<compile_context>
chip_gen: v5e
topology: v5e:2x2
jax: 0.10.0
libtpu: 0.0.40
codegen_flags: <defaults>
</compile_context>

<pallas_src>
import functools

import jax
import jax.numpy as jnp
from jax.experimental import pallas as pl
from jax.experimental.pallas import tpu as pltpu


# --------------------------------------------------------------------------- #
# Fused forward kernel
# --------------------------------------------------------------------------- #
def _layer_norm(v, g, b):
    mu = jnp.mean(v, axis=-1, keepdims=True)
    var = jnp.mean(jnp.square(v - mu), axis=-1, keepdims=True)
    return (v - mu) * jax.lax.rsqrt(var + 1e-5) * g + b


def _fused_forward_kernel(
    x_ref, wbd_ref, eye_s_ref, eye_f_ref, pos_tick_ref, pos_time_ref,
    t_wqkv_ref, t_wo_ref, t_w1_ref, t_b1_ref, t_w2_ref, t_lnp_ref,
    m_wqkv_ref, m_wo_ref, m_w1_ref, m_b1_ref, m_w2_ref, m_lnp_ref,
    o_ref, *, batch, depth, heads_t, dh_t, heads_m, dh_m,
):
    B = batch
    f32 = jnp.float32

    def bcast(w):  # add a leading batch dim so every contraction is a batched einsum
        return jnp.broadcast_to(w, (B,) + w.shape)

    def run_stack(h, wqkv_ref, wo_ref, w1_ref, b1_ref, w2_ref, lnp_ref, heads, dh):
        hd = heads * dh
        for l in range(depth):                      # trace-time unrolled (depth=4)
            wqkv = bcast(wqkv_ref[l])               # [B, D, 3*hd] (wq pre-scaled)
            wo = bcast(wo_ref[l])                   # [B, hd, D]
            w1 = bcast(w1_ref[l])                   # [B, D, Dff]
            w2 = bcast(w2_ref[l])                   # [B, Dff, D]
            b1 = b1_ref[l]                          # [1, Dff]
            lnp = lnp_ref[l]                        # [5, D]
            ln1g, ln1b = lnp[0:1, :], lnp[1:2, :]
            ln2g, ln2b = lnp[2:3, :], lnp[3:4, :]
            b2 = lnp[4:5, :]

            # ---- pre-LN multi-head softmax attention ----
            z = _layer_norm(h, ln1g, ln1b)
            qkv = jnp.einsum('bnd,bde->bne', z, wqkv, preferred_element_type=f32)
            q = qkv[:, :, 0:hd]
            k = qkv[:, :, hd:2 * hd]
            v = qkv[:, :, 2 * hd:3 * hd]
            heads_out = []
            for hh in range(heads):                 # small trace-time head loop
                lo = hh * dh
                qh = q[:, :, lo:lo + dh]
                kh = k[:, :, lo:lo + dh]
                vh = v[:, :, lo:lo + dh]
                s = jnp.einsum('bnd,bmd->bnm', qh, kh, preferred_element_type=f32)
                s = s - jnp.max(s, axis=-1, keepdims=True)
                p = jnp.exp(s)
                p = p * pl.reciprocal(jnp.sum(p, axis=-1, keepdims=True), approx=True)
                heads_out.append(
                    jnp.einsum('bnm,bmd->bnd', p, vh, preferred_element_type=f32))
            o_cat = jnp.concatenate(heads_out, axis=-1)          # [B, N, hd]
            h = h + jnp.einsum('bnh,bhd->bnd', o_cat, wo, preferred_element_type=f32)

            # ---- pre-LN GELU feed-forward (4x expansion) ----
            z2 = _layer_norm(h, ln2g, ln2b)
            ff = jnp.einsum('bnd,bdf->bnf', z2, w1, preferred_element_type=f32) + b1
            # TODO(synk): PyTorch nn.GELU defaults to exact erf; tanh approximation used.
            ff = jax.nn.gelu(ff, approximate=True)
            ff = jnp.einsum('bnf,bfd->bnd', ff, w2, preferred_element_type=f32) + b2
            h = h + ff
        return h

    x = x_ref[...]                                               # [B, S, NF*F]

    # 1) per-file linears fused as one block-diagonal batched matmul (bias
    #    folded into the ticker positional table at prep time)
    lin = jnp.einsum('bsc,bcn->bsn', x, bcast(wbd_ref[...]),
                     preferred_element_type=f32)                 # [B, S, NF]

    # 2) permute(0,2,1) -> ticker view, via identity matmul (trans-B form)
    tick = jnp.einsum('bnk,bsk->bns', bcast(eye_f_ref[...]), lin,
                      preferred_element_type=f32)                # [B, NF, S]
    tick = tick + pos_tick_ref[...]
    tick = run_stack(tick, t_wqkv_ref, t_wo_ref, t_w1_ref, t_b1_ref, t_w2_ref,
                     t_lnp_ref, heads_t, dh_t)

    # 3) permute back -> time view, positional embedding, time stack
    tm = jnp.einsum('bsk,bnk->bsn', bcast(eye_s_ref[...]), tick,
                    preferred_element_type=f32)                  # [B, S, NF]
    tm = tm + pos_time_ref[...]
    tm = run_stack(tm, m_wqkv_ref, m_wo_ref, m_w1_ref, m_b1_ref, m_w2_ref,
                   m_lnp_ref, heads_m, dh_m)

    # 4) mean over time, fused as epilogue
    o_ref[...] = jnp.mean(tm, axis=1)                            # [B, NF]


def cross_attention_transformer_forward(x, params, *, seq_len, n_files, depth=4):
    # TODO(synk): on v7x a core_parallel batch axis could engage the 2nd
    # TensorCore; at these launch-bound sizes a single fused invocation wins.
    B = x.shape[0]
    heads_t, dh_t = 5, seq_len // 2
    heads_m, dh_m = 124 // 31, n_files // 2
    kernel = functools.partial(
        _fused_forward_kernel, batch=B, depth=depth,
        heads_t=heads_t, dh_t=dh_t, heads_m=heads_m, dh_m=dh_m)

    t, m = params["ticker"], params["time"]
    args = (x, params["w_blockdiag"], params["eye_s"], params["eye_f"],
            params["pos_ticker"], params["pos_time"],
            t["wqkv"], t["wo"], t["w1"], t["b1"], t["w2"], t["lnp"],
            m["wqkv"], m["wo"], m["w1"], m["b1"], m["w2"], m["lnp"])

    vmem = pl.BlockSpec(memory_space=pltpu.MemorySpace.VMEM)
    return pl.pallas_call(
        kernel,
        out_shape=jax.ShapeDtypeStruct((B, n_files), jnp.float32),
        in_specs=[vmem] * len(args),
        out_specs=vmem,
    )(*args)


# --------------------------------------------------------------------------- #
# Parameter construction (deterministic) and packing
# --------------------------------------------------------------------------- #
def positional_encoding(max_len, d_model):
    position = jnp.arange(max_len, dtype=jnp.float32)[:, None]
    div_term = jnp.exp(jnp.arange(0, d_model, 2, dtype=jnp.float32)
                       * (-(jnp.log(10000.0) / d_model)))
    pe = jnp.zeros((max_len, d_model), jnp.float32)
    pe = pe.at[:, 0::2].set(jnp.sin(position * div_term))
    pe = pe.at[:, 1::2].set(jnp.cos(position * div_term))
    return pe


def _make_layer_params(key, dim, heads, dim_head, ff_mult=4):
    hd = heads * dim_head
    dff = dim * ff_mult
    ks = jax.random.split(key, 6)
    f32 = jnp.float32
    return dict(
        wq=(jax.random.normal(ks[0], (dim, hd)) * dim ** -0.5).astype(f32),
        wk=(jax.random.normal(ks[1], (dim, hd)) * dim ** -0.5).astype(f32),
        wv=(jax.random.normal(ks[2], (dim, hd)) * dim ** -0.5).astype(f32),
        wo=(jax.random.normal(ks[3], (hd, dim)) * hd ** -0.5).astype(f32),
        ln1_g=jnp.ones((1, dim), f32), ln1_b=jnp.zeros((1, dim), f32),
        w1=(jax.random.normal(ks[4], (dim, dff)) * dim ** -0.5).astype(f32),
        b1=jnp.zeros((1, dff), f32),
        w2=(jax.random.normal(ks[5], (dff, dim)) * dff ** -0.5).astype(f32),
        b2=jnp.zeros((1, dim), f32),
        ln2_g=jnp.ones((1, dim), f32), ln2_b=jnp.zeros((1, dim), f32),
    )


def _pack_stack(layer_keys, dim, heads, dim_head, ff_mult=4):
    layers = [_make_layer_params(k, dim, heads, dim_head, ff_mult) for k in layer_keys]
    scale = float(dim_head) ** -0.5          # fold softmax scale into wq
    wqkv = jnp.stack([jnp.concatenate([lp["wq"] * scale, lp["wk"], lp["wv"]], axis=1)
                      for lp in layers])                                   # [L, D, 3*hd]
    wo = jnp.stack([lp["wo"] for lp in layers])                            # [L, hd, D]
    w1 = jnp.stack([lp["w1"] for lp in layers])                            # [L, D, Dff]
    b1 = jnp.stack([lp["b1"] for lp in layers])                            # [L, 1, Dff]
    w2 = jnp.stack([lp["w2"] for lp in layers])                            # [L, Dff, D]
    lnp = jnp.stack([jnp.concatenate(
        [lp["ln1_g"], lp["ln1_b"], lp["ln2_g"], lp["ln2_b"], lp["b2"]], axis=0)
        for lp in layers])                                                 # [L, 5, D]
    return dict(wqkv=wqkv, wo=wo, w1=w1, b1=b1, w2=w2, lnp=lnp)


def make_params(key, *, seq_len, n_files, len_feature_columns, depth=4):
    kw, kb, kt, km = jax.random.split(key, 4)
    F = len_feature_columns
    # per-file Linear(F -> 1) weights packed block-diagonally: [n_files*F, n_files]
    ws = (jax.random.normal(kw, (n_files, F)) * F ** -0.5).astype(jnp.float32)
    w_bd = jnp.zeros((n_files * F, n_files), jnp.float32)
    for i in range(n_files):
        w_bd = w_bd.at[i * F:(i + 1) * F, i].set(ws[i])
    lin_bias = (jax.random.normal(kb, (n_files,)) * 0.1).astype(jnp.float32)

    # PositionalEmbedding(n_files, seq_len) / (seq_len, n_files); fold the
    # per-file linear bias into the ticker table (it is constant over time).
    pos_ticker = positional_encoding(n_files, seq_len) + lin_bias[:, None]  # [NF, S]
    pos_time = positional_encoding(seq_len, n_files)                        # [S, NF]

    return dict(
        w_blockdiag=w_bd,
        eye_s=jnp.eye(seq_len, dtype=jnp.float32),
        eye_f=jnp.eye(n_files, dtype=jnp.float32),
        pos_ticker=pos_ticker,
        pos_time=pos_time,
        ticker=_pack_stack(jax.random.split(kt, depth), seq_len, 5, seq_len // 2),
        time=_pack_stack(jax.random.split(km, depth), n_files, 124 // 31, n_files // 2),
    )


# --------------------------------------------------------------------------- #
if __name__ == "__main__":
    B = 2
    seq_len = 8
    n_files = 4
    len_feature_columns = 4

    key = jax.random.PRNGKey(0)
    kx, kp = jax.random.split(key)
    x = jax.random.normal(
        kx, (B, seq_len, n_files * len_feature_columns)).astype(jnp.float32)

    params = make_params(kp, seq_len=seq_len, n_files=n_files,
                         len_feature_columns=len_feature_columns)

    out = cross_attention_transformer_forward(
        x, params, seq_len=seq_len, n_files=n_files)
    jax.block_until_ready(out)
    assert out.shape == (B, n_files) and out.dtype == jnp.float32
    print("KERNEL_OK")
</pallas_src>

<mosaic_0001>
module attributes {stable_mosaic.version = 11 : i64} {
  func.func @_fused_forward_kernel(%arg0: memref<2x8x16xf32, #tpu.memory_space<vmem>>, %arg1: memref<16x4xf32, #tpu.memory_space<vmem>>, %arg2: memref<8x8xf32, #tpu.memory_space<vmem>>, %arg3: memref<4x4xf32, #tpu.memory_space<vmem>>, %arg4: memref<4x8xf32, #tpu.memory_space<vmem>>, %arg5: memref<8x4xf32, #tpu.memory_space<vmem>>, %arg6: memref<4x8x60xf32, #tpu.memory_space<vmem>>, %arg7: memref<4x20x8xf32, #tpu.memory_space<vmem>>, %arg8: memref<4x8x32xf32, #tpu.memory_space<vmem>>, %arg9: memref<4x1x32xf32, #tpu.memory_space<vmem>>, %arg10: memref<4x32x8xf32, #tpu.memory_space<vmem>>, %arg11: memref<4x5x8xf32, #tpu.memory_space<vmem>>, %arg12: memref<4x4x24xf32, #tpu.memory_space<vmem>>, %arg13: memref<4x8x4xf32, #tpu.memory_space<vmem>>, %arg14: memref<4x4x16xf32, #tpu.memory_space<vmem>>, %arg15: memref<4x1x16xf32, #tpu.memory_space<vmem>>, %arg16: memref<4x16x4xf32, #tpu.memory_space<vmem>>, %arg17: memref<4x5x4xf32, #tpu.memory_space<vmem>>, %arg18: memref<2x4xf32, #tpu.memory_space<vmem>>) attributes {dimension_semantics = [], scalar_prefetch = 0 : i64, scratch_operands = 0 : i64, tpu.core_type = #tpu.core_type<tc>} {
    %c0 = arith.constant 0 : index
    %c0_0 = arith.constant 0 : index
    %c0_1 = arith.constant 0 : index
    %0 = vector.load %arg0[%c0, %c0_0, %c0_1] : memref<2x8x16xf32, #tpu.memory_space<vmem>>, vector<2x8x16xf32>
    %c0_2 = arith.constant 0 : index
    %c0_3 = arith.constant 0 : index
    %1 = vector.load %arg1[%c0_2, %c0_3] : memref<16x4xf32, #tpu.memory_space<vmem>>, vector<16x4xf32>
    %2 = vector.shape_cast %1 : vector<16x4xf32> to vector<1x16x4xf32>
    %3 = vector.broadcast %2 : vector<1x16x4xf32> to vector<2x16x4xf32>
    "tpu.trace_start"() <{level = 10 : i32, message = "bsc,bcn->bsn"}> : () -> ()
    %cst = arith.constant dense<0.000000e+00> : vector<2x8x4xf32>
    %4 = tpu.matmul %0, %3, %cst {dimension_numbers = #tpu.dot_dimension_numbers<[2], [1], [1], [2], [0, 0, 0, 1, 1, 2], [0], [0]>} : vector<2x8x16xf32>, vector<2x16x4xf32>, vector<2x8x4xf32> -> vector<2x8x4xf32>
    "tpu.trace_stop"() : () -> ()
    %c0_4 = arith.constant 0 : index
    %c0_5 = arith.constant 0 : index
    %5 = vector.load %arg3[%c0_4, %c0_5] : memref<4x4xf32, #tpu.memory_space<vmem>>, vector<4x4xf32>
    %6 = vector.shape_cast %5 : vector<4x4xf32> to vector<1x4x4xf32>
    %7 = vector.broadcast %6 : vector<1x4x4xf32> to vector<2x4x4xf32>
    "tpu.trace_start"() <{level = 10 : i32, message = "bnk,bsk->bns"}> : () -> ()
    %cst_6 = arith.constant dense<0.000000e+00> : vector<2x4x8xf32>
    %8 = tpu.matmul %7, %4, %cst_6 {dimension_numbers = #tpu.dot_dimension_numbers<[2], [2], [1], [1], [0, 0, 0, 1, 1, 1], [0], [0]>} : vector<2x4x4xf32>, vector<2x8x4xf32>, vector<2x4x8xf32> -> vector<2x4x8xf32>
    "tpu.trace_stop"() : () -> ()
    %c0_7 = arith.constant 0 : index
    %c0_8 = arith.constant 0 : index
    %9 = vector.load %arg4[%c0_7, %c0_8] : memref<4x8xf32, #tpu.memory_space<vmem>>, vector<4x8xf32>
    %10 = vector.shape_cast %9 : vector<4x8xf32> to vector<1x4x8xf32>
    %11 = vector.broadcast %10 : vector<1x4x8xf32> to vector<2x4x8xf32>
    %12 = arith.addf %8, %11 : vector<2x4x8xf32>
    %c0_9 = arith.constant 0 : index
    %c0_10 = arith.constant 0 : index
    %c0_11 = arith.constant 0 : index
    %13 = vector.load %arg6[%c0_9, %c0_10, %c0_11] : memref<4x8x60xf32, #tpu.memory_space<vmem>>, vector<1x8x60xf32>
    %14 = vector.shape_cast %13 : vector<1x8x60xf32> to vector<8x60xf32>
    %15 = vector.shape_cast %14 : vector<8x60xf32> to vector<1x8x60xf32>
    %16 = vector.broadcast %15 : vector<1x8x60xf32> to vector<2x8x60xf32>
    %c0_12 = arith.constant 0 : index
    %c0_13 = arith.constant 0 : index
    %c0_14 = arith.constant 0 : index
    %17 = vector.load %arg7[%c0_12, %c0_13, %c0_14] : memref<4x20x8xf32, #tpu.memory_space<vmem>>, vector<1x20x8xf32>
    %18 = vector.shape_cast %17 : vector<1x20x8xf32> to vector<20x8xf32>
    %19 = vector.shape_cast %18 : vector<20x8xf32> to vector<1x20x8xf32>
    %20 = vector.broadcast %19 : vector<1x20x8xf32> to vector<2x20x8xf32>
    %c0_15 = arith.constant 0 : index
    %c0_16 = arith.constant 0 : index
    %c0_17 = arith.constant 0 : index
    %21 = vector.load %arg8[%c0_15, %c0_16, %c0_17] : memref<4x8x32xf32, #tpu.memory_space<vmem>>, vector<1x8x32xf32>
    %22 = vector.shape_cast %21 : vector<1x8x32xf32> to vector<8x32xf32>
    %23 = vector.shape_cast %22 : vector<8x32xf32> to vector<1x8x32xf32>
    %24 = vector.broadcast %23 : vector<1x8x32xf32> to vector<2x8x32xf32>
    %c0_18 = arith.constant 0 : index
    %c0_19 = arith.constant 0 : index
    %c0_20 = arith.constant 0 : index
    %25 = vector.load %arg10[%c0_18, %c0_19, %c0_20] : memref<4x32x8xf32, #tpu.memory_space<vmem>>, vector<1x32x8xf32>
    %26 = vector.shape_cast %25 : vector<1x32x8xf32> to vector<32x8xf32>
    %27 = vector.shape_cast %26 : vector<32x8xf32> to vector<1x32x8xf32>
    %28 = vector.broadcast %27 : vector<1x32x8xf32> to vector<2x32x8xf32>
    %c0_21 = arith.constant 0 : index
    %c0_22 = arith.constant 0 : index
    %c0_23 = arith.constant 0 : index
    %29 = vector.load %arg9[%c0_21, %c0_22, %c0_23] : memref<4x1x32xf32, #tpu.memory_space<vmem>>, vector<1x1x32xf32>
    %30 = vector.shape_cast %29 : vector<1x1x32xf32> to vector<1x32xf32>
    %c0_24 = arith.constant 0 : index
    %c0_25 = arith.constant 0 : index
    %c0_26 = arith.constant 0 : index
    %31 = vector.load %arg11[%c0_24, %c0_25, %c0_26] : memref<4x5x8xf32, #tpu.memory_space<vmem>>, vector<1x5x8xf32>
    %32 = vector.shape_cast %31 : vector<1x5x8xf32> to vector<5x8xf32>
    %33 = vector.extract_strided_slice %32 {offsets = [0, 0], sizes = [1, 8], strides = [1, 1]} : vector<5x8xf32> to vector<1x8xf32>
    %34 = vector.extract_strided_slice %32 {offsets = [1, 0], sizes = [1, 8], strides = [1, 1]} : vector<5x8xf32> to vector<1x8xf32>
    %35 = vector.extract_strided_slice %32 {offsets = [2, 0], sizes = [1, 8], strides = [1, 1]} : vector<5x8xf32> to vector<1x8xf32>
    %36 = vector.extract_strided_slice %32 {offsets = [3, 0], sizes = [1, 8], strides = [1, 1]} : vector<5x8xf32> to vector<1x8xf32>
    %37 = vector.extract_strided_slice %32 {offsets = [4, 0], sizes = [1, 8], strides = [1, 1]} : vector<5x8xf32> to vector<1x8xf32>
    %cst_27 = arith.constant dense<0.000000e+00> : vector<2x4xf32>
    %38 = vector.multi_reduction <add>, %12, %cst_27 [2] : vector<2x4x8xf32> to vector<2x4xf32>
    %39 = vector.shape_cast %38 : vector<2x4xf32> to vector<2x4x1xf32>
    %cst_28 = arith.constant 8.000000e+00 : f32
    %40 = vector.broadcast %cst_28 : f32 to vector<2x4x1xf32>
    %41 = arith.divf %39, %40 : vector<2x4x1xf32>
    %42 = vector.broadcast %41 : vector<2x4x1xf32> to vector<2x4x8xf32>
    %43 = arith.subf %12, %42 : vector<2x4x8xf32>
    %44 = arith.mulf %43, %43 : vector<2x4x8xf32>
    %cst_29 = arith.constant dense<0.000000e+00> : vector<2x4xf32>
    %45 = vector.multi_reduction <add>, %44, %cst_29 [2] : vector<2x4x8xf32> to vector<2x4xf32>
    %46 = vector.shape_cast %45 : vector<2x4xf32> to vector<2x4x1xf32>
    %cst_30 = arith.constant 8.000000e+00 : f32
    %47 = vector.broadcast %cst_30 : f32 to vector<2x4x1xf32>
    %48 = arith.divf %46, %47 : vector<2x4x1xf32>
    %49 = vector.broadcast %41 : vector<2x4x1xf32> to vector<2x4x8xf32>
    %50 = arith.subf %12, %49 : vector<2x4x8xf32>
    %cst_31 = arith.constant 9.99999974E-6 : f32
    %51 = vector.broadcast %cst_31 : f32 to vector<2x4x1xf32>
    %52 = arith.addf %48, %51 : vector<2x4x1xf32>
    %53 = math.rsqrt %52 : vector<2x4x1xf32>
    %54 = vector.broadcast %53 : vector<2x4x1xf32> to vector<2x4x8xf32>
    %55 = arith.mulf %50, %54 : vector<2x4x8xf32>
    %56 = vector.shape_cast %33 : vector<1x8xf32> to vector<1x1x8xf32>
    %57 = vector.broadcast %56 : vector<1x1x8xf32> to vector<2x4x8xf32>
    %58 = arith.mulf %55, %57 : vector<2x4x8xf32>
    %59 = vector.shape_cast %34 : vector<1x8xf32> to vector<1x1x8xf32>
    %60 = vector.broadcast %59 : vector<1x1x8xf32> to vector<2x4x8xf32>
    %61 = arith.addf %58, %60 : vector<2x4x8xf32>
    "tpu.trace_start"() <{level = 10 : i32, message = "bnd,bde->bne"}> : () -> ()
    %cst_32 = arith.constant dense<0.000000e+00> : vector<2x4x60xf32>
    %62 = tpu.matmul %61, %16, %cst_32 {dimension_numbers = #tpu.dot_dimension_numbers<[2], [1], [1], [2], [0, 0, 0, 1, 1, 2], [0], [0]>} : vector<2x4x8xf32>, vector<2x8x60xf32>, vector<2x4x60xf32> -> vector<2x4x60xf32>
    "tpu.trace_stop"() : () -> ()
    %63 = vector.extract_strided_slice %62 {offsets = [0, 0, 0], sizes = [2, 4, 20], strides = [1, 1, 1]} : vector<2x4x60xf32> to vector<2x4x20xf32>
    %64 = vector.extract_strided_slice %62 {offsets = [0, 0, 20], sizes = [2, 4, 20], strides = [1, 1, 1]} : vector<2x4x60xf32> to vector<2x4x20xf32>
    %65 = vector.extract_strided_slice %62 {offsets = [0, 0, 40], sizes = [2, 4, 20], strides = [1, 1, 1]} : vector<2x4x60xf32> to vector<2x4x20xf32>
    %66 = vector.extract_strided_slice %63 {offsets = [0, 0, 0], sizes = [2, 4, 4], strides = [1, 1, 1]} : vector<2x4x20xf32> to vector<2x4x4xf32>
    %67 = vector.extract_strided_slice %64 {offsets = [0, 0, 0], sizes = [2, 4, 4], strides = [1, 1, 1]} : vector<2x4x20xf32> to vector<2x4x4xf32>
    %68 = vector.extract_strided_slice %65 {offsets = [0, 0, 0], sizes = [2, 4, 4], strides = [1, 1, 1]} : vector<2x4x20xf32> to vector<2x4x4xf32>
    "tpu.trace_start"() <{level = 10 : i32, message = "bnd,bmd->bnm"}> : () -> ()
    %cst_33 = arith.constant dense<0.000000e+00> : vector<2x4x4xf32>
    %69 = tpu.matmul %66, %67, %cst_33 {dimension_numbers = #tpu.dot_dimension_numbers<[2], [2], [1], [1], [0, 0, 0, 1, 1, 1], [0], [0]>} : vector<2x4x4xf32>, vector<2x4x4xf32>, vector<2x4x4xf32> -> vector<2x4x4xf32>
    "tpu.trace_stop"() : () -> ()
    %cst_34 = arith.constant dense<0xFF800000> : vector<2x4xf32>
    %70 = vector.multi_reduction <maximumf>, %69, %cst_34 [2] : vector<2x4x4xf32> to vector<2x4xf32>
    %71 = vector.shape_cast %70 : vector<2x4xf32> to vector<2x4x1xf32>
    %72 = vector.broadcast %71 : vector<2x4x1xf32> to vector<2x4x4xf32>
    %73 = arith.subf %69, %72 : vector<2x4x4xf32>
    %74 = math.exp %73 : vector<2x4x4xf32>
    %cst_35 = arith.constant dense<0.000000e+00> : vector<2x4xf32>
    %75 = vector.multi_reduction <add>, %74, %cst_35 [2] : vector<2x4x4xf32> to vector<2x4xf32>
    %76 = vector.shape_cast %75 : vector<2x4xf32> to vector<2x4x1xf32>
    %77 = tpu.reciprocal %76 {approx = true} : vector<2x4x1xf32> -> vector<2x4x1xf32>
    %78 = vector.broadcast %77 : vector<2x4x1xf32> to vector<2x4x4xf32>
    %79 = arith.mulf %74, %78 : vector<2x4x4xf32>
    "tpu.trace_start"() <{level = 10 : i32, message = "bnm,bmd->bnd"}> : () -> ()
    %cst_36 = arith.constant dense<0.000000e+00> : vector<2x4x4xf32>
    %80 = tpu.matmul %79, %68, %cst_36 {dimension_numbers = #tpu.dot_dimension_numbers<[2], [1], [1], [2], [0, 0, 0, 1, 1, 2], [0], [0]>} : vector<2x4x4xf32>, vector<2x4x4xf32>, vector<2x4x4xf32> -> vector<2x4x4xf32>
    "tpu.trace_stop"() : () -> ()
    %81 = vector.extract_strided_slice %63 {offsets = [0, 0, 4], sizes = [2, 4, 4], strides = [1, 1, 1]} : vector<2x4x20xf32> to vector<2x4x4xf32>
    %82 = vector.extract_strided_slice %64 {offsets = [0, 0, 4], sizes = [2, 4, 4], strides = [1, 1, 1]} : vector<2x4x20xf32> to vector<2x4x4xf32>
    %83 = vector.extract_strided_slice %65 {offsets = [0, 0, 4], sizes = [2, 4, 4], strides = [1, 1, 1]} : vector<2x4x20xf32> to vector<2x4x4xf32>
    "tpu.trace_start"() <{level = 10 : i32, message = "bnd,bmd->bnm"}> : () -> ()
    %cst_37 = arith.constant dense<0.000000e+00> : vector<2x4x4xf32>
    %84 = tpu.matmul %81, %82, %cst_37 {dimension_numbers = #tpu.dot_dimension_numbers<[2], [2], [1], [1], [0, 0, 0, 1, 1, 1], [0], [0]>} : vector<2x4x4xf32>, vector<2x4x4xf32>, vector<2x4x4xf32> -> vector<2x4x4xf32>
    "tpu.trace_stop"() : () -> ()
    %cst_38 = arith.constant dense<0xFF800000> : vector<2x4xf32>
    %85 = vector.multi_reduction <maximumf>, %84, %cst_38 [2] : vector<2x4x4xf32> to vector<2x4xf32>
    %86 = vector.shape_cast %85 : vector<2x4xf32> to vector<2x4x1xf32>
    %87 = vector.broadcast %86 : vector<2x4x1xf32> to vector<2x4x4xf32>
    %88 = arith.subf %84, %87 : vector<2x4x4xf32>
    %89 = math.exp %88 : vector<2x4x4xf32>
    %cst_39 = arith.constant dense<0.000000e+00> : vector<2x4xf32>
    %90 = vector.multi_reduction <add>, %89, %cst_39 [2] : vector<2x4x4xf32> to vector<2x4xf32>
    %91 = vector.shape_cast %90 : vector<2x4xf32> to vector<2x4x1xf32>
    %92 = tpu.reciprocal %91 {approx = true} : vector<2x4x1xf32> -> vector<2x4x1xf32>
    %93 = vector.broadcast %92 : vector<2x4x1xf32> to vector<2x4x4xf32>
    %94 = arith.mulf %89, %93 : vector<2x4x4xf32>
    "tpu.trace_start"() <{level = 10 : i32, message = "bnm,bmd->bnd"}> : () -> ()
    %cst_40 = arith.constant dense<0.000000e+00> : vector<2x4x4xf32>
    %95 = tpu.matmul %94, %83, %cst_40 {dimension_numbers = #tpu.dot_dimension_numbers<[2], [1], [1], [2], [0, 0, 0, 1, 1, 2], [0], [0]>} : vector<2x4x4xf32>, vector<2x4x4xf32>, vector<2x4x4xf32> -> vector<2x4x4xf32>
    "tpu.trace_stop"() : () -> ()
    %96 = vector.extract_strided_slice %63 {offsets = [0, 0, 8], sizes = [2, 4, 4], strides = [1, 1, 1]} : vector<2x4x20xf32> to vector<2x4x4xf32>
    %97 = vector.extract_strided_slice %64 {offsets = [0, 0, 8], sizes = [2, 4, 4], strides = [1, 1, 1]} : vector<2x4x20xf32> to vector<2x4x4xf32>
    %98 = vector.extract_strided_slice %65 {offsets = [0, 0, 8], sizes = [2, 4, 4], strides = [1, 1, 1]} : vector<2x4x20xf32> to vector<2x4x4xf32>
    "tpu.trace_start"() <{level = 10 : i32, message = "bnd,bmd->bnm"}> : () -> ()
    %cst_41 = arith.constant dense<0.000000e+00> : vector<2x4x4xf32>
    %99 = tpu.matmul %96, %97, %cst_41 {dimension_numbers = #tpu.dot_dimension_numbers<[2], [2], [1], [1], [0, 0, 0, 1, 1, 1], [0], [0]>} : vector<2x4x4xf32>, vector<2x4x4xf32>, vector<2x4x4xf32> -> vector<2x4x4xf32>
    "tpu.trace_stop"() : () -> ()
    %cst_42 = arith.constant dense<0xFF800000> : vector<2x4xf32>
    %100 = vector.multi_reduction <maximumf>, %99, %cst_42 [2] : vector<2x4x4xf32> to vector<2x4xf32>
    %101 = vector.shape_cast %100 : vector<2x4xf32> to vector<2x4x1xf32>
    %102 = vector.broadcast %101 : vector<2x4x1xf32> to vector<2x4x4xf32>
    %103 = arith.subf %99, %102 : vector<2x4x4xf32>
    %104 = math.exp %103 : vector<2x4x4xf32>
    %cst_43 = arith.constant dense<0.000000e+00> : vector<2x4xf32>
    %105 = vector.multi_reduction <add>, %104, %cst_43 [2] : vector<2x4x4xf32> to vector<2x4xf32>
    %106 = vector.shape_cast %105 : vector<2x4xf32> to vector<2x4x1xf32>
    %107 = tpu.reciprocal %106 {approx = true} : vector<2x4x1xf32> -> vector<2x4x1xf32>
    %108 = vector.broadcast %107 : vector<2x4x1xf32> to vector<2x4x4xf32>
    %109 = arith.mulf %104, %108 : vector<2x4x4xf32>
    "tpu.trace_start"() <{level = 10 : i32, message = "bnm,bmd->bnd"}> : () -> ()
    %cst_44 = arith.constant dense<0.000000e+00> : vector<2x4x4xf32>
    %110 = tpu.matmul %109, %98, %cst_44 {dimension_numbers = #tpu.dot_dimension_numbers<[2], [1], [1], [2], [0, 0, 0, 1, 1, 2], [0], [0]>} : vector<2x4x4xf32>, vector<2x4x4xf32>, vector<2x4x4xf32> -> vector<2x4x4xf32>
    "tpu.trace_stop"() : () -> ()
    %111 = vector.extract_strided_slice %63 {offsets = [0, 0, 12], sizes = [2, 4, 4], strides = [1, 1, 1]} : vector<2x4x20xf32> to vector<2x4x4xf32>
    %112 = vector.extract_strided_slice %64 {offsets = [0, 0, 12], sizes = [2, 4, 4], strides = [1, 1, 1]} : vector<2x4x20xf32> to vector<2x4x4xf32>
    %113 = vector.extract_strided_slice %65 {offsets = [0, 0, 12], sizes = [2, 4, 4], strides = [1, 1, 1]} : vector<2x4x20xf32> to vector<2x4x4xf32>
    "tpu.trace_start"() <{level = 10 : i32, message = "bnd,bmd->bnm"}> : () -> ()
    %cst_45 = arith.constant dense<0.000000e+00> : vector<2x4x4xf32>
    %114 = tpu.matmul %111, %112, %cst_45 {dimension_numbers = #tpu.dot_dimension_numbers<[2], [2], [1], [1], [0, 0, 0, 1, 1, 1], [0], [0]>} : vector<2x4x4xf32>, vector<2x4x4xf32>, vector<2x4x4xf32> -> vector<2x4x4xf32>
    "tpu.trace_stop"() : () -> ()
    %cst_46 = arith.constant dense<0xFF800000> : vector<2x4xf32>
    %115 = vector.multi_reduction <maximumf>, %114, %cst_46 [2] : vector<2x4x4xf32> to vector<2x4xf32>
    %116 = vector.shape_cast %115 : vector<2x4xf32> to vector<2x4x1xf32>
    %117 = vector.broadcast %116 : vector<2x4x1xf32> to vector<2x4x4xf32>
    %118 = arith.subf %114, %117 : vector<2x4x4xf32>
    %119 = math.exp %118 : vector<2x4x4xf32>
    %cst_47 = arith.constant dense<0.000000e+00> : vector<2x4xf32>
    %120 = vector.multi_reduction <add>, %119, %cst_47 [2] : vector<2x4x4xf32> to vector<2x4xf32>
    %121 = vector.shape_cast %120 : vector<2x4xf32> to vector<2x4x1xf32>
    %122 = tpu.reciprocal %121 {approx = true} : vector<2x4x1xf32> -> vector<2x4x1xf32>
    %123 = vector.broadcast %122 : vector<2x4x1xf32> to vector<2x4x4xf32>
    %124 = arith.mulf %119, %123 : vector<2x4x4xf32>
    "tpu.trace_start"() <{level = 10 : i32, message = "bnm,bmd->bnd"}> : () -> ()
    %cst_48 = arith.constant dense<0.000000e+00> : vector<2x4x4xf32>
    %125 = tpu.matmul %124, %113, %cst_48 {dimension_numbers = #tpu.dot_dimension_numbers<[2], [1], [1], [2], [0, 0, 0, 1, 1, 2], [0], [0]>} : vector<2x4x4xf32>, vector<2x4x4xf32>, vector<2x4x4xf32> -> vector<2x4x4xf32>
    "tpu.trace_stop"() : () -> ()
    %126 = vector.extract_strided_slice %63 {offsets = [0, 0, 16], sizes = [2, 4, 4], strides = [1, 1, 1]} : vector<2x4x20xf32> to vector<2x4x4xf32>
    %127 = vector.extract_strided_slice %64 {offsets = [0, 0, 16], sizes = [2, 4, 4], strides = [1, 1, 1]} : vector<2x4x20xf32> to vector<2x4x4xf32>
    %128 = vector.extract_strided_slice %65 {offsets = [0, 0, 16], sizes = [2, 4, 4], strides = [1, 1, 1]} : vector<2x4x20xf32> to vector<2x4x4xf32>
    "tpu.trace_start"() <{level = 10 : i32, message = "bnd,bmd->bnm"}> : () -> ()
    %cst_49 = arith.constant dense<0.000000e+00> : vector<2x4x4xf32>
    %129 = tpu.matmul %126, %127, %cst_49 {dimension_numbers = #tpu.dot_dimension_numbers<[2], [2], [1], [1], [0, 0, 0, 1, 1, 1], [0], [0]>} : vector<2x4x4xf32>, vector<2x4x4xf32>, vector<2x4x4xf32> -> vector<2x4x4xf32>
    "tpu.trace_stop"() : () -> ()
    %cst_50 = arith.constant dense<0xFF800000> : vector<2x4xf32>
    %130 = vector.multi_reduction <maximumf>, %129, %cst_50 [2] : vector<2x4x4xf32> to vector<2x4xf32>
    %131 = vector.shape_cast %130 : vector<2x4xf32> to vector<2x4x1xf32>
    %132 = vector.broadcast %131 : vector<2x4x1xf32> to vector<2x4x4xf32>
    %133 = arith.subf %129, %132 : vector<2x4x4xf32>
    %134 = math.exp %133 : vector<2x4x4xf32>
    %cst_51 = arith.constant dense<0.000000e+00> : vector<2x4xf32>
    %135 = vector.multi_reduction <add>, %134, %cst_51 [2] : vector<2x4x4xf32> to vector<2x4xf32>
    %136 = vector.shape_cast %135 : vector<2x4xf32> to vector<2x4x1xf32>
    %137 = tpu.reciprocal %136 {approx = true} : vector<2x4x1xf32> -> vector<2x4x1xf32>
    %138 = vector.broadcast %137 : vector<2x4x1xf32> to vector<2x4x4xf32>
    %139 = arith.mulf %134, %138 : vector<2x4x4xf32>
    "tpu.trace_start"() <{level = 10 : i32, message = "bnm,bmd->bnd"}> : () -> ()
    %cst_52 = arith.constant dense<0.000000e+00> : vector<2x4x4xf32>
    %140 = tpu.matmul %139, %128, %cst_52 {dimension_numbers = #tpu.dot_dimension_numbers<[2], [1], [1], [2], [0, 0, 0, 1, 1, 2], [0], [0]>} : vector<2x4x4xf32>, vector<2x4x4xf32>, vector<2x4x4xf32> -> vector<2x4x4xf32>
    "tpu.trace_stop"() : () -> ()
    %141 = tpu.concatenate %80, %95, %110, %125, %140 in 2 : vector<2x4x4xf32>, vector<2x4x4xf32>, vector<2x4x4xf32>, vector<2x4x4xf32>, vector<2x4x4xf32> -> vector<2x4x20xf32>
    "tpu.trace_start"() <{level = 10 : i32, message = "bnh,bhd->bnd"}> : () -> ()
    %cst_53 = arith.constant dense<0.000000e+00> : vector<2x4x8xf32>
    %142 = tpu.matmul %141, %20, %cst_53 {dimension_numbers = #tpu.dot_dimension_numbers<[2], [1], [1], [2], [0, 0, 0, 1, 1, 2], [0], [0]>} : vector<2x4x20xf32>, vector<2x20x8xf32>, vector<2x4x8xf32> -> vector<2x4x8xf32>
    "tpu.trace_stop"() : () -> ()
    %143 = arith.addf %12, %142 : vector<2x4x8xf32>
    %cst_54 = arith.constant dense<0.000000e+00> : vector<2x4xf32>
    %144 = vector.multi_reduction <add>, %143, %cst_54 [2] : vector<2x4x8xf32> to vector<2x4xf32>
    %145 = vector.shape_cast %144 : vector<2x4xf32> to vector<2x4x1xf32>
    %cst_55 = arith.constant 8.000000e+00 : f32
    %146 = vector.broadcast %cst_55 : f32 to vector<2x4x1xf32>
    %147 = arith.divf %145, %146 : vector<2x4x1xf32>
    %148 = vector.broadcast %147 : vector<2x4x1xf32> to vector<2x4x8xf32>
    %149 = arith.subf %143, %148 : vector<2x4x8xf32>
    %150 = arith.mulf %149, %149 : vector<2x4x8xf32>
    %cst_56 = arith.constant dense<0.000000e+00> : vector<2x4xf32>
    %151 = vector.multi_reduction <add>, %150, %cst_56 [2] : vector<2x4x8xf32> to vector<2x4xf32>
    %152 = vector.shape_cast %151 : vector<2x4xf32> to vector<2x4x1xf32>
    %cst_57 = arith.constant 8.000000e+00 : f32
    %153 = vector.broadcast %cst_57 : f32 to vector<2x4x1xf32>
    %154 = arith.divf %152, %153 : vector<2x4x1xf32>
    %155 = vector.broadcast %147 : vector<2x4x1xf32> to vector<2x4x8xf32>
    %156 = arith.subf %143, %155 : vector<2x4x8xf32>
    %cst_58 = arith.constant 9.99999974E-6 : f32
    %157 = vector.broadcast %cst_58 : f32 to vector<2x4x1xf32>
    %158 = arith.addf %154, %157 : vector<2x4x1xf32>
    %159 = math.rsqrt %158 : vector<2x4x1xf32>
    %160 = vector.broadcast %159 : vector<2x4x1xf32> to vector<2x4x8xf32>
    %161 = arith.mulf %156, %160 : vector<2x4x8xf32>
    %162 = vector.shape_cast %35 : vector<1x8xf32> to vector<1x1x8xf32>
    %163 = vector.broadcast %162 : vector<1x1x8xf32> to vector<2x4x8xf32>
    %164 = arith.mulf %161, %163 : vector<2x4x8xf32>
    %165 = vector.shape_cast %36 : vector<1x8xf32> to vector<1x1x8xf32>
    %166 = vector.broadcast %165 : vector<1x1x8xf32> to vector<2x4x8xf32>
    %167 = arith.addf %164, %166 : vector<2x4x8xf32>
    "tpu.trace_start"() <{level = 10 : i32, message = "bnd,bdf->bnf"}> : () -> ()
    %cst_59 = arith.constant dense<0.000000e+00> : vector<2x4x32xf32>
    %168 = tpu.matmul %167, %24, %cst_59 {dimension_numbers = #tpu.dot_dimension_numbers<[2], [1], [1], [2], [0, 0, 0, 1, 1, 2], [0], [0]>} : vector<2x4x8xf32>, vector<2x8x32xf32>, vector<2x4x32xf32> -> vector<2x4x32xf32>
    "tpu.trace_stop"() : () -> ()
    %169 = vector.shape_cast %30 : vector<1x32xf32> to vector<1x1x32xf32>
    %170 = vector.broadcast %169 : vector<1x1x32xf32> to vector<2x4x32xf32>
    %171 = arith.addf %168, %170 : vector<2x4x32xf32>
    %172 = arith.mulf %171, %171 : vector<2x4x32xf32>
    %173 = arith.mulf %171, %172 : vector<2x4x32xf32>
    %cst_60 = arith.constant 4.471500e-02 : f32
    %174 = vector.broadcast %cst_60 : f32 to vector<2x4x32xf32>
    %175 = arith.mulf %174, %173 : vector<2x4x32xf32>
    %176 = arith.addf %171, %175 : vector<2x4x32xf32>
    %cst_61 = arith.constant 0.797884583 : f32
    %177 = vector.broadcast %cst_61 : f32 to vector<2x4x32xf32>
    %178 = arith.mulf %177, %176 : vector<2x4x32xf32>
    %179 = math.tanh %178 : vector<2x4x32xf32>
    %cst_62 = arith.constant 1.000000e+00 : f32
    %180 = vector.broadcast %cst_62 : f32 to vector<2x4x32xf32>
    %181 = arith.addf %180, %179 : vector<2x4x32xf32>
    %cst_63 = arith.constant 5.000000e-01 : f32
    %182 = vector.broadcast %cst_63 : f32 to vector<2x4x32xf32>
    %183 = arith.mulf %182, %181 : vector<2x4x32xf32>
    %184 = arith.mulf %171, %183 : vector<2x4x32xf32>
    "tpu.trace_start"() <{level = 10 : i32, message = "bnf,bfd->bnd"}> : () -> ()
    %cst_64 = arith.constant dense<0.000000e+00> : vector<2x4x8xf32>
    %185 = tpu.matmul %184, %28, %cst_64 {dimension_numbers = #tpu.dot_dimension_numbers<[2], [1], [1], [2], [0, 0, 0, 1, 1, 2], [0], [0]>} : vector<2x4x32xf32>, vector<2x32x8xf32>, vector<2x4x8xf32> -> vector<2x4x8xf32>
    "tpu.trace_stop"() : () -> ()
    %186 = vector.shape_cast %37 : vector<1x8xf32> to vector<1x1x8xf32>
    %187 = vector.broadcast %186 : vector<1x1x8xf32> to vector<2x4x8xf32>
    %188 = arith.addf %185, %187 : vector<2x4x8xf32>
    %189 = arith.addf %143, %188 : vector<2x4x8xf32>
    %c1 = arith.constant 1 : index
    %c0_65 = arith.constant 0 : index
    %c0_66 = arith.constant 0 : index
    %190 = vector.load %arg6[%c1, %c0_65, %c0_66] : memref<4x8x60xf32, #tpu.memory_space<vmem>>, vector<1x8x60xf32>
    %191 = vector.shape_cast %190 : vector<1x8x60xf32> to vector<8x60xf32>
    %192 = vector.shape_cast %191 : vector<8x60xf32> to vector<1x8x60xf32>
    %193 = vector.broadcast %192 : vector<1x8x60xf32> to vector<2x8x60xf32>
    %c1_67 = arith.constant 1 : index
    %c0_68 = arith.constant 0 : index
    %c0_69 = arith.constant 0 : index
    %194 = vector.load %arg7[%c1_67, %c0_68, %c0_69] : memref<4x20x8xf32, #tpu.memory_space<vmem>>, vector<1x20x8xf32>
    %195 = vector.shape_cast %194 : vector<1x20x8xf32> to vector<20x8xf32>
    %196 = vector.shape_cast %195 : vector<20x8xf32> to vector<1x20x8xf32>
    %197 = vector.broadcast %196 : vector<1x20x8xf32> to vector<2x20x8xf32>
    %c1_70 = arith.constant 1 : index
    %c0_71 = arith.constant 0 : index
    %c0_72 = arith.constant 0 : index
    %198 = vector.load %arg8[%c1_70, %c0_71, %c0_72] : memref<4x8x32xf32, #tpu.memory_space<vmem>>, vector<1x8x32xf32>
    %199 = vector.shape_cast %198 : vector<1x8x32xf32> to vector<8x32xf32>
    %200 = vector.shape_cast %199 : vector<8x32xf32> to vector<1x8x32xf32>
    %201 = vector.broadcast %200 : vector<1x8x32xf32> to vector<2x8x32xf32>
    %c1_73 = arith.constant 1 : index
    %c0_74 = arith.constant 0 : index
    %c0_75 = arith.constant 0 : index
    %202 = vector.load %arg10[%c1_73, %c0_74, %c0_75] : memref<4x32x8xf32, #tpu.memory_space<vmem>>, vector<1x32x8xf32>
    %203 = vector.shape_cast %202 : vector<1x32x8xf32> to vector<32x8xf32>
    %204 = vector.shape_cast %203 : vector<32x8xf32> to vector<1x32x8xf32>
    %205 = vector.broadcast %204 : vector<1x32x8xf32> to vector<2x32x8xf32>
    %c1_76 = arith.constant 1 : index
    %c0_77 = arith.constant 0 : index
    %c0_78 = arith.constant 0 : index
    %206 = vector.load %arg9[%c1_76, %c0_77, %c0_78] : memref<4x1x32xf32, #tpu.memory_space<vmem>>, vector<1x1x32xf32>
    %207 = vector.shape_cast %206 : vector<1x1x32xf32> to vector<1x32xf32>
    %c1_79 = arith.constant 1 : index
    %c0_80 = arith.constant 0 : index
    %c0_81 = arith.constant 0 : index
    %208 = vector.load %arg11[%c1_79, %c0_80, %c0_81] : memref<4x5x8xf32, #tpu.memory_space<vmem>>, vector<1x5x8xf32>
    %209 = vector.shape_cast %208 : vector<1x5x8xf32> to vector<5x8xf32>
    %210 = vector.extract_strided_slice %209 {offsets = [0, 0], sizes = [1, 8], strides = [1, 1]} : vector<5x8xf32> to vector<1x8xf32>
    %211 = vector.extract_strided_slice %209 {offsets = [1, 0], sizes = [1, 8], strides = [1, 1]} : vector<5x8xf32> to vector<1x8xf32>
    %212 = vector.extract_strided_slice %209 {offsets = [2, 0], sizes = [1, 8], strides = [1, 1]} : vector<5x8xf32> to vector<1x8xf32>
    %213 = vector.extract_strided_slice %209 {offsets = [3, 0], sizes = [1, 8], strides = [1, 1]} : vector<5x8xf32> to vector<1x8xf32>
    %214 = vector.extract_strided_slice %209 {offsets = [4, 0], sizes = [1, 8], strides = [1, 1]} : vector<5x8xf32> to vector<1x8xf32>
    %cst_82 = arith.constant dense<0.000000e+00> : vector<2x4xf32>
    %215 = vector.multi_reduction <add>, %189, %cst_82 [2] : vector<2x4x8xf32> to vector<2x4xf32>
    %216 = vector.shape_cast %215 : vector<2x4xf32> to vector<2x4x1xf32>
    %cst_83 = arith.constant 8.000000e+00 : f32
    %217 = vector.broadcast %cst_83 : f32 to vector<2x4x1xf32>
    %218 = arith.divf %216, %217 : vector<2x4x1xf32>
    %219 = vector.broadcast %218 : vector<2x4x1xf32> to vector<2x4x8xf32>
    %220 = arith.subf %189, %219 : vector<2x4x8xf32>
    %221 = arith.mulf %220, %220 : vector<2x4x8xf32>
    %cst_84 = arith.constant dense<0.000000e+00> : vector<2x4xf32>
    %222 = vector.multi_reduction <add>, %221, %cst_84 [2] : vector<2x4x8xf32> to vector<2x4xf32>
    %223 = vector.shape_cast %222 : vector<2x4xf32> to vector<2x4x1xf32>
    %cst_85 = arith.constant 8.000000e+00 : f32
    %224 = vector.broadcast %cst_85 : f32 to vector<2x4x1xf32>
    %225 = arith.divf %223, %224 : vector<2x4x1xf32>
    %226 = vector.broadcast %218 : vector<2x4x1xf32> to vector<2x4x8xf32>
    %227 = arith.subf %189, %226 : vector<2x4x8xf32>
    %cst_86 = arith.constant 9.99999974E-6 : f32
    %228 = vector.broadcast %cst_86 : f32 to vector<2x4x1xf32>
    %229 = arith.addf %225, %228 : vector<2x4x1xf32>
    %230 = math.rsqrt %229 : vector<2x4x1xf32>
    %231 = vector.broadcast %230 : vector<2x4x1xf32> to vector<2x4x8xf32>
    %232 = arith.mulf %227, %231 : vector<2x4x8xf32>
    %233 = vector.shape_cast %210 : vector<1x8xf32> to vector<1x1x8xf32>
    %234 = vector.broadcast %233 : vector<1x1x8xf32> to vector<2x4x8xf32>
    %235 = arith.mulf %232, %234 : vector<2x4x8xf32>
    %236 = vector.shape_cast %211 : vector<1x8xf32> to vector<1x1x8xf32>
    %237 = vector.broadcast %236 : vector<1x1x8xf32> to vector<2x4x8xf32>
    %238 = arith.addf %235, %237 : vector<2x4x8xf32>
    "tpu.trace_start"() <{level = 10 : i32, message = "bnd,bde->bne"}> : () -> ()
    %cst_87 = arith.constant dense<0.000000e+00> : vector<2x4x60xf32>
    %239 = tpu.matmul %238, %193, %cst_87 {dimension_numbers = #tpu.dot_dimension_numbers<[2], [1], [1], [2], [0, 0, 0, 1, 1, 2], [0], [0]>} : vector<2x4x8xf32>, vector<2x8x60xf32>, vector<2x4x60xf32> -> vector<2x4x60xf32>
    "tpu.trace_stop"() : () -> ()
    %240 = vector.extract_strided_slice %239 {offsets = [0, 0, 0], sizes = [2, 4, 20], strides = [1, 1, 1]} : vector<2x4x60xf32> to vector<2x4x20xf32>
    %241 = vector.extract_strided_slice %239 {offsets = [0, 0, 20], sizes = [2, 4, 20], strides = [1, 1, 1]} : vector<2x4x60xf32> to vector<2x4x20xf32>
    %242 = vector.extract_strided_slice %239 {offsets = [0, 0, 40], sizes = [2, 4, 20], strides = [1, 1, 1]} : vector<2x4x60xf32> to vector<2x4x20xf32>
    %243 = vector.extract_strided_slice %240 {offsets = [0, 0, 0], sizes = [2, 4, 4], strides = [1, 1, 1]} : vector<2x4x20xf32> to vector<2x4x4xf32>
    %244 = vector.extract_strided_slice %241 {offsets = [0, 0, 0], sizes = [2, 4, 4], strides = [1, 1, 1]} : vector<2x4x20xf32> to vector<2x4x4xf32>
    %245 = vector.extract_strided_slice %242 {offsets = [0, 0, 0], sizes = [2, 4, 4], strides = [1, 1, 1]} : vector<2x4x20xf32> to vector<2x4x4xf32>
    "tpu.trace_start"() <{level = 10 : i32, message = "bnd,bmd->bnm"}> : () -> ()
    %cst_88 = arith.constant dense<0.000000e+00> : vector<2x4x4xf32>
    %246 = tpu.matmul %243, %244, %cst_88 {dimension_numbers = #tpu.dot_dimension_numbers<[2], [2], [1], [1], [0, 0, 0, 1, 1, 1], [0], [0]>} : vector<2x4x4xf32>, vector<2x4x4xf32>, vector<2x4x4xf32> -> vector<2x4x4xf32>
    "tpu.trace_stop"() : () -> ()
    %cst_89 = arith.constant dense<0xFF800000> : vector<2x4xf32>
    %247 = vector.multi_reduction <maximumf>, %246, %cst_89 [2] : vector<2x4x4xf32> to vector<2x4xf32>
    %248 = vector.shape_cast %247 : vector<2x4xf32> to vector<2x4x1xf32>
    %249 = vector.broadcast %248 : vector<2x4x1xf32> to vector<2x4x4xf32>
    %250 = arith.subf %246, %249 : vector<2x4x4xf32>
    %251 = math.exp %250 : vector<2x4x4xf32>
    %cst_90 = arith.constant dense<0.000000e+00> : vector<2x4xf32>
    %252 = vector.multi_reduction <add>, %251, %cst_90 [2] : vector<2x4x4xf32> to vector<2x4xf32>
    %253 = vector.shape_cast %252 : vector<2x4xf32> to vector<2x4x1xf32>
    %254 = tpu.reciprocal %253 {approx = true} : vector<2x4x1xf32> -> vector<2x4x1xf32>
    %255 = vector.broadcast %254 : vector<2x4x1xf32> to vector<2x4x4xf32>
    %256 = arith.mulf %251, %255 : vector<2x4x4xf32>
    "tpu.trace_start"() <{level = 10 : i32, message = "bnm,bmd->bnd"}> : () -> ()
    %cst_91 = arith.constant dense<0.000000e+00> : vector<2x4x4xf32>
    %257 = tpu.matmul %256, %245, %cst_91 {dimension_numbers = #tpu.dot_dimension_numbers<[2], [1], [1], [2], [0, 0, 0, 1, 1, 2], [0], [0]>} : vector<2x4x4xf32>, vector<2x4x4xf32>, vector<2x4x4xf32> -> vector<2x4x4xf32>
    "tpu.trace_stop"() : () -> ()
    %258 = vector.extract_strided_slice %240 {offsets = [0, 0, 4], sizes = [2, 4, 4], strides = [1, 1, 1]} : vector<2x4x20xf32> to vector<2x4x4xf32>
    %259 = vector.extract_strided_slice %241 {offsets = [0, 0, 4], sizes = [2, 4, 4], strides = [1, 1, 1]} : vector<2x4x20xf32> to vector<2x4x4xf32>
    %260 = vector.extract_strided_slice %242 {offsets = [0, 0, 4], sizes = [2, 4, 4], strides = [1, 1, 1]} : vector<2x4x20xf32> to vector<2x4x4xf32>
    "tpu.trace_start"() <{level = 10 : i32, message = "bnd,bmd->bnm"}> : () -> ()
    %cst_92 = arith.constant dense<0.000000e+00> : vector<2x4x4xf32>
    %261 = tpu.matmul %258, %259, %cst_92 {dimension_numbers = #tpu.dot_dimension_numbers<[2], [2], [1], [1], [0, 0, 0, 1, 1, 1], [0], [0]>} : vector<2x4x4xf32>, vector<2x4x4xf32>, vector<2x4x4xf32> -> vector<2x4x4xf32>
    "tpu.trace_stop"() : () -> ()
    %cst_93 = arith.constant dense<0xFF800000> : vector<2x4xf32>
    %262 = vector.multi_reduction <maximumf>, %261, %cst_93 [2] : vector<2x4x4xf32> to vector<2x4xf32>
    %263 = vector.shape_cast %262 : vector<2x4xf32> to vector<2x4x1xf32>
    %264 = vector.broadcast %263 : vector<2x4x1xf32> to vector<2x4x4xf32>
    %265 = arith.subf %261, %264 : vector<2x4x4xf32>
    %266 = math.exp %265 : vector<2x4x4xf32>
    %cst_94 = arith.constant dense<0.000000e+00> : vector<2x4xf32>
    %267 = vector.multi_reduction <add>, %266, %cst_94 [2] : vector<2x4x4xf32> to vector<2x4xf32>
    %268 = vector.shape_cast %267 : vector<2x4xf32> to vector<2x4x1xf32>
    %269 = tpu.reciprocal %268 {approx = true} : vector<2x4x1xf32> -> vector<2x4x1xf32>
    %270 = vector.broadcast %269 : vector<2x4x1xf32> to vector<2x4x4xf32>
    %271 = arith.mulf %266, %270 : vector<2x4x4xf32>
    "tpu.trace_start"() <{level = 10 : i32, message = "bnm,bmd->bnd"}> : () -> ()
    %cst_95 = arith.constant dense<0.000000e+00> : vector<2x4x4xf32>
    %272 = tpu.matmul %271, %260, %cst_95 {dimension_numbers = #tpu.dot_dimension_numbers<[2], [1], [1], [2], [0, 0, 0, 1, 1, 2], [0], [0]>} : vector<2x4x4xf32>, vector<2x4x4xf32>, vector<2x4x4xf32> -> vector<2x4x4xf32>
    "tpu.trace_stop"() : () -> ()
    %273 = vector.extract_strided_slice %240 {offsets = [0, 0, 8], sizes = [2, 4, 4], strides = [1, 1, 1]} : vector<2x4x20xf32> to vector<2x4x4xf32>
    %274 = vector.extract_strided_slice %241 {offsets = [0, 0, 8], sizes = [2, 4, 4], strides = [1, 1, 1]} : vector<2x4x20xf32> to vector<2x4x4xf32>
    %275 = vector.extract_strided_slice %242 {offsets = [0, 0, 8], sizes = [2, 4, 4], strides = [1, 1, 1]} : vector<2x4x20xf32> to vector<2x4x4xf32>
    "tpu.trace_start"() <{level = 10 : i32, message = "bnd,bmd->bnm"}> : () -> ()
    %cst_96 = arith.constant dense<0.000000e+00> : vector<2x4x4xf32>
    %276 = tpu.matmul %273, %274, %cst_96 {dimension_numbers = #tpu.dot_dimension_numbers<[2], [2], [1], [1], [0, 0, 0, 1, 1, 1], [0], [0]>} : vector<2x4x4xf32>, vector<2x4x4xf32>, vector<2x4x4xf32> -> vector<2x4x4xf32>
    "tpu.trace_stop"() : () -> ()
    %cst_97 = arith.constant dense<0xFF800000> : vector<2x4xf32>
    %277 = vector.multi_reduction <maximumf>, %276, %cst_97 [2] : vector<2x4x4xf32> to vector<2x4xf32>
    %278 = vector.shape_cast %277 : vector<2x4xf32> to vector<2x4x1xf32>
    %279 = vector.broadcast %278 : vector<2x4x1xf32> to vector<2x4x4xf32>
    %280 = arith.subf %276, %279 : vector<2x4x4xf32>
    %281 = math.exp %280 : vector<2x4x4xf32>
    %cst_98 = arith.constant dense<0.000000e+00> : vector<2x4xf32>
    %282 = vector.multi_reduction <add>, %281, %cst_98 [2] : vector<2x4x4xf32> to vector<2x4xf32>
    %283 = vector.shape_cast %282 : vector<2x4xf32> to vector<2x4x1xf32>
    %284 = tpu.reciprocal %283 {approx = true} : vector<2x4x1xf32> -> vector<2x4x1xf32>
    %285 = vector.broadcast %284 : vector<2x4x1xf32> to vector<2x4x4xf32>
    %286 = arith.mulf %281, %285 : vector<2x4x4xf32>
    "tpu.trace_start"() <{level = 10 : i32, message = "bnm,bmd->bnd"}> : () -> ()
    %cst_99 = arith.constant dense<0.000000e+00> : vector<2x4x4xf32>
    %287 = tpu.matmul %286, %275, %cst_99 {dimension_numbers = #tpu.dot_dimension_numbers<[2], [1], [1], [2], [0, 0, 0, 1, 1, 2], [0], [0]>} : vector<2x4x4xf32>, vector<2x4x4xf32>, vector<2x4x4xf32> -> vector<2x4x4xf32>
    "tpu.trace_stop"() : () -> ()
    %288 = vector.extract_strided_slice %240 {offsets = [0, 0, 12], sizes = [2, 4, 4], strides = [1, 1, 1]} : vector<2x4x20xf32> to vector<2x4x4xf32>
    %289 = vector.extract_strided_slice %241 {offsets = [0, 0, 12], sizes = [2, 4, 4], strides = [1, 1, 1]} : vector<2x4x20xf32> to vector<2x4x4xf32>
    %290 = vector.extract_strided_slice %242 {offsets = [0, 0, 12], sizes = [2, 4, 4], strides = [1, 1, 1]} : vector<2x4x20xf32> to vector<2x4x4xf32>
    "tpu.trace_start"() <{level = 10 : i32, message = "bnd,bmd->bnm"}> : () -> ()
    %cst_100 = arith.constant dense<0.000000e+00> : vector<2x4x4xf32>
    %291 = tpu.matmul %288, %289, %cst_100 {dimension_numbers = #tpu.dot_dimension_numbers<[2], [2], [1], [1], [0, 0, 0, 1, 1, 1], [0], [0]>} : vector<2x4x4xf32>, vector<2x4x4xf32>, vector<2x4x4xf32> -> vector<2x4x4xf32>
    "tpu.trace_stop"() : () -> ()
    %cst_101 = arith.constant dense<0xFF800000> : vector<2x4xf32>
    %292 = vector.multi_reduction <maximumf>, %291, %cst_101 [2] : vector<2x4x4xf32> to vector<2x4xf32>
    %293 = vector.shape_cast %292 : vector<2x4xf32> to vector<2x4x1xf32>
    %294 = vector.broadcast %293 : vector<2x4x1xf32> to vector<2x4x4xf32>
    %295 = arith.subf %291, %294 : vector<2x4x4xf32>
    %296 = math.exp %295 : vector<2x4x4xf32>
    %cst_102 = arith.constant dense<0.000000e+00> : vector<2x4xf32>
    %297 = vector.multi_reduction <add>, %296, %cst_102 [2] : vector<2x4x4xf32> to vector<2x4xf32>
    %298 = vector.shape_cast %297 : vector<2x4xf32> to vector<2x4x1xf32>
    %299 = tpu.reciprocal %298 {approx = true} : vector<2x4x1xf32> -> vector<2x4x1xf32>
    %300 = vector.broadcast %299 : vector<2x4x1xf32> to vector<2x4x4xf32>
    %301 = arith.mulf %296, %300 : vector<2x4x4xf32>
    "tpu.trace_start"() <{level = 10 : i32, message = "bnm,bmd->bnd"}> : () -> ()
    %cst_103 = arith.constant dense<0.000000e+00> : vector<2x4x4xf32>
    %302 = tpu.matmul %301, %290, %cst_103 {dimension_numbers = #tpu.dot_dimension_numbers<[2], [1], [1], [2], [0, 0, 0, 1, 1, 2], [0], [0]>} : vector<2x4x4xf32>, vector<2x4x4xf32>, vector<2x4x4xf32> -> vector<2x4x4xf32>
    "tpu.trace_stop"() : () -> ()
    %303 = vector.extract_strided_slice %240 {offsets = [0, 0, 16], sizes = [2, 4, 4], strides = [1, 1, 1]} : vector<2x4x20xf32> to vector<2x4x4xf32>
    %304 = vector.extract_strided_slice %241 {offsets = [0, 0, 16], sizes = [2, 4, 4], strides = [1, 1, 1]} : vector<2x4x20xf32> to vector<2x4x4xf32>
    %305 = vector.extract_strided_slice %242 {offsets = [0, 0, 16], sizes = [2, 4, 4], strides = [1, 1, 1]} : vector<2x4x20xf32> to vector<2x4x4xf32>
    "tpu.trace_start"() <{level = 10 : i32, message = "bnd,bmd->bnm"}> : () -> ()
    %cst_104 = arith.constant dense<0.000000e+00> : vector<2x4x4xf32>
    %306 = tpu.matmul %303, %304, %cst_104 {dimension_numbers = #tpu.dot_dimension_numbers<[2], [2], [1], [1], [0, 0, 0, 1, 1, 1], [0], [0]>} : vector<2x4x4xf32>, vector<2x4x4xf32>, vector<2x4x4xf32> -> vector<2x4x4xf32>
    "tpu.trace_stop"() : () -> ()
    %cst_105 = arith.constant dense<0xFF800000> : vector<2x4xf32>
    %307 = vector.multi_reduction <maximumf>, %306, %cst_105 [2] : vector<2x4x4xf32> to vector<2x4xf32>
    %308 = vector.shape_cast %307 : vector<2x4xf32> to vector<2x4x1xf32>
    %309 = vector.broadcast %308 : vector<2x4x1xf32> to vector<2x4x4xf32>
    %310 = arith.subf %306, %309 : vector<2x4x4xf32>
    %311 = math.exp %310 : vector<2x4x4xf32>
    %cst_106 = arith.constant dense<0.000000e+00> : vector<2x4xf32>
    %312 = vector.multi_reduction <add>, %311, %cst_106 [2] : vector<2x4x4xf32> to vector<2x4xf32>
    %313 = vector.shape_cast %312 : vector<2x4xf32> to vector<2x4x1xf32>
    %314 = tpu.reciprocal %313 {approx = true} : vector<2x4x1xf32> -> vector<2x4x1xf32>
    %315 = vector.broadcast %314 : vector<2x4x1xf32> to vector<2x4x4xf32>
    %316 = arith.mulf %311, %315 : vector<2x4x4xf32>
    "tpu.trace_start"() <{level = 10 : i32, message = "bnm,bmd->bnd"}> : () -> ()
    %cst_107 = arith.constant dense<0.000000e+00> : vector<2x4x4xf32>
    %317 = tpu.matmul %316, %305, %cst_107 {dimension_numbers = #tpu.dot_dimension_numbers<[2], [1], [1], [2], [0, 0, 0, 1, 1, 2], [0], [0]>} : vector<2x4x4xf32>, vector<2x4x4xf32>, vector<2x4x4xf32> -> vector<2x4x4xf32>
    "tpu.trace_stop"() : () -> ()
    %318 = tpu.concatenate %257, %272, %287, %302, %317 in 2 : vector<2x4x4xf32>, vector<2x4x4xf32>, vector<2x4x4xf32>, vector<2x4x4xf32>, vector<2x4x4xf32> -> vector<2x4x20xf32>
    "tpu.trace_start"() <{level = 10 : i32, message = "bnh,bhd->bnd"}> : () -> ()
    %cst_108 = arith.constant dense<0.000000e+00> : vector<2x4x8xf32>
    %319 = tpu.matmul %318, %197, %cst_108 {dimension_numbers = #tpu.dot_dimension_numbers<[2], [1], [1], [2], [0, 0, 0, 1, 1, 2], [0], [0]>} : vector<2x4x20xf32>, vector<2x20x8xf32>, vector<2x4x8xf32> -> vector<2x4x8xf32>
    "tpu.trace_stop"() : () -> ()
    %320 = arith.addf %189, %319 : vector<2x4x8xf32>
    %cst_109 = arith.constant dense<0.000000e+00> : vector<2x4xf32>
    %321 = vector.multi_reduction <add>, %320, %cst_109 [2] : vector<2x4x8xf32> to vector<2x4xf32>
    %322 = vector.shape_cast %321 : vector<2x4xf32> to vector<2x4x1xf32>
    %cst_110 = arith.constant 8.000000e+00 : f32
    %323 = vector.broadcast %cst_110 : f32 to vector<2x4x1xf32>
    %324 = arith.divf %322, %323 : vector<2x4x1xf32>
    %325 = vector.broadcast %324 : vector<2x4x1xf32> to vector<2x4x8xf32>
    %326 = arith.subf %320, %325 : vector<2x4x8xf32>
    %327 = arith.mulf %326, %326 : vector<2x4x8xf32>
    %cst_111 = arith.constant dense<0.000000e+00> : vector<2x4xf32>
    %328 = vector.multi_reduction <add>, %327, %cst_111 [2] : vector<2x4x8xf32> to vector<2x4xf32>
    %329 = vector.shape_cast %328 : vector<2x4xf32> to vector<2x4x1xf32>
    %cst_112 = arith.constant 8.000000e+00 : f32
    %330 = vector.broadcast %cst_112 : f32 to vector<2x4x1xf32>
    %331 = arith.divf %329, %330 : vector<2x4x1xf32>
    %332 = vector.broadcast %324 : vector<2x4x1xf32> to vector<2x4x8xf32>
    %333 = arith.subf %320, %332 : vector<2x4x8xf32>
    %cst_113 = arith.constant 9.99999974E-6 : f32
    %334 = vector.broadcast %cst_113 : f32 to vector<2x4x1xf32>
    %335 = arith.addf %331, %334 : vector<2x4x1xf32>
    %336 = math.rsqrt %335 : vector<2x4x1xf32>
    %337 = vector.broadcast %336 : vector<2x4x1xf32> to vector<2x4x8xf32>
    %338 = arith.mulf %333, %337 : vector<2x4x8xf32>
    %339 = vector.shape_cast %212 : vector<1x8xf32> to vector<1x1x8xf32>
    %340 = vector.broadcast %339 : vector<1x1x8xf32> to vector<2x4x8xf32>
    %341 = arith.mulf %338, %340 : vector<2x4x8xf32>
    %342 = vector.shape_cast %213 : vector<1x8xf32> to vector<1x1x8xf32>
    %343 = vector.broadcast %342 : vector<1x1x8xf32> to vector<2x4x8xf32>
    %344 = arith.addf %341, %343 : vector<2x4x8xf32>
    "tpu.trace_start"() <{level = 10 : i32, message = "bnd,bdf->bnf"}> : () -> ()
    %cst_114 = arith.constant dense<0.000000e+00> : vector<2x4x32xf32>
    %345 = tpu.matmul %344, %201, %cst_114 {dimension_numbers = #tpu.dot_dimension_numbers<[2], [1], [1], [2], [0, 0, 0, 1, 1, 2], [0], [0]>} : vector<2x4x8xf32>, vector<2x8x32xf32>, vector<2x4x32xf32> -> vector<2x4x32xf32>
    "tpu.trace_stop"() : () -> ()
    %346 = vector.shape_cast %207 : vector<1x32xf32> to vector<1x1x32xf32>
    %347 = vector.broadcast %346 : vector<1x1x32xf32> to vector<2x4x32xf32>
    %348 = arith.addf %345, %347 : vector<2x4x32xf32>
    %349 = arith.mulf %348, %348 : vector<2x4x32xf32>
    %350 = arith.mulf %348, %349 : vector<2x4x32xf32>
    %cst_115 = arith.constant 4.471500e-02 : f32
    %351 = vector.broadcast %cst_115 : f32 to vector<2x4x32xf32>
    %352 = arith.mulf %351, %350 : vector<2x4x32xf32>
    %353 = arith.addf %348, %352 : vector<2x4x32xf32>
    %cst_116 = arith.constant 0.797884583 : f32
    %354 = vector.broadcast %cst_116 : f32 to vector<2x4x32xf32>
    %355 = arith.mulf %354, %353 : vector<2x4x32xf32>
    %356 = math.tanh %355 : vector<2x4x32xf32>
    %cst_117 = arith.constant 1.000000e+00 : f32
    %357 = vector.broadcast %cst_117 : f32 to vector<2x4x32xf32>
    %358 = arith.addf %357, %356 : vector<2x4x32xf32>
    %cst_118 = arith.constant 5.000000e-01 : f32
    %359 = vector.broadcast %cst_118 : f32 to vector<2x4x32xf32>
    %360 = arith.mulf %359, %358 : vector<2x4x32xf32>
    %361 = arith.mulf %348, %360 : vector<2x4x32xf32>
    "tpu.trace_start"() <{level = 10 : i32, message = "bnf,bfd->bnd"}> : () -> ()
    %cst_119 = arith.constant dense<0.000000e+00> : vector<2x4x8xf32>
    %362 = tpu.matmul %361, %205, %cst_119 {dimension_numbers = #tpu.dot_dimension_numbers<[2], [1], [1], [2], [0, 0, 0, 1, 1, 2], [0], [0]>} : vector<2x4x32xf32>, vector<2x32x8xf32>, vector<2x4x8xf32> -> vector<2x4x8xf32>
    "tpu.trace_stop"() : () -> ()
    %363 = vector.shape_cast %214 : vector<1x8xf32> to vector<1x1x8xf32>
    %364 = vector.broadcast %363 : vector<1x1x8xf32> to vector<2x4x8xf32>
    %365 = arith.addf %362, %364 : vector<2x4x8xf32>
    %366 = arith.addf %320, %365 : vector<2x4x8xf32>
    %c2 = arith.constant 2 : index
    %c0_120 = arith.constant 0 : index
    %c0_121 = arith.constant 0 : index
    %367 = vector.load %arg6[%c2, %c0_120, %c0_121] : memref<4x8x60xf32, #tpu.memory_space<vmem>>, vector<1x8x60xf32>
    %368 = vector.shape_cast %367 : vector<1x8x60xf32> to vector<8x60xf32>
    %369 = vector.shape_cast %368 : vector<8x60xf32> to vector<1x8x60xf32>
    %370 = vector.broadcast %369 : vector<1x8x60xf32> to vector<2x8x60xf32>
    %c2_122 = arith.constant 2 : index
    %c0_123 = arith.constant 0 : index
    %c0_124 = arith.constant 0 : index
    %371 = vector.load %arg7[%c2_122, %c0_123, %c0_124] : memref<4x20x8xf32, #tpu.memory_space<vmem>>, vector<1x20x8xf32>
    %372 = vector.shape_cast %371 : vector<1x20x8xf32> to vector<20x8xf32>
    %373 = vector.shape_cast %372 : vector<20x8xf32> to vector<1x20x8xf32>
    %374 = vector.broadcast %373 : vector<1x20x8xf32> to vector<2x20x8xf32>
    %c2_125 = arith.constant 2 : index
    %c0_126 = arith.constant 0 : index
    %c0_127 = arith.constant 0 : index
    %375 = vector.load %arg8[%c2_125, %c0_126, %c0_127] : memref<4x8x32xf32, #tpu.memory_space<vmem>>, vector<1x8x32xf32>
    %376 = vector.shape_cast %375 : vector<1x8x32xf32> to vector<8x32xf32>
    %377 = vector.shape_cast %376 : vector<8x32xf32> to vector<1x8x32xf32>
    %378 = vector.broadcast %377 : vector<1x8x32xf32> to vector<2x8x32xf32>
    %c2_128 = arith.constant 2 : index
    %c0_129 = arith.constant 0 : index
    %c0_130 = arith.constant 0 : index
    %379 = vector.load %arg10[%c2_128, %c0_129, %c0_130] : memref<4x32x8xf32, #tpu.memory_space<vmem>>, vector<1x32x8xf32>
    %380 = vector.shape_cast %379 : vector<1x32x8xf32> to vector<32x8xf32>
    %381 = vector.shape_cast %380 : vector<32x8xf32> to vector<1x32x8xf32>
    %382 = vector.broadcast %381 : vector<1x32x8xf32> to vector<2x32x8xf32>
    %c2_131 = arith.constant 2 : index
    %c0_132 = arith.constant 0 : index
    %c0_133 = arith.constant 0 : index
    %383 = vector.load %arg9[%c2_131, %c0_132, %c0_133] : memref<4x1x32xf32, #tpu.memory_space<vmem>>, vector<1x1x32xf32>
    %384 = vector.shape_cast %383 : vector<1x1x32xf32> to vector<1x32xf32>
    %c2_134 = arith.constant 2 : index
    %c0_135 = arith.constant 0 : index
    %c0_136 = arith.constant 0 : index
    %385 = vector.load %arg11[%c2_134, %c0_135, %c0_136] : memref<4x5x8xf32, #tpu.memory_space<vmem>>, vector<1x5x8xf32>
    %386 = vector.shape_cast %385 : vector<1x5x8xf32> to vector<5x8xf32>
    %387 = vector.extract_strided_slice %386 {offsets = [0, 0], sizes = [1, 8], strides = [1, 1]} : vector<5x8xf32> to vector<1x8xf32>
    %388 = vector.extract_strided_slice %386 {offsets = [1, 0], sizes = [1, 8], strides = [1, 1]} : vector<5x8xf32> to vector<1x8xf32>
    %389 = vector.extract_strided_slice %386 {offsets = [2, 0], sizes = [1, 8], strides = [1, 1]} : vector<5x8xf32> to vector<1x8xf32>
    %390 = vector.extract_strided_slice %386 {offsets = [3, 0], sizes = [1, 8], strides = [1, 1]} : vector<5x8xf32> to vector<1x8xf32>
    %391 = vector.extract_strided_slice %386 {offsets = [4, 0], sizes = [1, 8], strides = [1, 1]} : vector<5x8xf32> to vector<1x8xf32>
    %cst_137 = arith.constant dense<0.000000e+00> : vector<2x4xf32>
    %392 = vector.multi_reduction <add>, %366, %cst_137 [2] : vector<2x4x8xf32> to vector<2x4xf32>
    %393 = vector.shape_cast %392 : vector<2x4xf32> to vector<2x4x1xf32>
    %cst_138 = arith.constant 8.000000e+00 : f32
    %394 = vector.broadcast %cst_138 : f32 to vector<2x4x1xf32>
    %395 = arith.divf %393, %394 : vector<2x4x1xf32>
    %396 = vector.broadcast %395 : vector<2x4x1xf32> to vector<2x4x8xf32>
    %397 = arith.subf %366, %396 : vector<2x4x8xf32>
    %398 = arith.mulf %397, %397 : vector<2x4x8xf32>
    %cst_139 = arith.constant dense<0.000000e+00> : vector<2x4xf32>
    %399 = vector.multi_reduction <add>, %398, %cst_139 [2] : vector<2x4x8xf32> to vector<2x4xf32>
    %400 = vector.shape_cast %399 : vector<2x4xf32> to vector<2x4x1xf32>
    %cst_140 = arith.constant 8.000000e+00 : f32
    %401 = vector.broadcast %cst_140 : f32 to vector<2x4x1xf32>
    %402 = arith.divf %400, %401 : vector<2x4x1xf32>
    %403 = vector.broadcast %395 : vector<2x4x1xf32> to vector<2x4x8xf32>
    %404 = arith.subf %366, %403 : vector<2x4x8xf32>
    %cst_141 = arith.constant 9.99999974E-6 : f32
    %405 = vector.broadcast %cst_141 : f32 to vector<2x4x1xf32>
    %406 = arith.addf %402, %405 : vector<2x4x1xf32>
    %407 = math.rsqrt %406 : vector<2x4x1xf32>
    %408 = vector.broadcast %407 : vector<2x4x1xf32> to vector<2x4x8xf32>
    %409 = arith.mulf %404, %408 : vector<2x4x8xf32>
    %410 = vector.shape_cast %387 : vector<1x8xf32> to vector<1x1x8xf32>
    %411 = vector.broadcast %410 : vector<1x1x8xf32> to vector<2x4x8xf32>
    %412 = arith.mulf %409, %411 : vector<2x4x8xf32>
    %413 = vector.shape_cast %388 : vector<1x8xf32> to vector<1x1x8xf32>
    %414 = vector.broadcast %413 : vector<1x1x8xf32> to vector<2x4x8xf32>
    %415 = arith.addf %412, %414 : vector<2x4x8xf32>
    "tpu.trace_start"() <{level = 10 : i32, message = "bnd,bde->bne"}> : () -> ()
    %cst_142 = arith.constant dense<0.000000e+00> : vector<2x4x60xf32>
    %416 = tpu.matmul %415, %370, %cst_142 {dimension_numbers = #tpu.dot_dimension_numbers<[2], [1], [1], [2], [0, 0, 0, 1, 1, 2], [0], [0]>} : vector<2x4x8xf32>, vector<2x8x60xf32>, vector<2x4x60xf32> -> vector<2x4x60xf32>
    "tpu.trace_stop"() : () -> ()
    %417 = vector.extract_strided_slice %416 {offsets = [0, 0, 0], sizes = [2, 4, 20], strides = [1, 1, 1]} : vector<2x4x60xf32> to vector<2x4x20xf32>
    %418 = vector.extract_strided_slice %416 {offsets = [0, 0, 20], sizes = [2, 4, 20], strides = [1, 1, 1]} : vector<2x4x60xf32> to vector<2x4x20xf32>
    %419 = vector.extract_strided_slice %416 {offsets = [0, 0, 40], sizes = [2, 4, 20], strides = [1, 1, 1]} : vector<2x4x60xf32> to vector<2x4x20xf32>
    %420 = vector.extract_strided_slice %417 {offsets = [0, 0, 0], sizes = [2, 4, 4], strides = [1, 1, 1]} : vector<2x4x20xf32> to vector<2x4x4xf32>
    %421 = vector.extract_strided_slice %418 {offsets = [0, 0, 0], sizes = [2, 4, 4], strides = [1, 1, 1]} : vector<2x4x20xf32> to vector<2x4x4xf32>
    %422 = vector.extract_strided_slice %419 {offsets = [0, 0, 0], sizes = [2, 4, 4], strides = [1, 1, 1]} : vector<2x4x20xf32> to vector<2x4x4xf32>
    "tpu.trace_start"() <{level = 10 : i32, message = "bnd,bmd->bnm"}> : () -> ()
    %cst_143 = arith.constant dense<0.000000e+00> : vector<2x4x4xf32>
    %423 = tpu.matmul %420, %421, %cst_143 {dimension_numbers = #tpu.dot_dimension_numbers<[2], [2], [1], [1], [0, 0, 0, 1, 1, 1], [0], [0]>} : vector<2x4x4xf32>, vector<2x4x4xf32>, vector<2x4x4xf32> -> vector<2x4x4xf32>
    "tpu.trace_stop"() : () -> ()
    %cst_144 = arith.constant dense<0xFF800000> : vector<2x4xf32>
    %424 = vector.multi_reduction <maximumf>, %423, %cst_144 [2] : vector<2x4x4xf32> to vector<2x4xf32>
    %425 = vector.shape_cast %424 : vector<2x4xf32> to vector<2x4x1xf32>
    %426 = vector.broadcast %425 : vector<2x4x1xf32> to vector<2x4x4xf32>
    %427 = arith.subf %423, %426 : vector<2x4x4xf32>
    %428 = math.exp %427 : vector<2x4x4xf32>
    %cst_145 = arith.constant dense<0.000000e+00> : vector<2x4xf32>
    %429 = vector.multi_reduction <add>, %428, %cst_145 [2] : vector<2x4x4xf32> to vector<2x4xf32>
    %430 = vector.shape_cast %429 : vector<2x4xf32> to vector<2x4x1xf32>
    %431 = tpu.reciprocal %430 {approx = true} : vector<2x4x1xf32> -> vector<2x4x1xf32>
    %432 = vector.broadcast %431 : vector<2x4x1xf32> to vector<2x4x4xf32>
    %433 = arith.mulf %428, %432 : vector<2x4x4xf32>
    "tpu.trace_start"() <{level = 10 : i32, message = "bnm,bmd->bnd"}> : () -> ()
    %cst_146 = arith.constant dense<0.000000e+00> : vector<2x4x4xf32>
    %434 = tpu.matmul %433, %422, %cst_146 {dimension_numbers = #tpu.dot_dimension_numbers<[2], [1], [1], [2], [0, 0, 0, 1, 1, 2], [0], [0]>} : vector<2x4x4xf32>, vector<2x4x4xf32>, vector<2x4x4xf32> -> vector<2x4x4xf32>
    "tpu.trace_stop"() : () -> ()
    %435 = vector.extract_strided_slice %417 {offsets = [0, 0, 4], sizes = [2, 4, 4], strides = [1, 1, 1]} : vector<2x4x20xf32> to vector<2x4x4xf32>
    %436 = vector.extract_strided_slice %418 {offsets = [0, 0, 4], sizes = [2, 4, 4], strides = [1, 1, 1]} : vector<2x4x20xf32> to vector<2x4x4xf32>
    %437 = vector.extract_strided_slice %419 {offsets = [0, 0, 4], sizes = [2, 4, 4], strides = [1, 1, 1]} : vector<2x4x20xf32> to vector<2x4x4xf32>
    "tpu.trace_start"() <{level = 10 : i32, message = "bnd,bmd->bnm"}> : () -> ()
    %cst_147 = arith.constant dense<0.000000e+00> : vector<2x4x4xf32>
    %438 = tpu.matmul %435, %436, %cst_147 {dimension_numbers = #tpu.dot_dimension_numbers<[2], [2], [1], [1], [0, 0, 0, 1, 1, 1], [0], [0]>} : vector<2x4x4xf32>, vector<2x4x4xf32>, vector<2x4x4xf32> -> vector<2x4x4xf32>
    "tpu.trace_stop"() : () -> ()
    %cst_148 = arith.constant dense<0xFF800000> : vector<2x4xf32>
    %439 = vector.multi_reduction <maximumf>, %438, %cst_148 [2] : vector<2x4x4xf32> to vector<2x4xf32>
    %440 = vector.shape_cast %439 : vector<2x4xf32> to vector<2x4x1xf32>
    %441 = vector.broadcast %440 : vector<2x4x1xf32> to vector<2x4x4xf32>
    %442 = arith.subf %438, %441 : vector<2x4x4xf32>
    %443 = math.exp %442 : vector<2x4x4xf32>
    %cst_149 = arith.constant dense<0.000000e+00> : vector<2x4xf32>
    %444 = vector.multi_reduction <add>, %443, %cst_149 [2] : vector<2x4x4xf32> to vector<2x4xf32>
    %445 = vector.shape_cast %444 : vector<2x4xf32> to vector<2x4x1xf32>
    %446 = tpu.reciprocal %445 {approx = true} : vector<2x4x1xf32> -> vector<2x4x1xf32>
    %447 = vector.broadcast %446 : vector<2x4x1xf32> to vector<2x4x4xf32>
    %448 = arith.mulf %443, %447 : vector<2x4x4xf32>
    "tpu.trace_start"() <{level = 10 : i32, message = "bnm,bmd->bnd"}> : () -> ()
    %cst_150 = arith.constant dense<0.000000e+00> : vector<2x4x4xf32>
    %449 = tpu.matmul %448, %437, %cst_150 {dimension_numbers = #tpu.dot_dimension_numbers<[2], [1], [1], [2], [0, 0, 0, 1, 1, 2], [0], [0]>} : vector<2x4x4xf32>, vector<2x4x4xf32>, vector<2x4x4xf32> -> vector<2x4x4xf32>
    "tpu.trace_stop"() : () -> ()
    %450 = vector.extract_strided_slice %417 {offsets = [0, 0, 8], sizes = [2, 4, 4], strides = [1, 1, 1]} : vector<2x4x20xf32> to vector<2x4x4xf32>
    %451 = vector.extract_strided_slice %418 {offsets = [0, 0, 8], sizes = [2, 4, 4], strides = [1, 1, 1]} : vector<2x4x20xf32> to vector<2x4x4xf32>
    %452 = vector.extract_strided_slice %419 {offsets = [0, 0, 8], sizes = [2, 4, 4], strides = [1, 1, 1]} : vector<2x4x20xf32> to vector<2x4x4xf32>
    "tpu.trace_start"() <{level = 10 : i32, message = "bnd,bmd->bnm"}> : () -> ()
    %cst_151 = arith.constant dense<0.000000e+00> : vector<2x4x4xf32>
    %453 = tpu.matmul %450, %451, %cst_151 {dimension_numbers = #tpu.dot_dimension_numbers<[2], [2], [1], [1], [0, 0, 0, 1, 1, 1], [0], [0]>} : vector<2x4x4xf32>, vector<2x4x4xf32>, vector<2x4x4xf32> -> vector<2x4x4xf32>
    "tpu.trace_stop"() : () -> ()
    %cst_152 = arith.constant dense<0xFF800000> : vector<2x4xf32>
    %454 = vector.multi_reduction <maximumf>, %453, %cst_152 [2] : vector<2x4x4xf32> to vector<2x4xf32>
    %455 = vector.shape_cast %454 : vector<2x4xf32> to vector<2x4x1xf32>
    %456 = vector.broadcast %455 : vector<2x4x1xf32> to vector<2x4x4xf32>
    %457 = arith.subf %453, %456 : vector<2x4x4xf32>
    %458 = math.exp %457 : vector<2x4x4xf32>
    %cst_153 = arith.constant dense<0.000000e+00> : vector<2x4xf32>
    %459 = vector.multi_reduction <add>, %458, %cst_153 [2] : vector<2x4x4xf32> to vector<2x4xf32>
    %460 = vector.shape_cast %459 : vector<2x4xf32> to vector<2x4x1xf32>
    %461 = tpu.reciprocal %460 {approx = true} : vector<2x4x1xf32> -> vector<2x4x1xf32>
    %462 = vector.broadcast %461 : vector<2x4x1xf32> to vector<2x4x4xf32>
    %463 = arith.mulf %458, %462 : vector<2x4x4xf32>
    "tpu.trace_start"() <{level = 10 : i32, message = "bnm,bmd->bnd"}> : () -> ()
    %cst_154 = arith.constant dense<0.000000e+00> : vector<2x4x4xf32>
    %464 = tpu.matmul %463, %452, %cst_154 {dimension_numbers = #tpu.dot_dimension_numbers<[2], [1], [1], [2], [0, 0, 0, 1, 1, 2], [0], [0]>} : vector<2x4x4xf32>, vector<2x4x4xf32>, vector<2x4x4xf32> -> vector<2x4x4xf32>
    "tpu.trace_stop"() : () -> ()
    %465 = vector.extract_strided_slice %417 {offsets = [0, 0, 12], sizes = [2, 4, 4], strides = [1, 1, 1]} : vector<2x4x20xf32> to vector<2x4x4xf32>
    %466 = vector.extract_strided_slice %418 {offsets = [0, 0, 12], sizes = [2, 4, 4], strides = [1, 1, 1]} : vector<2x4x20xf32> to vector<2x4x4xf32>
    %467 = vector.extract_strided_slice %419 {offsets = [0, 0, 12], sizes = [2, 4, 4], strides = [1, 1, 1]} : vector<2x4x20xf32> to vector<2x4x4xf32>
    "tpu.trace_start"() <{level = 10 : i32, message = "bnd,bmd->bnm"}> : () -> ()
    %cst_155 = arith.constant dense<0.000000e+00> : vector<2x4x4xf32>
    %468 = tpu.matmul %465, %466, %cst_155 {dimension_numbers = #tpu.dot_dimension_numbers<[2], [2], [1], [1], [0, 0, 0, 1, 1, 1], [0], [0]>} : vector<2x4x4xf32>, vector<2x4x4xf32>, vector<2x4x4xf32> -> vector<2x4x4xf32>
    "tpu.trace_stop"() : () -> ()
    %cst_156 = arith.constant dense<0xFF800000> : vector<2x4xf32>
    %469 = vector.multi_reduction <maximumf>, %468, %cst_156 [2] : vector<2x4x4xf32> to vector<2x4xf32>
    %470 = vector.shape_cast %469 : vector<2x4xf32> to vector<2x4x1xf32>
    %471 = vector.broadcast %470 : vector<2x4x1xf32> to vector<2x4x4xf32>
    %472 = arith.subf %468, %471 : vector<2x4x4xf32>
    %473 = math.exp %472 : vector<2x4x4xf32>
    %cst_157 = arith.constant dense<0.000000e+00> : vector<2x4xf32>
    %474 = vector.multi_reduction <add>, %473, %cst_157 [2] : vector<2x4x4xf32> to vector<2x4xf32>
    %475 = vector.shape_cast %474 : vector<2x4xf32> to vector<2x4x1xf32>
    %476 = tpu.reciprocal %475 {approx = true} : vector<2x4x1xf32> -> vector<2x4x1xf32>
    %477 = vector.broadcast %476 : vector<2x4x1xf32> to vector<2x4x4xf32>
    %478 = arith.mulf %473, %477 : vector<2x4x4xf32>
    "tpu.trace_start"() <{level = 10 : i32, message = "bnm,bmd->bnd"}> : () -> ()
    %cst_158 = arith.constant dense<0.000000e+00> : vector<2x4x4xf32>
    %479 = tpu.matmul %478, %467, %cst_158 {dimension_numbers = #tpu.dot_dimension_numbers<[2], [1], [1], [2], [0, 0, 0, 1, 1, 2], [0], [0]>} : vector<2x4x4xf32>, vector<2x4x4xf32>, vector<2x4x4xf32> -> vector<2x4x4xf32>
    "tpu.trace_stop"() : () -> ()
    %480 = vector.extract_strided_slice %417 {offsets = [0, 0, 16], sizes = [2, 4, 4], strides = [1, 1, 1]} : vector<2x4x20xf32> to vector<2x4x4xf32>
    %481 = vector.extract_strided_slice %418 {offsets = [0, 0, 16], sizes = [2, 4, 4], strides = [1, 1, 1]} : vector<2x4x20xf32> to vector<2x4x4xf32>
    %482 = vector.extract_strided_slice %419 {offsets = [0, 0, 16], sizes = [2, 4, 4], strides = [1, 1, 1]} : vector<2x4x20xf32> to vector<2x4x4xf32>
    "tpu.trace_start"() <{level = 10 : i32, message = "bnd,bmd->bnm"}> : () -> ()
    %cst_159 = arith.constant dense<0.000000e+00> : vector<2x4x4xf32>
    %483 = tpu.matmul %480, %481, %cst_159 {dimension_numbers = #tpu.dot_dimension_numbers<[2], [2], [1], [1], [0, 0, 0, 1, 1, 1], [0], [0]>} : vector<2x4x4xf32>, vector<2x4x4xf32>, vector<2x4x4xf32> -> vector<2x4x4xf32>
    "tpu.trace_stop"() : () -> ()
    %cst_160 = arith.constant dense<0xFF800000> : vector<2x4xf32>
    %484 = vector.multi_reduction <maximumf>, %483, %cst_160 [2] : vector<2x4x4xf32> to vector<2x4xf32>
    %485 = vector.shape_cast %484 : vector<2x4xf32> to vector<2x4x1xf32>
    %486 = vector.broadcast %485 : vector<2x4x1xf32> to vector<2x4x4xf32>
    %487 = arith.subf %483, %486 : vector<2x4x4xf32>
    %488 = math.exp %487 : vector<2x4x4xf32>
    %cst_161 = arith.constant dense<0.000000e+00> : vector<2x4xf32>
    %489 = vector.multi_reduction <add>, %488, %cst_161 [2] : vector<2x4x4xf32> to vector<2x4xf32>
    %490 = vector.shape_cast %489 : vector<2x4xf32> to vector<2x4x1xf32>
    %491 = tpu.reciprocal %490 {approx = true} : vector<2x4x1xf32> -> vector<2x4x1xf32>
    %492 = vector.broadcast %491 : vector<2x4x1xf32> to vector<2x4x4xf32>
    %493 = arith.mulf %488, %492 : vector<2x4x4xf32>
    "tpu.trace_start"() <{level = 10 : i32, message = "bnm,bmd->bnd"}> : () -> ()
    %cst_162 = arith.constant dense<0.000000e+00> : vector<2x4x4xf32>
    %494 = tpu.matmul %493, %482, %cst_162 {dimension_numbers = #tpu.dot_dimension_numbers<[2], [1], [1], [2], [0, 0, 0, 1, 1, 2], [0], [0]>} : vector<2x4x4xf32>, vector<2x4x4xf32>, vector<2x4x4xf32> -> vector<2x4x4xf32>
    "tpu.trace_stop"() : () -> ()
    %495 = tpu.concatenate %434, %449, %464, %479, %494 in 2 : vector<2x4x4xf32>, vector<2x4x4xf32>, vector<2x4x4xf32>, vector<2x4x4xf32>, vector<2x4x4xf32> -> vector<2x4x20xf32>
    "tpu.trace_start"() <{level = 10 : i32, message = "bnh,bhd->bnd"}> : () -> ()
    %cst_163 = arith.constant dense<0.000000e+00> : vector<2x4x8xf32>
    %496 = tpu.matmul %495, %374, %cst_163 {dimension_numbers = #tpu.dot_dimension_numbers<[2], [1], [1], [2], [0, 0, 0, 1, 1, 2], [0], [0]>} : vector<2x4x20xf32>, vector<2x20x8xf32>, vector<2x4x8xf32> -> vector<2x4x8xf32>
    "tpu.trace_stop"() : () -> ()
    %497 = arith.addf %366, %496 : vector<2x4x8xf32>
    %cst_164 = arith.constant dense<0.000000e+00> : vector<2x4xf32>
    %498 = vector.multi_reduction <add>, %497, %cst_164 [2] : vector<2x4x8xf32> to vector<2x4xf32>
    %499 = vector.shape_cast %498 : vector<2x4xf32> to vector<2x4x1xf32>
    %cst_165 = arith.constant 8.000000e+00 : f32
    %500 = vector.broadcast %cst_165 : f32 to vector<2x4x1xf32>
    %501 = arith.divf %499, %500 : vector<2x4x1xf32>
    %502 = vector.broadcast %501 : vector<2x4x1xf32> to vector<2x4x8xf32>
    %503 = arith.subf %497, %502 : vector<2x4x8xf32>
    %504 = arith.mulf %503, %503 : vector<2x4x8xf32>
    %cst_166 = arith.constant dense<0.000000e+00> : vector<2x4xf32>
    %505 = vector.multi_reduction <add>, %504, %cst_166 [2] : vector<2x4x8xf32> to vector<2x4xf32>
    %506 = vector.shape_cast %505 : vector<2x4xf32> to vector<2x4x1xf32>
    %cst_167 = arith.constant 8.000000e+00 : f32
    %507 = vector.broadcast %cst_167 : f32 to vector<2x4x1xf32>
    %508 = arith.divf %506, %507 : vector<2x4x1xf32>
    %509 = vector.broadcast %501 : vector<2x4x1xf32> to vector<2x4x8xf32>
    %510 = arith.subf %497, %509 : vector<2x4x8xf32>
    %cst_168 = arith.constant 9.99999974E-6 : f32
    %511 = vector.broadcast %cst_168 : f32 to vector<2x4x1xf32>
    %512 = arith.addf %508, %511 : vector<2x4x1xf32>
    %513 = math.rsqrt %512 : vector<2x4x1xf32>
    %514 = vector.broadcast %513 : vector<2x4x1xf32> to vector<2x4x8xf32>
    %515 = arith.mulf %510, %514 : vector<2x4x8xf32>
    %516 = vector.shape_cast %389 : vector<1x8xf32> to vector<1x1x8xf32>
    %517 = vector.broadcast %516 : vector<1x1x8xf32> to vector<2x4x8xf32>
    %518 = arith.mulf %515, %517 : vector<2x4x8xf32>
    %519 = vector.shape_cast %390 : vector<1x8xf32> to vector<1x1x8xf32>
    %520 = vector.broadcast %519 : vector<1x1x8xf32> to vector<2x4x8xf32>
    %521 = arith.addf %518, %520 : vector<2x4x8xf32>
    "tpu.trace_start"() <{level = 10 : i32, message = "bnd,bdf->bnf"}> : () -> ()
    %cst_169 = arith.constant dense<0.000000e+00> : vector<2x4x32xf32>
    %522 = tpu.matmul %521, %378, %cst_169 {dimension_numbers = #tpu.dot_dimension_numbers<[2], [1], [1], [2], [0, 0, 0, 1, 1, 2], [0], [0]>} : vector<2x4x8xf32>, vector<2x8x32xf32>, vector<2x4x32xf32> -> vector<2x4x32xf32>
    "tpu.trace_stop"() : () -> ()
    %523 = vector.shape_cast %384 : vector<1x32xf32> to vector<1x1x32xf32>
    %524 = vector.broadcast %523 : vector<1x1x32xf32> to vector<2x4x32xf32>
    %525 = arith.addf %522, %524 : vector<2x4x32xf32>
    %526 = arith.mulf %525, %525 : vector<2x4x32xf32>
    %527 = arith.mulf %525, %526 : vector<2x4x32xf32>
    %cst_170 = arith.constant 4.471500e-02 : f32
    %528 = vector.broadcast %cst_170 : f32 to vector<2x4x32xf32>
    %529 = arith.mulf %528, %527 : vector<2x4x32xf32>
    %530 = arith.addf %525, %529 : vector<2x4x32xf32>
    %cst_171 = arith.constant 0.797884583 : f32
    %531 = vector.broadcast %cst_171 : f32 to vector<2x4x32xf32>
    %532 = arith.mulf %531, %530 : vector<2x4x32xf32>
    %533 = math.tanh %532 : vector<2x4x32xf32>
    %cst_172 = arith.constant 1.000000e+00 : f32
    %534 = vector.broadcast %cst_172 : f32 to vector<2x4x32xf32>
    %535 = arith.addf %534, %533 : vector<2x4x32xf32>
    %cst_173 = arith.constant 5.000000e-01 : f32
    %536 = vector.broadcast %cst_173 : f32 to vector<2x4x32xf32>
    %537 = arith.mulf %536, %535 : vector<2x4x32xf32>
    %538 = arith.mulf %525, %537 : vector<2x4x32xf32>
    "tpu.trace_start"() <{level = 10 : i32, message = "bnf,bfd->bnd"}> : () -> ()
    %cst_174 = arith.constant dense<0.000000e+00> : vector<2x4x8xf32>
    %539 = tpu.matmul %538, %382, %cst_174 {dimension_numbers = #tpu.dot_dimension_numbers<[2], [1], [1], [2], [0, 0, 0, 1, 1, 2], [0], [0]>} : vector<2x4x32xf32>, vector<2x32x8xf32>, vector<2x4x8xf32> -> vector<2x4x8xf32>
    "tpu.trace_stop"() : () -> ()
    %540 = vector.shape_cast %391 : vector<1x8xf32> to vector<1x1x8xf32>
    %541 = vector.broadcast %540 : vector<1x1x8xf32> to vector<2x4x8xf32>
    %542 = arith.addf %539, %541 : vector<2x4x8xf32>
    %543 = arith.addf %497, %542 : vector<2x4x8xf32>
    %c3 = arith.constant 3 : index
    %c0_175 = arith.constant 0 : index
    %c0_176 = arith.constant 0 : index
    %544 = vector.load %arg6[%c3, %c0_175, %c0_176] : memref<4x8x60xf32, #tpu.memory_space<vmem>>, vector<1x8x60xf32>
    %545 = vector.shape_cast %544 : vector<1x8x60xf32> to vector<8x60xf32>
    %546 = vector.shape_cast %545 : vector<8x60xf32> to vector<1x8x60xf32>
    %547 = vector.broadcast %546 : vector<1x8x60xf32> to vector<2x8x60xf32>
    %c3_177 = arith.constant 3 : index
    %c0_178 = arith.constant 0 : index
    %c0_179 = arith.constant 0 : index
    %548 = vector.load %arg7[%c3_177, %c0_178, %c0_179] : memref<4x20x8xf32, #tpu.memory_space<vmem>>, vector<1x20x8xf32>
    %549 = vector.shape_cast %548 : vector<1x20x8xf32> to vector<20x8xf32>
    %550 = vector.shape_cast %549 : vector<20x8xf32> to vector<1x20x8xf32>
    %551 = vector.broadcast %550 : vector<1x20x8xf32> to vector<2x20x8xf32>
    %c3_180 = arith.constant 3 : index
    %c0_181 = arith.constant 0 : index
    %c0_182 = arith.constant 0 : index
    %552 = vector.load %arg8[%c3_180, %c0_181, %c0_182] : memref<4x8x32xf32, #tpu.memory_space<vmem>>, vector<1x8x32xf32>
    %553 = vector.shape_cast %552 : vector<1x8x32xf32> to vector<8x32xf32>
    %554 = vector.shape_cast %553 : vector<8x32xf32> to vector<1x8x32xf32>
    %555 = vector.broadcast %554 : vector<1x8x32xf32> to vector<2x8x32xf32>
    %c3_183 = arith.constant 3 : index
    %c0_184 = arith.constant 0 : index
    %c0_185 = arith.constant 0 : index
    %556 = vector.load %arg10[%c3_183, %c0_184, %c0_185] : memref<4x32x8xf32, #tpu.memory_space<vmem>>, vector<1x32x8xf32>
    %557 = vector.shape_cast %556 : vector<1x32x8xf32> to vector<32x8xf32>
    %558 = vector.shape_cast %557 : vector<32x8xf32> to vector<1x32x8xf32>
    %559 = vector.broadcast %558 : vector<1x32x8xf32> to vector<2x32x8xf32>
    %c3_186 = arith.constant 3 : index
    %c0_187 = arith.constant 0 : index
    %c0_188 = arith.constant 0 : index
    %560 = vector.load %arg9[%c3_186, %c0_187, %c0_188] : memref<4x1x32xf32, #tpu.memory_space<vmem>>, vector<1x1x32xf32>
    %561 = vector.shape_cast %560 : vector<1x1x32xf32> to vector<1x32xf32>
    %c3_189 = arith.constant 3 : index
    %c0_190 = arith.constant 0 : index
    %c0_191 = arith.constant 0 : index
    %562 = vector.load %arg11[%c3_189, %c0_190, %c0_191] : memref<4x5x8xf32, #tpu.memory_space<vmem>>, vector<1x5x8xf32>
    %563 = vector.shape_cast %562 : vector<1x5x8xf32> to vector<5x8xf32>
    %564 = vector.extract_strided_slice %563 {offsets = [0, 0], sizes = [1, 8], strides = [1, 1]} : vector<5x8xf32> to vector<1x8xf32>
    %565 = vector.extract_strided_slice %563 {offsets = [1, 0], sizes = [1, 8], strides = [1, 1]} : vector<5x8xf32> to vector<1x8xf32>
    %566 = vector.extract_strided_slice %563 {offsets = [2, 0], sizes = [1, 8], strides = [1, 1]} : vector<5x8xf32> to vector<1x8xf32>
    %567 = vector.extract_strided_slice %563 {offsets = [3, 0], sizes = [1, 8], strides = [1, 1]} : vector<5x8xf32> to vector<1x8xf32>
    %568 = vector.extract_strided_slice %563 {offsets = [4, 0], sizes = [1, 8], strides = [1, 1]} : vector<5x8xf32> to vector<1x8xf32>
    %cst_192 = arith.constant dense<0.000000e+00> : vector<2x4xf32>
    %569 = vector.multi_reduction <add>, %543, %cst_192 [2] : vector<2x4x8xf32> to vector<2x4xf32>
    %570 = vector.shape_cast %569 : vector<2x4xf32> to vector<2x4x1xf32>
    %cst_193 = arith.constant 8.000000e+00 : f32
    %571 = vector.broadcast %cst_193 : f32 to vector<2x4x1xf32>
    %572 = arith.divf %570, %571 : vector<2x4x1xf32>
    %573 = vector.broadcast %572 : vector<2x4x1xf32> to vector<2x4x8xf32>
    %574 = arith.subf %543, %573 : vector<2x4x8xf32>
    %575 = arith.mulf %574, %574 : vector<2x4x8xf32>
    %cst_194 = arith.constant dense<0.000000e+00> : vector<2x4xf32>
    %576 = vector.multi_reduction <add>, %575, %cst_194 [2] : vector<2x4x8xf32> to vector<2x4xf32>
    %577 = vector.shape_cast %576 : vector<2x4xf32> to vector<2x4x1xf32>
    %cst_195 = arith.constant 8.000000e+00 : f32
    %578 = vector.broadcast %cst_195 : f32 to vector<2x4x1xf32>
    %579 = arith.divf %577, %578 : vector<2x4x1xf32>
    %580 = vector.broadcast %572 : vector<2x4x1xf32> to vector<2x4x8xf32>
    %581 = arith.subf %543, %580 : vector<2x4x8xf32>
    %cst_196 = arith.constant 9.99999974E-6 : f32
    %582 = vector.broadcast %cst_196 : f32 to vector<2x4x1xf32>
    %583 = arith.addf %579, %582 : vector<2x4x1xf32>
    %584 = math.rsqrt %583 : vector<2x4x1xf32>
    %585 = vector.broadcast %584 : vector<2x4x1xf32> to vector<2x4x8xf32>
    %586 = arith.mulf %581, %585 : vector<2x4x8xf32>
    %587 = vector.shape_cast %564 : vector<1x8xf32> to vector<1x1x8xf32>
    %588 = vector.broadcast %587 : vector<1x1x8xf32> to vector<2x4x8xf32>
    %589 = arith.mulf %586, %588 : vector<2x4x8xf32>
    %590 = vector.shape_cast %565 : vector<1x8xf32> to vector<1x1x8xf32>
    %591 = vector.broadcast %590 : vector<1x1x8xf32> to vector<2x4x8xf32>
    %592 = arith.addf %589, %591 : vector<2x4x8xf32>
    "tpu.trace_start"() <{level = 10 : i32, message = "bnd,bde->bne"}> : () -> ()
    %cst_197 = arith.constant dense<0.000000e+00> : vector<2x4x60xf32>
    %593 = tpu.matmul %592, %547, %cst_197 {dimension_numbers = #tpu.dot_dimension_numbers<[2], [1], [1], [2], [0, 0, 0, 1, 1, 2], [0], [0]>} : vector<2x4x8xf32>, vector<2x8x60xf32>, vector<2x4x60xf32> -> vector<2x4x60xf32>
    "tpu.trace_stop"() : () -> ()
    %594 = vector.extract_strided_slice %593 {offsets = [0, 0, 0], sizes = [2, 4, 20], strides = [1, 1, 1]} : vector<2x4x60xf32> to vector<2x4x20xf32>
    %595 = vector.extract_strided_slice %593 {offsets = [0, 0, 20], sizes = [2, 4, 20], strides = [1, 1, 1]} : vector<2x4x60xf32> to vector<2x4x20xf32>
    %596 = vector.extract_strided_slice %593 {offsets = [0, 0, 40], sizes = [2, 4, 20], strides = [1, 1, 1]} : vector<2x4x60xf32> to vector<2x4x20xf32>
    %597 = vector.extract_strided_slice %594 {offsets = [0, 0, 0], sizes = [2, 4, 4], strides = [1, 1, 1]} : vector<2x4x20xf32> to vector<2x4x4xf32>
    %598 = vector.extract_strided_slice %595 {offsets = [0, 0, 0], sizes = [2, 4, 4], strides = [1, 1, 1]} : vector<2x4x20xf32> to vector<2x4x4xf32>
    %599 = vector.extract_strided_slice %596 {offsets = [0, 0, 0], sizes = [2, 4, 4], strides = [1, 1, 1]} : vector<2x4x20xf32> to vector<2x4x4xf32>
    "tpu.trace_start"() <{level = 10 : i32, message = "bnd,bmd->bnm"}> : () -> ()
    %cst_198 = arith.constant dense<0.000000e+00> : vector<2x4x4xf32>
    %600 = tpu.matmul %597, %598, %cst_198 {dimension_numbers = #tpu.dot_dimension_numbers<[2], [2], [1], [1], [0, 0, 0, 1, 1, 1], [0], [0]>} : vector<2x4x4xf32>, vector<2x4x4xf32>, vector<2x4x4xf32> -> vector<2x4x4xf32>
    "tpu.trace_stop"() : () -> ()
    %cst_199 = arith.constant dense<0xFF800000> : vector<2x4xf32>
    %601 = vector.multi_reduction <maximumf>, %600, %cst_199 [2] : vector<2x4x4xf32> to vector<2x4xf32>
    %602 = vector.shape_cast %601 : vector<2x4xf32> to vector<2x4x1xf32>
    %603 = vector.broadcast %602 : vector<2x4x1xf32> to vector<2x4x4xf32>
    %604 = arith.subf %600, %603 : vector<2x4x4xf32>
    %605 = math.exp %604 : vector<2x4x4xf32>
    %cst_200 = arith.constant dense<0.000000e+00> : vector<2x4xf32>
    %606 = vector.multi_reduction <add>, %605, %cst_200 [2] : vector<2x4x4xf32> to vector<2x4xf32>
    %607 = vector.shape_cast %606 : vector<2x4xf32> to vector<2x4x1xf32>
    %608 = tpu.reciprocal %607 {approx = true} : vector<2x4x1xf32> -> vector<2x4x1xf32>
    %609 = vector.broadcast %608 : vector<2x4x1xf32> to vector<2x4x4xf32>
    %610 = arith.mulf %605, %609 : vector<2x4x4xf32>
    "tpu.trace_start"() <{level = 10 : i32, message = "bnm,bmd->bnd"}> : () -> ()
    %cst_201 = arith.constant dense<0.000000e+00> : vector<2x4x4xf32>
    %611 = tpu.matmul %610, %599, %cst_201 {dimension_numbers = #tpu.dot_dimension_numbers<[2], [1], [1], [2], [0, 0, 0, 1, 1, 2], [0], [0]>} : vector<2x4x4xf32>, vector<2x4x4xf32>, vector<2x4x4xf32> -> vector<2x4x4xf32>
    "tpu.trace_stop"() : () -> ()
    %612 = vector.extract_strided_slice %594 {offsets = [0, 0, 4], sizes = [2, 4, 4], strides = [1, 1, 1]} : vector<2x4x20xf32> to vector<2x4x4xf32>
    %613 = vector.extract_strided_slice %595 {offsets = [0, 0, 4], sizes = [2, 4, 4], strides = [1, 1, 1]} : vector<2x4x20xf32> to vector<2x4x4xf32>
    %614 = vector.extract_strided_slice %596 {offsets = [0, 0, 4], sizes = [2, 4, 4], strides = [1, 1, 1]} : vector<2x4x20xf32> to vector<2x4x4xf32>
    "tpu.trace_start"() <{level = 10 : i32, message = "bnd,bmd->bnm"}> : () -> ()
    %cst_202 = arith.constant dense<0.000000e+00> : vector<2x4x4xf32>
    %615 = tpu.matmul %612, %613, %cst_202 {dimension_numbers = #tpu.dot_dimension_numbers<[2], [2], [1], [1], [0, 0, 0, 1, 1, 1], [0], [0]>} : vector<2x4x4xf32>, vector<2x4x4xf32>, vector<2x4x4xf32> -> vector<2x4x4xf32>
    "tpu.trace_stop"() : () -> ()
    %cst_203 = arith.constant dense<0xFF800000> : vector<2x4xf32>
    %616 = vector.multi_reduction <maximumf>, %615, %cst_203 [2] : vector<2x4x4xf32> to vector<2x4xf32>
    %617 = vector.shape_cast %616 : vector<2x4xf32> to vector<2x4x1xf32>
    %618 = vector.broadcast %617 : vector<2x4x1xf32> to vector<2x4x4xf32>
    %619 = arith.subf %615, %618 : vector<2x4x4xf32>
    %620 = math.exp %619 : vector<2x4x4xf32>
    %cst_204 = arith.constant dense<0.000000e+00> : vector<2x4xf32>
    %621 = vector.multi_reduction <add>, %620, %cst_204 [2] : vector<2x4x4xf32> to vector<2x4xf32>
    %622 = vector.shape_cast %621 : vector<2x4xf32> to vector<2x4x1xf32>
    %623 = tpu.reciprocal %622 {approx = true} : vector<2x4x1xf32> -> vector<2x4x1xf32>
    %624 = vector.broadcast %623 : vector<2x4x1xf32> to vector<2x4x4xf32>
    %625 = arith.mulf %620, %624 : vector<2x4x4xf32>
    "tpu.trace_start"() <{level = 10 : i32, message = "bnm,bmd->bnd"}> : () -> ()
    %cst_205 = arith.constant dense<0.000000e+00> : vector<2x4x4xf32>
    %626 = tpu.matmul %625, %614, %cst_205 {dimension_numbers = #tpu.dot_dimension_numbers<[2], [1], [1], [2], [0, 0, 0, 1, 1, 2], [0], [0]>} : vector<2x4x4xf32>, vector<2x4x4xf32>, vector<2x4x4xf32> -> vector<2x4x4xf32>
    "tpu.trace_stop"() : () -> ()
    %627 = vector.extract_strided_slice %594 {offsets = [0, 0, 8], sizes = [2, 4, 4], strides = [1, 1, 1]} : vector<2x4x20xf32> to vector<2x4x4xf32>
    %628 = vector.extract_strided_slice %595 {offsets = [0, 0, 8], sizes = [2, 4, 4], strides = [1, 1, 1]} : vector<2x4x20xf32> to vector<2x4x4xf32>
    %629 = vector.extract_strided_slice %596 {offsets = [0, 0, 8], sizes = [2, 4, 4], strides = [1, 1, 1]} : vector<2x4x20xf32> to vector<2x4x4xf32>
    "tpu.trace_start"() <{level = 10 : i32, message = "bnd,bmd->bnm"}> : () -> ()
    %cst_206 = arith.constant dense<0.000000e+00> : vector<2x4x4xf32>
    %630 = tpu.matmul %627, %628, %cst_206 {dimension_numbers = #tpu.dot_dimension_numbers<[2], [2], [1], [1], [0, 0, 0, 1, 1, 1], [0], [0]>} : vector<2x4x4xf32>, vector<2x4x4xf32>, vector<2x4x4xf32> -> vector<2x4x4xf32>
    "tpu.trace_stop"() : () -> ()
    %cst_207 = arith.constant dense<0xFF800000> : vector<2x4xf32>
    %631 = vector.multi_reduction <maximumf>, %630, %cst_207 [2] : vector<2x4x4xf32> to vector<2x4xf32>
    %632 = vector.shape_cast %631 : vector<2x4xf32> to vector<2x4x1xf32>
    %633 = vector.broadcast %632 : vector<2x4x1xf32> to vector<2x4x4xf32>
    %634 = arith.subf %630, %633 : vector<2x4x4xf32>
    %635 = math.exp %634 : vector<2x4x4xf32>
    %cst_208 = arith.constant dense<0.000000e+00> : vector<2x4xf32>
    %636 = vector.multi_reduction <add>, %635, %cst_208 [2] : vector<2x4x4xf32> to vector<2x4xf32>
    %637 = vector.shape_cast %636 : vector<2x4xf32> to vector<2x4x1xf32>
    %638 = tpu.reciprocal %637 {approx = true} : vector<2x4x1xf32> -> vector<2x4x1xf32>
    %639 = vector.broadcast %638 : vector<2x4x1xf32> to vector<2x4x4xf32>
    %640 = arith.mulf %635, %639 : vector<2x4x4xf32>
    "tpu.trace_start"() <{level = 10 : i32, message = "bnm,bmd->bnd"}> : () -> ()
    %cst_209 = arith.constant dense<0.000000e+00> : vector<2x4x4xf32>
    %641 = tpu.matmul %640, %629, %cst_209 {dimension_numbers = #tpu.dot_dimension_numbers<[2], [1], [1], [2], [0, 0, 0, 1, 1, 2], [0], [0]>} : vector<2x4x4xf32>, vector<2x4x4xf32>, vector<2x4x4xf32> -> vector<2x4x4xf32>
    "tpu.trace_stop"() : () -> ()
    %642 = vector.extract_strided_slice %594 {offsets = [0, 0, 12], sizes = [2, 4, 4], strides = [1, 1, 1]} : vector<2x4x20xf32> to vector<2x4x4xf32>
    %643 = vector.extract_strided_slice %595 {offsets = [0, 0, 12], sizes = [2, 4, 4], strides = [1, 1, 1]} : vector<2x4x20xf32> to vector<2x4x4xf32>
    %644 = vector.extract_strided_slice %596 {offsets = [0, 0, 12], sizes = [2, 4, 4], strides = [1, 1, 1]} : vector<2x4x20xf32> to vector<2x4x4xf32>
    "tpu.trace_start"() <{level = 10 : i32, message = "bnd,bmd->bnm"}> : () -> ()
    %cst_210 = arith.constant dense<0.000000e+00> : vector<2x4x4xf32>
    %645 = tpu.matmul %642, %643, %cst_210 {dimension_numbers = #tpu.dot_dimension_numbers<[2], [2], [1], [1], [0, 0, 0, 1, 1, 1], [0], [0]>} : vector<2x4x4xf32>, vector<2x4x4xf32>, vector<2x4x4xf32> -> vector<2x4x4xf32>
    "tpu.trace_stop"() : () -> ()
    %cst_211 = arith.constant dense<0xFF800000> : vector<2x4xf32>
    %646 = vector.multi_reduction <maximumf>, %645, %cst_211 [2] : vector<2x4x4xf32> to vector<2x4xf32>
    %647 = vector.shape_cast %646 : vector<2x4xf32> to vector<2x4x1xf32>
    %648 = vector.broadcast %647 : vector<2x4x1xf32> to vector<2x4x4xf32>
    %649 = arith.subf %645, %648 : vector<2x4x4xf32>
    %650 = math.exp %649 : vector<2x4x4xf32>
    %cst_212 = arith.constant dense<0.000000e+00> : vector<2x4xf32>
    %651 = vector.multi_reduction <add>, %650, %cst_212 [2] : vector<2x4x4xf32> to vector<2x4xf32>
    %652 = vector.shape_cast %651 : vector<2x4xf32> to vector<2x4x1xf32>
    %653 = tpu.reciprocal %652 {approx = true} : vector<2x4x1xf32> -> vector<2x4x1xf32>
    %654 = vector.broadcast %653 : vector<2x4x1xf32> to vector<2x4x4xf32>
    %655 = arith.mulf %650, %654 : vector<2x4x4xf32>
    "tpu.trace_start"() <{level = 10 : i32, message = "bnm,bmd->bnd"}> : () -> ()
    %cst_213 = arith.constant dense<0.000000e+00> : vector<2x4x4xf32>
    %656 = tpu.matmul %655, %644, %cst_213 {dimension_numbers = #tpu.dot_dimension_numbers<[2], [1], [1], [2], [0, 0, 0, 1, 1, 2], [0], [0]>} : vector<2x4x4xf32>, vector<2x4x4xf32>, vector<2x4x4xf32> -> vector<2x4x4xf32>
    "tpu.trace_stop"() : () -> ()
    %657 = vector.extract_strided_slice %594 {offsets = [0, 0, 16], sizes = [2, 4, 4], strides = [1, 1, 1]} : vector<2x4x20xf32> to vector<2x4x4xf32>
    %658 = vector.extract_strided_slice %595 {offsets = [0, 0, 16], sizes = [2, 4, 4], strides = [1, 1, 1]} : vector<2x4x20xf32> to vector<2x4x4xf32>
    %659 = vector.extract_strided_slice %596 {offsets = [0, 0, 16], sizes = [2, 4, 4], strides = [1, 1, 1]} : vector<2x4x20xf32> to vector<2x4x4xf32>
    "tpu.trace_start"() <{level = 10 : i32, message = "bnd,bmd->bnm"}> : () -> ()
    %cst_214 = arith.constant dense<0.000000e+00> : vector<2x4x4xf32>
    %660 = tpu.matmul %657, %658, %cst_214 {dimension_numbers = #tpu.dot_dimension_numbers<[2], [2], [1], [1], [0, 0, 0, 1, 1, 1], [0], [0]>} : vector<2x4x4xf32>, vector<2x4x4xf32>, vector<2x4x4xf32> -> vector<2x4x4xf32>
    "tpu.trace_stop"() : () -> ()
    %cst_215 = arith.constant dense<0xFF800000> : vector<2x4xf32>
    %661 = vector.multi_reduction <maximumf>, %660, %cst_215 [2] : vector<2x4x4xf32> to vector<2x4xf32>
    %662 = vector.shape_cast %661 : vector<2x4xf32> to vector<2x4x1xf32>
    %663 = vector.broadcast %662 : vector<2x4x1xf32> to vector<2x4x4xf32>
    %664 = arith.subf %660, %663 : vector<2x4x4xf32>
    %665 = math.exp %664 : vector<2x4x4xf32>
    %cst_216 = arith.constant dense<0.000000e+00> : vector<2x4xf32>
    %666 = vector.multi_reduction <add>, %665, %cst_216 [2] : vector<2x4x4xf32> to vector<2x4xf32>
    %667 = vector.shape_cast %666 : vector<2x4xf32> to vector<2x4x1xf32>
    %668 = tpu.reciprocal %667 {approx = true} : vector<2x4x1xf32> -> vector<2x4x1xf32>
    %669 = vector.broadcast %668 : vector<2x4x1xf32> to vector<2x4x4xf32>
    %670 = arith.mulf %665, %669 : vector<2x4x4xf32>
    "tpu.trace_start"() <{level = 10 : i32, message = "bnm,bmd->bnd"}> : () -> ()
    %cst_217 = arith.constant dense<0.000000e+00> : vector<2x4x4xf32>
    %671 = tpu.matmul %670, %659, %cst_217 {dimension_numbers = #tpu.dot_dimension_numbers<[2], [1], [1], [2], [0, 0, 0, 1, 1, 2], [0], [0]>} : vector<2x4x4xf32>, vector<2x4x4xf32>, vector<2x4x4xf32> -> vector<2x4x4xf32>
    "tpu.trace_stop"() : () -> ()
    %672 = tpu.concatenate %611, %626, %641, %656, %671 in 2 : vector<2x4x4xf32>, vector<2x4x4xf32>, vector<2x4x4xf32>, vector<2x4x4xf32>, vector<2x4x4xf32> -> vector<2x4x20xf32>
    "tpu.trace_start"() <{level = 10 : i32, message = "bnh,bhd->bnd"}> : () -> ()
    %cst_218 = arith.constant dense<0.000000e+00> : vector<2x4x8xf32>
    %673 = tpu.matmul %672, %551, %cst_218 {dimension_numbers = #tpu.dot_dimension_numbers<[2], [1], [1], [2], [0, 0, 0, 1, 1, 2], [0], [0]>} : vector<2x4x20xf32>, vector<2x20x8xf32>, vector<2x4x8xf32> -> vector<2x4x8xf32>
    "tpu.trace_stop"() : () -> ()
    %674 = arith.addf %543, %673 : vector<2x4x8xf32>
    %cst_219 = arith.constant dense<0.000000e+00> : vector<2x4xf32>
    %675 = vector.multi_reduction <add>, %674, %cst_219 [2] : vector<2x4x8xf32> to vector<2x4xf32>
    %676 = vector.shape_cast %675 : vector<2x4xf32> to vector<2x4x1xf32>
    %cst_220 = arith.constant 8.000000e+00 : f32
    %677 = vector.broadcast %cst_220 : f32 to vector<2x4x1xf32>
    %678 = arith.divf %676, %677 : vector<2x4x1xf32>
    %679 = vector.broadcast %678 : vector<2x4x1xf32> to vector<2x4x8xf32>
    %680 = arith.subf %674, %679 : vector<2x4x8xf32>
    %681 = arith.mulf %680, %680 : vector<2x4x8xf32>
    %cst_221 = arith.constant dense<0.000000e+00> : vector<2x4xf32>
    %682 = vector.multi_reduction <add>, %681, %cst_221 [2] : vector<2x4x8xf32> to vector<2x4xf32>
    %683 = vector.shape_cast %682 : vector<2x4xf32> to vector<2x4x1xf32>
    %cst_222 = arith.constant 8.000000e+00 : f32
    %684 = vector.broadcast %cst_222 : f32 to vector<2x4x1xf32>
    %685 = arith.divf %683, %684 : vector<2x4x1xf32>
    %686 = vector.broadcast %678 : vector<2x4x1xf32> to vector<2x4x8xf32>
    %687 = arith.subf %674, %686 : vector<2x4x8xf32>
    %cst_223 = arith.constant 9.99999974E-6 : f32
    %688 = vector.broadcast %cst_223 : f32 to vector<2x4x1xf32>
    %689 = arith.addf %685, %688 : vector<2x4x1xf32>
    %690 = math.rsqrt %689 : vector<2x4x1xf32>
    %691 = vector.broadcast %690 : vector<2x4x1xf32> to vector<2x4x8xf32>
    %692 = arith.mulf %687, %691 : vector<2x4x8xf32>
    %693 = vector.shape_cast %566 : vector<1x8xf32> to vector<1x1x8xf32>
    %694 = vector.broadcast %693 : vector<1x1x8xf32> to vector<2x4x8xf32>
    %695 = arith.mulf %692, %694 : vector<2x4x8xf32>
    %696 = vector.shape_cast %567 : vector<1x8xf32> to vector<1x1x8xf32>
    %697 = vector.broadcast %696 : vector<1x1x8xf32> to vector<2x4x8xf32>
    %698 = arith.addf %695, %697 : vector<2x4x8xf32>
    "tpu.trace_start"() <{level = 10 : i32, message = "bnd,bdf->bnf"}> : () -> ()
    %cst_224 = arith.constant dense<0.000000e+00> : vector<2x4x32xf32>
    %699 = tpu.matmul %698, %555, %cst_224 {dimension_numbers = #tpu.dot_dimension_numbers<[2], [1], [1], [2], [0, 0, 0, 1, 1, 2], [0], [0]>} : vector<2x4x8xf32>, vector<2x8x32xf32>, vector<2x4x32xf32> -> vector<2x4x32xf32>
    "tpu.trace_stop"() : () -> ()
    %700 = vector.shape_cast %561 : vector<1x32xf32> to vector<1x1x32xf32>
    %701 = vector.broadcast %700 : vector<1x1x32xf32> to vector<2x4x32xf32>
    %702 = arith.addf %699, %701 : vector<2x4x32xf32>
    %703 = arith.mulf %702, %702 : vector<2x4x32xf32>
    %704 = arith.mulf %702, %703 : vector<2x4x32xf32>
    %cst_225 = arith.constant 4.471500e-02 : f32
    %705 = vector.broadcast %cst_225 : f32 to vector<2x4x32xf32>
    %706 = arith.mulf %705, %704 : vector<2x4x32xf32>
    %707 = arith.addf %702, %706 : vector<2x4x32xf32>
    %cst_226 = arith.constant 0.797884583 : f32
    %708 = vector.broadcast %cst_226 : f32 to vector<2x4x32xf32>
    %709 = arith.mulf %708, %707 : vector<2x4x32xf32>
    %710 = math.tanh %709 : vector<2x4x32xf32>
    %cst_227 = arith.constant 1.000000e+00 : f32
    %711 = vector.broadcast %cst_227 : f32 to vector<2x4x32xf32>
    %712 = arith.addf %711, %710 : vector<2x4x32xf32>
    %cst_228 = arith.constant 5.000000e-01 : f32
    %713 = vector.broadcast %cst_228 : f32 to vector<2x4x32xf32>
    %714 = arith.mulf %713, %712 : vector<2x4x32xf32>
    %715 = arith.mulf %702, %714 : vector<2x4x32xf32>
    "tpu.trace_start"() <{level = 10 : i32, message = "bnf,bfd->bnd"}> : () -> ()
    %cst_229 = arith.constant dense<0.000000e+00> : vector<2x4x8xf32>
    %716 = tpu.matmul %715, %559, %cst_229 {dimension_numbers = #tpu.dot_dimension_numbers<[2], [1], [1], [2], [0, 0, 0, 1, 1, 2], [0], [0]>} : vector<2x4x32xf32>, vector<2x32x8xf32>, vector<2x4x8xf32> -> vector<2x4x8xf32>
    "tpu.trace_stop"() : () -> ()
    %717 = vector.shape_cast %568 : vector<1x8xf32> to vector<1x1x8xf32>
    %718 = vector.broadcast %717 : vector<1x1x8xf32> to vector<2x4x8xf32>
    %719 = arith.addf %716, %718 : vector<2x4x8xf32>
    %720 = arith.addf %674, %719 : vector<2x4x8xf32>
    %c0_230 = arith.constant 0 : index
    %c0_231 = arith.constant 0 : index
    %721 = vector.load %arg2[%c0_230, %c0_231] : memref<8x8xf32, #tpu.memory_space<vmem>>, vector<8x8xf32>
    %722 = vector.shape_cast %721 : vector<8x8xf32> to vector<1x8x8xf32>
    %723 = vector.broadcast %722 : vector<1x8x8xf32> to vector<2x8x8xf32>
    "tpu.trace_start"() <{level = 10 : i32, message = "bsk,bnk->bsn"}> : () -> ()
    %cst_232 = arith.constant dense<0.000000e+00> : vector<2x8x4xf32>
    %724 = tpu.matmul %723, %720, %cst_232 {dimension_numbers = #tpu.dot_dimension_numbers<[2], [2], [1], [1], [0, 0, 0, 1, 1, 1], [0], [0]>} : vector<2x8x8xf32>, vector<2x4x8xf32>, vector<2x8x4xf32> -> vector<2x8x4xf32>
    "tpu.trace_stop"() : () -> ()
    %c0_233 = arith.constant 0 : index
    %c0_234 = arith.constant 0 : index
    %725 = vector.load %arg5[%c0_233, %c0_234] : memref<8x4xf32, #tpu.memory_space<vmem>>, vector<8x4xf32>
    %726 = vector.shape_cast %725 : vector<8x4xf32> to vector<1x8x4xf32>
    %727 = vector.broadcast %726 : vector<1x8x4xf32> to vector<2x8x4xf32>
    %728 = arith.addf %724, %727 : vector<2x8x4xf32>
    %c0_235 = arith.constant 0 : index
    %c0_236 = arith.constant 0 : index
    %c0_237 = arith.constant 0 : index
    %729 = vector.load %arg12[%c0_235, %c0_236, %c0_237] : memref<4x4x24xf32, #tpu.memory_space<vmem>>, vector<1x4x24xf32>
    %730 = vector.shape_cast %729 : vector<1x4x24xf32> to vector<4x24xf32>
    %731 = vector.shape_cast %730 : vector<4x24xf32> to vector<1x4x24xf32>
    %732 = vector.broadcast %731 : vector<1x4x24xf32> to vector<2x4x24xf32>
    %c0_238 = arith.constant 0 : index
    %c0_239 = arith.constant 0 : index
    %c0_240 = arith.constant 0 : index
    %733 = vector.load %arg13[%c0_238, %c0_239, %c0_240] : memref<4x8x4xf32, #tpu.memory_space<vmem>>, vector<1x8x4xf32>
    %734 = vector.shape_cast %733 : vector<1x8x4xf32> to vector<8x4xf32>
    %735 = vector.shape_cast %734 : vector<8x4xf32> to vector<1x8x4xf32>
    %736 = vector.broadcast %735 : vector<1x8x4xf32> to vector<2x8x4xf32>
    %c0_241 = arith.constant 0 : index
    %c0_242 = arith.constant 0 : index
    %c0_243 = arith.constant 0 : index
    %737 = vector.load %arg14[%c0_241, %c0_242, %c0_243] : memref<4x4x16xf32, #tpu.memory_space<vmem>>, vector<1x4x16xf32>
    %738 = vector.shape_cast %737 : vector<1x4x16xf32> to vector<4x16xf32>
    %739 = vector.shape_cast %738 : vector<4x16xf32> to vector<1x4x16xf32>
    %740 = vector.broadcast %739 : vector<1x4x16xf32> to vector<2x4x16xf32>
    %c0_244 = arith.constant 0 : index
    %c0_245 = arith.constant 0 : index
    %c0_246 = arith.constant 0 : index
    %741 = vector.load %arg16[%c0_244, %c0_245, %c0_246] : memref<4x16x4xf32, #tpu.memory_space<vmem>>, vector<1x16x4xf32>
    %742 = vector.shape_cast %741 : vector<1x16x4xf32> to vector<16x4xf32>
    %743 = vector.shape_cast %742 : vector<16x4xf32> to vector<1x16x4xf32>
    %744 = vector.broadcast %743 : vector<1x16x4xf32> to vector<2x16x4xf32>
    %c0_247 = arith.constant 0 : index
    %c0_248 = arith.constant 0 : index
    %c0_249 = arith.constant 0 : index
    %745 = vector.load %arg15[%c0_247, %c0_248, %c0_249] : memref<4x1x16xf32, #tpu.memory_space<vmem>>, vector<1x1x16xf32>
    %746 = vector.shape_cast %745 : vector<1x1x16xf32> to vector<1x16xf32>
    %c0_250 = arith.constant 0 : index
    %c0_251 = arith.constant 0 : index
    %c0_252 = arith.constant 0 : index
    %747 = vector.load %arg17[%c0_250, %c0_251, %c0_252] : memref<4x5x4xf32, #tpu.memory_space<vmem>>, vector<1x5x4xf32>
    %748 = vector.shape_cast %747 : vector<1x5x4xf32> to vector<5x4xf32>
    %749 = vector.extract_strided_slice %748 {offsets = [0, 0], sizes = [1, 4], strides = [1, 1]} : vector<5x4xf32> to vector<1x4xf32>
    %750 = vector.extract_strided_slice %748 {offsets = [1, 0], sizes = [1, 4], strides = [1, 1]} : vector<5x4xf32> to vector<1x4xf32>
    %751 = vector.extract_strided_slice %748 {offsets = [2, 0], sizes = [1, 4], strides = [1, 1]} : vector<5x4xf32> to vector<1x4xf32>
    %752 = vector.extract_strided_slice %748 {offsets = [3, 0], sizes = [1, 4], strides = [1, 1]} : vector<5x4xf32> to vector<1x4xf32>
    %753 = vector.extract_strided_slice %748 {offsets = [4, 0], sizes = [1, 4], strides = [1, 1]} : vector<5x4xf32> to vector<1x4xf32>
    %cst_253 = arith.constant dense<0.000000e+00> : vector<2x8xf32>
    %754 = vector.multi_reduction <add>, %728, %cst_253 [2] : vector<2x8x4xf32> to vector<2x8xf32>
    %755 = vector.shape_cast %754 : vector<2x8xf32> to vector<2x8x1xf32>
    %cst_254 = arith.constant 4.000000e+00 : f32
    %756 = vector.broadcast %cst_254 : f32 to vector<2x8x1xf32>
    %757 = arith.divf %755, %756 : vector<2x8x1xf32>
    %758 = vector.broadcast %757 : vector<2x8x1xf32> to vector<2x8x4xf32>
    %759 = arith.subf %728, %758 : vector<2x8x4xf32>
    %760 = arith.mulf %759, %759 : vector<2x8x4xf32>
    %cst_255 = arith.constant dense<0.000000e+00> : vector<2x8xf32>
    %761 = vector.multi_reduction <add>, %760, %cst_255 [2] : vector<2x8x4xf32> to vector<2x8xf32>
    %762 = vector.shape_cast %761 : vector<2x8xf32> to vector<2x8x1xf32>
    %cst_256 = arith.constant 4.000000e+00 : f32
    %763 = vector.broadcast %cst_256 : f32 to vector<2x8x1xf32>
    %764 = arith.divf %762, %763 : vector<2x8x1xf32>
    %765 = vector.broadcast %757 : vector<2x8x1xf32> to vector<2x8x4xf32>
    %766 = arith.subf %728, %765 : vector<2x8x4xf32>
    %cst_257 = arith.constant 9.99999974E-6 : f32
    %767 = vector.broadcast %cst_257 : f32 to vector<2x8x1xf32>
    %768 = arith.addf %764, %767 : vector<2x8x1xf32>
    %769 = math.rsqrt %768 : vector<2x8x1xf32>
    %770 = vector.broadcast %769 : vector<2x8x1xf32> to vector<2x8x4xf32>
    %771 = arith.mulf %766, %770 : vector<2x8x4xf32>
    %772 = vector.shape_cast %749 : vector<1x4xf32> to vector<1x1x4xf32>
    %773 = vector.broadcast %772 : vector<1x1x4xf32> to vector<2x8x4xf32>
    %774 = arith.mulf %771, %773 : vector<2x8x4xf32>
    %775 = vector.shape_cast %750 : vector<1x4xf32> to vector<1x1x4xf32>
    %776 = vector.broadcast %775 : vector<1x1x4xf32> to vector<2x8x4xf32>
    %777 = arith.addf %774, %776 : vector<2x8x4xf32>
    "tpu.trace_start"() <{level = 10 : i32, message = "bnd,bde->bne"}> : () -> ()
    %cst_258 = arith.constant dense<0.000000e+00> : vector<2x8x24xf32>
    %778 = tpu.matmul %777, %732, %cst_258 {dimension_numbers = #tpu.dot_dimension_numbers<[2], [1], [1], [2], [0, 0, 0, 1, 1, 2], [0], [0]>} : vector<2x8x4xf32>, vector<2x4x24xf32>, vector<2x8x24xf32> -> vector<2x8x24xf32>
    "tpu.trace_stop"() : () -> ()
    %779 = vector.extract_strided_slice %778 {offsets = [0, 0, 0], sizes = [2, 8, 8], strides = [1, 1, 1]} : vector<2x8x24xf32> to vector<2x8x8xf32>
    %780 = vector.extract_strided_slice %778 {offsets = [0, 0, 8], sizes = [2, 8, 8], strides = [1, 1, 1]} : vector<2x8x24xf32> to vector<2x8x8xf32>
    %781 = vector.extract_strided_slice %778 {offsets = [0, 0, 16], sizes = [2, 8, 8], strides = [1, 1, 1]} : vector<2x8x24xf32> to vector<2x8x8xf32>
    %782 = vector.extract_strided_slice %779 {offsets = [0, 0, 0], sizes = [2, 8, 2], strides = [1, 1, 1]} : vector<2x8x8xf32> to vector<2x8x2xf32>
    %783 = vector.extract_strided_slice %780 {offsets = [0, 0, 0], sizes = [2, 8, 2], strides = [1, 1, 1]} : vector<2x8x8xf32> to vector<2x8x2xf32>
    %784 = vector.extract_strided_slice %781 {offsets = [0, 0, 0], sizes = [2, 8, 2], strides = [1, 1, 1]} : vector<2x8x8xf32> to vector<2x8x2xf32>
    "tpu.trace_start"() <{level = 10 : i32, message = "bnd,bmd->bnm"}> : () -> ()
    %cst_259 = arith.constant dense<0.000000e+00> : vector<2x8x8xf32>
    %785 = tpu.matmul %782, %783, %cst_259 {dimension_numbers = #tpu.dot_dimension_numbers<[2], [2], [1], [1], [0, 0, 0, 1, 1, 1], [0], [0]>} : vector<2x8x2xf32>, vector<2x8x2xf32>, vector<2x8x8xf32> -> vector<2x8x8xf32>
    "tpu.trace_stop"() : () -> ()
    %cst_260 = arith.constant dense<0xFF800000> : vector<2x8xf32>
    %786 = vector.multi_reduction <maximumf>, %785, %cst_260 [2] : vector<2x8x8xf32> to vector<2x8xf32>
    %787 = vector.shape_cast %786 : vector<2x8xf32> to vector<2x8x1xf32>
    %788 = vector.broadcast %787 : vector<2x8x1xf32> to vector<2x8x8xf32>
    %789 = arith.subf %785, %788 : vector<2x8x8xf32>
    %790 = math.exp %789 : vector<2x8x8xf32>
    %cst_261 = arith.constant dense<0.000000e+00> : vector<2x8xf32>
    %791 = vector.multi_reduction <add>, %790, %cst_261 [2] : vector<2x8x8xf32> to vector<2x8xf32>
    %792 = vector.shape_cast %791 : vector<2x8xf32> to vector<2x8x1xf32>
    %793 = tpu.reciprocal %792 {approx = true} : vector<2x8x1xf32> -> vector<2x8x1xf32>
    %794 = vector.broadcast %793 : vector<2x8x1xf32> to vector<2x8x8xf32>
    %795 = arith.mulf %790, %794 : vector<2x8x8xf32>
    "tpu.trace_start"() <{level = 10 : i32, message = "bnm,bmd->bnd"}> : () -> ()
    %cst_262 = arith.constant dense<0.000000e+00> : vector<2x8x2xf32>
    %796 = tpu.matmul %795, %784, %cst_262 {dimension_numbers = #tpu.dot_dimension_numbers<[2], [1], [1], [2], [0, 0, 0, 1, 1, 2], [0], [0]>} : vector<2x8x8xf32>, vector<2x8x2xf32>, vector<2x8x2xf32> -> vector<2x8x2xf32>
    "tpu.trace_stop"() : () -> ()
    %797 = vector.extract_strided_slice %779 {offsets = [0, 0, 2], sizes = [2, 8, 2], strides = [1, 1, 1]} : vector<2x8x8xf32> to vector<2x8x2xf32>
    %798 = vector.extract_strided_slice %780 {offsets = [0, 0, 2], sizes = [2, 8, 2], strides = [1, 1, 1]} : vector<2x8x8xf32> to vector<2x8x2xf32>
    %799 = vector.extract_strided_slice %781 {offsets = [0, 0, 2], sizes = [2, 8, 2], strides = [1, 1, 1]} : vector<2x8x8xf32> to vector<2x8x2xf32>
    "tpu.trace_start"() <{level = 10 : i32, message = "bnd,bmd->bnm"}> : () -> ()
    %cst_263 = arith.constant dense<0.000000e+00> : vector<2x8x8xf32>
    %800 = tpu.matmul %797, %798, %cst_263 {dimension_numbers = #tpu.dot_dimension_numbers<[2], [2], [1], [1], [0, 0, 0, 1, 1, 1], [0], [0]>} : vector<2x8x2xf32>, vector<2x8x2xf32>, vector<2x8x8xf32> -> vector<2x8x8xf32>
    "tpu.trace_stop"() : () -> ()
    %cst_264 = arith.constant dense<0xFF800000> : vector<2x8xf32>
    %801 = vector.multi_reduction <maximumf>, %800, %cst_264 [2] : vector<2x8x8xf32> to vector<2x8xf32>
    %802 = vector.shape_cast %801 : vector<2x8xf32> to vector<2x8x1xf32>
    %803 = vector.broadcast %802 : vector<2x8x1xf32> to vector<2x8x8xf32>
    %804 = arith.subf %800, %803 : vector<2x8x8xf32>
    %805 = math.exp %804 : vector<2x8x8xf32>
    %cst_265 = arith.constant dense<0.000000e+00> : vector<2x8xf32>
    %806 = vector.multi_reduction <add>, %805, %cst_265 [2] : vector<2x8x8xf32> to vector<2x8xf32>
    %807 = vector.shape_cast %806 : vector<2x8xf32> to vector<2x8x1xf32>
    %808 = tpu.reciprocal %807 {approx = true} : vector<2x8x1xf32> -> vector<2x8x1xf32>
    %809 = vector.broadcast %808 : vector<2x8x1xf32> to vector<2x8x8xf32>
    %810 = arith.mulf %805, %809 : vector<2x8x8xf32>
    "tpu.trace_start"() <{level = 10 : i32, message = "bnm,bmd->bnd"}> : () -> ()
    %cst_266 = arith.constant dense<0.000000e+00> : vector<2x8x2xf32>
    %811 = tpu.matmul %810, %799, %cst_266 {dimension_numbers = #tpu.dot_dimension_numbers<[2], [1], [1], [2], [0, 0, 0, 1, 1, 2], [0], [0]>} : vector<2x8x8xf32>, vector<2x8x2xf32>, vector<2x8x2xf32> -> vector<2x8x2xf32>
    "tpu.trace_stop"() : () -> ()
    %812 = vector.extract_strided_slice %779 {offsets = [0, 0, 4], sizes = [2, 8, 2], strides = [1, 1, 1]} : vector<2x8x8xf32> to vector<2x8x2xf32>
    %813 = vector.extract_strided_slice %780 {offsets = [0, 0, 4], sizes = [2, 8, 2], strides = [1, 1, 1]} : vector<2x8x8xf32> to vector<2x8x2xf32>
    %814 = vector.extract_strided_slice %781 {offsets = [0, 0, 4], sizes = [2, 8, 2], strides = [1, 1, 1]} : vector<2x8x8xf32> to vector<2x8x2xf32>
    "tpu.trace_start"() <{level = 10 : i32, message = "bnd,bmd->bnm"}> : () -> ()
    %cst_267 = arith.constant dense<0.000000e+00> : vector<2x8x8xf32>
    %815 = tpu.matmul %812, %813, %cst_267 {dimension_numbers = #tpu.dot_dimension_numbers<[2], [2], [1], [1], [0, 0, 0, 1, 1, 1], [0], [0]>} : vector<2x8x2xf32>, vector<2x8x2xf32>, vector<2x8x8xf32> -> vector<2x8x8xf32>
    "tpu.trace_stop"() : () -> ()
    %cst_268 = arith.constant dense<0xFF800000> : vector<2x8xf32>
    %816 = vector.multi_reduction <maximumf>, %815, %cst_268 [2] : vector<2x8x8xf32> to vector<2x8xf32>
    %817 = vector.shape_cast %816 : vector<2x8xf32> to vector<2x8x1xf32>
    %818 = vector.broadcast %817 : vector<2x8x1xf32> to vector<2x8x8xf32>
    %819 = arith.subf %815, %818 : vector<2x8x8xf32>
    %820 = math.exp %819 : vector<2x8x8xf32>
    %cst_269 = arith.constant dense<0.000000e+00> : vector<2x8xf32>
    %821 = vector.multi_reduction <add>, %820, %cst_269 [2] : vector<2x8x8xf32> to vector<2x8xf32>
    %822 = vector.shape_cast %821 : vector<2x8xf32> to vector<2x8x1xf32>
    %823 = tpu.reciprocal %822 {approx = true} : vector<2x8x1xf32> -> vector<2x8x1xf32>
    %824 = vector.broadcast %823 : vector<2x8x1xf32> to vector<2x8x8xf32>
    %825 = arith.mulf %820, %824 : vector<2x8x8xf32>
    "tpu.trace_start"() <{level = 10 : i32, message = "bnm,bmd->bnd"}> : () -> ()
    %cst_270 = arith.constant dense<0.000000e+00> : vector<2x8x2xf32>
    %826 = tpu.matmul %825, %814, %cst_270 {dimension_numbers = #tpu.dot_dimension_numbers<[2], [1], [1], [2], [0, 0, 0, 1, 1, 2], [0], [0]>} : vector<2x8x8xf32>, vector<2x8x2xf32>, vector<2x8x2xf32> -> vector<2x8x2xf32>
    "tpu.trace_stop"() : () -> ()
    %827 = vector.extract_strided_slice %779 {offsets = [0, 0, 6], sizes = [2, 8, 2], strides = [1, 1, 1]} : vector<2x8x8xf32> to vector<2x8x2xf32>
    %828 = vector.extract_strided_slice %780 {offsets = [0, 0, 6], sizes = [2, 8, 2], strides = [1, 1, 1]} : vector<2x8x8xf32> to vector<2x8x2xf32>
    %829 = vector.extract_strided_slice %781 {offsets = [0, 0, 6], sizes = [2, 8, 2], strides = [1, 1, 1]} : vector<2x8x8xf32> to vector<2x8x2xf32>
    "tpu.trace_start"() <{level = 10 : i32, message = "bnd,bmd->bnm"}> : () -> ()
    %cst_271 = arith.constant dense<0.000000e+00> : vector<2x8x8xf32>
    %830 = tpu.matmul %827, %828, %cst_271 {dimension_numbers = #tpu.dot_dimension_numbers<[2], [2], [1], [1], [0, 0, 0, 1, 1, 1], [0], [0]>} : vector<2x8x2xf32>, vector<2x8x2xf32>, vector<2x8x8xf32> -> vector<2x8x8xf32>
    "tpu.trace_stop"() : () -> ()
    %cst_272 = arith.constant dense<0xFF800000> : vector<2x8xf32>
    %831 = vector.multi_reduction <maximumf>, %830, %cst_272 [2] : vector<2x8x8xf32> to vector<2x8xf32>
    %832 = vector.shape_cast %831 : vector<2x8xf32> to vector<2x8x1xf32>
    %833 = vector.broadcast %832 : vector<2x8x1xf32> to vector<2x8x8xf32>
    %834 = arith.subf %830, %833 : vector<2x8x8xf32>
    %835 = math.exp %834 : vector<2x8x8xf32>
    %cst_273 = arith.constant dense<0.000000e+00> : vector<2x8xf32>
    %836 = vector.multi_reduction <add>, %835, %cst_273 [2] : vector<2x8x8xf32> to vector<2x8xf32>
    %837 = vector.shape_cast %836 : vector<2x8xf32> to vector<2x8x1xf32>
    %838 = tpu.reciprocal %837 {approx = true} : vector<2x8x1xf32> -> vector<2x8x1xf32>
    %839 = vector.broadcast %838 : vector<2x8x1xf32> to vector<2x8x8xf32>
    %840 = arith.mulf %835, %839 : vector<2x8x8xf32>
    "tpu.trace_start"() <{level = 10 : i32, message = "bnm,bmd->bnd"}> : () -> ()
    %cst_274 = arith.constant dense<0.000000e+00> : vector<2x8x2xf32>
    %841 = tpu.matmul %840, %829, %cst_274 {dimension_numbers = #tpu.dot_dimension_numbers<[2], [1], [1], [2], [0, 0, 0, 1, 1, 2], [0], [0]>} : vector<2x8x8xf32>, vector<2x8x2xf32>, vector<2x8x2xf32> -> vector<2x8x2xf32>
    "tpu.trace_stop"() : () -> ()
    %842 = tpu.concatenate %796, %811, %826, %841 in 2 : vector<2x8x2xf32>, vector<2x8x2xf32>, vector<2x8x2xf32>, vector<2x8x2xf32> -> vector<2x8x8xf32>
    "tpu.trace_start"() <{level = 10 : i32, message = "bnh,bhd->bnd"}> : () -> ()
    %cst_275 = arith.constant dense<0.000000e+00> : vector<2x8x4xf32>
    %843 = tpu.matmul %842, %736, %cst_275 {dimension_numbers = #tpu.dot_dimension_numbers<[2], [1], [1], [2], [0, 0, 0, 1, 1, 2], [0], [0]>} : vector<2x8x8xf32>, vector<2x8x4xf32>, vector<2x8x4xf32> -> vector<2x8x4xf32>
    "tpu.trace_stop"() : () -> ()
    %844 = arith.addf %728, %843 : vector<2x8x4xf32>
    %cst_276 = arith.constant dense<0.000000e+00> : vector<2x8xf32>
    %845 = vector.multi_reduction <add>, %844, %cst_276 [2] : vector<2x8x4xf32> to vector<2x8xf32>
    %846 = vector.shape_cast %845 : vector<2x8xf32> to vector<2x8x1xf32>
    %cst_277 = arith.constant 4.000000e+00 : f32
    %847 = vector.broadcast %cst_277 : f32 to vector<2x8x1xf32>
    %848 = arith.divf %846, %847 : vector<2x8x1xf32>
    %849 = vector.broadcast %848 : vector<2x8x1xf32> to vector<2x8x4xf32>
    %850 = arith.subf %844, %849 : vector<2x8x4xf32>
    %851 = arith.mulf %850, %850 : vector<2x8x4xf32>
    %cst_278 = arith.constant dense<0.000000e+00> : vector<2x8xf32>
    %852 = vector.multi_reduction <add>, %851, %cst_278 [2] : vector<2x8x4xf32> to vector<2x8xf32>
    %853 = vector.shape_cast %852 : vector<2x8xf32> to vector<2x8x1xf32>
    %cst_279 = arith.constant 4.000000e+00 : f32
    %854 = vector.broadcast %cst_279 : f32 to vector<2x8x1xf32>
    %855 = arith.divf %853, %854 : vector<2x8x1xf32>
    %856 = vector.broadcast %848 : vector<2x8x1xf32> to vector<2x8x4xf32>
    %857 = arith.subf %844, %856 : vector<2x8x4xf32>
    %cst_280 = arith.constant 9.99999974E-6 : f32
    %858 = vector.broadcast %cst_280 : f32 to vector<2x8x1xf32>
    %859 = arith.addf %855, %858 : vector<2x8x1xf32>
    %860 = math.rsqrt %859 : vector<2x8x1xf32>
    %861 = vector.broadcast %860 : vector<2x8x1xf32> to vector<2x8x4xf32>
    %862 = arith.mulf %857, %861 : vector<2x8x4xf32>
    %863 = vector.shape_cast %751 : vector<1x4xf32> to vector<1x1x4xf32>
    %864 = vector.broadcast %863 : vector<1x1x4xf32> to vector<2x8x4xf32>
    %865 = arith.mulf %862, %864 : vector<2x8x4xf32>
    %866 = vector.shape_cast %752 : vector<1x4xf32> to vector<1x1x4xf32>
    %867 = vector.broadcast %866 : vector<1x1x4xf32> to vector<2x8x4xf32>
    %868 = arith.addf %865, %867 : vector<2x8x4xf32>
    "tpu.trace_start"() <{level = 10 : i32, message = "bnd,bdf->bnf"}> : () -> ()
    %cst_281 = arith.constant dense<0.000000e+00> : vector<2x8x16xf32>
    %869 = tpu.matmul %868, %740, %cst_281 {dimension_numbers = #tpu.dot_dimension_numbers<[2], [1], [1], [2], [0, 0, 0, 1, 1, 2], [0], [0]>} : vector<2x8x4xf32>, vector<2x4x16xf32>, vector<2x8x16xf32> -> vector<2x8x16xf32>
    "tpu.trace_stop"() : () -> ()
    %870 = vector.shape_cast %746 : vector<1x16xf32> to vector<1x1x16xf32>
    %871 = vector.broadcast %870 : vector<1x1x16xf32> to vector<2x8x16xf32>
    %872 = arith.addf %869, %871 : vector<2x8x16xf32>
    %873 = arith.mulf %872, %872 : vector<2x8x16xf32>
    %874 = arith.mulf %872, %873 : vector<2x8x16xf32>
    %cst_282 = arith.constant 4.471500e-02 : f32
    %875 = vector.broadcast %cst_282 : f32 to vector<2x8x16xf32>
    %876 = arith.mulf %875, %874 : vector<2x8x16xf32>
    %877 = arith.addf %872, %876 : vector<2x8x16xf32>
    %cst_283 = arith.constant 0.797884583 : f32
    %878 = vector.broadcast %cst_283 : f32 to vector<2x8x16xf32>
    %879 = arith.mulf %878, %877 : vector<2x8x16xf32>
    %880 = math.tanh %879 : vector<2x8x16xf32>
    %cst_284 = arith.constant 1.000000e+00 : f32
    %881 = vector.broadcast %cst_284 : f32 to vector<2x8x16xf32>
    %882 = arith.addf %881, %880 : vector<2x8x16xf32>
    %cst_285 = arith.constant 5.000000e-01 : f32
    %883 = vector.broadcast %cst_285 : f32 to vector<2x8x16xf32>
    %884 = arith.mulf %883, %882 : vector<2x8x16xf32>
    %885 = arith.mulf %872, %884 : vector<2x8x16xf32>
    "tpu.trace_start"() <{level = 10 : i32, message = "bnf,bfd->bnd"}> : () -> ()
    %cst_286 = arith.constant dense<0.000000e+00> : vector<2x8x4xf32>
    %886 = tpu.matmul %885, %744, %cst_286 {dimension_numbers = #tpu.dot_dimension_numbers<[2], [1], [1], [2], [0, 0, 0, 1, 1, 2], [0], [0]>} : vector<2x8x16xf32>, vector<2x16x4xf32>, vector<2x8x4xf32> -> vector<2x8x4xf32>
    "tpu.trace_stop"() : () -> ()
    %887 = vector.shape_cast %753 : vector<1x4xf32> to vector<1x1x4xf32>
    %888 = vector.broadcast %887 : vector<1x1x4xf32> to vector<2x8x4xf32>
    %889 = arith.addf %886, %888 : vector<2x8x4xf32>
    %890 = arith.addf %844, %889 : vector<2x8x4xf32>
    %c1_287 = arith.constant 1 : index
    %c0_288 = arith.constant 0 : index
    %c0_289 = arith.constant 0 : index
    %891 = vector.load %arg12[%c1_287, %c0_288, %c0_289] : memref<4x4x24xf32, #tpu.memory_space<vmem>>, vector<1x4x24xf32>
    %892 = vector.shape_cast %891 : vector<1x4x24xf32> to vector<4x24xf32>
    %893 = vector.shape_cast %892 : vector<4x24xf32> to vector<1x4x24xf32>
    %894 = vector.broadcast %893 : vector<1x4x24xf32> to vector<2x4x24xf32>
    %c1_290 = arith.constant 1 : index
    %c0_291 = arith.constant 0 : index
    %c0_292 = arith.constant 0 : index
    %895 = vector.load %arg13[%c1_290, %c0_291, %c0_292] : memref<4x8x4xf32, #tpu.memory_space<vmem>>, vector<1x8x4xf32>
    %896 = vector.shape_cast %895 : vector<1x8x4xf32> to vector<8x4xf32>
    %897 = vector.shape_cast %896 : vector<8x4xf32> to vector<1x8x4xf32>
    %898 = vector.broadcast %897 : vector<1x8x4xf32> to vector<2x8x4xf32>
    %c1_293 = arith.constant 1 : index
    %c0_294 = arith.constant 0 : index
    %c0_295 = arith.constant 0 : index
    %899 = vector.load %arg14[%c1_293, %c0_294, %c0_295] : memref<4x4x16xf32, #tpu.memory_space<vmem>>, vector<1x4x16xf32>
    %900 = vector.shape_cast %899 : vector<1x4x16xf32> to vector<4x16xf32>
    %901 = vector.shape_cast %900 : vector<4x16xf32> to vector<1x4x16xf32>
    %902 = vector.broadcast %901 : vector<1x4x16xf32> to vector<2x4x16xf32>
    %c1_296 = arith.constant 1 : index
    %c0_297 = arith.constant 0 : index
    %c0_298 = arith.constant 0 : index
    %903 = vector.load %arg16[%c1_296, %c0_297, %c0_298] : memref<4x16x4xf32, #tpu.memory_space<vmem>>, vector<1x16x4xf32>
    %904 = vector.shape_cast %903 : vector<1x16x4xf32> to vector<16x4xf32>
    %905 = vector.shape_cast %904 : vector<16x4xf32> to vector<1x16x4xf32>
    %906 = vector.broadcast %905 : vector<1x16x4xf32> to vector<2x16x4xf32>
    %c1_299 = arith.constant 1 : index
    %c0_300 = arith.constant 0 : index
    %c0_301 = arith.constant 0 : index
    %907 = vector.load %arg15[%c1_299, %c0_300, %c0_301] : memref<4x1x16xf32, #tpu.memory_space<vmem>>, vector<1x1x16xf32>
    %908 = vector.shape_cast %907 : vector<1x1x16xf32> to vector<1x16xf32>
    %c1_302 = arith.constant 1 : index
    %c0_303 = arith.constant 0 : index
    %c0_304 = arith.constant 0 : index
    %909 = vector.load %arg17[%c1_302, %c0_303, %c0_304] : memref<4x5x4xf32, #tpu.memory_space<vmem>>, vector<1x5x4xf32>
    %910 = vector.shape_cast %909 : vector<1x5x4xf32> to vector<5x4xf32>
    %911 = vector.extract_strided_slice %910 {offsets = [0, 0], sizes = [1, 4], strides = [1, 1]} : vector<5x4xf32> to vector<1x4xf32>
    %912 = vector.extract_strided_slice %910 {offsets = [1, 0], sizes = [1, 4], strides = [1, 1]} : vector<5x4xf32> to vector<1x4xf32>
    %913 = vector.extract_strided_slice %910 {offsets = [2, 0], sizes = [1, 4], strides = [1, 1]} : vector<5x4xf32> to vector<1x4xf32>
    %914 = vector.extract_strided_slice %910 {offsets = [3, 0], sizes = [1, 4], strides = [1, 1]} : vector<5x4xf32> to vector<1x4xf32>
    %915 = vector.extract_strided_slice %910 {offsets = [4, 0], sizes = [1, 4], strides = [1, 1]} : vector<5x4xf32> to vector<1x4xf32>
    %cst_305 = arith.constant dense<0.000000e+00> : vector<2x8xf32>
    %916 = vector.multi_reduction <add>, %890, %cst_305 [2] : vector<2x8x4xf32> to vector<2x8xf32>
    %917 = vector.shape_cast %916 : vector<2x8xf32> to vector<2x8x1xf32>
    %cst_306 = arith.constant 4.000000e+00 : f32
    %918 = vector.broadcast %cst_306 : f32 to vector<2x8x1xf32>
    %919 = arith.divf %917, %918 : vector<2x8x1xf32>
    %920 = vector.broadcast %919 : vector<2x8x1xf32> to vector<2x8x4xf32>
    %921 = arith.subf %890, %920 : vector<2x8x4xf32>
    %922 = arith.mulf %921, %921 : vector<2x8x4xf32>
    %cst_307 = arith.constant dense<0.000000e+00> : vector<2x8xf32>
    %923 = vector.multi_reduction <add>, %922, %cst_307 [2] : vector<2x8x4xf32> to vector<2x8xf32>
    %924 = vector.shape_cast %923 : vector<2x8xf32> to vector<2x8x1xf32>
    %cst_308 = arith.constant 4.000000e+00 : f32
    %925 = vector.broadcast %cst_308 : f32 to vector<2x8x1xf32>
    %926 = arith.divf %924, %925 : vector<2x8x1xf32>
    %927 = vector.broadcast %919 : vector<2x8x1xf32> to vector<2x8x4xf32>
    %928 = arith.subf %890, %927 : vector<2x8x4xf32>
    %cst_309 = arith.constant 9.99999974E-6 : f32
    %929 = vector.broadcast %cst_309 : f32 to vector<2x8x1xf32>
    %930 = arith.addf %926, %929 : vector<2x8x1xf32>
    %931 = math.rsqrt %930 : vector<2x8x1xf32>
    %932 = vector.broadcast %931 : vector<2x8x1xf32> to vector<2x8x4xf32>
    %933 = arith.mulf %928, %932 : vector<2x8x4xf32>
    %934 = vector.shape_cast %911 : vector<1x4xf32> to vector<1x1x4xf32>
    %935 = vector.broadcast %934 : vector<1x1x4xf32> to vector<2x8x4xf32>
    %936 = arith.mulf %933, %935 : vector<2x8x4xf32>
    %937 = vector.shape_cast %912 : vector<1x4xf32> to vector<1x1x4xf32>
    %938 = vector.broadcast %937 : vector<1x1x4xf32> to vector<2x8x4xf32>
    %939 = arith.addf %936, %938 : vector<2x8x4xf32>
    "tpu.trace_start"() <{level = 10 : i32, message = "bnd,bde->bne"}> : () -> ()
    %cst_310 = arith.constant dense<0.000000e+00> : vector<2x8x24xf32>
    %940 = tpu.matmul %939, %894, %cst_310 {dimension_numbers = #tpu.dot_dimension_numbers<[2], [1], [1], [2], [0, 0, 0, 1, 1, 2], [0], [0]>} : vector<2x8x4xf32>, vector<2x4x24xf32>, vector<2x8x24xf32> -> vector<2x8x24xf32>
    "tpu.trace_stop"() : () -> ()
    %941 = vector.extract_strided_slice %940 {offsets = [0, 0, 0], sizes = [2, 8, 8], strides = [1, 1, 1]} : vector<2x8x24xf32> to vector<2x8x8xf32>
    %942 = vector.extract_strided_slice %940 {offsets = [0, 0, 8], sizes = [2, 8, 8], strides = [1, 1, 1]} : vector<2x8x24xf32> to vector<2x8x8xf32>
    %943 = vector.extract_strided_slice %940 {offsets = [0, 0, 16], sizes = [2, 8, 8], strides = [1, 1, 1]} : vector<2x8x24xf32> to vector<2x8x8xf32>
    %944 = vector.extract_strided_slice %941 {offsets = [0, 0, 0], sizes = [2, 8, 2], strides = [1, 1, 1]} : vector<2x8x8xf32> to vector<2x8x2xf32>
    %945 = vector.extract_strided_slice %942 {offsets = [0, 0, 0], sizes = [2, 8, 2], strides = [1, 1, 1]} : vector<2x8x8xf32> to vector<2x8x2xf32>
    %946 = vector.extract_strided_slice %943 {offsets = [0, 0, 0], sizes = [2, 8, 2], strides = [1, 1, 1]} : vector<2x8x8xf32> to vector<2x8x2xf32>
    "tpu.trace_start"() <{level = 10 : i32, message = "bnd,bmd->bnm"}> : () -> ()
    %cst_311 = arith.constant dense<0.000000e+00> : vector<2x8x8xf32>
    %947 = tpu.matmul %944, %945, %cst_311 {dimension_numbers = #tpu.dot_dimension_numbers<[2], [2], [1], [1], [0, 0, 0, 1, 1, 1], [0], [0]>} : vector<2x8x2xf32>, vector<2x8x2xf32>, vector<2x8x8xf32> -> vector<2x8x8xf32>
    "tpu.trace_stop"() : () -> ()
    %cst_312 = arith.constant dense<0xFF800000> : vector<2x8xf32>
    %948 = vector.multi_reduction <maximumf>, %947, %cst_312 [2] : vector<2x8x8xf32> to vector<2x8xf32>
    %949 = vector.shape_cast %948 : vector<2x8xf32> to vector<2x8x1xf32>
    %950 = vector.broadcast %949 : vector<2x8x1xf32> to vector<2x8x8xf32>
    %951 = arith.subf %947, %950 : vector<2x8x8xf32>
    %952 = math.exp %951 : vector<2x8x8xf32>
    %cst_313 = arith.constant dense<0.000000e+00> : vector<2x8xf32>
    %953 = vector.multi_reduction <add>, %952, %cst_313 [2] : vector<2x8x8xf32> to vector<2x8xf32>
    %954 = vector.shape_cast %953 : vector<2x8xf32> to vector<2x8x1xf32>
    %955 = tpu.reciprocal %954 {approx = true} : vector<2x8x1xf32> -> vector<2x8x1xf32>
    %956 = vector.broadcast %955 : vector<2x8x1xf32> to vector<2x8x8xf32>
    %957 = arith.mulf %952, %956 : vector<2x8x8xf32>
    "tpu.trace_start"() <{level = 10 : i32, message = "bnm,bmd->bnd"}> : () -> ()
    %cst_314 = arith.constant dense<0.000000e+00> : vector<2x8x2xf32>
    %958 = tpu.matmul %957, %946, %cst_314 {dimension_numbers = #tpu.dot_dimension_numbers<[2], [1], [1], [2], [0, 0, 0, 1, 1, 2], [0], [0]>} : vector<2x8x8xf32>, vector<2x8x2xf32>, vector<2x8x2xf32> -> vector<2x8x2xf32>
    "tpu.trace_stop"() : () -> ()
    %959 = vector.extract_strided_slice %941 {offsets = [0, 0, 2], sizes = [2, 8, 2], strides = [1, 1, 1]} : vector<2x8x8xf32> to vector<2x8x2xf32>
    %960 = vector.extract_strided_slice %942 {offsets = [0, 0, 2], sizes = [2, 8, 2], strides = [1, 1, 1]} : vector<2x8x8xf32> to vector<2x8x2xf32>
    %961 = vector.extract_strided_slice %943 {offsets = [0, 0, 2], sizes = [2, 8, 2], strides = [1, 1, 1]} : vector<2x8x8xf32> to vector<2x8x2xf32>
    "tpu.trace_start"() <{level = 10 : i32, message = "bnd,bmd->bnm"}> : () -> ()
    %cst_315 = arith.constant dense<0.000000e+00> : vector<2x8x8xf32>
    %962 = tpu.matmul %959, %960, %cst_315 {dimension_numbers = #tpu.dot_dimension_numbers<[2], [2], [1], [1], [0, 0, 0, 1, 1, 1], [0], [0]>} : vector<2x8x2xf32>, vector<2x8x2xf32>, vector<2x8x8xf32> -> vector<2x8x8xf32>
    "tpu.trace_stop"() : () -> ()
    %cst_316 = arith.constant dense<0xFF800000> : vector<2x8xf32>
    %963 = vector.multi_reduction <maximumf>, %962, %cst_316 [2] : vector<2x8x8xf32> to vector<2x8xf32>
    %964 = vector.shape_cast %963 : vector<2x8xf32> to vector<2x8x1xf32>
    %965 = vector.broadcast %964 : vector<2x8x1xf32> to vector<2x8x8xf32>
    %966 = arith.subf %962, %965 : vector<2x8x8xf32>
    %967 = math.exp %966 : vector<2x8x8xf32>
    %cst_317 = arith.constant dense<0.000000e+00> : vector<2x8xf32>
    %968 = vector.multi_reduction <add>, %967, %cst_317 [2] : vector<2x8x8xf32> to vector<2x8xf32>
    %969 = vector.shape_cast %968 : vector<2x8xf32> to vector<2x8x1xf32>
    %970 = tpu.reciprocal %969 {approx = true} : vector<2x8x1xf32> -> vector<2x8x1xf32>
    %971 = vector.broadcast %970 : vector<2x8x1xf32> to vector<2x8x8xf32>
    %972 = arith.mulf %967, %971 : vector<2x8x8xf32>
    "tpu.trace_start"() <{level = 10 : i32, message = "bnm,bmd->bnd"}> : () -> ()
    %cst_318 = arith.constant dense<0.000000e+00> : vector<2x8x2xf32>
    %973 = tpu.matmul %972, %961, %cst_318 {dimension_numbers = #tpu.dot_dimension_numbers<[2], [1], [1], [2], [0, 0, 0, 1, 1, 2], [0], [0]>} : vector<2x8x8xf32>, vector<2x8x2xf32>, vector<2x8x2xf32> -> vector<2x8x2xf32>
    "tpu.trace_stop"() : () -> ()
    %974 = vector.extract_strided_slice %941 {offsets = [0, 0, 4], sizes = [2, 8, 2], strides = [1, 1, 1]} : vector<2x8x8xf32> to vector<2x8x2xf32>
    %975 = vector.extract_strided_slice %942 {offsets = [0, 0, 4], sizes = [2, 8, 2], strides = [1, 1, 1]} : vector<2x8x8xf32> to vector<2x8x2xf32>
    %976 = vector.extract_strided_slice %943 {offsets = [0, 0, 4], sizes = [2, 8, 2], strides = [1, 1, 1]} : vector<2x8x8xf32> to vector<2x8x2xf32>
    "tpu.trace_start"() <{level = 10 : i32, message = "bnd,bmd->bnm"}> : () -> ()
    %cst_319 = arith.constant dense<0.000000e+00> : vector<2x8x8xf32>
    %977 = tpu.matmul %974, %975, %cst_319 {dimension_numbers = #tpu.dot_dimension_numbers<[2], [2], [1], [1], [0, 0, 0, 1, 1, 1], [0], [0]>} : vector<2x8x2xf32>, vector<2x8x2xf32>, vector<2x8x8xf32> -> vector<2x8x8xf32>
    "tpu.trace_stop"() : () -> ()
    %cst_320 = arith.constant dense<0xFF800000> : vector<2x8xf32>
    %978 = vector.multi_reduction <maximumf>, %977, %cst_320 [2] : vector<2x8x8xf32> to vector<2x8xf32>
    %979 = vector.shape_cast %978 : vector<2x8xf32> to vector<2x8x1xf32>
    %980 = vector.broadcast %979 : vector<2x8x1xf32> to vector<2x8x8xf32>
    %981 = arith.subf %977, %980 : vector<2x8x8xf32>
    %982 = math.exp %981 : vector<2x8x8xf32>
    %cst_321 = arith.constant dense<0.000000e+00> : vector<2x8xf32>
    %983 = vector.multi_reduction <add>, %982, %cst_321 [2] : vector<2x8x8xf32> to vector<2x8xf32>
    %984 = vector.shape_cast %983 : vector<2x8xf32> to vector<2x8x1xf32>
    %985 = tpu.reciprocal %984 {approx = true} : vector<2x8x1xf32> -> vector<2x8x1xf32>
    %986 = vector.broadcast %985 : vector<2x8x1xf32> to vector<2x8x8xf32>
    %987 = arith.mulf %982, %986 : vector<2x8x8xf32>
    "tpu.trace_start"() <{level = 10 : i32, message = "bnm,bmd->bnd"}> : () -> ()
    %cst_322 = arith.constant dense<0.000000e+00> : vector<2x8x2xf32>
    %988 = tpu.matmul %987, %976, %cst_322 {dimension_numbers = #tpu.dot_dimension_numbers<[2], [1], [1], [2], [0, 0, 0, 1, 1, 2], [0], [0]>} : vector<2x8x8xf32>, vector<2x8x2xf32>, vector<2x8x2xf32> -> vector<2x8x2xf32>
    "tpu.trace_stop"() : () -> ()
    %989 = vector.extract_strided_slice %941 {offsets = [0, 0, 6], sizes = [2, 8, 2], strides = [1, 1, 1]} : vector<2x8x8xf32> to vector<2x8x2xf32>
    %990 = vector.extract_strided_slice %942 {offsets = [0, 0, 6], sizes = [2, 8, 2], strides = [1, 1, 1]} : vector<2x8x8xf32> to vector<2x8x2xf32>
    %991 = vector.extract_strided_slice %943 {offsets = [0, 0, 6], sizes = [2, 8, 2], strides = [1, 1, 1]} : vector<2x8x8xf32> to vector<2x8x2xf32>
    "tpu.trace_start"() <{level = 10 : i32, message = "bnd,bmd->bnm"}> : () -> ()
    %cst_323 = arith.constant dense<0.000000e+00> : vector<2x8x8xf32>
    %992 = tpu.matmul %989, %990, %cst_323 {dimension_numbers = #tpu.dot_dimension_numbers<[2], [2], [1], [1], [0, 0, 0, 1, 1, 1], [0], [0]>} : vector<2x8x2xf32>, vector<2x8x2xf32>, vector<2x8x8xf32> -> vector<2x8x8xf32>
    "tpu.trace_stop"() : () -> ()
    %cst_324 = arith.constant dense<0xFF800000> : vector<2x8xf32>
    %993 = vector.multi_reduction <maximumf>, %992, %cst_324 [2] : vector<2x8x8xf32> to vector<2x8xf32>
    %994 = vector.shape_cast %993 : vector<2x8xf32> to vector<2x8x1xf32>
    %995 = vector.broadcast %994 : vector<2x8x1xf32> to vector<2x8x8xf32>
    %996 = arith.subf %992, %995 : vector<2x8x8xf32>
    %997 = math.exp %996 : vector<2x8x8xf32>
    %cst_325 = arith.constant dense<0.000000e+00> : vector<2x8xf32>
    %998 = vector.multi_reduction <add>, %997, %cst_325 [2] : vector<2x8x8xf32> to vector<2x8xf32>
    %999 = vector.shape_cast %998 : vector<2x8xf32> to vector<2x8x1xf32>
    %1000 = tpu.reciprocal %999 {approx = true} : vector<2x8x1xf32> -> vector<2x8x1xf32>
    %1001 = vector.broadcast %1000 : vector<2x8x1xf32> to vector<2x8x8xf32>
    %1002 = arith.mulf %997, %1001 : vector<2x8x8xf32>
    "tpu.trace_start"() <{level = 10 : i32, message = "bnm,bmd->bnd"}> : () -> ()
    %cst_326 = arith.constant dense<0.000000e+00> : vector<2x8x2xf32>
    %1003 = tpu.matmul %1002, %991, %cst_326 {dimension_numbers = #tpu.dot_dimension_numbers<[2], [1], [1], [2], [0, 0, 0, 1, 1, 2], [0], [0]>} : vector<2x8x8xf32>, vector<2x8x2xf32>, vector<2x8x2xf32> -> vector<2x8x2xf32>
    "tpu.trace_stop"() : () -> ()
    %1004 = tpu.concatenate %958, %973, %988, %1003 in 2 : vector<2x8x2xf32>, vector<2x8x2xf32>, vector<2x8x2xf32>, vector<2x8x2xf32> -> vector<2x8x8xf32>
    "tpu.trace_start"() <{level = 10 : i32, message = "bnh,bhd->bnd"}> : () -> ()
    %cst_327 = arith.constant dense<0.000000e+00> : vector<2x8x4xf32>
    %1005 = tpu.matmul %1004, %898, %cst_327 {dimension_numbers = #tpu.dot_dimension_numbers<[2], [1], [1], [2], [0, 0, 0, 1, 1, 2], [0], [0]>} : vector<2x8x8xf32>, vector<2x8x4xf32>, vector<2x8x4xf32> -> vector<2x8x4xf32>
    "tpu.trace_stop"() : () -> ()
    %1006 = arith.addf %890, %1005 : vector<2x8x4xf32>
    %cst_328 = arith.constant dense<0.000000e+00> : vector<2x8xf32>
    %1007 = vector.multi_reduction <add>, %1006, %cst_328 [2] : vector<2x8x4xf32> to vector<2x8xf32>
    %1008 = vector.shape_cast %1007 : vector<2x8xf32> to vector<2x8x1xf32>
    %cst_329 = arith.constant 4.000000e+00 : f32
    %1009 = vector.broadcast %cst_329 : f32 to vector<2x8x1xf32>
    %1010 = arith.divf %1008, %1009 : vector<2x8x1xf32>
    %1011 = vector.broadcast %1010 : vector<2x8x1xf32> to vector<2x8x4xf32>
    %1012 = arith.subf %1006, %1011 : vector<2x8x4xf32>
    %1013 = arith.mulf %1012, %1012 : vector<2x8x4xf32>
    %cst_330 = arith.constant dense<0.000000e+00> : vector<2x8xf32>
    %1014 = vector.multi_reduction <add>, %1013, %cst_330 [2] : vector<2x8x4xf32> to vector<2x8xf32>
    %1015 = vector.shape_cast %1014 : vector<2x8xf32> to vector<2x8x1xf32>
    %cst_331 = arith.constant 4.000000e+00 : f32
    %1016 = vector.broadcast %cst_331 : f32 to vector<2x8x1xf32>
    %1017 = arith.divf %1015, %1016 : vector<2x8x1xf32>
    %1018 = vector.broadcast %1010 : vector<2x8x1xf32> to vector<2x8x4xf32>
    %1019 = arith.subf %1006, %1018 : vector<2x8x4xf32>
    %cst_332 = arith.constant 9.99999974E-6 : f32
    %1020 = vector.broadcast %cst_332 : f32 to vector<2x8x1xf32>
    %1021 = arith.addf %1017, %1020 : vector<2x8x1xf32>
    %1022 = math.rsqrt %1021 : vector<2x8x1xf32>
    %1023 = vector.broadcast %1022 : vector<2x8x1xf32> to vector<2x8x4xf32>
    %1024 = arith.mulf %1019, %1023 : vector<2x8x4xf32>
    %1025 = vector.shape_cast %913 : vector<1x4xf32> to vector<1x1x4xf32>
    %1026 = vector.broadcast %1025 : vector<1x1x4xf32> to vector<2x8x4xf32>
    %1027 = arith.mulf %1024, %1026 : vector<2x8x4xf32>
    %1028 = vector.shape_cast %914 : vector<1x4xf32> to vector<1x1x4xf32>
    %1029 = vector.broadcast %1028 : vector<1x1x4xf32> to vector<2x8x4xf32>
    %1030 = arith.addf %1027, %1029 : vector<2x8x4xf32>
    "tpu.trace_start"() <{level = 10 : i32, message = "bnd,bdf->bnf"}> : () -> ()
    %cst_333 = arith.constant dense<0.000000e+00> : vector<2x8x16xf32>
    %1031 = tpu.matmul %1030, %902, %cst_333 {dimension_numbers = #tpu.dot_dimension_numbers<[2], [1], [1], [2], [0, 0, 0, 1, 1, 2], [0], [0]>} : vector<2x8x4xf32>, vector<2x4x16xf32>, vector<2x8x16xf32> -> vector<2x8x16xf32>
    "tpu.trace_stop"() : () -> ()
    %1032 = vector.shape_cast %908 : vector<1x16xf32> to vector<1x1x16xf32>
    %1033 = vector.broadcast %1032 : vector<1x1x16xf32> to vector<2x8x16xf32>
    %1034 = arith.addf %1031, %1033 : vector<2x8x16xf32>
    %1035 = arith.mulf %1034, %1034 : vector<2x8x16xf32>
    %1036 = arith.mulf %1034, %1035 : vector<2x8x16xf32>
    %cst_334 = arith.constant 4.471500e-02 : f32
    %1037 = vector.broadcast %cst_334 : f32 to vector<2x8x16xf32>
    %1038 = arith.mulf %1037, %1036 : vector<2x8x16xf32>
    %1039 = arith.addf %1034, %1038 : vector<2x8x16xf32>
    %cst_335 = arith.constant 0.797884583 : f32
    %1040 = vector.broadcast %cst_335 : f32 to vector<2x8x16xf32>
    %1041 = arith.mulf %1040, %1039 : vector<2x8x16xf32>
    %1042 = math.tanh %1041 : vector<2x8x16xf32>
    %cst_336 = arith.constant 1.000000e+00 : f32
    %1043 = vector.broadcast %cst_336 : f32 to vector<2x8x16xf32>
    %1044 = arith.addf %1043, %1042 : vector<2x8x16xf32>
    %cst_337 = arith.constant 5.000000e-01 : f32
    %1045 = vector.broadcast %cst_337 : f32 to vector<2x8x16xf32>
    %1046 = arith.mulf %1045, %1044 : vector<2x8x16xf32>
    %1047 = arith.mulf %1034, %1046 : vector<2x8x16xf32>
    "tpu.trace_start"() <{level = 10 : i32, message = "bnf,bfd->bnd"}> : () -> ()
    %cst_338 = arith.constant dense<0.000000e+00> : vector<2x8x4xf32>
    %1048 = tpu.matmul %1047, %906, %cst_338 {dimension_numbers = #tpu.dot_dimension_numbers<[2], [1], [1], [2], [0, 0, 0, 1, 1, 2], [0], [0]>} : vector<2x8x16xf32>, vector<2x16x4xf32>, vector<2x8x4xf32> -> vector<2x8x4xf32>
    "tpu.trace_stop"() : () -> ()
    %1049 = vector.shape_cast %915 : vector<1x4xf32> to vector<1x1x4xf32>
    %1050 = vector.broadcast %1049 : vector<1x1x4xf32> to vector<2x8x4xf32>
    %1051 = arith.addf %1048, %1050 : vector<2x8x4xf32>
    %1052 = arith.addf %1006, %1051 : vector<2x8x4xf32>
    %c2_339 = arith.constant 2 : index
    %c0_340 = arith.constant 0 : index
    %c0_341 = arith.constant 0 : index
    %1053 = vector.load %arg12[%c2_339, %c0_340, %c0_341] : memref<4x4x24xf32, #tpu.memory_space<vmem>>, vector<1x4x24xf32>
    %1054 = vector.shape_cast %1053 : vector<1x4x24xf32> to vector<4x24xf32>
    %1055 = vector.shape_cast %1054 : vector<4x24xf32> to vector<1x4x24xf32>
    %1056 = vector.broadcast %1055 : vector<1x4x24xf32> to vector<2x4x24xf32>
    %c2_342 = arith.constant 2 : index
    %c0_343 = arith.constant 0 : index
    %c0_344 = arith.constant 0 : index
    %1057 = vector.load %arg13[%c2_342, %c0_343, %c0_344] : memref<4x8x4xf32, #tpu.memory_space<vmem>>, vector<1x8x4xf32>
    %1058 = vector.shape_cast %1057 : vector<1x8x4xf32> to vector<8x4xf32>
    %1059 = vector.shape_cast %1058 : vector<8x4xf32> to vector<1x8x4xf32>
    %1060 = vector.broadcast %1059 : vector<1x8x4xf32> to vector<2x8x4xf32>
    %c2_345 = arith.constant 2 : index
    %c0_346 = arith.constant 0 : index
    %c0_347 = arith.constant 0 : index
    %1061 = vector.load %arg14[%c2_345, %c0_346, %c0_347] : memref<4x4x16xf32, #tpu.memory_space<vmem>>, vector<1x4x16xf32>
    %1062 = vector.shape_cast %1061 : vector<1x4x16xf32> to vector<4x16xf32>
    %1063 = vector.shape_cast %1062 : vector<4x16xf32> to vector<1x4x16xf32>
    %1064 = vector.broadcast %1063 : vector<1x4x16xf32> to vector<2x4x16xf32>
    %c2_348 = arith.constant 2 : index
    %c0_349 = arith.constant 0 : index
    %c0_350 = arith.constant 0 : index
    %1065 = vector.load %arg16[%c2_348, %c0_349, %c0_350] : memref<4x16x4xf32, #tpu.memory_space<vmem>>, vector<1x16x4xf32>
    %1066 = vector.shape_cast %1065 : vector<1x16x4xf32> to vector<16x4xf32>
    %1067 = vector.shape_cast %1066 : vector<16x4xf32> to vector<1x16x4xf32>
    %1068 = vector.broadcast %1067 : vector<1x16x4xf32> to vector<2x16x4xf32>
    %c2_351 = arith.constant 2 : index
    %c0_352 = arith.constant 0 : index
    %c0_353 = arith.constant 0 : index
    %1069 = vector.load %arg15[%c2_351, %c0_352, %c0_353] : memref<4x1x16xf32, #tpu.memory_space<vmem>>, vector<1x1x16xf32>
    %1070 = vector.shape_cast %1069 : vector<1x1x16xf32> to vector<1x16xf32>
    %c2_354 = arith.constant 2 : index
    %c0_355 = arith.constant 0 : index
    %c0_356 = arith.constant 0 : index
    %1071 = vector.load %arg17[%c2_354, %c0_355, %c0_356] : memref<4x5x4xf32, #tpu.memory_space<vmem>>, vector<1x5x4xf32>
    %1072 = vector.shape_cast %1071 : vector<1x5x4xf32> to vector<5x4xf32>
    %1073 = vector.extract_strided_slice %1072 {offsets = [0, 0], sizes = [1, 4], strides = [1, 1]} : vector<5x4xf32> to vector<1x4xf32>
    %1074 = vector.extract_strided_slice %1072 {offsets = [1, 0], sizes = [1, 4], strides = [1, 1]} : vector<5x4xf32> to vector<1x4xf32>
    %1075 = vector.extract_strided_slice %1072 {offsets = [2, 0], sizes = [1, 4], strides = [1, 1]} : vector<5x4xf32> to vector<1x4xf32>
    %1076 = vector.extract_strided_slice %1072 {offsets = [3, 0], sizes = [1, 4], strides = [1, 1]} : vector<5x4xf32> to vector<1x4xf32>
    %1077 = vector.extract_strided_slice %1072 {offsets = [4, 0], sizes = [1, 4], strides = [1, 1]} : vector<5x4xf32> to vector<1x4xf32>
    %cst_357 = arith.constant dense<0.000000e+00> : vector<2x8xf32>
    %1078 = vector.multi_reduction <add>, %1052, %cst_357 [2] : vector<2x8x4xf32> to vector<2x8xf32>
    %1079 = vector.shape_cast %1078 : vector<2x8xf32> to vector<2x8x1xf32>
    %cst_358 = arith.constant 4.000000e+00 : f32
    %1080 = vector.broadcast %cst_358 : f32 to vector<2x8x1xf32>
    %1081 = arith.divf %1079, %1080 : vector<2x8x1xf32>
    %1082 = vector.broadcast %1081 : vector<2x8x1xf32> to vector<2x8x4xf32>
    %1083 = arith.subf %1052, %1082 : vector<2x8x4xf32>
    %1084 = arith.mulf %1083, %1083 : vector<2x8x4xf32>
    %cst_359 = arith.constant dense<0.000000e+00> : vector<2x8xf32>
    %1085 = vector.multi_reduction <add>, %1084, %cst_359 [2] : vector<2x8x4xf32> to vector<2x8xf32>
    %1086 = vector.shape_cast %1085 : vector<2x8xf32> to vector<2x8x1xf32>
    %cst_360 = arith.constant 4.000000e+00 : f32
    %1087 = vector.broadcast %cst_360 : f32 to vector<2x8x1xf32>
    %1088 = arith.divf %1086, %1087 : vector<2x8x1xf32>
    %1089 = vector.broadcast %1081 : vector<2x8x1xf32> to vector<2x8x4xf32>
    %1090 = arith.subf %1052, %1089 : vector<2x8x4xf32>
    %cst_361 = arith.constant 9.99999974E-6 : f32
    %1091 = vector.broadcast %cst_361 : f32 to vector<2x8x1xf32>
    %1092 = arith.addf %1088, %1091 : vector<2x8x1xf32>
    %1093 = math.rsqrt %1092 : vector<2x8x1xf32>
    %1094 = vector.broadcast %1093 : vector<2x8x1xf32> to vector<2x8x4xf32>
    %1095 = arith.mulf %1090, %1094 : vector<2x8x4xf32>
    %1096 = vector.shape_cast %1073 : vector<1x4xf32> to vector<1x1x4xf32>
    %1097 = vector.broadcast %1096 : vector<1x1x4xf32> to vector<2x8x4xf32>
    %1098 = arith.mulf %1095, %1097 : vector<2x8x4xf32>
    %1099 = vector.shape_cast %1074 : vector<1x4xf32> to vector<1x1x4xf32>
    %1100 = vector.broadcast %1099 : vector<1x1x4xf32> to vector<2x8x4xf32>
    %1101 = arith.addf %1098, %1100 : vector<2x8x4xf32>
    "tpu.trace_start"() <{level = 10 : i32, message = "bnd,bde->bne"}> : () -> ()
    %cst_362 = arith.constant dense<0.000000e+00> : vector<2x8x24xf32>
    %1102 = tpu.matmul %1101, %1056, %cst_362 {dimension_numbers = #tpu.dot_dimension_numbers<[2], [1], [1], [2], [0, 0, 0, 1, 1, 2], [0], [0]>} : vector<2x8x4xf32>, vector<2x4x24xf32>, vector<2x8x24xf32> -> vector<2x8x24xf32>
    "tpu.trace_stop"() : () -> ()
    %1103 = vector.extract_strided_slice %1102 {offsets = [0, 0, 0], sizes = [2, 8, 8], strides = [1, 1, 1]} : vector<2x8x24xf32> to vector<2x8x8xf32>
    %1104 = vector.extract_strided_slice %1102 {offsets = [0, 0, 8], sizes = [2, 8, 8], strides = [1, 1, 1]} : vector<2x8x24xf32> to vector<2x8x8xf32>
    %1105 = vector.extract_strided_slice %1102 {offsets = [0, 0, 16], sizes = [2, 8, 8], strides = [1, 1, 1]} : vector<2x8x24xf32> to vector<2x8x8xf32>
    %1106 = vector.extract_strided_slice %1103 {offsets = [0, 0, 0], sizes = [2, 8, 2], strides = [1, 1, 1]} : vector<2x8x8xf32> to vector<2x8x2xf32>
    %1107 = vector.extract_strided_slice %1104 {offsets = [0, 0, 0], sizes = [2, 8, 2], strides = [1, 1, 1]} : vector<2x8x8xf32> to vector<2x8x2xf32>
    %1108 = vector.extract_strided_slice %1105 {offsets = [0, 0, 0], sizes = [2, 8, 2], strides = [1, 1, 1]} : vector<2x8x8xf32> to vector<2x8x2xf32>
    "tpu.trace_start"() <{level = 10 : i32, message = "bnd,bmd->bnm"}> : () -> ()
    %cst_363 = arith.constant dense<0.000000e+00> : vector<2x8x8xf32>
    %1109 = tpu.matmul %1106, %1107, %cst_363 {dimension_numbers = #tpu.dot_dimension_numbers<[2], [2], [1], [1], [0, 0, 0, 1, 1, 1], [0], [0]>} : vector<2x8x2xf32>, vector<2x8x2xf32>, vector<2x8x8xf32> -> vector<2x8x8xf32>
    "tpu.trace_stop"() : () -> ()
    %cst_364 = arith.constant dense<0xFF800000> : vector<2x8xf32>
    %1110 = vector.multi_reduction <maximumf>, %1109, %cst_364 [2] : vector<2x8x8xf32> to vector<2x8xf32>
    %1111 = vector.shape_cast %1110 : vector<2x8xf32> to vector<2x8x1xf32>
    %1112 = vector.broadcast %1111 : vector<2x8x1xf32> to vector<2x8x8xf32>
    %1113 = arith.subf %1109, %1112 : vector<2x8x8xf32>
    %1114 = math.exp %1113 : vector<2x8x8xf32>
    %cst_365 = arith.constant dense<0.000000e+00> : vector<2x8xf32>
    %1115 = vector.multi_reduction <add>, %1114, %cst_365 [2] : vector<2x8x8xf32> to vector<2x8xf32>
    %1116 = vector.shape_cast %1115 : vector<2x8xf32> to vector<2x8x1xf32>
    %1117 = tpu.reciprocal %1116 {approx = true} : vector<2x8x1xf32> -> vector<2x8x1xf32>
    %1118 = vector.broadcast %1117 : vector<2x8x1xf32> to vector<2x8x8xf32>
    %1119 = arith.mulf %1114, %1118 : vector<2x8x8xf32>
    "tpu.trace_start"() <{level = 10 : i32, message = "bnm,bmd->bnd"}> : () -> ()
    %cst_366 = arith.constant dense<0.000000e+00> : vector<2x8x2xf32>
    %1120 = tpu.matmul %1119, %1108, %cst_366 {dimension_numbers = #tpu.dot_dimension_numbers<[2], [1], [1], [2], [0, 0, 0, 1, 1, 2], [0], [0]>} : vector<2x8x8xf32>, vector<2x8x2xf32>, vector<2x8x2xf32> -> vector<2x8x2xf32>
    "tpu.trace_stop"() : () -> ()
    %1121 = vector.extract_strided_slice %1103 {offsets = [0, 0, 2], sizes = [2, 8, 2], strides = [1, 1, 1]} : vector<2x8x8xf32> to vector<2x8x2xf32>
    %1122 = vector.extract_strided_slice %1104 {offsets = [0, 0, 2], sizes = [2, 8, 2], strides = [1, 1, 1]} : vector<2x8x8xf32> to vector<2x8x2xf32>
    %1123 = vector.extract_strided_slice %1105 {offsets = [0, 0, 2], sizes = [2, 8, 2], strides = [1, 1, 1]} : vector<2x8x8xf32> to vector<2x8x2xf32>
    "tpu.trace_start"() <{level = 10 : i32, message = "bnd,bmd->bnm"}> : () -> ()
    %cst_367 = arith.constant dense<0.000000e+00> : vector<2x8x8xf32>
    %1124 = tpu.matmul %1121, %1122, %cst_367 {dimension_numbers = #tpu.dot_dimension_numbers<[2], [2], [1], [1], [0, 0, 0, 1, 1, 1], [0], [0]>} : vector<2x8x2xf32>, vector<2x8x2xf32>, vector<2x8x8xf32> -> vector<2x8x8xf32>
    "tpu.trace_stop"() : () -> ()
    %cst_368 = arith.constant dense<0xFF800000> : vector<2x8xf32>
    %1125 = vector.multi_reduction <maximumf>, %1124, %cst_368 [2] : vector<2x8x8xf32> to vector<2x8xf32>
    %1126 = vector.shape_cast %1125 : vector<2x8xf32> to vector<2x8x1xf32>
    %1127 = vector.broadcast %1126 : vector<2x8x1xf32> to vector<2x8x8xf32>
    %1128 = arith.subf %1124, %1127 : vector<2x8x8xf32>
    %1129 = math.exp %1128 : vector<2x8x8xf32>
    %cst_369 = arith.constant dense<0.000000e+00> : vector<2x8xf32>
    %1130 = vector.multi_reduction <add>, %1129, %cst_369 [2] : vector<2x8x8xf32> to vector<2x8xf32>
    %1131 = vector.shape_cast %1130 : vector<2x8xf32> to vector<2x8x1xf32>
    %1132 = tpu.reciprocal %1131 {approx = true} : vector<2x8x1xf32> -> vector<2x8x1xf32>
    %1133 = vector.broadcast %1132 : vector<2x8x1xf32> to vector<2x8x8xf32>
    %1134 = arith.mulf %1129, %1133 : vector<2x8x8xf32>
    "tpu.trace_start"() <{level = 10 : i32, message = "bnm,bmd->bnd"}> : () -> ()
    %cst_370 = arith.constant dense<0.000000e+00> : vector<2x8x2xf32>
    %1135 = tpu.matmul %1134, %1123, %cst_370 {dimension_numbers = #tpu.dot_dimension_numbers<[2], [1], [1], [2], [0, 0, 0, 1, 1, 2], [0], [0]>} : vector<2x8x8xf32>, vector<2x8x2xf32>, vector<2x8x2xf32> -> vector<2x8x2xf32>
    "tpu.trace_stop"() : () -> ()
    %1136 = vector.extract_strided_slice %1103 {offsets = [0, 0, 4], sizes = [2, 8, 2], strides = [1, 1, 1]} : vector<2x8x8xf32> to vector<2x8x2xf32>
    %1137 = vector.extract_strided_slice %1104 {offsets = [0, 0, 4], sizes = [2, 8, 2], strides = [1, 1, 1]} : vector<2x8x8xf32> to vector<2x8x2xf32>
    %1138 = vector.extract_strided_slice %1105 {offsets = [0, 0, 4], sizes = [2, 8, 2], strides = [1, 1, 1]} : vector<2x8x8xf32> to vector<2x8x2xf32>
    "tpu.trace_start"() <{level = 10 : i32, message = "bnd,bmd->bnm"}> : () -> ()
    %cst_371 = arith.constant dense<0.000000e+00> : vector<2x8x8xf32>
    %1139 = tpu.matmul %1136, %1137, %cst_371 {dimension_numbers = #tpu.dot_dimension_numbers<[2], [2], [1], [1], [0, 0, 0, 1, 1, 1], [0], [0]>} : vector<2x8x2xf32>, vector<2x8x2xf32>, vector<2x8x8xf32> -> vector<2x8x8xf32>
    "tpu.trace_stop"() : () -> ()
    %cst_372 = arith.constant dense<0xFF800000> : vector<2x8xf32>
    %1140 = vector.multi_reduction <maximumf>, %1139, %cst_372 [2] : vector<2x8x8xf32> to vector<2x8xf32>
    %1141 = vector.shape_cast %1140 : vector<2x8xf32> to vector<2x8x1xf32>
    %1142 = vector.broadcast %1141 : vector<2x8x1xf32> to vector<2x8x8xf32>
    %1143 = arith.subf %1139, %1142 : vector<2x8x8xf32>
    %1144 = math.exp %1143 : vector<2x8x8xf32>
    %cst_373 = arith.constant dense<0.000000e+00> : vector<2x8xf32>
    %1145 = vector.multi_reduction <add>, %1144, %cst_373 [2] : vector<2x8x8xf32> to vector<2x8xf32>
    %1146 = vector.shape_cast %1145 : vector<2x8xf32> to vector<2x8x1xf32>
    %1147 = tpu.reciprocal %1146 {approx = true} : vector<2x8x1xf32> -> vector<2x8x1xf32>
    %1148 = vector.broadcast %1147 : vector<2x8x1xf32> to vector<2x8x8xf32>
    %1149 = arith.mulf %1144, %1148 : vector<2x8x8xf32>
    "tpu.trace_start"() <{level = 10 : i32, message = "bnm,bmd->bnd"}> : () -> ()
    %cst_374 = arith.constant dense<0.000000e+00> : vector<2x8x2xf32>
    %1150 = tpu.matmul %1149, %1138, %cst_374 {dimension_numbers = #tpu.dot_dimension_numbers<[2], [1], [1], [2], [0, 0, 0, 1, 1, 2], [0], [0]>} : vector<2x8x8xf32>, vector<2x8x2xf32>, vector<2x8x2xf32> -> vector<2x8x2xf32>
    "tpu.trace_stop"() : () -> ()
    %1151 = vector.extract_strided_slice %1103 {offsets = [0, 0, 6], sizes = [2, 8, 2], strides = [1, 1, 1]} : vector<2x8x8xf32> to vector<2x8x2xf32>
    %1152 = vector.extract_strided_slice %1104 {offsets = [0, 0, 6], sizes = [2, 8, 2], strides = [1, 1, 1]} : vector<2x8x8xf32> to vector<2x8x2xf32>
    %1153 = vector.extract_strided_slice %1105 {offsets = [0, 0, 6], sizes = [2, 8, 2], strides = [1, 1, 1]} : vector<2x8x8xf32> to vector<2x8x2xf32>
    "tpu.trace_start"() <{level = 10 : i32, message = "bnd,bmd->bnm"}> : () -> ()
    %cst_375 = arith.constant dense<0.000000e+00> : vector<2x8x8xf32>
    %1154 = tpu.matmul %1151, %1152, %cst_375 {dimension_numbers = #tpu.dot_dimension_numbers<[2], [2], [1], [1], [0, 0, 0, 1, 1, 1], [0], [0]>} : vector<2x8x2xf32>, vector<2x8x2xf32>, vector<2x8x8xf32> -> vector<2x8x8xf32>
    "tpu.trace_stop"() : () -> ()
    %cst_376 = arith.constant dense<0xFF800000> : vector<2x8xf32>
    %1155 = vector.multi_reduction <maximumf>, %1154, %cst_376 [2] : vector<2x8x8xf32> to vector<2x8xf32>
    %1156 = vector.shape_cast %1155 : vector<2x8xf32> to vector<2x8x1xf32>
    %1157 = vector.broadcast %1156 : vector<2x8x1xf32> to vector<2x8x8xf32>
    %1158 = arith.subf %1154, %1157 : vector<2x8x8xf32>
    %1159 = math.exp %1158 : vector<2x8x8xf32>
    %cst_377 = arith.constant dense<0.000000e+00> : vector<2x8xf32>
    %1160 = vector.multi_reduction <add>, %1159, %cst_377 [2] : vector<2x8x8xf32> to vector<2x8xf32>
    %1161 = vector.shape_cast %1160 : vector<2x8xf32> to vector<2x8x1xf32>
    %1162 = tpu.reciprocal %1161 {approx = true} : vector<2x8x1xf32> -> vector<2x8x1xf32>
    %1163 = vector.broadcast %1162 : vector<2x8x1xf32> to vector<2x8x8xf32>
    %1164 = arith.mulf %1159, %1163 : vector<2x8x8xf32>
    "tpu.trace_start"() <{level = 10 : i32, message = "bnm,bmd->bnd"}> : () -> ()
    %cst_378 = arith.constant dense<0.000000e+00> : vector<2x8x2xf32>
    %1165 = tpu.matmul %1164, %1153, %cst_378 {dimension_numbers = #tpu.dot_dimension_numbers<[2], [1], [1], [2], [0, 0, 0, 1, 1, 2], [0], [0]>} : vector<2x8x8xf32>, vector<2x8x2xf32>, vector<2x8x2xf32> -> vector<2x8x2xf32>
    "tpu.trace_stop"() : () -> ()
    %1166 = tpu.concatenate %1120, %1135, %1150, %1165 in 2 : vector<2x8x2xf32>, vector<2x8x2xf32>, vector<2x8x2xf32>, vector<2x8x2xf32> -> vector<2x8x8xf32>
    "tpu.trace_start"() <{level = 10 : i32, message = "bnh,bhd->bnd"}> : () -> ()
    %cst_379 = arith.constant dense<0.000000e+00> : vector<2x8x4xf32>
    %1167 = tpu.matmul %1166, %1060, %cst_379 {dimension_numbers = #tpu.dot_dimension_numbers<[2], [1], [1], [2], [0, 0, 0, 1, 1, 2], [0], [0]>} : vector<2x8x8xf32>, vector<2x8x4xf32>, vector<2x8x4xf32> -> vector<2x8x4xf32>
    "tpu.trace_stop"() : () -> ()
    %1168 = arith.addf %1052, %1167 : vector<2x8x4xf32>
    %cst_380 = arith.constant dense<0.000000e+00> : vector<2x8xf32>
    %1169 = vector.multi_reduction <add>, %1168, %cst_380 [2] : vector<2x8x4xf32> to vector<2x8xf32>
    %1170 = vector.shape_cast %1169 : vector<2x8xf32> to vector<2x8x1xf32>
    %cst_381 = arith.constant 4.000000e+00 : f32
    %1171 = vector.broadcast %cst_381 : f32 to vector<2x8x1xf32>
    %1172 = arith.divf %1170, %1171 : vector<2x8x1xf32>
    %1173 = vector.broadcast %1172 : vector<2x8x1xf32> to vector<2x8x4xf32>
    %1174 = arith.subf %1168, %1173 : vector<2x8x4xf32>
    %1175 = arith.mulf %1174, %1174 : vector<2x8x4xf32>
    %cst_382 = arith.constant dense<0.000000e+00> : vector<2x8xf32>
    %1176 = vector.multi_reduction <add>, %1175, %cst_382 [2] : vector<2x8x4xf32> to vector<2x8xf32>
    %1177 = vector.shape_cast %1176 : vector<2x8xf32> to vector<2x8x1xf32>
    %cst_383 = arith.constant 4.000000e+00 : f32
    %1178 = vector.broadcast %cst_383 : f32 to vector<2x8x1xf32>
    %1179 = arith.divf %1177, %1178 : vector<2x8x1xf32>
    %1180 = vector.broadcast %1172 : vector<2x8x1xf32> to vector<2x8x4xf32>
    %1181 = arith.subf %1168, %1180 : vector<2x8x4xf32>
    %cst_384 = arith.constant 9.99999974E-6 : f32
    %1182 = vector.broadcast %cst_384 : f32 to vector<2x8x1xf32>
    %1183 = arith.addf %1179, %1182 : vector<2x8x1xf32>
    %1184 = math.rsqrt %1183 : vector<2x8x1xf32>
    %1185 = vector.broadcast %1184 : vector<2x8x1xf32> to vector<2x8x4xf32>
    %1186 = arith.mulf %1181, %1185 : vector<2x8x4xf32>
    %1187 = vector.shape_cast %1075 : vector<1x4xf32> to vector<1x1x4xf32>
    %1188 = vector.broadcast %1187 : vector<1x1x4xf32> to vector<2x8x4xf32>
    %1189 = arith.mulf %1186, %1188 : vector<2x8x4xf32>
    %1190 = vector.shape_cast %1076 : vector<1x4xf32> to vector<1x1x4xf32>
    %1191 = vector.broadcast %1190 : vector<1x1x4xf32> to vector<2x8x4xf32>
    %1192 = arith.addf %1189, %1191 : vector<2x8x4xf32>
    "tpu.trace_start"() <{level = 10 : i32, message = "bnd,bdf->bnf"}> : () -> ()
    %cst_385 = arith.constant dense<0.000000e+00> : vector<2x8x16xf32>
    %1193 = tpu.matmul %1192, %1064, %cst_385 {dimension_numbers = #tpu.dot_dimension_numbers<[2], [1], [1], [2], [0, 0, 0, 1, 1, 2], [0], [0]>} : vector<2x8x4xf32>, vector<2x4x16xf32>, vector<2x8x16xf32> -> vector<2x8x16xf32>
    "tpu.trace_stop"() : () -> ()
    %1194 = vector.shape_cast %1070 : vector<1x16xf32> to vector<1x1x16xf32>
    %1195 = vector.broadcast %1194 : vector<1x1x16xf32> to vector<2x8x16xf32>
    %1196 = arith.addf %1193, %1195 : vector<2x8x16xf32>
    %1197 = arith.mulf %1196, %1196 : vector<2x8x16xf32>
    %1198 = arith.mulf %1196, %1197 : vector<2x8x16xf32>
    %cst_386 = arith.constant 4.471500e-02 : f32
    %1199 = vector.broadcast %cst_386 : f32 to vector<2x8x16xf32>
    %1200 = arith.mulf %1199, %1198 : vector<2x8x16xf32>
    %1201 = arith.addf %1196, %1200 : vector<2x8x16xf32>
    %cst_387 = arith.constant 0.797884583 : f32
    %1202 = vector.broadcast %cst_387 : f32 to vector<2x8x16xf32>
    %1203 = arith.mulf %1202, %1201 : vector<2x8x16xf32>
    %1204 = math.tanh %1203 : vector<2x8x16xf32>
    %cst_388 = arith.constant 1.000000e+00 : f32
    %1205 = vector.broadcast %cst_388 : f32 to vector<2x8x16xf32>
    %1206 = arith.addf %1205, %1204 : vector<2x8x16xf32>
    %cst_389 = arith.constant 5.000000e-01 : f32
    %1207 = vector.broadcast %cst_389 : f32 to vector<2x8x16xf32>
    %1208 = arith.mulf %1207, %1206 : vector<2x8x16xf32>
    %1209 = arith.mulf %1196, %1208 : vector<2x8x16xf32>
    "tpu.trace_start"() <{level = 10 : i32, message = "bnf,bfd->bnd"}> : () -> ()
    %cst_390 = arith.constant dense<0.000000e+00> : vector<2x8x4xf32>
    %1210 = tpu.matmul %1209, %1068, %cst_390 {dimension_numbers = #tpu.dot_dimension_numbers<[2], [1], [1], [2], [0, 0, 0, 1, 1, 2], [0], [0]>} : vector<2x8x16xf32>, vector<2x16x4xf32>, vector<2x8x4xf32> -> vector<2x8x4xf32>
    "tpu.trace_stop"() : () -> ()
    %1211 = vector.shape_cast %1077 : vector<1x4xf32> to vector<1x1x4xf32>
    %1212 = vector.broadcast %1211 : vector<1x1x4xf32> to vector<2x8x4xf32>
    %1213 = arith.addf %1210, %1212 : vector<2x8x4xf32>
    %1214 = arith.addf %1168, %1213 : vector<2x8x4xf32>
    %c3_391 = arith.constant 3 : index
    %c0_392 = arith.constant 0 : index
    %c0_393 = arith.constant 0 : index
    %1215 = vector.load %arg12[%c3_391, %c0_392, %c0_393] : memref<4x4x24xf32, #tpu.memory_space<vmem>>, vector<1x4x24xf32>
    %1216 = vector.shape_cast %1215 : vector<1x4x24xf32> to vector<4x24xf32>
    %1217 = vector.shape_cast %1216 : vector<4x24xf32> to vector<1x4x24xf32>
    %1218 = vector.broadcast %1217 : vector<1x4x24xf32> to vector<2x4x24xf32>
    %c3_394 = arith.constant 3 : index
    %c0_395 = arith.constant 0 : index
    %c0_396 = arith.constant 0 : index
    %1219 = vector.load %arg13[%c3_394, %c0_395, %c0_396] : memref<4x8x4xf32, #tpu.memory_space<vmem>>, vector<1x8x4xf32>
    %1220 = vector.shape_cast %1219 : vector<1x8x4xf32> to vector<8x4xf32>
    %1221 = vector.shape_cast %1220 : vector<8x4xf32> to vector<1x8x4xf32>
    %1222 = vector.broadcast %1221 : vector<1x8x4xf32> to vector<2x8x4xf32>
    %c3_397 = arith.constant 3 : index
    %c0_398 = arith.constant 0 : index
    %c0_399 = arith.constant 0 : index
    %1223 = vector.load %arg14[%c3_397, %c0_398, %c0_399] : memref<4x4x16xf32, #tpu.memory_space<vmem>>, vector<1x4x16xf32>
    %1224 = vector.shape_cast %1223 : vector<1x4x16xf32> to vector<4x16xf32>
    %1225 = vector.shape_cast %1224 : vector<4x16xf32> to vector<1x4x16xf32>
    %1226 = vector.broadcast %1225 : vector<1x4x16xf32> to vector<2x4x16xf32>
    %c3_400 = arith.constant 3 : index
    %c0_401 = arith.constant 0 : index
    %c0_402 = arith.constant 0 : index
    %1227 = vector.load %arg16[%c3_400, %c0_401, %c0_402] : memref<4x16x4xf32, #tpu.memory_space<vmem>>, vector<1x16x4xf32>
    %1228 = vector.shape_cast %1227 : vector<1x16x4xf32> to vector<16x4xf32>
    %1229 = vector.shape_cast %1228 : vector<16x4xf32> to vector<1x16x4xf32>
    %1230 = vector.broadcast %1229 : vector<1x16x4xf32> to vector<2x16x4xf32>
    %c3_403 = arith.constant 3 : index
    %c0_404 = arith.constant 0 : index
    %c0_405 = arith.constant 0 : index
    %1231 = vector.load %arg15[%c3_403, %c0_404, %c0_405] : memref<4x1x16xf32, #tpu.memory_space<vmem>>, vector<1x1x16xf32>
    %1232 = vector.shape_cast %1231 : vector<1x1x16xf32> to vector<1x16xf32>
    %c3_406 = arith.constant 3 : index
    %c0_407 = arith.constant 0 : index
    %c0_408 = arith.constant 0 : index
    %1233 = vector.load %arg17[%c3_406, %c0_407, %c0_408] : memref<4x5x4xf32, #tpu.memory_space<vmem>>, vector<1x5x4xf32>
    %1234 = vector.shape_cast %1233 : vector<1x5x4xf32> to vector<5x4xf32>
    %1235 = vector.extract_strided_slice %1234 {offsets = [0, 0], sizes = [1, 4], strides = [1, 1]} : vector<5x4xf32> to vector<1x4xf32>
    %1236 = vector.extract_strided_slice %1234 {offsets = [1, 0], sizes = [1, 4], strides = [1, 1]} : vector<5x4xf32> to vector<1x4xf32>
    %1237 = vector.extract_strided_slice %1234 {offsets = [2, 0], sizes = [1, 4], strides = [1, 1]} : vector<5x4xf32> to vector<1x4xf32>
    %1238 = vector.extract_strided_slice %1234 {offsets = [3, 0], sizes = [1, 4], strides = [1, 1]} : vector<5x4xf32> to vector<1x4xf32>
    %1239 = vector.extract_strided_slice %1234 {offsets = [4, 0], sizes = [1, 4], strides = [1, 1]} : vector<5x4xf32> to vector<1x4xf32>
    %cst_409 = arith.constant dense<0.000000e+00> : vector<2x8xf32>
    %1240 = vector.multi_reduction <add>, %1214, %cst_409 [2] : vector<2x8x4xf32> to vector<2x8xf32>
    %1241 = vector.shape_cast %1240 : vector<2x8xf32> to vector<2x8x1xf32>
    %cst_410 = arith.constant 4.000000e+00 : f32
    %1242 = vector.broadcast %cst_410 : f32 to vector<2x8x1xf32>
    %1243 = arith.divf %1241, %1242 : vector<2x8x1xf32>
    %1244 = vector.broadcast %1243 : vector<2x8x1xf32> to vector<2x8x4xf32>
    %1245 = arith.subf %1214, %1244 : vector<2x8x4xf32>
    %1246 = arith.mulf %1245, %1245 : vector<2x8x4xf32>
    %cst_411 = arith.constant dense<0.000000e+00> : vector<2x8xf32>
    %1247 = vector.multi_reduction <add>, %1246, %cst_411 [2] : vector<2x8x4xf32> to vector<2x8xf32>
    %1248 = vector.shape_cast %1247 : vector<2x8xf32> to vector<2x8x1xf32>
    %cst_412 = arith.constant 4.000000e+00 : f32
    %1249 = vector.broadcast %cst_412 : f32 to vector<2x8x1xf32>
    %1250 = arith.divf %1248, %1249 : vector<2x8x1xf32>
    %1251 = vector.broadcast %1243 : vector<2x8x1xf32> to vector<2x8x4xf32>
    %1252 = arith.subf %1214, %1251 : vector<2x8x4xf32>
    %cst_413 = arith.constant 9.99999974E-6 : f32
    %1253 = vector.broadcast %cst_413 : f32 to vector<2x8x1xf32>
    %1254 = arith.addf %1250, %1253 : vector<2x8x1xf32>
    %1255 = math.rsqrt %1254 : vector<2x8x1xf32>
    %1256 = vector.broadcast %1255 : vector<2x8x1xf32> to vector<2x8x4xf32>
    %1257 = arith.mulf %1252, %1256 : vector<2x8x4xf32>
    %1258 = vector.shape_cast %1235 : vector<1x4xf32> to vector<1x1x4xf32>
    %1259 = vector.broadcast %1258 : vector<1x1x4xf32> to vector<2x8x4xf32>
    %1260 = arith.mulf %1257, %1259 : vector<2x8x4xf32>
    %1261 = vector.shape_cast %1236 : vector<1x4xf32> to vector<1x1x4xf32>
    %1262 = vector.broadcast %1261 : vector<1x1x4xf32> to vector<2x8x4xf32>
    %1263 = arith.addf %1260, %1262 : vector<2x8x4xf32>
    "tpu.trace_start"() <{level = 10 : i32, message = "bnd,bde->bne"}> : () -> ()
    %cst_414 = arith.constant dense<0.000000e+00> : vector<2x8x24xf32>
    %1264 = tpu.matmul %1263, %1218, %cst_414 {dimension_numbers = #tpu.dot_dimension_numbers<[2], [1], [1], [2], [0, 0, 0, 1, 1, 2], [0], [0]>} : vector<2x8x4xf32>, vector<2x4x24xf32>, vector<2x8x24xf32> -> vector<2x8x24xf32>
    "tpu.trace_stop"() : () -> ()
    %1265 = vector.extract_strided_slice %1264 {offsets = [0, 0, 0], sizes = [2, 8, 8], strides = [1, 1, 1]} : vector<2x8x24xf32> to vector<2x8x8xf32>
    %1266 = vector.extract_strided_slice %1264 {offsets = [0, 0, 8], sizes = [2, 8, 8], strides = [1, 1, 1]} : vector<2x8x24xf32> to vector<2x8x8xf32>
    %1267 = vector.extract_strided_slice %1264 {offsets = [0, 0, 16], sizes = [2, 8, 8], strides = [1, 1, 1]} : vector<2x8x24xf32> to vector<2x8x8xf32>
    %1268 = vector.extract_strided_slice %1265 {offsets = [0, 0, 0], sizes = [2, 8, 2], strides = [1, 1, 1]} : vector<2x8x8xf32> to vector<2x8x2xf32>
    %1269 = vector.extract_strided_slice %1266 {offsets = [0, 0, 0], sizes = [2, 8, 2], strides = [1, 1, 1]} : vector<2x8x8xf32> to vector<2x8x2xf32>
    %1270 = vector.extract_strided_slice %1267 {offsets = [0, 0, 0], sizes = [2, 8, 2], strides = [1, 1, 1]} : vector<2x8x8xf32> to vector<2x8x2xf32>
    "tpu.trace_start"() <{level = 10 : i32, message = "bnd,bmd->bnm"}> : () -> ()
    %cst_415 = arith.constant dense<0.000000e+00> : vector<2x8x8xf32>
    %1271 = tpu.matmul %1268, %1269, %cst_415 {dimension_numbers = #tpu.dot_dimension_numbers<[2], [2], [1], [1], [0, 0, 0, 1, 1, 1], [0], [0]>} : vector<2x8x2xf32>, vector<2x8x2xf32>, vector<2x8x8xf32> -> vector<2x8x8xf32>
    "tpu.trace_stop"() : () -> ()
    %cst_416 = arith.constant dense<0xFF800000> : vector<2x8xf32>
    %1272 = vector.multi_reduction <maximumf>, %1271, %cst_416 [2] : vector<2x8x8xf32> to vector<2x8xf32>
    %1273 = vector.shape_cast %1272 : vector<2x8xf32> to vector<2x8x1xf32>
    %1274 = vector.broadcast %1273 : vector<2x8x1xf32> to vector<2x8x8xf32>
    %1275 = arith.subf %1271, %1274 : vector<2x8x8xf32>
    %1276 = math.exp %1275 : vector<2x8x8xf32>
    %cst_417 = arith.constant dense<0.000000e+00> : vector<2x8xf32>
    %1277 = vector.multi_reduction <add>, %1276, %cst_417 [2] : vector<2x8x8xf32> to vector<2x8xf32>
    %1278 = vector.shape_cast %1277 : vector<2x8xf32> to vector<2x8x1xf32>
    %1279 = tpu.reciprocal %1278 {approx = true} : vector<2x8x1xf32> -> vector<2x8x1xf32>
    %1280 = vector.broadcast %1279 : vector<2x8x1xf32> to vector<2x8x8xf32>
    %1281 = arith.mulf %1276, %1280 : vector<2x8x8xf32>
    "tpu.trace_start"() <{level = 10 : i32, message = "bnm,bmd->bnd"}> : () -> ()
    %cst_418 = arith.constant dense<0.000000e+00> : vector<2x8x2xf32>
    %1282 = tpu.matmul %1281, %1270, %cst_418 {dimension_numbers = #tpu.dot_dimension_numbers<[2], [1], [1], [2], [0, 0, 0, 1, 1, 2], [0], [0]>} : vector<2x8x8xf32>, vector<2x8x2xf32>, vector<2x8x2xf32> -> vector<2x8x2xf32>
    "tpu.trace_stop"() : () -> ()
    %1283 = vector.extract_strided_slice %1265 {offsets = [0, 0, 2], sizes = [2, 8, 2], strides = [1, 1, 1]} : vector<2x8x8xf32> to vector<2x8x2xf32>
    %1284 = vector.extract_strided_slice %1266 {offsets = [0, 0, 2], sizes = [2, 8, 2], strides = [1, 1, 1]} : vector<2x8x8xf32> to vector<2x8x2xf32>
    %1285 = vector.extract_strided_slice %1267 {offsets = [0, 0, 2], sizes = [2, 8, 2], strides = [1, 1, 1]} : vector<2x8x8xf32> to vector<2x8x2xf32>
    "tpu.trace_start"() <{level = 10 : i32, message = "bnd,bmd->bnm"}> : () -> ()
    %cst_419 = arith.constant dense<0.000000e+00> : vector<2x8x8xf32>
    %1286 = tpu.matmul %1283, %1284, %cst_419 {dimension_numbers = #tpu.dot_dimension_numbers<[2], [2], [1], [1], [0, 0, 0, 1, 1, 1], [0], [0]>} : vector<2x8x2xf32>, vector<2x8x2xf32>, vector<2x8x8xf32> -> vector<2x8x8xf32>
    "tpu.trace_stop"() : () -> ()
    %cst_420 = arith.constant dense<0xFF800000> : vector<2x8xf32>
    %1287 = vector.multi_reduction <maximumf>, %1286, %cst_420 [2] : vector<2x8x8xf32> to vector<2x8xf32>
    %1288 = vector.shape_cast %1287 : vector<2x8xf32> to vector<2x8x1xf32>
    %1289 = vector.broadcast %1288 : vector<2x8x1xf32> to vector<2x8x8xf32>
    %1290 = arith.subf %1286, %1289 : vector<2x8x8xf32>
    %1291 = math.exp %1290 : vector<2x8x8xf32>
    %cst_421 = arith.constant dense<0.000000e+00> : vector<2x8xf32>
    %1292 = vector.multi_reduction <add>, %1291, %cst_421 [2] : vector<2x8x8xf32> to vector<2x8xf32>
    %1293 = vector.shape_cast %1292 : vector<2x8xf32> to vector<2x8x1xf32>
    %1294 = tpu.reciprocal %1293 {approx = true} : vector<2x8x1xf32> -> vector<2x8x1xf32>
    %1295 = vector.broadcast %1294 : vector<2x8x1xf32> to vector<2x8x8xf32>
    %1296 = arith.mulf %1291, %1295 : vector<2x8x8xf32>
    "tpu.trace_start"() <{level = 10 : i32, message = "bnm,bmd->bnd"}> : () -> ()
    %cst_422 = arith.constant dense<0.000000e+00> : vector<2x8x2xf32>
    %1297 = tpu.matmul %1296, %1285, %cst_422 {dimension_numbers = #tpu.dot_dimension_numbers<[2], [1], [1], [2], [0, 0, 0, 1, 1, 2], [0], [0]>} : vector<2x8x8xf32>, vector<2x8x2xf32>, vector<2x8x2xf32> -> vector<2x8x2xf32>
    "tpu.trace_stop"() : () -> ()
    %1298 = vector.extract_strided_slice %1265 {offsets = [0, 0, 4], sizes = [2, 8, 2], strides = [1, 1, 1]} : vector<2x8x8xf32> to vector<2x8x2xf32>
    %1299 = vector.extract_strided_slice %1266 {offsets = [0, 0, 4], sizes = [2, 8, 2], strides = [1, 1, 1]} : vector<2x8x8xf32> to vector<2x8x2xf32>
    %1300 = vector.extract_strided_slice %1267 {offsets = [0, 0, 4], sizes = [2, 8, 2], strides = [1, 1, 1]} : vector<2x8x8xf32> to vector<2x8x2xf32>
    "tpu.trace_start"() <{level = 10 : i32, message = "bnd,bmd->bnm"}> : () -> ()
    %cst_423 = arith.constant dense<0.000000e+00> : vector<2x8x8xf32>
    %1301 = tpu.matmul %1298, %1299, %cst_423 {dimension_numbers = #tpu.dot_dimension_numbers<[2], [2], [1], [1], [0, 0, 0, 1, 1, 1], [0], [0]>} : vector<2x8x2xf32>, vector<2x8x2xf32>, vector<2x8x8xf32> -> vector<2x8x8xf32>
    "tpu.trace_stop"() : () -> ()
    %cst_424 = arith.constant dense<0xFF800000> : vector<2x8xf32>
    %1302 = vector.multi_reduction <maximumf>, %1301, %cst_424 [2] : vector<2x8x8xf32> to vector<2x8xf32>
    %1303 = vector.shape_cast %1302 : vector<2x8xf32> to vector<2x8x1xf32>
    %1304 = vector.broadcast %1303 : vector<2x8x1xf32> to vector<2x8x8xf32>
    %1305 = arith.subf %1301, %1304 : vector<2x8x8xf32>
    %1306 = math.exp %1305 : vector<2x8x8xf32>
    %cst_425 = arith.constant dense<0.000000e+00> : vector<2x8xf32>
    %1307 = vector.multi_reduction <add>, %1306, %cst_425 [2] : vector<2x8x8xf32> to vector<2x8xf32>
    %1308 = vector.shape_cast %1307 : vector<2x8xf32> to vector<2x8x1xf32>
    %1309 = tpu.reciprocal %1308 {approx = true} : vector<2x8x1xf32> -> vector<2x8x1xf32>
    %1310 = vector.broadcast %1309 : vector<2x8x1xf32> to vector<2x8x8xf32>
    %1311 = arith.mulf %1306, %1310 : vector<2x8x8xf32>
    "tpu.trace_start"() <{level = 10 : i32, message = "bnm,bmd->bnd"}> : () -> ()
    %cst_426 = arith.constant dense<0.000000e+00> : vector<2x8x2xf32>
    %1312 = tpu.matmul %1311, %1300, %cst_426 {dimension_numbers = #tpu.dot_dimension_numbers<[2], [1], [1], [2], [0, 0, 0, 1, 1, 2], [0], [0]>} : vector<2x8x8xf32>, vector<2x8x2xf32>, vector<2x8x2xf32> -> vector<2x8x2xf32>
    "tpu.trace_stop"() : () -> ()
    %1313 = vector.extract_strided_slice %1265 {offsets = [0, 0, 6], sizes = [2, 8, 2], strides = [1, 1, 1]} : vector<2x8x8xf32> to vector<2x8x2xf32>
    %1314 = vector.extract_strided_slice %1266 {offsets = [0, 0, 6], sizes = [2, 8, 2], strides = [1, 1, 1]} : vector<2x8x8xf32> to vector<2x8x2xf32>
    %1315 = vector.extract_strided_slice %1267 {offsets = [0, 0, 6], sizes = [2, 8, 2], strides = [1, 1, 1]} : vector<2x8x8xf32> to vector<2x8x2xf32>
    "tpu.trace_start"() <{level = 10 : i32, message = "bnd,bmd->bnm"}> : () -> ()
    %cst_427 = arith.constant dense<0.000000e+00> : vector<2x8x8xf32>
    %1316 = tpu.matmul %1313, %1314, %cst_427 {dimension_numbers = #tpu.dot_dimension_numbers<[2], [2], [1], [1], [0, 0, 0, 1, 1, 1], [0], [0]>} : vector<2x8x2xf32>, vector<2x8x2xf32>, vector<2x8x8xf32> -> vector<2x8x8xf32>
    "tpu.trace_stop"() : () -> ()
    %cst_428 = arith.constant dense<0xFF800000> : vector<2x8xf32>
    %1317 = vector.multi_reduction <maximumf>, %1316, %cst_428 [2] : vector<2x8x8xf32> to vector<2x8xf32>
    %1318 = vector.shape_cast %1317 : vector<2x8xf32> to vector<2x8x1xf32>
    %1319 = vector.broadcast %1318 : vector<2x8x1xf32> to vector<2x8x8xf32>
    %1320 = arith.subf %1316, %1319 : vector<2x8x8xf32>
    %1321 = math.exp %1320 : vector<2x8x8xf32>
    %cst_429 = arith.constant dense<0.000000e+00> : vector<2x8xf32>
    %1322 = vector.multi_reduction <add>, %1321, %cst_429 [2] : vector<2x8x8xf32> to vector<2x8xf32>
    %1323 = vector.shape_cast %1322 : vector<2x8xf32> to vector<2x8x1xf32>
    %1324 = tpu.reciprocal %1323 {approx = true} : vector<2x8x1xf32> -> vector<2x8x1xf32>
    %1325 = vector.broadcast %1324 : vector<2x8x1xf32> to vector<2x8x8xf32>
    %1326 = arith.mulf %1321, %1325 : vector<2x8x8xf32>
    "tpu.trace_start"() <{level = 10 : i32, message = "bnm,bmd->bnd"}> : () -> ()
    %cst_430 = arith.constant dense<0.000000e+00> : vector<2x8x2xf32>
    %1327 = tpu.matmul %1326, %1315, %cst_430 {dimension_numbers = #tpu.dot_dimension_numbers<[2], [1], [1], [2], [0, 0, 0, 1, 1, 2], [0], [0]>} : vector<2x8x8xf32>, vector<2x8x2xf32>, vector<2x8x2xf32> -> vector<2x8x2xf32>
    "tpu.trace_stop"() : () -> ()
    %1328 = tpu.concatenate %1282, %1297, %1312, %1327 in 2 : vector<2x8x2xf32>, vector<2x8x2xf32>, vector<2x8x2xf32>, vector<2x8x2xf32> -> vector<2x8x8xf32>
    "tpu.trace_start"() <{level = 10 : i32, message = "bnh,bhd->bnd"}> : () -> ()
    %cst_431 = arith.constant dense<0.000000e+00> : vector<2x8x4xf32>
    %1329 = tpu.matmul %1328, %1222, %cst_431 {dimension_numbers = #tpu.dot_dimension_numbers<[2], [1], [1], [2], [0, 0, 0, 1, 1, 2], [0], [0]>} : vector<2x8x8xf32>, vector<2x8x4xf32>, vector<2x8x4xf32> -> vector<2x8x4xf32>
    "tpu.trace_stop"() : () -> ()
    %1330 = arith.addf %1214, %1329 : vector<2x8x4xf32>
    %cst_432 = arith.constant dense<0.000000e+00> : vector<2x8xf32>
    %1331 = vector.multi_reduction <add>, %1330, %cst_432 [2] : vector<2x8x4xf32> to vector<2x8xf32>
    %1332 = vector.shape_cast %1331 : vector<2x8xf32> to vector<2x8x1xf32>
    %cst_433 = arith.constant 4.000000e+00 : f32
    %1333 = vector.broadcast %cst_433 : f32 to vector<2x8x1xf32>
    %1334 = arith.divf %1332, %1333 : vector<2x8x1xf32>
    %1335 = vector.broadcast %1334 : vector<2x8x1xf32> to vector<2x8x4xf32>
    %1336 = arith.subf %1330, %1335 : vector<2x8x4xf32>
    %1337 = arith.mulf %1336, %1336 : vector<2x8x4xf32>
    %cst_434 = arith.constant dense<0.000000e+00> : vector<2x8xf32>
    %1338 = vector.multi_reduction <add>, %1337, %cst_434 [2] : vector<2x8x4xf32> to vector<2x8xf32>
    %1339 = vector.shape_cast %1338 : vector<2x8xf32> to vector<2x8x1xf32>
    %cst_435 = arith.constant 4.000000e+00 : f32
    %1340 = vector.broadcast %cst_435 : f32 to vector<2x8x1xf32>
    %1341 = arith.divf %1339, %1340 : vector<2x8x1xf32>
    %1342 = vector.broadcast %1334 : vector<2x8x1xf32> to vector<2x8x4xf32>
    %1343 = arith.subf %1330, %1342 : vector<2x8x4xf32>
    %cst_436 = arith.constant 9.99999974E-6 : f32
    %1344 = vector.broadcast %cst_436 : f32 to vector<2x8x1xf32>
    %1345 = arith.addf %1341, %1344 : vector<2x8x1xf32>
    %1346 = math.rsqrt %1345 : vector<2x8x1xf32>
    %1347 = vector.broadcast %1346 : vector<2x8x1xf32> to vector<2x8x4xf32>
    %1348 = arith.mulf %1343, %1347 : vector<2x8x4xf32>
    %1349 = vector.shape_cast %1237 : vector<1x4xf32> to vector<1x1x4xf32>
    %1350 = vector.broadcast %1349 : vector<1x1x4xf32> to vector<2x8x4xf32>
    %1351 = arith.mulf %1348, %1350 : vector<2x8x4xf32>
    %1352 = vector.shape_cast %1238 : vector<1x4xf32> to vector<1x1x4xf32>
    %1353 = vector.broadcast %1352 : vector<1x1x4xf32> to vector<2x8x4xf32>
    %1354 = arith.addf %1351, %1353 : vector<2x8x4xf32>
    "tpu.trace_start"() <{level = 10 : i32, message = "bnd,bdf->bnf"}> : () -> ()
    %cst_437 = arith.constant dense<0.000000e+00> : vector<2x8x16xf32>
    %1355 = tpu.matmul %1354, %1226, %cst_437 {dimension_numbers = #tpu.dot_dimension_numbers<[2], [1], [1], [2], [0, 0, 0, 1, 1, 2], [0], [0]>} : vector<2x8x4xf32>, vector<2x4x16xf32>, vector<2x8x16xf32> -> vector<2x8x16xf32>
    "tpu.trace_stop"() : () -> ()
    %1356 = vector.shape_cast %1232 : vector<1x16xf32> to vector<1x1x16xf32>
    %1357 = vector.broadcast %1356 : vector<1x1x16xf32> to vector<2x8x16xf32>
    %1358 = arith.addf %1355, %1357 : vector<2x8x16xf32>
    %1359 = arith.mulf %1358, %1358 : vector<2x8x16xf32>
    %1360 = arith.mulf %1358, %1359 : vector<2x8x16xf32>
    %cst_438 = arith.constant 4.471500e-02 : f32
    %1361 = vector.broadcast %cst_438 : f32 to vector<2x8x16xf32>
    %1362 = arith.mulf %1361, %1360 : vector<2x8x16xf32>
    %1363 = arith.addf %1358, %1362 : vector<2x8x16xf32>
    %cst_439 = arith.constant 0.797884583 : f32
    %1364 = vector.broadcast %cst_439 : f32 to vector<2x8x16xf32>
    %1365 = arith.mulf %1364, %1363 : vector<2x8x16xf32>
    %1366 = math.tanh %1365 : vector<2x8x16xf32>
    %cst_440 = arith.constant 1.000000e+00 : f32
    %1367 = vector.broadcast %cst_440 : f32 to vector<2x8x16xf32>
    %1368 = arith.addf %1367, %1366 : vector<2x8x16xf32>
    %cst_441 = arith.constant 5.000000e-01 : f32
    %1369 = vector.broadcast %cst_441 : f32 to vector<2x8x16xf32>
    %1370 = arith.mulf %1369, %1368 : vector<2x8x16xf32>
    %1371 = arith.mulf %1358, %1370 : vector<2x8x16xf32>
    "tpu.trace_start"() <{level = 10 : i32, message = "bnf,bfd->bnd"}> : () -> ()
    %cst_442 = arith.constant dense<0.000000e+00> : vector<2x8x4xf32>
    %1372 = tpu.matmul %1371, %1230, %cst_442 {dimension_numbers = #tpu.dot_dimension_numbers<[2], [1], [1], [2], [0, 0, 0, 1, 1, 2], [0], [0]>} : vector<2x8x16xf32>, vector<2x16x4xf32>, vector<2x8x4xf32> -> vector<2x8x4xf32>
    "tpu.trace_stop"() : () -> ()
    %1373 = vector.shape_cast %1239 : vector<1x4xf32> to vector<1x1x4xf32>
    %1374 = vector.broadcast %1373 : vector<1x1x4xf32> to vector<2x8x4xf32>
    %1375 = arith.addf %1372, %1374 : vector<2x8x4xf32>
    %1376 = arith.addf %1330, %1375 : vector<2x8x4xf32>
    %cst_443 = arith.constant dense<0.000000e+00> : vector<2x4xf32>
    %1377 = vector.multi_reduction <add>, %1376, %cst_443 [1] : vector<2x8x4xf32> to vector<2x4xf32>
    %cst_444 = arith.constant 8.000000e+00 : f32
    %1378 = vector.broadcast %cst_444 : f32 to vector<2x4xf32>
    %1379 = arith.divf %1377, %1378 : vector<2x4xf32>
    %c0_445 = arith.constant 0 : index
    %c0_446 = arith.constant 0 : index
    %1380 = vector.load %arg18[%c0_445, %c0_446] : memref<2x4xf32, #tpu.memory_space<vmem>>, vector<2x4xf32>
    tpu.vector_store %arg18[%c0_445, %c0_446], %1379 {strides = array<i32>} : memref<2x4xf32, #tpu.memory_space<vmem>>, vector<2x4xf32>,
    return
  }
}

</mosaic_0001>

<bundles_post_ra>
// kernel: tpu_custom_call.1
= control target key start
LH: loop header
LB: loop body
LE: loop exit
PB: predicated region body
PF: predicated region fallthrough
CT: control target
= control target key end

     0   :  { %s10806_s0 = inlined_call_operand.vmem [shape: f32[2,8,16], index: 0, kind: input, shape index: {}]   ;;  %s10807_s1 = inlined_call_operand.vmem [shape: f32[16,4], index: 1, kind: input, shape index: {}]   ;;  %s10808_s2 = inlined_call_operand.vmem [shape: f32[8,8], index: 2, kind: input, shape index: {}]   ;;  %s10809_s3 = inlined_call_operand.vmem [shape: f32[4,4], index: 3, kind: input, shape index: {}]   ;;  %s10810_s4 = inlined_call_operand.vmem [shape: f32[4,8], index: 4, kind: input, shape index: {}]   ;;  %s10811_s5 = inlined_call_operand.vmem [shape: f32[8,4], index: 5, kind: input, shape index: {}]   ;;  %s10812_s6 = inlined_call_operand.vmem [shape: f32[4,8,60], index: 6, kind: input, shape index: {}]   ;;  %s10813_s7 = inlined_call_operand.vmem [shape: f32[4,20,8], index: 7, kind: input, shape index: {}]   ;;  %s10814_s8 = inlined_call_operand.vmem [shape: f32[4,8,32], index: 8, kind: input, shape index: {}]   ;;  %s10815_s9 = inlined_call_operand.vmem [shape: f32[4,1,32], index: 9, kind: input, shape index: {}]   ;;  %s10816_s10 = inlined_call_operand.vmem [shape: f32[4,32,8], index: 10, kind: input, shape index: {}]   ;;  %s10817_s11 = inlined_call_operand.vmem [shape: f32[4,5,8], index: 11, kind: input, shape index: {}]   ;;  %s10818_s12 = inlined_call_operand.vmem [shape: f32[4,4,24], index: 12, kind: input, shape index: {}]   ;;  %s10819_s13 = inlined_call_operand.vmem [shape: f32[4,8,4], index: 13, kind: input, shape index: {}]   ;;  %s10820_s14 = inlined_call_operand.vmem [shape: f32[4,4,16], index: 14, kind: input, shape index: {}]   ;;  %s10821_s15 = inlined_call_operand.vmem [shape: f32[4,1,16], index: 15, kind: input, shape index: {}]   ;;  %s10822_s16 = inlined_call_operand.vmem [shape: f32[4,16,4], index: 16, kind: input, shape index: {}]   ;;  %s10823_s17 = inlined_call_operand.vmem [shape: f32[4,5,4], index: 17, kind: input, shape index: {}]   ;;  %s10824_s18 = inlined_call_operand.hbm [shape: f32[2,4], index: 18, kind: output, shape index: {}]  }
   0x1   :  { %10870 = sst [smem:[#allocation5_spill]] %s10806_s0 }
   0x2   :  { %10871 = sst [smem:[#allocation6_spill]] %s10807_s1 }
   0x3   :  { %10872 = sst [smem:[#allocation7_spill]] %s10808_s2 }
   0x4   :  { %10873 = sst [smem:[#allocation8_spill]] %s10811_s5 }
   0x5   :  { %10874 = sst [smem:[#allocation9_spill]] %s10814_s8 }
   0x6   :  { %10875 = sst [smem:[#allocation10_spill]] %s10818_s12 }
   0x7   :  { %10876 = sst [smem:[#allocation11_spill]] %s10819_s13 }
   0x8   :  { %10877 = sst [smem:[#allocation12_spill]] %s10820_s14 }
   0x9   :  { %10878 = sst [smem:[#allocation13_spill]] %s10821_s15 }
   0xa   :  { %10879 = sst [smem:[#allocation14_spill]] %s10822_s16 }
   0xb   :  { %10880 = sst [smem:[#allocation15_spill]] %s10823_s17 }
   0xc   :  { %10881 = sst [smem:[#allocation16_spill]] %s10824_s18 }
   0xd   :  { %s10882_s29 = sld [smem:[#allocation6_spill]]  ;;  %vm64_vm0 = vcmask 130048  }
   0xe   :  { %s10883_s20 = sld [smem:[#allocation5_spill]] }
  0x13   :  { %v63_v0 = vld [vmem:[%s10882_s29 + $0x8] sm:$0xff]  ;;  %v62_v1 = vld [vmem:[%s10882_s29] sm:$0xff] }
  0x14   :  { %v60_v2 = vld [vmem:[%s10883_s20] sm:$0xff]  ;;  %82 = vmatpush.msra.mxu0 %v63_v0  ;;  %105 = vmatpush.msra.mxu1 %v63_v0  ;;  %v61_v3 = vld [vmem:[%s10883_s20 + $0x8] sm:$0xff] }
  0x16   :  { %83 = vmatpush.msra.mxu0 %v62_v1  ;;  %106 = vmatpush.msra.mxu1 %v62_v1 }
  0x17   :  { %7884 = vmatmul.msk.f32.vlgmr.msra.gmra.mxu0 %vm64_vm0, %v60_v2  ;;  %7885 = vmatmul.msk.f32.vlgmr.msra.gmra.mxu1 %vm64_vm0, %v61_v3 }
  0x18   :  { %23 = vsyncpa [#allocation3], 0  ;;  %vm113_vm1 = vcmask 31744   ;;  %v111_v6 = vld [vmem:[%s10809_s3] sm:$0xf]  ;;  %vm174_vm2 = vcmask 60416  }
  0x19   :  { %v112_v7 = vld [vmem:[%s10810_s4] sm:$0xf]  ;;  %v8823_v14 = vmov 8.0   ;;  %vm232_vm8 = vcmask 64512   ;;  %s10859_s28 = smov 104   ;;  %s10861_s29 = smov 108  }
  0x1a   :  { %8409 = vrcp.f32 %v8823_v14  ;;  %v163_v31 = vld [vmem:[%s10812_s6] sm:$0xff]  ;;  %s10857_s30 = smov 100   ;;  %s10847_s0 = smov 96   ;;  %vm361_vm11 = vcmask 1043456   ;;  %vm333_vm12 = vcmask 27648   ;;  %vm975_vm13 = vcmask 97280  }
  0x1b   :  { %251 = vmatpush.msrb.mxu0 %v163_v31  ;;  %274 = vmatpush.msrb.mxu1 %v163_v31  ;;  %v8995_v43 = vld [vmem:[%s10817_s11] sm:$0x1f]  ;;  %s10855_s19 = smov 120   ;;  %s10853_s1 = smov 124   ;;  %vm980_vm14 = vcmask 162816  }
  0x1c   :  { %v226_v47 = vperm.slane %v8995_v43, 0  ;;  %v229_v51 = vperm.slane %v8995_v43, 1  ;;  %s10851_s20 = smov 116   ;;  %s10845_s21 = smov 112  }
  0x1d   :  { %s10849_s22 = smov 92   ;;  %s10835_s2 = smov 84  }
  0x1e   :  { %s10839_s23 = smov 88   ;;  %s10833_s24 = smov 80  }
  0x1f   :  { %s10831_s25 = smov 76   ;;  %s10827_s3 = smov 72  }
  0x20   :  { %v8410_v15 = vpop.eup %8409  ;;  %s10829_s4 = smov 4   ;;  %s10837_s26 = smov 8  }
  0x21   :  { %v182_v16 = vmul.f32 8.0, %v8410_v15  ;;  %vm186_vm3 = vweird.f32 %v8410_v15  ;;  %s10843_s27 = smov 12   ;;  %s10901_s18 = smov 112  }
  0x22   :  { %s10903_s5 = sld [smem:[#allocation7_spill]] }
  0x23   :  { %v183_v17 = vsub.f32 1.0, %v182_v16  ;;  %s10907_s13 = sld [smem:[#allocation11_spill]] }
  0x25   :  { %v184_v18 = vmul.f32 %v8410_v15, %v183_v17 }
  0x27   :  { %v185_v19 = vadd.f32 %v8410_v15, %v184_v18 }
  0x29   :  { %v8979_v20 = vsel %vm186_vm3, %v8410_v15, %v185_v19 }
  0x94   :  { %v85_v4 = vpop.f32.mrf.mxu0  ;;  %v108_v5 = vpop.f32.mrf.mxu1 }
  0x95   :  { %7886 = vmatpush.xpose.msk.msra.mxu2 %vm113_vm1, %v85_v4  ;;  %7888 = vmatpush.xpose.msk.msra.mxu3 %vm113_vm1, %v108_v5 }
  0x98   :  { %7887 = vmatmul.msk.f32.vlgmr.msra.gmra.mxu2 %vm113_vm1, %v111_v6  ;;  %7889 = vmatmul.msk.f32.vlgmr.msra.gmra.mxu3 %vm113_vm1, %v111_v6 }
 0x11b   :  { %v137_v8 = vpop.f32.mrf.mxu2  ;;  %v160_v10 = vpop.f32.mrf.mxu3 }
 0x11c   :  { %v8971_v9 = vadd.f32 %v137_v8, %v112_v7  ;;  %v8975_v12 = vadd.f32 %v160_v10, %v112_v7 }
 0x11e   :  { %v175_v11 = vsel %vm174_vm2, %v8971_v9, 0.0  ;;  %v178_v13 = vsel %vm174_vm2, %v8975_v12, 0.0 }
 0x11f   :  { %176 = vadd.xlane.f32.xlu0 %v175_v11 }
 0x127   :  { %179 = vadd.xlane.f32.xlu0 %v178_v13 }
 0x192   :  { %v177_v21 = vpop.xlane.xlu0 %176 }
 0x193   :  { %v188_v22 = vmul.f32 %v8979_v20, %v177_v21 }
 0x195   :  { %v190_v23 = vsub.f32 %v8971_v9, %v188_v22 }
 0x197   :  { %v192_v24 = vmul.f32 %v190_v23, %v190_v23 }
 0x199   :  { %v194_v25 = vsel %vm174_vm2, %v192_v24, 0.0 }
 0x19a   :  { %195 = vadd.xlane.f32.xlu1 %v194_v25  ;;  %v180_v26 = vpop.xlane.xlu0 %179 }
 0x19b   :  { %v189_v27 = vmul.f32 %v8979_v20, %v180_v26 }
 0x19d   :  { %v191_v28 = vsub.f32 %v8975_v12, %v189_v27 }
 0x19f   :  { %v193_v29 = vmul.f32 %v191_v28, %v191_v28 }
 0x1a1   :  { %v197_v30 = vsel %vm174_vm2, %v193_v29, 0.0 }
 0x1a2   :  { %198 = vadd.xlane.f32.xlu1 %v197_v30 }
 0x20d   :  { %v196_v32 = vpop.xlane.xlu1 %195 }
 0x20e   :  { %v200_v33 = vmul.f32 %v196_v32, %v8979_v20 }
 0x210   :  { %v202_v34 = vadd.f32 1e-05, %v200_v33 }
 0x212   :  { %8411 = vrsqrt.f32 %v202_v34  ;;  %vm210_vm5 = vweird.f32 %v202_v34 }
 0x215   :  { %v199_v35 = vpop.xlane.xlu1 %198 }
 0x216   :  { %v201_v36 = vmul.f32 %v199_v35, %v8979_v20 }
 0x218   :  { %v8412_v37 = vpop.eup %8411  ;;  %v203_v38 = vadd.f32 1e-05, %v201_v36 }
 0x219   :  { %v205_v39 = vmul.f32 %v8412_v37, %v202_v34  ;;  %vm211_vm4 = vweird.f32 %v8412_v37 }
 0x21a   :  { %8413 = vrsqrt.f32 %v203_v38  ;;  %vm212_vm6 = vmor %vm210_vm5, %vm211_vm4  ;;  %vm220_vm9 = vweird.f32 %v203_v38 }
 0x21b   :  { %v206_v40 = vmul.f32 %v8412_v37, %v205_v39 }
 0x21d   :  { %v207_v41 = vmul.f32 0.5, %v206_v40 }
 0x21f   :  { %v208_v42 = vsub.f32 1.5, %v207_v41 }
 0x220   :  { %v8414_v44 = vpop.eup %8413 }
 0x221   :  { %v209_v45 = vmul.f32 %v8412_v37, %v208_v42  ;;  %v215_v46 = vmul.f32 %v8414_v44, %v203_v38  ;;  %vm221_vm7 = vweird.f32 %v8414_v44 }
 0x222   :  { %vm222_vm10 = vmor %vm220_vm9, %vm221_vm7  ;;  %vm1150_vm9 = vcmask 261120  }
 0x223   :  { %v213_v48 = vsel %vm212_vm6, %v8412_v37, %v209_v45  ;;  %v216_v49 = vmul.f32 %v8414_v44, %v215_v46 }
 0x224   :  { %v224_v50 = vmul.f32 %v213_v48, %v190_v23 }
 0x225   :  { %v217_v52 = vmul.f32 0.5, %v216_v49 }
 0x226   :  { %v227_v53 = vmul.f32 %v226_v47, %v224_v50 }
 0x227   :  { %v218_v54 = vsub.f32 1.5, %v217_v52 }
 0x228   :  { %v230_v55 = vadd.f32 %v229_v51, %v227_v53 }
 0x229   :  { %v219_v56 = vmul.f32 %v8414_v44, %v218_v54 }
 0x22a   :  { %7890 = vmatmul.msk.f32.vlgmr.msrb.gmra.mxu0 %vm232_vm8, %v230_v55 }
 0x22b   :  { %v223_v57 = vsel %vm222_vm10, %v8414_v44, %v219_v56 }
 0x22c   :  { %v225_v58 = vmul.f32 %v223_v57, %v191_v28 }
 0x22e   :  { %v228_v59 = vmul.f32 %v226_v47, %v225_v58 }
 0x230   :  { %v231_v60 = vadd.f32 %v229_v51, %v228_v59 }
 0x232   :  { %7891 = vmatmul.msk.f32.vlgmr.msrb.gmra.mxu1 %vm232_vm8, %v231_v60 }
 0x2a7   :  { %v9001_v61 = vpop.f32.mrf.mxu0 }
 0x2a8   :  { %413 = vrot.lane.b32.xlu0 %v9001_v61, %s10859_s28  ;;  %280 = vrot.lane.b32.xlu2 %v9001_v61, %s10861_s29 }
 0x2af   :  { %v9007_v62 = vpop.f32.mrf.mxu1 }
 0x2b0   :  { %573 = vrot.lane.b32.xlu0 %v9007_v62, %s10857_s30  ;;  %441 = vrot.lane.b32.xlu1 %v9007_v62, %s10859_s28 }
 0x2b1   :  { %307 = vrot.lane.b32.xlu2 %v9007_v62, %s10861_s29 }
 0x2b8   :  { %677 = vrot.lane.b32.xlu0 %v9001_v61, %s10847_s0  ;;  %571 = vrot.lane.b32.xlu1 %v9007_v62, %s10855_s19 }
 0x2b9   :  { %411 = vrot.lane.b32.xlu2 %v9001_v61, %s10853_s1 }
 0x2c0   :  { %703 = vrot.lane.b32.xlu0 %v9007_v62, %s10851_s20  ;;  %675 = vrot.lane.b32.xlu1 %v9001_v61, %s10851_s20 }
 0x2c1   :  { %439 = vrot.lane.b32.xlu2 %v9007_v62, %s10853_s1 }
 0x2c8   :  { %807 = vrot.lane.b32.xlu0 %v9001_v61, %s10845_s21  ;;  %837 = vrot.lane.b32.xlu1 %v9007_v62, %s10849_s22 }
 0x2c9   :  { %545 = vrot.lane.b32.xlu2 %v9001_v61, %s10857_s30 }
 0x2d0   :  { %489 = vrot.lane.b32.xlu0 %v9001_v61, %s10835_s2  ;;  %384 = vrot.lane.b32.xlu1 %v9007_v62, %s10839_s23 }
 0x2d1   :  { %543 = vrot.lane.b32.xlu2 %v9001_v61, %s10855_s19 }
 0x2d8   :  { %621 = vrot.lane.b32.xlu0 %v9001_v61, %s10833_s24 }
 0x2d9   :  { %705 = vrot.lane.b32.xlu2 %v9007_v62, %s10847_s0 }
 0x2e0   :  { %648 = vrot.lane.b32.xlu0 %v9007_v62, %s10833_s24  ;;  %s10886_s24 = smov 80  }
 0x2e1   :  { %809 = vrot.lane.b32.xlu2 %v9001_v61, %s10849_s22 }
 0x2e9   :  { %835 = vrot.lane.b32.xlu2 %v9007_v62, %s10845_s21 }
 0x2f1   :  { %356 = vrot.lane.b32.xlu2 %v9001_v61, %s10839_s23  ;;  %s10885_s23 = smov 84  }
 0x2f9   :  { %516 = vrot.lane.b32.xlu2 %v9007_v62, %s10835_s2  ;;  %s10884_s2 = smov 88  }
 0x302   :  { %v281_v63 = vpop.permute.xlu2 %280 }
 0x303   :  { %7892 = vmatpush.xpose.msk.msrb.mxu2 %vm113_vm1, %v281_v63 }
 0x306   :  { %7893 = vmatmul.msk.f32.vlgmr.msrb.gmra.mxu2 %vm113_vm1, %v9001_v61 }
 0x30b   :  { %v308_v0 = vpop.permute.xlu2 %307 }
 0x30c   :  { %7894 = vmatpush.xpose.msk.msrb.mxu3 %vm113_vm1, %v308_v0 }
 0x30f   :  { %7895 = vmatmul.msk.f32.vlgmr.msrb.gmra.mxu3 %vm113_vm1, %v9007_v62 }
 0x313   :  { %v412_v1 = vpop.permute.xlu2 %411 }
 0x31a   :  { %v414_v2 = vpop.permute.xlu0 %413 }
 0x31b   :  { %v440_v3 = vpop.permute.xlu2 %439  ;;  %7900 = vmatpush.xpose.msk.msra.mxu2 %vm113_vm1, %v414_v2 }
 0x31e   :  { %7901 = vmatmul.msk.f32.vlgmr.msra.gmra.mxu2 %vm113_vm1, %v412_v1 }
 0x322   :  { %v442_v4 = vpop.permute.xlu1 %441  ;;  %v574_v5 = vpop.permute.xlu0 %573 }
 0x323   :  { %v546_v6 = vpop.permute.xlu2 %545  ;;  %7902 = vmatpush.xpose.msk.msra.mxu3 %vm113_vm1, %v442_v4 }
 0x324   :  { %7908 = vmatpush.xpose.msk.msrb.mxu2 %vm113_vm1, %v546_v6 }
 0x326   :  { %7903 = vmatmul.msk.f32.vlgmr.msra.gmra.mxu3 %vm113_vm1, %v440_v3 }
 0x327   :  { %7910 = vmatpush.xpose.msk.msrb.mxu3 %vm113_vm1, %v574_v5 }
 0x32a   :  { %v572_v7 = vpop.permute.xlu1 %571  ;;  %v678_v8 = vpop.permute.xlu0 %677 }
 0x32b   :  { %v544_v10 = vpop.permute.xlu2 %543  ;;  %7916 = vmatpush.xpose.msk.msra.mxu2 %vm113_vm1, %v678_v8 }
 0x32c   :  { %7909 = vmatmul.msk.f32.vlgmr.msrb.gmra.mxu2 %vm113_vm1, %v544_v10 }
 0x32e   :  { %7911 = vmatmul.msk.f32.vlgmr.msrb.gmra.mxu3 %vm113_vm1, %v572_v7 }
 0x332   :  { %v676_v11 = vpop.permute.xlu1 %675  ;;  %v704_v14 = vpop.permute.xlu0 %703 }
 0x333   :  { %v706_v13 = vpop.permute.xlu2 %705 }
 0x334   :  { %7917 = vmatmul.msk.f32.vlgmr.msra.gmra.mxu2 %vm113_vm1, %v676_v11  ;;  %7918 = vmatpush.xpose.msk.msra.mxu3 %vm113_vm1, %v706_v13 }
 0x337   :  { %7919 = vmatmul.msk.f32.vlgmr.msra.gmra.mxu3 %vm113_vm1, %v704_v14 }
 0x33a   :  { %v838_v15 = vpop.permute.xlu1 %837  ;;  %v808_v17 = vpop.permute.xlu0 %807 }
 0x33b   :  { %v810_v16 = vpop.permute.xlu2 %809  ;;  %7926 = vmatpush.xpose.msk.msrb.mxu3 %vm113_vm1, %v838_v15 }
 0x33c   :  { %7924 = vmatpush.xpose.msk.msrb.mxu2 %vm113_vm1, %v810_v16 }
 0x33f   :  { %7925 = vmatmul.msk.f32.vlgmr.msrb.gmra.mxu2 %vm113_vm1, %v808_v17 }
 0x342   :  { %v385_v18 = vpop.permute.xlu1 %384  ;;  %v490_v22 = vpop.permute.xlu0 %489 }
 0x343   :  { %v836_v19 = vpop.permute.xlu2 %835  ;;  %7898 = vmatpush.msk.msra.mxu1 %vm361_vm11, %v385_v18 }
 0x344   :  { %7927 = vmatmul.msk.f32.vlgmr.msrb.gmra.mxu3 %vm113_vm1, %v836_v19 }
 0x34a   :  { %v9097_v45 = vpop.permute.xlu0 %621 }
 0x34b   :  { %v357_v21 = vpop.permute.xlu2 %356 }
 0x34c   :  { %7896 = vmatpush.msk.msra.mxu0 %vm361_vm11, %v357_v21 }
 0x34e   :  { %7904 = vmatpush.msk.msrb.mxu0 %vm361_vm11, %v490_v22 }
 0x352   :  { %v9099_v47 = vpop.permute.xlu0 %648 }
 0x353   :  { %v517_v23 = vpop.permute.xlu2 %516 }
 0x354   :  { %7906 = vmatpush.msk.msrb.mxu1 %vm361_vm11, %v517_v23 }
 0x389   :  { %v303_v24 = vpop.f32.mrf.mxu2 }
 0x38a   :  { %v334_v25 = vsel %vm333_vm12, %v303_v24, -inf }
 0x38b   :  { %335 = vmax.xlane.f32.xlu1 %v334_v25 }
 0x392   :  { %v330_v26 = vpop.f32.mrf.mxu3 }
 0x393   :  { %v337_v27 = vsel %vm333_vm12, %v330_v26, -inf }
 0x394   :  { %338 = vmax.xlane.f32.xlu0 %v337_v27 }
 0x3a1   :  { %v436_v28 = vpop.f32.mrf.mxu2 }
 0x3a2   :  { %v467_v29 = vsel %vm333_vm12, %v436_v28, -inf }
 0x3a3   :  { %468 = vmax.xlane.f32.xlu2 %v467_v29 }
 0x3a9   :  { %v464_v30 = vpop.f32.mrf.mxu3 }
 0x3aa   :  { %v470_v31 = vsel %vm333_vm12, %v464_v30, -inf }
 0x3ab   :  { %471 = vmax.xlane.f32.xlu1 %v470_v31 }
 0x3af   :  { %v568_v32 = vpop.f32.mrf.mxu2 }
 0x3b0   :  { %v599_v33 = vsel %vm333_vm12, %v568_v32, -inf }
 0x3b1   :  { %600 = vmax.xlane.f32.xlu0 %v599_v33  ;;  %v596_v34 = vpop.f32.mrf.mxu3 }
 0x3b2   :  { %v602_v35 = vsel %vm333_vm12, %v596_v34, -inf }
 0x3b3   :  { %603 = vmax.xlane.f32.xlu2 %v602_v35 }
 0x3b7   :  { %v700_v36 = vpop.f32.mrf.mxu2 }
 0x3b8   :  { %v731_v37 = vsel %vm333_vm12, %v700_v36, -inf }
 0x3b9   :  { %732 = vmax.xlane.f32.xlu1 %v731_v37 }
 0x3ba   :  { %v728_v38 = vpop.f32.mrf.mxu3 }
 0x3bb   :  { %v734_v39 = vsel %vm333_vm12, %v728_v38, -inf }
 0x3bc   :  { %735 = vmax.xlane.f32.xlu0 %v734_v39 }
 0x3c2   :  { %v9087_v40 = vpop.f32.mrf.mxu2 }
 0x3c3   :  { %v863_v41 = vsel %vm333_vm12, %v9087_v40, -inf }
 0x3c4   :  { %864 = vmax.xlane.f32.xlu2 %v863_v41 }
 0x3c7   :  { %v9091_v42 = vpop.f32.mrf.mxu3 }
 0x3c8   :  { %v866_v44 = vsel %vm333_vm12, %v9091_v42, -inf }
 0x3c9   :  { %867 = vmax.xlane.f32.xlu1 %v866_v44 }
 0x3dc   :  { %753 = vrot.lane.b32.xlu2 %v9001_v61, %s10831_s25 }
 0x3fe   :  { %v336_v46 = vpop.xlane.xlu1 %335 }
 0x3ff   :  { %v340_v48 = vsub.f32 %v303_v24, %v336_v46 }
 0x401   :  { %v342_v49 = vmul.f32 1.442695, %v340_v48 }
 0x403   :  { %8415 = vpow2.f32 %v342_v49 }
 0x407   :  { %v339_v50 = vpop.xlane.xlu0 %338 }
 0x408   :  { %v341_v51 = vsub.f32 %v330_v26, %v339_v50 }
 0x409   :  { %v9101_v52 = vpop.eup %8415 }
 0x40a   :  { %v344_v53 = vmul.f32 1.442695, %v341_v51  ;;  %v346_v54 = vsel %vm333_vm12, %v9101_v52, 0.0 }
 0x40b   :  { %347 = vadd.xlane.f32.xlu0 %v346_v54 }
 0x40c   :  { %8417 = vpow2.f32 %v344_v53 }
 0x412   :  { %v9105_v55 = vpop.eup %8417 }
 0x413   :  { %v349_v56 = vsel %vm333_vm12, %v9105_v55, 0.0 }
 0x414   :  { %350 = vadd.xlane.f32.xlu2 %v349_v56 }
 0x416   :  { %v469_v57 = vpop.xlane.xlu2 %468 }
 0x417   :  { %v473_v58 = vsub.f32 %v436_v28, %v469_v57 }
 0x419   :  { %v475_v59 = vmul.f32 1.442695, %v473_v58 }
 0x41b   :  { %8419 = vpow2.f32 %v475_v59 }
 0x41e   :  { %v472_v60 = vpop.xlane.xlu1 %471 }
 0x41f   :  { %v474_v63 = vsub.f32 %v464_v30, %v472_v60 }
 0x421   :  { %v9109_v0 = vpop.eup %8419  ;;  %v477_v1 = vmul.f32 1.442695, %v474_v63 }
 0x422   :  { %v479_v2 = vsel %vm333_vm12, %v9109_v0, 0.0 }
 0x423   :  { %8421 = vpow2.f32 %v477_v1  ;;  %480 = vadd.xlane.f32.xlu1 %v479_v2 }
 0x424   :  { %v601_v3 = vpop.xlane.xlu0 %600 }
 0x425   :  { %v605_v4 = vsub.f32 %v568_v32, %v601_v3 }
 0x426   :  { %v604_v5 = vpop.xlane.xlu2 %603 }
 0x427   :  { %v607_v6 = vmul.f32 1.442695, %v605_v4  ;;  %v606_v7 = vsub.f32 %v596_v34, %v604_v5 }
 0x429   :  { %v9113_v8 = vpop.eup %8421  ;;  %8423 = vpow2.f32 %v607_v6  ;;  %v609_v11 = vmul.f32 1.442695, %v606_v7 }
 0x42a   :  { %v482_v10 = vsel %vm333_vm12, %v9113_v8, 0.0 }
 0x42b   :  { %483 = vadd.xlane.f32.xlu0 %v482_v10  ;;  %8425 = vpow2.f32 %v609_v11 }
 0x42c   :  { %v733_v13 = vpop.xlane.xlu1 %732 }
 0x42d   :  { %v737_v14 = vsub.f32 %v700_v36, %v733_v13 }
 0x42f   :  { %v9117_v15 = vpop.eup %8423  ;;  %v739_v16 = vmul.f32 1.442695, %v737_v14  ;;  %v736_v17 = vpop.xlane.xlu0 %735 }
 0x430   :  { %v738_v18 = vsub.f32 %v728_v38, %v736_v17  ;;  %v611_v21 = vsel %vm333_vm12, %v9117_v15, 0.0 }
 0x431   :  { %8427 = vpow2.f32 %v739_v16  ;;  %v9121_v22 = vpop.eup %8425 }
 0x432   :  { %v741_v19 = vmul.f32 1.442695, %v738_v18  ;;  %v614_v29 = vsel %vm333_vm12, %v9121_v22, 0.0 }
 0x433   :  { %612 = vadd.xlane.f32.xlu0 %v611_v21 }
 0x434   :  { %8429 = vpow2.f32 %v741_v19 }
 0x437   :  { %v9123_v23 = vpop.eup %8427  ;;  %v865_v24 = vpop.xlane.xlu2 %864 }
 0x438   :  { %v869_v25 = vsub.f32 %v9087_v40, %v865_v24  ;;  %v743_v26 = vsel %vm333_vm12, %v9123_v23, 0.0  ;;  %v164_v24 = vld [vmem:[%s10813_s7] sm:$0xff] }
 0x439   :  { %744 = vadd.xlane.f32.xlu1 %v743_v26 }
 0x43a   :  { %v9128_v27 = vpop.eup %8429  ;;  %v871_v28 = vmul.f32 1.442695, %v869_v25 }
 0x43b   :  { %615 = vadd.xlane.f32.xlu0 %v614_v29  ;;  %v746_v30 = vsel %vm333_vm12, %v9128_v27, 0.0 }
 0x43c   :  { %8431 = vpow2.f32 %v871_v28  ;;  %v868_v31 = vpop.xlane.xlu1 %867  ;;  %747 = vadd.xlane.f32.xlu2 %v746_v30 }
 0x43d   :  { %v870_v32 = vsub.f32 %v9091_v42, %v868_v31 }
 0x43f   :  { %v873_v33 = vmul.f32 1.442695, %v870_v32  ;;  %v754_v39 = vpop.permute.xlu2 %753 }
 0x441   :  { %8433 = vpow2.f32 %v873_v33 }
 0x442   :  { %v8432_v34 = vpop.eup %8431 }
 0x443   :  { %v875_v35 = vsel %vm333_vm12, %v8432_v34, 0.0 }
 0x444   :  { %876 = vadd.xlane.f32.xlu0 %v875_v35 }
 0x447   :  { %v9136_v36 = vpop.eup %8433 }
 0x448   :  { %v878_v37 = vsel %vm333_vm12, %v9136_v36, 0.0 }
 0x449   :  { %879 = vadd.xlane.f32.xlu1 %v878_v37 }
 0x454   :  { %885 = vrot.lane.b32.xlu2 %v9001_v61, %s10827_s3 }
 0x458   :  { %912 = vrot.lane.b32.xlu0 %v9007_v62, %s10827_s3  ;;  %s10841_s3 = smov 16  }
 0x462   :  { %780 = vrot.lane.b32.xlu1 %v9007_v62, %s10831_s25  ;;  %s10887_s25 = smov 76  }
 0x47e   :  { %v348_v38 = vpop.xlane.xlu0 %347 }
 0x47f   :  { %8435 = vrcp.f32 %v348_v38 }
 0x485   :  { %v8436_v40 = vpop.eup %8435 }
 0x486   :  { %v354_v41 = vmul.f32 %v8436_v40, %v9101_v52 }
 0x487   :  { %v351_v42 = vpop.xlane.xlu2 %350 }
 0x488   :  { %8437 = vrcp.f32 %v351_v42  ;;  %7897 = vmatmul.msk.f32.vlgmr.msra.gmra.mxu0 %vm113_vm1, %v354_v41 }
 0x489   :  { %7912 = vmatpush.msk.msra.mxu0 %vm361_vm11, %v9097_v45 }
 0x48e   :  { %v8438_v61 = vpop.eup %8437 }
 0x48f   :  { %v355_v44 = vmul.f32 %v8438_v61, %v9105_v55 }
 0x491   :  { %7899 = vmatmul.msk.f32.vlgmr.msra.gmra.mxu1 %vm113_vm1, %v355_v44 }
 0x492   :  { %7914 = vmatpush.msk.msra.mxu1 %vm361_vm11, %v9099_v47 }
 0x496   :  { %v481_v62 = vpop.xlane.xlu1 %480 }
 0x497   :  { %8439 = vrcp.f32 %v481_v62 }
 0x49d   :  { %v8440_v46 = vpop.eup %8439 }
 0x49e   :  { %v487_v48 = vmul.f32 %v8440_v46, %v9109_v0  ;;  %v484_v49 = vpop.xlane.xlu0 %483 }
 0x49f   :  { %8441 = vrcp.f32 %v484_v49 }
 0x4a0   :  { %7905 = vmatmul.msk.f32.vlgmr.msrb.gmra.mxu0 %vm113_vm1, %v487_v48 }
 0x4a1   :  { %7920 = vmatpush.msk.msrb.mxu0 %vm361_vm11, %v754_v39 }
 0x4a5   :  { %v8442_v45 = vpop.eup %8441 }
 0x4a6   :  { %v488_v50 = vmul.f32 %v8442_v45, %v9113_v8  ;;  %v613_v51 = vpop.xlane.xlu0 %612 }
 0x4a7   :  { %8443 = vrcp.f32 %v613_v51 }
 0x4a8   :  { %7907 = vmatmul.msk.f32.vlgmr.msrb.gmra.mxu1 %vm113_vm1, %v488_v50 }
 0x4ac   :  { %v745_v52 = vpop.xlane.xlu1 %744 }
 0x4ad   :  { %v8444_v47 = vpop.eup %8443  ;;  %8445 = vrcp.f32 %v745_v52 }
 0x4ae   :  { %v619_v53 = vmul.f32 %v8444_v47, %v9117_v15  ;;  %v616_v54 = vpop.xlane.xlu0 %615 }
 0x4af   :  { %v748_v55 = vpop.xlane.xlu2 %747  ;;  %8447 = vrcp.f32 %v616_v54  ;;  %v167_v54 = vld [vmem:[%s10814_s8] sm:$0xff] }
 0x4b0   :  { %7913 = vmatmul.msk.f32.vlgmr.msra.gmra.mxu0 %vm113_vm1, %v619_v53 }
 0x4b3   :  { %v8446_v56 = vpop.eup %8445 }
 0x4b4   :  { %v751_v59 = vmul.f32 %v8446_v56, %v9123_v23  ;;  %v165_v23 = vld [vmem:[%s10813_s7 + $0x8] sm:$0xff] }
 0x4b5   :  { %v8448_v57 = vpop.eup %8447 }
 0x4b6   :  { %v620_v58 = vmul.f32 %v8448_v57, %v9121_v22  ;;  %v166_v22 = vld [vmem:[%s10813_s7 + $0x10] sm:$0xf] }
 0x4b7   :  { %v886_v60 = vpop.permute.xlu2 %885  ;;  %v877_v63 = vpop.xlane.xlu0 %876  ;;  %7932 = vmatpush.msk.msra.mxu2 %vm361_vm11, %v166_v22  ;;  %7934 = vmatpush.msk.msra.mxu3 %vm361_vm11, %v166_v22 }
 0x4b8   :  { %8449 = vrcp.f32 %v877_v63  ;;  %7928 = vmatpush.msk.msra.mxu0 %vm361_vm11, %v886_v60  ;;  %7915 = vmatmul.msk.f32.vlgmr.msra.gmra.mxu1 %vm113_vm1, %v620_v58 }
 0x4b9   :  { %7921 = vmatmul.msk.f32.vlgmr.msrb.gmra.mxu0 %vm113_vm1, %v751_v59  ;;  %8451 = vrcp.f32 %v748_v55  ;;  %1001 = vmatpush.msra.mxu2 %v165_v23 }
 0x4ba   :  { %1024 = vmatpush.msra.mxu3 %v165_v23  ;;  %1103 = vmatpush.msrb.mxu0 %v167_v54 }
 0x4bb   :  { %1002 = vmatpush.msra.mxu2 %v164_v24 }
 0x4bc   :  { %v880_v2 = vpop.xlane.xlu1 %879  ;;  %1025 = vmatpush.msra.mxu3 %v164_v24  ;;  %v171_v24 = vld [vmem:[%s10816_s10 + $0x18] sm:$0xff] }
 0x4bd   :  { %8453 = vrcp.f32 %v880_v2  ;;  %v1076_v2 = vperm.slane %v8995_v43, 2  ;;  %1166 = vmatpush.msrb.mxu2 %v171_v24 }
 0x4be   :  { %v8450_v0 = vpop.eup %8449  ;;  %1189 = vmatpush.msrb.mxu3 %v171_v24 }
 0x4bf   :  { %v883_v1 = vmul.f32 %v8450_v0, %v8432_v34  ;;  %v8452_v3 = vpop.eup %8451 }
 0x4c0   :  { %v752_v4 = vmul.f32 %v8452_v3, %v9128_v27 }
 0x4c1   :  { %7929 = vmatmul.msk.f32.vlgmr.msra.gmra.mxu0 %vm113_vm1, %v883_v1 }
 0x4c3   :  { %v8454_v7 = vpop.eup %8453 }
 0x4c4   :  { %v884_v8 = vmul.f32 %v8454_v7, %v9136_v36 }
 0x4ca   :  { %v913_v6 = vpop.permute.xlu0 %912 }
 0x4d4   :  { %v781_v5 = vpop.permute.xlu1 %780 }
 0x4d5   :  { %7922 = vmatpush.msk.msrb.mxu1 %vm361_vm11, %v781_v5  ;;  %v1079_v5 = vperm.slane %v8995_v43, 3 }
 0x4d6   :  { %7923 = vmatmul.msk.f32.vlgmr.msrb.gmra.mxu1 %vm113_vm1, %v752_v4 }
 0x4d7   :  { %7930 = vmatpush.msk.msra.mxu1 %vm361_vm11, %v913_v6 }
 0x4d9   :  { %1126 = vmatpush.msrb.mxu1 %v167_v54 }
 0x4de   :  { %7931 = vmatmul.msk.f32.vlgmr.msra.gmra.mxu1 %vm113_vm1, %v884_v8 }
 0x505   :  { %v381_v10 = vpop.f32.mrf.mxu0 }
 0x50e   :  { %v408_v11 = vpop.f32.mrf.mxu1 }
 0x51d   :  { %v513_v13 = vpop.f32.mrf.mxu0 }
 0x51e   :  { %941 = vrot.lane.b32.xlu1 %v513_v13, %s10829_s4 }
 0x525   :  { %v540_v14 = vpop.f32.mrf.mxu1 }
 0x526   :  { %943 = vrot.lane.b32.xlu2 %v540_v14, %s10829_s4  ;;  %s10890_s4 = smov 8  }
 0x52d   :  { %v645_v15 = vpop.f32.mrf.mxu0 }
 0x52e   :  { %949 = vrot.lane.b32.xlu1 %v645_v15, %s10837_s26 }
 0x535   :  { %v672_v16 = vpop.f32.mrf.mxu1 }
 0x536   :  { %v777_v17 = vpop.f32.mrf.mxu0  ;;  %951 = vrot.lane.b32.xlu2 %v672_v16, %s10837_s26  ;;  %s10891_s26 = smov 12  }
 0x537   :  { %957 = vrot.lane.b32.xlu1 %v777_v17, %s10843_s27 }
 0x53e   :  { %v909_v18 = vpop.f32.mrf.mxu0 }
 0x53f   :  { %965 = vrot.lane.b32.xlu2 %v909_v18, %s10841_s3 }
 0x553   :  { %v804_v19 = vpop.f32.mrf.mxu1 }
 0x554   :  { %959 = vrot.lane.b32.xlu0 %v804_v19, %s10843_s27  ;;  %s10889_s27 = smov 4  }
 0x55b   :  { %v936_v21 = vpop.f32.mrf.mxu1 }
 0x55c   :  { %967 = vrot.lane.b32.xlu1 %v936_v21, %s10841_s3  ;;  %s10888_s3 = smov 72  }
 0x580   :  { %v944_v25 = vpop.permute.xlu2 %943 }
 0x581   :  { %v972_v36 = vsel %vm113_vm1, %v408_v11, %v944_v25  ;;  %v170_v25 = vld [vmem:[%s10816_s10 + $0x10] sm:$0xff] }
 0x582   :  { %1167 = vmatpush.msrb.mxu2 %v170_v25  ;;  %1190 = vmatpush.msrb.mxu3 %v170_v25 }
 0x590   :  { %v942_v26 = vpop.permute.xlu1 %941  ;;  %v952_v27 = vpop.permute.xlu2 %951 }
 0x591   :  { %v971_v29 = vsel %vm113_vm1, %v381_v10, %v942_v26  ;;  %v974_v37 = vsel %vm232_vm8, %v972_v36, %v952_v27  ;;  %v169_v26 = vld [vmem:[%s10816_s10 + $0x8] sm:$0xff]  ;;  %v168_v27 = vld [vmem:[%s10816_s10] sm:$0xff] }
 0x592   :  { %1168 = vmatpush.msrb.mxu2 %v169_v26  ;;  %1191 = vmatpush.msrb.mxu3 %v169_v26 }
 0x594   :  { %1169 = vmatpush.msrb.mxu2 %v168_v27  ;;  %1192 = vmatpush.msrb.mxu3 %v168_v27 }
 0x599   :  { %v966_v32 = vpop.permute.xlu2 %965 }
 0x5a0   :  { %v950_v28 = vpop.permute.xlu1 %949 }
 0x5a1   :  { %v973_v30 = vsel %vm232_vm8, %v971_v29, %v950_v28  ;;  %v8401_v28 = vld [vmem:[%s10815_s9] ss:$0 sm:$0xff] }
 0x5a9   :  { %v958_v31 = vpop.permute.xlu1 %957 }
 0x5aa   :  { %v976_v33 = vsel %vm975_vm13, %v973_v30, %v958_v31 }
 0x5ab   :  { %v978_v34 = vsel %vm64_vm0, %v976_v33, %v966_v32 }
 0x5ac   :  { %7933 = vmatmul.msk.f32.vlgmr.msra.gmra.mxu2 %vm980_vm14, %v978_v34 }
 0x5c6   :  { %v960_v35 = vpop.permute.xlu0 %959 }
 0x5c7   :  { %v977_v38 = vsel %vm975_vm13, %v974_v37, %v960_v35 }
 0x5ce   :  { %v968_v39 = vpop.permute.xlu1 %967 }
 0x5cf   :  { %v979_v40 = vsel %vm64_vm0, %v977_v38, %v968_v39 }
 0x5d0   :  { %7935 = vmatmul.msk.f32.vlgmr.msra.gmra.mxu3 %vm980_vm14, %v979_v40 }
 0x62f   :  { %v1004_v41 = vpop.f32.mrf.mxu2 }
 0x630   :  { %v9203_v42 = vadd.f32 %v1004_v41, %v8971_v9 }
 0x632   :  { %v1032_v61 = vsel %vm174_vm2, %v9203_v42, 0.0 }
 0x633   :  { %1033 = vadd.xlane.f32.xlu0 %v1032_v61 }
 0x653   :  { %v1027_v44 = vpop.f32.mrf.mxu3 }
 0x654   :  { %v9208_v62 = vadd.f32 %v1027_v44, %v8975_v12 }
 0x656   :  { %v1035_v46 = vsel %vm174_vm2, %v9208_v62, 0.0 }
 0x657   :  { %1036 = vadd.xlane.f32.xlu2 %v1035_v46 }
 0x6a6   :  { %v1034_v48 = vpop.xlane.xlu0 %1033 }
 0x6a7   :  { %v1038_v49 = vmul.f32 %v1034_v48, %v8979_v20 }
 0x6a9   :  { %v1040_v45 = vsub.f32 %v9203_v42, %v1038_v49 }
 0x6ab   :  { %v1042_v50 = vmul.f32 %v1040_v45, %v1040_v45 }
 0x6ad   :  { %v1044_v9 = vsel %vm174_vm2, %v1042_v50, 0.0 }
 0x6ae   :  { %1045 = vadd.xlane.f32.xlu1 %v1044_v9 }
 0x6ca   :  { %v1037_v51 = vpop.xlane.xlu2 %1036 }
 0x6cb   :  { %v1039_v52 = vmul.f32 %v1037_v51, %v8979_v20 }
 0x6cd   :  { %v1041_v47 = vsub.f32 %v9208_v62, %v1039_v52  ;;  %v1149_v52 = vperm.slane %v8995_v43, 4 }
 0x6cf   :  { %v1043_v12 = vmul.f32 %v1041_v47, %v1041_v47 }
 0x6d1   :  { %v1047_v53 = vsel %vm174_vm2, %v1043_v12, 0.0 }
 0x6d2   :  { %1048 = vadd.xlane.f32.xlu0 %v1047_v53 }
 0x721   :  { %v1046_v55 = vpop.xlane.xlu1 %1045 }
 0x722   :  { %v1050_v56 = vmul.f32 %v1046_v55, %v8979_v20 }
 0x724   :  { %v1052_v57 = vadd.f32 1e-05, %v1050_v56 }
 0x726   :  { %8455 = vrsqrt.f32 %v1052_v57  ;;  %vm1060_vm3 = vweird.f32 %v1052_v57 }
 0x72c   :  { %v8456_v58 = vpop.eup %8455 }
 0x72d   :  { %v1055_v59 = vmul.f32 %v8456_v58, %v1052_v57  ;;  %vm1061_vm15 = vweird.f32 %v8456_v58 }
 0x72e   :  { %vm1062_vm4 = vmor %vm1060_vm3, %vm1061_vm15 }
 0x72f   :  { %v1056_v60 = vmul.f32 %v8456_v58, %v1055_v59 }
 0x731   :  { %v1057_v63 = vmul.f32 0.5, %v1056_v60 }
 0x733   :  { %v1058_v0 = vsub.f32 1.5, %v1057_v63 }
 0x735   :  { %v1059_v1 = vmul.f32 %v8456_v58, %v1058_v0 }
 0x737   :  { %v1063_v3 = vsel %vm1062_vm4, %v8456_v58, %v1059_v1 }
 0x738   :  { %v1074_v4 = vmul.f32 %v1063_v3, %v1040_v45 }
 0x73a   :  { %v1077_v6 = vmul.f32 %v1076_v2, %v1074_v4  ;;  %v7940_v4 = vld [vmem:[%s10812_s6 + $0x8] sm:$0xff] }
 0x73b   :  { %1284 = vmatpush.msra.mxu0 %v7940_v4  ;;  %1307 = vmatpush.msra.mxu1 %v7940_v4 }
 0x73c   :  { %v1080_v7 = vadd.f32 %v1079_v5, %v1077_v6 }
 0x73e   :  { %7936 = vmatmul.msk.f32.vlgmr.msrb.gmra.mxu0 %vm232_vm8, %v1080_v7 }
 0x745   :  { %v1049_v8 = vpop.xlane.xlu0 %1048 }
 0x746   :  { %v1051_v10 = vmul.f32 %v1049_v8, %v8979_v20 }
 0x748   :  { %v1053_v11 = vadd.f32 1e-05, %v1051_v10 }
 0x74a   :  { %8457 = vrsqrt.f32 %v1053_v11  ;;  %vm1070_vm6 = vweird.f32 %v1053_v11 }
 0x750   :  { %v8458_v13 = vpop.eup %8457 }
 0x751   :  { %v1065_v14 = vmul.f32 %v8458_v13, %v1053_v11  ;;  %vm1071_vm5 = vweird.f32 %v8458_v13 }
 0x752   :  { %vm1072_vm7 = vmor %vm1070_vm6, %vm1071_vm5 }
 0x753   :  { %v1066_v15 = vmul.f32 %v8458_v13, %v1065_v14  ;;  %v9268_v14 = vld [vmem:[%s10817_s11 + $0x8] sm:$0x1f] }
 0x755   :  { %v1067_v16 = vmul.f32 0.5, %v1066_v15 }
 0x757   :  { %v1068_v17 = vsub.f32 1.5, %v1067_v16 }
 0x759   :  { %v1069_v18 = vmul.f32 %v8458_v13, %v1068_v17  ;;  %v1260_v17 = vperm.slane %v9268_v14, 0 }
 0x75b   :  { %v1073_v19 = vsel %vm1072_vm7, %v8458_v13, %v1069_v18 }
 0x75c   :  { %v1075_v21 = vmul.f32 %v1073_v19, %v1041_v47 }
 0x75e   :  { %v1078_v22 = vmul.f32 %v1076_v2, %v1075_v21  ;;  %v1263_v21 = vperm.slane %v9268_v14, 1 }
 0x760   :  { %v1081_v23 = vadd.f32 %v1079_v5, %v1078_v22 }
 0x762   :  { %7937 = vmatmul.msk.f32.vlgmr.msrb.gmra.mxu1 %vm232_vm8, %v1081_v23 }
 0x7bb   :  { %v1105_v29 = vpop.f32.mrf.mxu0 }
 0x7bc   :  { %v1106_v30 = vadd.f32 %v8401_v28, %v1105_v29 }
 0x7be   :  { %v1131_v31 = vmul.f32 %v1106_v30, %v1106_v30 }
 0x7c0   :  { %v1133_v32 = vmul.f32 %v1131_v31, %v1106_v30 }
 0x7c2   :  { %v1135_v33 = vmul.f32 0.044715, %v1133_v32 }
 0x7c4   :  { %v1137_v34 = vadd.f32 %v1135_v33, %v1106_v30 }
 0x7c6   :  { %v1139_v35 = vmul.f32 0.7978846, %v1137_v34 }
 0x7c8   :  { %8459 = vtanh.f32 %v1139_v35 }
 0x7ce   :  { %v8460_v36 = vpop.eup %8459 }
 0x7cf   :  { %v1143_v37 = vadd.f32 1.0, %v8460_v36 }
 0x7d1   :  { %v1145_v38 = vmul.f32 0.5, %v1143_v37 }
 0x7d3   :  { %v1147_v39 = vmul.f32 %v1145_v38, %v1106_v30 }
 0x7d5   :  { %7938 = vmatmul.msk.f32.vlgmr.msrb.gmra.mxu2 %vm1150_vm9, %v1147_v39 }
 0x7df   :  { %v1128_v40 = vpop.f32.mrf.mxu1 }
 0x7e0   :  { %v1129_v41 = vadd.f32 %v8401_v28, %v1128_v40 }
 0x7e2   :  { %v1132_v61 = vmul.f32 %v1129_v41, %v1129_v41 }
 0x7e4   :  { %v1134_v44 = vmul.f32 %v1132_v61, %v1129_v41 }
 0x7e6   :  { %v1136_v46 = vmul.f32 0.044715, %v1134_v44 }
 0x7e8   :  { %v1138_v48 = vadd.f32 %v1136_v46, %v1129_v41 }
 0x7ea   :  { %v1140_v49 = vmul.f32 0.7978846, %v1138_v48 }
 0x7ec   :  { %8461 = vtanh.f32 %v1140_v49 }
 0x7f2   :  { %v8462_v45 = vpop.eup %8461 }
 0x7f3   :  { %v1144_v50 = vadd.f32 1.0, %v8462_v45 }
 0x7f5   :  { %v1146_v9 = vmul.f32 0.5, %v1144_v50 }
 0x7f7   :  { %v1148_v51 = vmul.f32 %v1146_v9, %v1129_v41 }
 0x7f9   :  { %7939 = vmatmul.msk.f32.vlgmr.msrb.gmra.mxu3 %vm1150_vm9, %v1148_v51 }
 0x858   :  { %v1171_v47 = vpop.f32.mrf.mxu2 }
 0x859   :  { %v1172_v12 = vadd.f32 %v1171_v47, %v1149_v52 }
 0x85b   :  { %v9246_v53 = vadd.f32 %v1172_v12, %v9203_v42 }
 0x85d   :  { %v1216_v54 = vsel %vm174_vm2, %v9246_v53, 0.0 }
 0x85e   :  { %1217 = vadd.xlane.f32.xlu2 %v1216_v54 }
 0x87c   :  { %v1194_v55 = vpop.f32.mrf.mxu3 }
 0x87d   :  { %v1195_v56 = vadd.f32 %v1194_v55, %v1149_v52 }
 0x87f   :  { %v9251_v57 = vadd.f32 %v1195_v56, %v9208_v62 }
 0x881   :  { %v1219_v58 = vsel %vm174_vm2, %v9251_v57, 0.0 }
 0x882   :  { %1220 = vadd.xlane.f32.xlu1 %v1219_v58 }
 0x8d1   :  { %v1218_v59 = vpop.xlane.xlu2 %1217 }
 0x8d2   :  { %v1222_v43 = vmul.f32 %v1218_v59, %v8979_v20 }
 0x8d4   :  { %v1224_v60 = vsub.f32 %v9246_v53, %v1222_v43 }
 0x8d6   :  { %v1226_v42 = vmul.f32 %v1224_v60, %v1224_v60 }
 0x8d8   :  { %v1228_v63 = vsel %vm174_vm2, %v1226_v42, 0.0 }
 0x8d9   :  { %1229 = vadd.xlane.f32.xlu0 %v1228_v63 }
 0x8f5   :  { %v1221_v0 = vpop.xlane.xlu1 %1220 }
 0x8f6   :  { %v1223_v1 = vmul.f32 %v1221_v0, %v8979_v20 }
 0x8f8   :  { %v1225_v2 = vsub.f32 %v9251_v57, %v1223_v1 }
 0x8fa   :  { %v1227_v62 = vmul.f32 %v1225_v2, %v1225_v2 }
 0x8fc   :  { %v1231_v3 = vsel %vm174_vm2, %v1227_v62, 0.0 }
 0x8fd   :  { %1232 = vadd.xlane.f32.xlu2 %v1231_v3 }
 0x94c   :  { %v1230_v5 = vpop.xlane.xlu0 %1229 }
 0x94d   :  { %v1234_v6 = vmul.f32 %v1230_v5, %v8979_v20 }
 0x94f   :  { %v1236_v7 = vadd.f32 1e-05, %v1234_v6 }
 0x951   :  { %8463 = vrsqrt.f32 %v1236_v7  ;;  %vm1244_vm15 = vweird.f32 %v1236_v7 }
 0x957   :  { %v8464_v8 = vpop.eup %8463 }
 0x958   :  { %v1239_v10 = vmul.f32 %v8464_v8, %v1236_v7  ;;  %vm1245_vm10 = vweird.f32 %v8464_v8 }
 0x959   :  { %vm1246_vm3 = vmor %vm1244_vm15, %vm1245_vm10 }
 0x95a   :  { %v1240_v11 = vmul.f32 %v8464_v8, %v1239_v10 }
 0x95c   :  { %v1241_v13 = vmul.f32 0.5, %v1240_v11 }
 0x95e   :  { %v1242_v15 = vsub.f32 1.5, %v1241_v13 }
 0x960   :  { %v1243_v16 = vmul.f32 %v8464_v8, %v1242_v15 }
 0x962   :  { %v1247_v18 = vsel %vm1246_vm3, %v8464_v8, %v1243_v16 }
 0x963   :  { %v1258_v19 = vmul.f32 %v1247_v18, %v1224_v60 }
 0x965   :  { %v1261_v22 = vmul.f32 %v1260_v17, %v1258_v19 }
 0x967   :  { %v1264_v23 = vadd.f32 %v1263_v21, %v1261_v22 }
 0x969   :  { %7951 = vmatmul.msk.f32.vlgmr.msra.gmra.mxu0 %vm232_vm8, %v1264_v23 }
 0x970   :  { %v1233_v24 = vpop.xlane.xlu2 %1232 }
 0x971   :  { %v1235_v25 = vmul.f32 %v1233_v24, %v8979_v20 }
 0x973   :  { %v1237_v26 = vadd.f32 1e-05, %v1235_v25 }
 0x975   :  { %8465 = vrsqrt.f32 %v1237_v26  ;;  %vm1254_vm5 = vweird.f32 %v1237_v26 }
 0x97b   :  { %v8466_v27 = vpop.eup %8465 }
 0x97c   :  { %v1249_v28 = vmul.f32 %v8466_v27, %v1237_v26  ;;  %vm1255_vm4 = vweird.f32 %v8466_v27 }
 0x97d   :  { %vm1256_vm6 = vmor %vm1254_vm5, %vm1255_vm4 }
 0x97e   :  { %v1250_v29 = vmul.f32 %v8466_v27, %v1249_v28 }
 0x980   :  { %v1251_v30 = vmul.f32 0.5, %v1250_v29 }
 0x982   :  { %v1252_v31 = vsub.f32 1.5, %v1251_v30 }
 0x984   :  { %v1253_v32 = vmul.f32 %v8466_v27, %v1252_v31 }
 0x986   :  { %v1257_v33 = vsel %vm1256_vm6, %v8466_v27, %v1253_v32 }
 0x987   :  { %v1259_v34 = vmul.f32 %v1257_v33, %v1225_v2 }
 0x989   :  { %v1262_v35 = vmul.f32 %v1260_v17, %v1259_v34 }
 0x98b   :  { %v1265_v36 = vadd.f32 %v1263_v21, %v1262_v35 }
 0x98d   :  { %7952 = vmatmul.msk.f32.vlgmr.msra.gmra.mxu1 %vm232_vm8, %v1265_v36 }
 0x9e6   :  { %v9275_v37 = vpop.f32.mrf.mxu0 }
 0x9e7   :  { %1444 = vrot.lane.b32.xlu2 %v9275_v37, %s10859_s28  ;;  %1313 = vrot.lane.b32.xlu1 %v9275_v37, %s10861_s29 }
 0x9ef   :  { %1442 = vrot.lane.b32.xlu1 %v9275_v37, %s10853_s1 }
 0xa0a   :  { %v9283_v38 = vpop.f32.mrf.mxu1 }
 0xa0b   :  { %1340 = vrot.lane.b32.xlu0 %v9283_v38, %s10861_s29  ;;  %1470 = vrot.lane.b32.xlu2 %v9283_v38, %s10853_s1  ;;  %s10896_s1 = smov 120   ;;  %s10898_s29 = smov 116  }
 0xa0c   :  { %1604 = vrot.lane.b32.xlu1 %v9283_v38, %s10857_s30 }
 0xa13   :  { %1472 = vrot.lane.b32.xlu0 %v9283_v38, %s10859_s28  ;;  %1574 = vrot.lane.b32.xlu2 %v9275_v37, %s10855_s19  ;;  %s10897_s28 = smov 124  }
 0xa14   :  { %1708 = vrot.lane.b32.xlu1 %v9275_v37, %s10847_s0 }
 0xa1b   :  { %1576 = vrot.lane.b32.xlu0 %v9275_v37, %s10857_s30  ;;  %1736 = vrot.lane.b32.xlu2 %v9283_v38, %s10847_s0  ;;  %s10893_s30 = smov 108   ;;  %s10894_s0 = smov 104  }
 0xa1c   :  { %1734 = vrot.lane.b32.xlu1 %v9283_v38, %s10851_s20 }
 0xa23   :  { %1602 = vrot.lane.b32.xlu0 %v9283_v38, %s10855_s19  ;;  %1840 = vrot.lane.b32.xlu2 %v9275_v37, %s10849_s22  ;;  %s10895_s19 = smov 100  }
 0xa24   :  { %1838 = vrot.lane.b32.xlu1 %v9275_v37, %s10845_s21 }
 0xa2b   :  { %1706 = vrot.lane.b32.xlu0 %v9275_v37, %s10851_s20  ;;  %1866 = vrot.lane.b32.xlu2 %v9283_v38, %s10845_s21  ;;  %s10892_s21 = smov 16   ;;  %s10899_s20 = smov 92  }
 0xa33   :  { %1868 = vrot.lane.b32.xlu0 %v9283_v38, %s10849_s22  ;;  %1388 = vrot.lane.b32.xlu2 %v9275_v37, %s10884_s2  ;;  %s10900_s22 = smov 96  }
 0xa3b   :  { %1415 = vrot.lane.b32.xlu0 %v9283_v38, %s10884_s2 }
 0xa41   :  { %v1445_v40 = vpop.permute.xlu2 %1444 }
 0xa59   :  { %v1314_v39 = vpop.permute.xlu1 %1313 }
 0xa5a   :  { %7953 = vmatpush.xpose.msk.msra.mxu2 %vm113_vm1, %v1314_v39 }
 0xa5d   :  { %7954 = vmatmul.msk.f32.vlgmr.msra.gmra.mxu2 %vm113_vm1, %v9275_v37 }
 0xa5e   :  { %7961 = vmatpush.xpose.msk.msrb.mxu2 %vm113_vm1, %v1445_v40 }
 0xa61   :  { %v1443_v41 = vpop.permute.xlu1 %1442 }
 0xa65   :  { %v1471_v61 = vpop.permute.xlu2 %1470  ;;  %7962 = vmatmul.msk.f32.vlgmr.msrb.gmra.mxu2 %vm113_vm1, %v1443_v41 }
 0xa6d   :  { %v1575_v44 = vpop.permute.xlu2 %1574 }
 0xa75   :  { %v1737_v46 = vpop.permute.xlu2 %1736 }
 0xa7d   :  { %v1841_v48 = vpop.permute.xlu2 %1840  ;;  %v1341_v49 = vpop.permute.xlu0 %1340 }
 0xa7e   :  { %7955 = vmatpush.xpose.msk.msra.mxu3 %vm113_vm1, %v1341_v49  ;;  %v1605_v45 = vpop.permute.xlu1 %1604 }
 0xa81   :  { %7956 = vmatmul.msk.f32.vlgmr.msra.gmra.mxu3 %vm113_vm1, %v9283_v38 }
 0xa85   :  { %v1867_v50 = vpop.permute.xlu2 %1866  ;;  %v1473_v9 = vpop.permute.xlu0 %1472 }
 0xa86   :  { %7963 = vmatpush.xpose.msk.msrb.mxu3 %vm113_vm1, %v1473_v9  ;;  %v1709_v47 = vpop.permute.xlu1 %1708 }
 0xa89   :  { %7964 = vmatmul.msk.f32.vlgmr.msrb.gmra.mxu3 %vm113_vm1, %v1471_v61 }
 0xa8a   :  { %7971 = vmatpush.xpose.msk.msra.mxu3 %vm113_vm1, %v1605_v45 }
 0xa8d   :  { %v1389_v51 = vpop.permute.xlu2 %1388  ;;  %v1577_v52 = vpop.permute.xlu0 %1576 }
 0xa8e   :  { %7979 = vmatpush.xpose.msk.msrb.mxu3 %vm113_vm1, %v1737_v46  ;;  %7957 = vmatpush.msk.msrb.mxu0 %vm361_vm11, %v1389_v51  ;;  %v1735_v54 = vpop.permute.xlu1 %1734 }
 0xa8f   :  { %7969 = vmatpush.xpose.msk.msra.mxu2 %vm113_vm1, %v1577_v52 }
 0xa92   :  { %7970 = vmatmul.msk.f32.vlgmr.msra.gmra.mxu2 %vm113_vm1, %v1575_v44 }
 0xa93   :  { %7977 = vmatpush.xpose.msk.msrb.mxu2 %vm113_vm1, %v1709_v47 }
 0xa95   :  { %v1603_v12 = vpop.permute.xlu0 %1602 }
 0xa96   :  { %7972 = vmatmul.msk.f32.vlgmr.msra.gmra.mxu3 %vm113_vm1, %v1603_v12  ;;  %v1839_v56 = vpop.permute.xlu1 %1838 }
 0xa97   :  { %7985 = vmatpush.xpose.msk.msra.mxu2 %vm113_vm1, %v1841_v48 }
 0xa9d   :  { %v1707_v55 = vpop.permute.xlu0 %1706 }
 0xa9e   :  { %7978 = vmatmul.msk.f32.vlgmr.msrb.gmra.mxu2 %vm113_vm1, %v1707_v55  ;;  %7980 = vmatmul.msk.f32.vlgmr.msrb.gmra.mxu3 %vm113_vm1, %v1735_v54 }
 0xaa5   :  { %v1869_v58 = vpop.permute.xlu0 %1868 }
 0xaa6   :  { %7986 = vmatmul.msk.f32.vlgmr.msra.gmra.mxu2 %vm113_vm1, %v1839_v56  ;;  %7987 = vmatpush.xpose.msk.msra.mxu3 %vm113_vm1, %v1869_v58 }
 0xaa9   :  { %7988 = vmatmul.msk.f32.vlgmr.msra.gmra.mxu3 %vm113_vm1, %v1867_v50 }
 0xaad   :  { %v1416_v59 = vpop.permute.xlu0 %1415 }
 0xaae   :  { %7959 = vmatpush.msk.msrb.mxu1 %vm361_vm11, %v1416_v59 }
 0xae0   :  { %v1336_v43 = vpop.f32.mrf.mxu2 }
 0xae1   :  { %v1366_v60 = vsel %vm333_vm12, %v1336_v43, -inf }
 0xae2   :  { %1367 = vmax.xlane.f32.xlu0 %v1366_v60 }
 0xae8   :  { %v1467_v42 = vpop.f32.mrf.mxu2 }
 0xae9   :  { %v1498_v63 = vsel %vm333_vm12, %v1467_v42, -inf }
 0xaea   :  { %1499 = vmax.xlane.f32.xlu2 %v1498_v63 }
 0xb04   :  { %v1363_v0 = vpop.f32.mrf.mxu3 }
 0xb05   :  { %v1369_v1 = vsel %vm333_vm12, %v1363_v0, -inf }
 0xb06   :  { %1370 = vmax.xlane.f32.xlu1 %v1369_v1 }
 0xb0c   :  { %v1495_v2 = vpop.f32.mrf.mxu3 }
 0xb0d   :  { %v1501_v62 = vsel %vm333_vm12, %v1495_v2, -inf }
 0xb0e   :  { %1502 = vmax.xlane.f32.xlu0 %v1501_v62 }
 0xb15   :  { %v1599_v3 = vpop.f32.mrf.mxu2 }
 0xb16   :  { %v1630_v15 = vsel %vm333_vm12, %v1599_v3, -inf }
 0xb19   :  { %v9347_v4 = vpop.f32.mrf.mxu3 }
 0xb1a   :  { %v1633_v5 = vsel %vm333_vm12, %v9347_v4, -inf }
 0xb1b   :  { %1634 = vmax.xlane.f32.xlu2 %v1633_v5 }
 0xb1f   :  { %1547 = vrot.lane.b32.xlu1 %v9283_v38, %s10885_s23 }
 0xb21   :  { %v1731_v6 = vpop.f32.mrf.mxu2  ;;  %v1759_v10 = vpop.f32.mrf.mxu3 }
 0xb22   :  { %1520 = vrot.lane.b32.xlu0 %v9275_v37, %s10885_s23  ;;  %v1762_v11 = vsel %vm333_vm12, %v1731_v6, -inf  ;;  %v1765_v21 = vsel %vm333_vm12, %v1759_v10, -inf }
 0xb27   :  { %1652 = vrot.lane.b32.xlu1 %v9275_v37, %s10886_s24 }
 0xb29   :  { %v9357_v7 = vpop.f32.mrf.mxu2 }
 0xb2a   :  { %v1894_v8 = vsel %vm333_vm12, %v9357_v7, -inf }
 0xb2b   :  { %1895 = vmax.xlane.f32.xlu2 %v1894_v8 }
 0xb2c   :  { %v9362_v13 = vpop.f32.mrf.mxu3 }
 0xb2d   :  { %v1897_v16 = vsel %vm333_vm12, %v9362_v13, -inf }
 0xb4c   :  { %1763 = vmax.xlane.f32.xlu0 %v1762_v11 }
 0xb51   :  { %1631 = vmax.xlane.f32.xlu1 %v1630_v15 }
 0xb54   :  { %1898 = vmax.xlane.f32.xlu0 %v1897_v16 }
 0xb55   :  { %v1368_v17 = vpop.xlane.xlu0 %1367 }
 0xb56   :  { %v1372_v18 = vsub.f32 %v1336_v43, %v1368_v17 }
 0xb58   :  { %v1374_v19 = vmul.f32 1.442695, %v1372_v18 }
 0xb59   :  { %1766 = vmax.xlane.f32.xlu1 %v1765_v21 }
 0xb5a   :  { %8467 = vpow2.f32 %v1374_v19 }
 0xb5d   :  { %v1500_v22 = vpop.xlane.xlu2 %1499 }
 0xb5e   :  { %v1504_v23 = vsub.f32 %v1467_v42, %v1500_v22 }
 0xb60   :  { %v8468_v24 = vpop.eup %8467  ;;  %v1506_v25 = vmul.f32 1.442695, %v1504_v23 }
 0xb61   :  { %v1378_v26 = vsel %vm333_vm12, %v8468_v24, 0.0 }
 0xb62   :  { %8469 = vpow2.f32 %v1506_v25  ;;  %1379 = vadd.xlane.f32.xlu1 %v1378_v26 }
 0xb68   :  { %v8470_v27 = vpop.eup %8469 }
 0xb69   :  { %v1510_v28 = vsel %vm333_vm12, %v8470_v27, 0.0 }
 0xb6a   :  { %1511 = vadd.xlane.f32.xlu0 %v1510_v28 }
 0xb79   :  { %v1371_v29 = vpop.xlane.xlu1 %1370 }
 0xb7a   :  { %v1373_v30 = vsub.f32 %v1363_v0, %v1371_v29 }
 0xb7c   :  { %v1376_v31 = vmul.f32 1.442695, %v1373_v30 }
 0xb7e   :  { %8471 = vpow2.f32 %v1376_v31 }
 0xb81   :  { %v1503_v32 = vpop.xlane.xlu0 %1502 }
 0xb82   :  { %v1505_v33 = vsub.f32 %v1495_v2, %v1503_v32 }
 0xb84   :  { %v9370_v34 = vpop.eup %8471  ;;  %v1508_v35 = vmul.f32 1.442695, %v1505_v33 }
 0xb85   :  { %v1381_v36 = vsel %vm333_vm12, %v9370_v34, 0.0 }
 0xb86   :  { %8473 = vpow2.f32 %v1508_v35  ;;  %1382 = vadd.xlane.f32.xlu2 %v1381_v36 }
 0xb8c   :  { %v9374_v39 = vpop.eup %8473 }
 0xb8d   :  { %v1513_v40 = vsel %vm333_vm12, %v9374_v39, 0.0 }
 0xb8e   :  { %1514 = vadd.xlane.f32.xlu1 %v1513_v40  ;;  %v1635_v45 = vpop.xlane.xlu2 %1634 }
 0xb8f   :  { %v1637_v51 = vsub.f32 %v9347_v4, %v1635_v45 }
 0xb91   :  { %v1548_v41 = vpop.permute.xlu1 %1547  ;;  %v1640_v12 = vmul.f32 1.442695, %v1637_v51 }
 0xb92   :  { %7967 = vmatpush.msk.msra.mxu1 %vm361_vm11, %v1548_v41 }
 0xb94   :  { %v1521_v61 = vpop.permute.xlu0 %1520 }
 0xb95   :  { %7965 = vmatpush.msk.msra.mxu0 %vm361_vm11, %v1521_v61 }
 0xb99   :  { %v1653_v44 = vpop.permute.xlu1 %1652 }
 0xb9e   :  { %v1896_v8 = vpop.xlane.xlu2 %1895 }
 0xb9f   :  { %v1900_v23 = vsub.f32 %v9357_v7, %v1896_v8 }
 0xbbf   :  { %v1764_v46 = vpop.xlane.xlu0 %1763 }
 0xbc0   :  { %v1768_v48 = vsub.f32 %v1731_v6, %v1764_v46 }
 0xbc2   :  { %v1770_v49 = vmul.f32 1.442695, %v1768_v48 }
 0xbc4   :  { %8475 = vpow2.f32 %v1770_v49  ;;  %v1632_v50 = vpop.xlane.xlu1 %1631 }
 0xbc5   :  { %v1636_v9 = vsub.f32 %v1599_v3, %v1632_v50 }
 0xbc7   :  { %v1638_v52 = vmul.f32 1.442695, %v1636_v9  ;;  %v1899_v42 = vpop.xlane.xlu0 %1898 }
 0xbc8   :  { %v1901_v11 = vsub.f32 %v9362_v13, %v1899_v42  ;;  %v1902_v13 = vmul.f32 1.442695, %v1900_v23  ;;  %v7941_v42 = vld [vmem:[%s10813_s7 + $0x18] sm:$0xff] }
 0xbc9   :  { %8477 = vpow2.f32 %v1638_v52 }
 0xbca   :  { %v9381_v47 = vpop.eup %8475  ;;  %8479 = vpow2.f32 %v1640_v12  ;;  %v1904_v15 = vmul.f32 1.442695, %v1901_v11 }
 0xbcb   :  { %v1774_v54 = vsel %vm333_vm12, %v9381_v47, 0.0 }
 0xbcc   :  { %v1767_v55 = vpop.xlane.xlu1 %1766  ;;  %1775 = vadd.xlane.f32.xlu2 %v1774_v54 }
 0xbcd   :  { %v1769_v56 = vsub.f32 %v1759_v10, %v1767_v55 }
 0xbcf   :  { %v8478_v58 = vpop.eup %8477  ;;  %v1772_v59 = vmul.f32 1.442695, %v1769_v56 }
 0xbd0   :  { %v1642_v43 = vsel %vm333_vm12, %v8478_v58, 0.0  ;;  %v9386_v60 = vpop.eup %8479 }
 0xbd1   :  { %8481 = vpow2.f32 %v1772_v59  ;;  %1643 = vadd.xlane.f32.xlu1 %v1642_v43  ;;  %v1645_v2 = vsel %vm333_vm12, %v9386_v60, 0.0  ;;  %v7943_v43 = vld [vmem:[%s10813_s7 + $0x28] sm:$0xf] }
 0xbd2   :  { %7993 = vmatpush.msk.msrb.mxu2 %vm361_vm11, %v7943_v43  ;;  %7995 = vmatpush.msk.msrb.mxu3 %vm361_vm11, %v7943_v43 }
 0xbd5   :  { %v1380_v63 = vpop.xlane.xlu1 %1379 }
 0xbd6   :  { %8483 = vrcp.f32 %v1380_v63 }
 0xbd7   :  { %v9388_v0 = vpop.eup %8481 }
 0xbd8   :  { %v1777_v1 = vsel %vm333_vm12, %v9388_v0, 0.0 }
 0xbd9   :  { %1778 = vadd.xlane.f32.xlu0 %v1777_v1  ;;  %1646 = vadd.xlane.f32.xlu1 %v1645_v2 }
 0xbdc   :  { %v8484_v62 = vpop.eup %8483 }
 0xbdd   :  { %v1386_v3 = vmul.f32 %v8484_v62, %v8468_v24  ;;  %v1512_v4 = vpop.xlane.xlu0 %1511 }
 0xbde   :  { %8485 = vrcp.f32 %v1512_v4 }
 0xbdf   :  { %7958 = vmatmul.msk.f32.vlgmr.msrb.gmra.mxu0 %vm113_vm1, %v1386_v3 }
 0xbe0   :  { %7973 = vmatpush.msk.msrb.mxu0 %vm361_vm11, %v1653_v44 }
 0xbe4   :  { %v8486_v5 = vpop.eup %8485  ;;  %1784 = vrot.lane.b32.xlu2 %v9275_v37, %s10887_s25 }
 0xbe5   :  { %v1518_v6 = vmul.f32 %v8486_v5, %v8470_v27 }
 0xbe7   :  { %7966 = vmatmul.msk.f32.vlgmr.msra.gmra.mxu0 %vm113_vm1, %v1518_v6 }
 0xbed   :  { %1811 = vrot.lane.b32.xlu0 %v9283_v38, %s10887_s25 }
 0xbf2   :  { %1679 = vrot.lane.b32.xlu1 %v9283_v38, %s10886_s24 }
 0xbf5   :  { %1916 = vrot.lane.b32.xlu0 %v9275_v37, %s10888_s3 }
 0xbf9   :  { %v1383_v10 = vpop.xlane.xlu2 %1382 }
 0xbfa   :  { %8487 = vrcp.f32 %v1383_v10 }
 0xc00   :  { %v8488_v16 = vpop.eup %8487 }
 0xc01   :  { %v1387_v17 = vmul.f32 %v8488_v16, %v9370_v34  ;;  %v1515_v18 = vpop.xlane.xlu1 %1514 }
 0xc02   :  { %8489 = vrcp.f32 %v1515_v18 }
 0xc03   :  { %8491 = vpow2.f32 %v1904_v15  ;;  %7960 = vmatmul.msk.f32.vlgmr.msrb.gmra.mxu1 %vm113_vm1, %v1387_v17 }
 0xc04   :  { %8493 = vpow2.f32 %v1902_v13 }
 0xc08   :  { %v8490_v19 = vpop.eup %8489 }
 0xc09   :  { %v8492_v21 = vpop.eup %8491  ;;  %v1519_v22 = vmul.f32 %v8490_v19, %v9374_v39 }
 0xc0a   :  { %v1909_v37 = vsel %vm333_vm12, %v8492_v21, 0.0  ;;  %v8494_v24 = vpop.eup %8493 }
 0xc0b   :  { %7968 = vmatmul.msk.f32.vlgmr.msra.gmra.mxu1 %vm113_vm1, %v1519_v22  ;;  %v1906_v25 = vsel %vm333_vm12, %v8494_v24, 0.0 }
 0xc0d   :  { %1910 = vadd.xlane.f32.xlu2 %v1909_v37 }
 0xc1c   :  { %1907 = vadd.xlane.f32.xlu1 %v1906_v25 }
 0xc25   :  { %1943 = vrot.lane.b32.xlu2 %v9283_v38, %s10888_s3 }
 0xc3f   :  { %v1776_v26 = vpop.xlane.xlu2 %1775 }
 0xc44   :  { %v1644_v27 = vpop.xlane.xlu1 %1643 }
 0xc45   :  { %8495 = vrcp.f32 %v1644_v27 }
 0xc46   :  { %8497 = vrcp.f32 %v1776_v26 }
 0xc47   :  { %v1785_v28 = vpop.permute.xlu2 %1784 }
 0xc48   :  { %7981 = vmatpush.msk.msra.mxu0 %vm361_vm11, %v1785_v28 }
 0xc4b   :  { %v8496_v7 = vpop.eup %8495 }
 0xc4c   :  { %v1650_v29 = vmul.f32 %v8496_v7, %v8478_v58  ;;  %v8498_v30 = vpop.eup %8497  ;;  %v1779_v32 = vpop.xlane.xlu0 %1778 }
 0xc4d   :  { %v1782_v31 = vmul.f32 %v8498_v30, %v9381_v47  ;;  %v1647_v33 = vpop.xlane.xlu1 %1646 }
 0xc4e   :  { %7974 = vmatmul.msk.f32.vlgmr.msrb.gmra.mxu0 %vm113_vm1, %v1650_v29  ;;  %8499 = vrcp.f32 %v1647_v33 }
 0xc4f   :  { %8501 = vrcp.f32 %v1779_v32 }
 0xc54   :  { %v8500_v35 = vpop.eup %8499 }
 0xc55   :  { %v1651_v36 = vmul.f32 %v8500_v35, %v9386_v60  ;;  %v8502_v61 = vpop.eup %8501  ;;  %v7942_v60 = vld [vmem:[%s10813_s7 + $0x20] sm:$0xff] }
 0xc56   :  { %7982 = vmatmul.msk.f32.vlgmr.msra.gmra.mxu0 %vm113_vm1, %v1782_v31  ;;  %v1783_v44 = vmul.f32 %v8502_v61, %v9388_v0  ;;  %2030 = vmatpush.msrb.mxu2 %v7942_v60  ;;  %v7944_v31 = vld [vmem:[%s10814_s8 + $0x8] sm:$0xff] }
 0xc57   :  { %2053 = vmatpush.msrb.mxu3 %v7942_v60 }
 0xc58   :  { %2031 = vmatpush.msrb.mxu2 %v7941_v42 }
 0xc59   :  { %2054 = vmatpush.msrb.mxu3 %v7941_v42  ;;  %v7948_v42 = vld [vmem:[%s10816_s10 + $0x38] sm:$0xff] }
 0xc5a   :  { %2194 = vmatpush.msra.mxu2 %v7948_v42 }
 0xc5b   :  { %2217 = vmatpush.msra.mxu3 %v7948_v42 }
 0xc5c   :  { %v1412_v38 = vpop.f32.mrf.mxu0 }
 0xc5f   :  { %v1812_v34 = vpop.permute.xlu0 %1811 }
 0xc64   :  { %v1680_v39 = vpop.permute.xlu1 %1679  ;;  %v1544_v40 = vpop.f32.mrf.mxu0 }
 0xc65   :  { %7975 = vmatpush.msk.msrb.mxu1 %vm361_vm11, %v1680_v39  ;;  %1972 = vrot.lane.b32.xlu0 %v1544_v40, %s10889_s27 }
 0xc66   :  { %7976 = vmatmul.msk.f32.vlgmr.msrb.gmra.mxu1 %vm113_vm1, %v1651_v36 }
 0xc67   :  { %7983 = vmatpush.msk.msra.mxu1 %vm361_vm11, %v1812_v34  ;;  %v1917_v41 = vpop.permute.xlu0 %1916 }
 0xc68   :  { %7989 = vmatpush.msk.msrb.mxu0 %vm361_vm11, %v1917_v41 }
 0xc6a   :  { %2132 = vmatpush.msra.mxu0 %v7944_v31 }
 0xc6e   :  { %7984 = vmatmul.msk.f32.vlgmr.msra.gmra.mxu1 %vm113_vm1, %v1783_v44 }
 0xc80   :  { %v1439_v46 = vpop.f32.mrf.mxu1  ;;  %v1911_v48 = vpop.xlane.xlu2 %1910 }
 0xc81   :  { %8503 = vrcp.f32 %v1911_v48 }
 0xc87   :  { %v8504_v49 = vpop.eup %8503 }
 0xc88   :  { %v1915_v45 = vmul.f32 %v8504_v49, %v8492_v21  ;;  %v1571_v50 = vpop.f32.mrf.mxu1  ;;  %v1944_v9 = vpop.permute.xlu2 %1943  ;;  %v2105_v49 = vperm.slane %v9268_v14, 2 }
 0xc89   :  { %1974 = vrot.lane.b32.xlu2 %v1571_v50, %s10889_s27  ;;  %7991 = vmatpush.msk.msrb.mxu1 %vm361_vm11, %v1944_v9 }
 0xc8a   :  { %7992 = vmatmul.msk.f32.vlgmr.msrb.gmra.mxu1 %vm113_vm1, %v1915_v45 }
 0xc8b   :  { %2155 = vmatpush.msra.mxu1 %v7944_v31 }
 0xc8f   :  { %v1908_v51 = vpop.xlane.xlu1 %1907 }
 0xc90   :  { %8505 = vrcp.f32 %v1908_v51 }
 0xc96   :  { %v8506_v52 = vpop.eup %8505 }
 0xc97   :  { %v1914_v47 = vmul.f32 %v8506_v52, %v8494_v24  ;;  %v2108_v52 = vperm.slane %v9268_v14, 3 }
 0xc99   :  { %7990 = vmatmul.msk.f32.vlgmr.msrb.gmra.mxu0 %vm113_vm1, %v1914_v47 }
 0xccb   :  { %v1676_v12 = vpop.f32.mrf.mxu0 }
 0xccc   :  { %1980 = vrot.lane.b32.xlu1 %v1676_v12, %s10890_s4 }
 0xcd3   :  { %v1808_v54 = vpop.f32.mrf.mxu0 }
 0xcd4   :  { %1988 = vrot.lane.b32.xlu2 %v1808_v54, %s10891_s26 }
 0xcd7   :  { %v1973_v63 = vpop.permute.xlu0 %1972 }
 0xcd8   :  { %v2002_v3 = vsel %vm113_vm1, %v1412_v38, %v1973_v63  ;;  %v7947_v63 = vld [vmem:[%s10816_s10 + $0x30] sm:$0xff] }
 0xcd9   :  { %2195 = vmatpush.msra.mxu2 %v7947_v63  ;;  %2218 = vmatpush.msra.mxu3 %v7947_v63 }
 0xce3   :  { %v1703_v55 = vpop.f32.mrf.mxu1  ;;  %v1975_v0 = vpop.permute.xlu2 %1974 }
 0xce4   :  { %1982 = vrot.lane.b32.xlu0 %v1703_v55, %s10890_s4  ;;  %v2003_v11 = vsel %vm113_vm1, %v1439_v46, %v1975_v0  ;;  %v7946_v0 = vld [vmem:[%s10816_s10 + $0x28] sm:$0xff] }
 0xce5   :  { %2196 = vmatpush.msra.mxu2 %v7946_v0  ;;  %2219 = vmatpush.msra.mxu3 %v7946_v0 }
 0xceb   :  { %v1835_v56 = vpop.f32.mrf.mxu1 }
 0xcec   :  { %1990 = vrot.lane.b32.xlu0 %v1835_v56, %s10891_s26 }
 0xd07   :  { %v1967_v58 = vpop.f32.mrf.mxu1 }
 0xd08   :  { %1998 = vrot.lane.b32.xlu0 %v1967_v58, %s10892_s21 }
 0xd16   :  { %v1940_v59 = vpop.f32.mrf.mxu0 }
 0xd17   :  { %1996 = vrot.lane.b32.xlu2 %v1940_v59, %s10892_s21 }
 0xd2e   :  { %v1989_v2 = vpop.permute.xlu2 %1988 }
 0xd3e   :  { %v1981_v62 = vpop.permute.xlu1 %1980 }
 0xd3f   :  { %v2004_v4 = vsel %vm232_vm8, %v2002_v3, %v1981_v62 }
 0xd40   :  { %v2006_v6 = vsel %vm975_vm13, %v2004_v4, %v1989_v2  ;;  %v8402_v2 = vld [vmem:[%s10815_s9 + $0x1] ss:$0 sm:$0xff] }
 0xd56   :  { %v1983_v1 = vpop.permute.xlu0 %1982 }
 0xd57   :  { %v2005_v15 = vsel %vm232_vm8, %v2003_v11, %v1983_v1  ;;  %v7945_v1 = vld [vmem:[%s10816_s10 + $0x20] sm:$0xff] }
 0xd58   :  { %2197 = vmatpush.msra.mxu2 %v7945_v1  ;;  %2220 = vmatpush.msra.mxu3 %v7945_v1 }
 0xd5e   :  { %v1991_v8 = vpop.permute.xlu0 %1990 }
 0xd5f   :  { %v2007_v16 = vsel %vm975_vm13, %v2005_v15, %v1991_v8 }
 0xd71   :  { %v1997_v5 = vpop.permute.xlu2 %1996 }
 0xd72   :  { %v2008_v10 = vsel %vm64_vm0, %v2006_v6, %v1997_v5 }
 0xd73   :  { %7994 = vmatmul.msk.f32.vlgmr.msrb.gmra.mxu2 %vm980_vm14, %v2008_v10 }
 0xd7a   :  { %v1999_v17 = vpop.permute.xlu0 %1998 }
 0xd7b   :  { %v2009_v18 = vsel %vm64_vm0, %v2007_v16, %v1999_v17 }
 0xd7c   :  { %7996 = vmatmul.msk.f32.vlgmr.msrb.gmra.mxu3 %vm980_vm14, %v2009_v18 }
 0xdf6   :  { %v2033_v19 = vpop.f32.mrf.mxu2 }
 0xdf7   :  { %v9459_v21 = vadd.f32 %v2033_v19, %v9246_v53 }
 0xdf9   :  { %v2061_v22 = vsel %vm174_vm2, %v9459_v21, 0.0 }
 0xdfa   :  { %2062 = vadd.xlane.f32.xlu2 %v2061_v22 }
 0xdff   :  { %v2056_v23 = vpop.f32.mrf.mxu3 }
 0xe00   :  { %v9464_v37 = vadd.f32 %v2056_v23, %v9251_v57 }
 0xe02   :  { %v2064_v13 = vsel %vm174_vm2, %v9464_v37, 0.0 }
 0xe03   :  { %2065 = vadd.xlane.f32.xlu1 %v2064_v13 }
 0xe6d   :  { %v2063_v24 = vpop.xlane.xlu2 %2062 }
 0xe6e   :  { %v2067_v25 = vmul.f32 %v2063_v24, %v8979_v20 }
 0xe70   :  { %v2069_v26 = vsub.f32 %v9459_v21, %v2067_v25 }
 0xe72   :  { %v2071_v27 = vmul.f32 %v2069_v26, %v2069_v26 }
 0xe74   :  { %v2073_v53 = vsel %vm174_vm2, %v2071_v27, 0.0 }
 0xe75   :  { %2074 = vadd.xlane.f32.xlu0 %v2073_v53 }
 0xe76   :  { %v2066_v28 = vpop.xlane.xlu1 %2065 }
 0xe77   :  { %v2068_v7 = vmul.f32 %v2066_v28, %v8979_v20 }
 0xe79   :  { %v2070_v29 = vsub.f32 %v9464_v37, %v2068_v7  ;;  %v2178_v7 = vperm.slane %v9268_v14, 4 }
 0xe7b   :  { %v2072_v57 = vmul.f32 %v2070_v29, %v2070_v29 }
 0xe7d   :  { %v2076_v30 = vsel %vm174_vm2, %v2072_v57, 0.0 }
 0xe7e   :  { %2077 = vadd.xlane.f32.xlu2 %v2076_v30 }
 0xee8   :  { %v2075_v32 = vpop.xlane.xlu0 %2074 }
 0xee9   :  { %v2079_v33 = vmul.f32 %v2075_v32, %v8979_v20 }
 0xeeb   :  { %v2081_v38 = vadd.f32 1e-05, %v2079_v33 }
 0xeed   :  { %8507 = vrsqrt.f32 %v2081_v38  ;;  %vm2089_vm10 = vweird.f32 %v2081_v38 }
 0xef1   :  { %v2078_v34 = vpop.xlane.xlu2 %2077 }
 0xef2   :  { %v2080_v35 = vmul.f32 %v2078_v34, %v8979_v20 }
 0xef3   :  { %v8508_v36 = vpop.eup %8507 }
 0xef4   :  { %v2084_v39 = vmul.f32 %v8508_v36, %v2081_v38  ;;  %v2082_v40 = vadd.f32 1e-05, %v2080_v35  ;;  %vm2090_vm7 = vweird.f32 %v8508_v36 }
 0xef5   :  { %vm2091_vm15 = vmor %vm2089_vm10, %vm2090_vm7 }
 0xef6   :  { %v2085_v41 = vmul.f32 %v8508_v36, %v2084_v39  ;;  %8509 = vrsqrt.f32 %v2082_v40  ;;  %vm2099_vm4 = vweird.f32 %v2082_v40 }
 0xef8   :  { %v2086_v61 = vmul.f32 0.5, %v2085_v41 }
 0xefa   :  { %v2087_v44 = vsub.f32 1.5, %v2086_v61 }
 0xefc   :  { %v8510_v46 = vpop.eup %8509  ;;  %v2088_v48 = vmul.f32 %v8508_v36, %v2087_v44 }
 0xefd   :  { %v2094_v45 = vmul.f32 %v8510_v46, %v2082_v40  ;;  %vm2100_vm3 = vweird.f32 %v8510_v46 }
 0xefe   :  { %v2092_v50 = vsel %vm2091_vm15, %v8508_v36, %v2088_v48  ;;  %vm2101_vm5 = vmor %vm2099_vm4, %vm2100_vm3 }
 0xeff   :  { %v2103_v9 = vmul.f32 %v2092_v50, %v2069_v26  ;;  %v2095_v51 = vmul.f32 %v8510_v46, %v2094_v45 }
 0xf01   :  { %v2106_v47 = vmul.f32 %v2105_v49, %v2103_v9  ;;  %v2096_v12 = vmul.f32 0.5, %v2095_v51 }
 0xf03   :  { %v2097_v54 = vsub.f32 1.5, %v2096_v12  ;;  %v2109_v55 = vadd.f32 %v2108_v52, %v2106_v47 }
 0xf05   :  { %v2098_v56 = vmul.f32 %v8510_v46, %v2097_v54  ;;  %7997 = vmatmul.msk.f32.vlgmr.msra.gmra.mxu0 %vm232_vm8, %v2109_v55  ;;  %v9525_v55 = vld [vmem:[%s10817_s11 + $0x10] sm:$0x1f] }
 0xf06   :  { %v2291_v1 = vperm.slane %v9525_v55, 1 }
 0xf07   :  { %v2102_v58 = vsel %vm2101_vm5, %v8510_v46, %v2098_v56  ;;  %v8001_v46 = vld [vmem:[%s10812_s6 + $0x10] sm:$0xff] }
 0xf08   :  { %v2104_v59 = vmul.f32 %v2102_v58, %v2070_v29  ;;  %2312 = vmatpush.msrb.mxu0 %v8001_v46  ;;  %2335 = vmatpush.msrb.mxu1 %v8001_v46 }
 0xf0a   :  { %v2107_v43 = vmul.f32 %v2105_v49, %v2104_v59 }
 0xf0c   :  { %v2110_v60 = vadd.f32 %v2108_v52, %v2107_v43  ;;  %v2288_v43 = vperm.slane %v9525_v55, 0 }
 0xf0e   :  { %7998 = vmatmul.msk.f32.vlgmr.msra.gmra.mxu1 %vm232_vm8, %v2110_v60 }
 0xf82   :  { %v2134_v62 = vpop.f32.mrf.mxu0 }
 0xf83   :  { %v2135_v3 = vadd.f32 %v8402_v2, %v2134_v62 }
 0xf85   :  { %v2160_v4 = vmul.f32 %v2135_v3, %v2135_v3 }
 0xf87   :  { %v2162_v5 = vmul.f32 %v2160_v4, %v2135_v3 }
 0xf89   :  { %v2164_v6 = vmul.f32 0.044715, %v2162_v5 }
 0xf8b   :  { %v2166_v8 = vadd.f32 %v2164_v6, %v2135_v3  ;;  %v2157_v10 = vpop.f32.mrf.mxu1 }
 0xf8c   :  { %v2158_v11 = vadd.f32 %v8402_v2, %v2157_v10 }
 0xf8d   :  { %v2168_v15 = vmul.f32 0.7978846, %v2166_v8 }
 0xf8e   :  { %v2161_v16 = vmul.f32 %v2158_v11, %v2158_v11 }
 0xf8f   :  { %8511 = vtanh.f32 %v2168_v15 }
 0xf90   :  { %v2163_v17 = vmul.f32 %v2161_v16, %v2158_v11 }
 0xf92   :  { %v2165_v18 = vmul.f32 0.044715, %v2163_v17 }
 0xf94   :  { %v2167_v19 = vadd.f32 %v2165_v18, %v2158_v11 }
 0xf95   :  { %v8512_v22 = vpop.eup %8511 }
 0xf96   :  { %v2172_v23 = vadd.f32 1.0, %v8512_v22  ;;  %v2169_v13 = vmul.f32 0.7978846, %v2167_v19 }
 0xf98   :  { %v2174_v24 = vmul.f32 0.5, %v2172_v23  ;;  %8513 = vtanh.f32 %v2169_v13 }
 0xf9a   :  { %v2176_v25 = vmul.f32 %v2174_v24, %v2135_v3 }
 0xf9c   :  { %7999 = vmatmul.msk.f32.vlgmr.msra.gmra.mxu2 %vm1150_vm9, %v2176_v25 }
 0xf9e   :  { %v8514_v26 = vpop.eup %8513 }
 0xf9f   :  { %v2173_v27 = vadd.f32 1.0, %v8514_v26 }
 0xfa1   :  { %v2175_v53 = vmul.f32 0.5, %v2173_v27 }
 0xfa3   :  { %v2177_v28 = vmul.f32 %v2175_v53, %v2158_v11 }
 0xfa5   :  { %8000 = vmatmul.msk.f32.vlgmr.msra.gmra.mxu3 %vm1150_vm9, %v2177_v28 }
0x101f   :  { %v2199_v29 = vpop.f32.mrf.mxu2 }
0x1020   :  { %v2200_v57 = vadd.f32 %v2199_v29, %v2178_v7 }
0x1022   :  { %v9502_v30 = vadd.f32 %v2200_v57, %v9459_v21 }
0x1024   :  { %v2244_v31 = vsel %vm174_vm2, %v9502_v30, 0.0 }
0x1025   :  { %2245 = vadd.xlane.f32.xlu1 %v2244_v31 }
0x1028   :  { %v2222_v32 = vpop.f32.mrf.mxu3 }
0x1029   :  { %v2223_v33 = vadd.f32 %v2222_v32, %v2178_v7 }
0x102b   :  { %v9507_v38 = vadd.f32 %v2223_v33, %v9464_v37 }
0x102d   :  { %v2247_v34 = vsel %vm174_vm2, %v9507_v38, 0.0 }
0x102e   :  { %2248 = vadd.xlane.f32.xlu0 %v2247_v34 }
0x1098   :  { %v2246_v35 = vpop.xlane.xlu1 %2245 }
0x1099   :  { %v2250_v14 = vmul.f32 %v2246_v35, %v8979_v20 }
0x109b   :  { %v2252_v36 = vsub.f32 %v9502_v30, %v2250_v14 }
0x109d   :  { %v2254_v21 = vmul.f32 %v2252_v36, %v2252_v36 }
0x109f   :  { %v2256_v39 = vsel %vm174_vm2, %v2254_v21, 0.0 }
0x10a0   :  { %2257 = vadd.xlane.f32.xlu2 %v2256_v39 }
0x10a1   :  { %v2249_v40 = vpop.xlane.xlu0 %2248 }
0x10a2   :  { %v2251_v41 = vmul.f32 %v2249_v40, %v8979_v20 }
0x10a4   :  { %v2253_v61 = vsub.f32 %v9507_v38, %v2251_v41 }
0x10a6   :  { %v2255_v37 = vmul.f32 %v2253_v61, %v2253_v61 }
0x10a8   :  { %v2259_v44 = vsel %vm174_vm2, %v2255_v37, 0.0 }
0x10a9   :  { %2260 = vadd.xlane.f32.xlu1 %v2259_v44 }
0x1113   :  { %v2258_v48 = vpop.xlane.xlu2 %2257 }
0x1114   :  { %v2262_v49 = vmul.f32 %v2258_v48, %v8979_v20 }
0x1116   :  { %v2264_v45 = vadd.f32 1e-05, %v2262_v49 }
0x1118   :  { %8515 = vrsqrt.f32 %v2264_v45  ;;  %vm2272_vm7 = vweird.f32 %v2264_v45 }
0x111c   :  { %v2261_v50 = vpop.xlane.xlu1 %2260 }
0x111d   :  { %v2263_v9 = vmul.f32 %v2261_v50, %v8979_v20 }
0x111e   :  { %v8516_v51 = vpop.eup %8515 }
0x111f   :  { %v2267_v52 = vmul.f32 %v8516_v51, %v2264_v45  ;;  %v2265_v47 = vadd.f32 1e-05, %v2263_v9  ;;  %vm2273_vm6 = vweird.f32 %v8516_v51 }
0x1120   :  { %vm2274_vm10 = vmor %vm2272_vm7, %vm2273_vm6 }
0x1121   :  { %v2268_v12 = vmul.f32 %v8516_v51, %v2267_v52  ;;  %8517 = vrsqrt.f32 %v2265_v47  ;;  %vm2282_vm3 = vweird.f32 %v2265_v47 }
0x1123   :  { %v2269_v54 = vmul.f32 0.5, %v2268_v12 }
0x1125   :  { %v2270_v56 = vsub.f32 1.5, %v2269_v54 }
0x1127   :  { %v8518_v58 = vpop.eup %8517  ;;  %v2271_v59 = vmul.f32 %v8516_v51, %v2270_v56 }
0x1128   :  { %v2277_v60 = vmul.f32 %v8518_v58, %v2265_v47  ;;  %vm2283_vm15 = vweird.f32 %v8518_v58 }
0x1129   :  { %v2275_v42 = vsel %vm2274_vm10, %v8516_v51, %v2271_v59  ;;  %vm2284_vm4 = vmor %vm2282_vm3, %vm2283_vm15 }
0x112a   :  { %v2286_v63 = vmul.f32 %v2275_v42, %v2252_v36  ;;  %v2278_v0 = vmul.f32 %v8518_v58, %v2277_v60 }
0x112c   :  { %v2289_v2 = vmul.f32 %v2288_v43, %v2286_v63  ;;  %v2279_v62 = vmul.f32 0.5, %v2278_v0 }
0x112e   :  { %v2280_v3 = vsub.f32 1.5, %v2279_v62  ;;  %v2292_v4 = vadd.f32 %v2291_v1, %v2289_v2 }
0x1130   :  { %v2281_v5 = vmul.f32 %v8518_v58, %v2280_v3  ;;  %8012 = vmatmul.msk.f32.vlgmr.msrb.gmra.mxu0 %vm232_vm8, %v2292_v4 }
0x1132   :  { %v2285_v6 = vsel %vm2284_vm4, %v8518_v58, %v2281_v5 }
0x1133   :  { %v2287_v8 = vmul.f32 %v2285_v6, %v2253_v61 }
0x1135   :  { %v2290_v10 = vmul.f32 %v2288_v43, %v2287_v8 }
0x1137   :  { %v2293_v11 = vadd.f32 %v2291_v1, %v2290_v10 }
0x1139   :  { %8013 = vmatmul.msk.f32.vlgmr.msrb.gmra.mxu1 %vm232_vm8, %v2293_v11 }
0x11ad   :  { %v9531_v15 = vpop.f32.mrf.mxu0 }
0x11ae   :  { %2341 = vrot.lane.b32.xlu0 %v9531_v15, %s10893_s30  ;;  %2472 = vrot.lane.b32.xlu1 %v9531_v15, %s10894_s0 }
0x11b6   :  { %2604 = vrot.lane.b32.xlu1 %v9531_v15, %s10895_s19  ;;  %v9539_v16 = vpop.f32.mrf.mxu1 }
0x11b7   :  { %2500 = vrot.lane.b32.xlu0 %v9539_v16, %s10894_s0  ;;  %2368 = vrot.lane.b32.xlu2 %v9539_v16, %s10893_s30 }
0x11be   :  { %2630 = vrot.lane.b32.xlu1 %v9539_v16, %s10896_s1 }
0x11bf   :  { %2498 = vrot.lane.b32.xlu0 %v9539_v16, %s10897_s28  ;;  %2470 = vrot.lane.b32.xlu2 %v9531_v15, %s10897_s28 }
0x11c6   :  { %2734 = vrot.lane.b32.xlu1 %v9531_v15, %s10898_s29 }
0x11c7   :  { %2602 = vrot.lane.b32.xlu0 %v9531_v15, %s10896_s1  ;;  %2632 = vrot.lane.b32.xlu2 %v9539_v16, %s10895_s19 }
0x11ce   :  { %2896 = vrot.lane.b32.xlu1 %v9539_v16, %s10899_s20 }
0x11cf   :  { %2764 = vrot.lane.b32.xlu0 %v9539_v16, %s10900_s22  ;;  %2736 = vrot.lane.b32.xlu2 %v9531_v15, %s10900_s22 }
0x11d7   :  { %2868 = vrot.lane.b32.xlu0 %v9531_v15, %s10899_s20  ;;  %2762 = vrot.lane.b32.xlu2 %v9539_v16, %s10898_s29 }
0x11df   :  { %2894 = vrot.lane.b32.xlu0 %v9539_v16, %s10901_s18  ;;  %2866 = vrot.lane.b32.xlu2 %v9531_v15, %s10901_s18 }
0x11e7   :  { %2416 = vrot.lane.b32.xlu0 %v9531_v15, %s10884_s2 }
0x1211   :  { %v2369_v17 = vpop.permute.xlu2 %2368 }
0x1212   :  { %8016 = vmatpush.xpose.msk.msrb.mxu3 %vm113_vm1, %v2369_v17 }
0x1215   :  { %8017 = vmatmul.msk.f32.vlgmr.msrb.gmra.mxu3 %vm113_vm1, %v9539_v16 }
0x1219   :  { %v2471_v18 = vpop.permute.xlu2 %2470 }
0x1220   :  { %v2473_v19 = vpop.permute.xlu1 %2472  ;;  %v2342_v22 = vpop.permute.xlu0 %2341 }
0x1221   :  { %8014 = vmatpush.xpose.msk.msrb.mxu2 %vm113_vm1, %v2342_v22  ;;  %v2633_v23 = vpop.permute.xlu2 %2632 }
0x1224   :  { %8015 = vmatmul.msk.f32.vlgmr.msrb.gmra.mxu2 %vm113_vm1, %v9531_v15 }
0x1225   :  { %8022 = vmatpush.xpose.msk.msra.mxu2 %vm113_vm1, %v2473_v19 }
0x1228   :  { %v2605_v13 = vpop.permute.xlu1 %2604 }
0x1229   :  { %8030 = vmatpush.xpose.msk.msrb.mxu2 %vm113_vm1, %v2605_v13  ;;  %v2501_v24 = vpop.permute.xlu0 %2500  ;;  %v2737_v25 = vpop.permute.xlu2 %2736 }
0x122a   :  { %8024 = vmatpush.xpose.msk.msra.mxu3 %vm113_vm1, %v2501_v24 }
0x122c   :  { %8023 = vmatmul.msk.f32.vlgmr.msra.gmra.mxu2 %vm113_vm1, %v2471_v18 }
0x122d   :  { %8038 = vmatpush.xpose.msk.msra.mxu2 %vm113_vm1, %v2737_v25 }
0x122e   :  { %8032 = vmatpush.xpose.msk.msrb.mxu3 %vm113_vm1, %v2633_v23 }
0x1230   :  { %v2631_v26 = vpop.permute.xlu1 %2630 }
0x1231   :  { %v2499_v27 = vpop.permute.xlu0 %2498  ;;  %v2763_v29 = vpop.permute.xlu2 %2762 }
0x1232   :  { %8025 = vmatmul.msk.f32.vlgmr.msra.gmra.mxu3 %vm113_vm1, %v2499_v27 }
0x1238   :  { %v2735_v53 = vpop.permute.xlu1 %2734 }
0x1239   :  { %v2603_v28 = vpop.permute.xlu0 %2602  ;;  %v2867_v32 = vpop.permute.xlu2 %2866 }
0x123a   :  { %8031 = vmatmul.msk.f32.vlgmr.msrb.gmra.mxu2 %vm113_vm1, %v2603_v28  ;;  %8033 = vmatmul.msk.f32.vlgmr.msrb.gmra.mxu3 %vm113_vm1, %v2631_v26 }
0x1240   :  { %v2897_v57 = vpop.permute.xlu1 %2896 }
0x1241   :  { %v2765_v7 = vpop.permute.xlu0 %2764 }
0x1242   :  { %8039 = vmatmul.msk.f32.vlgmr.msra.gmra.mxu2 %vm113_vm1, %v2735_v53  ;;  %8040 = vmatpush.xpose.msk.msra.mxu3 %vm113_vm1, %v2765_v7 }
0x1245   :  { %8041 = vmatmul.msk.f32.vlgmr.msra.gmra.mxu3 %vm113_vm1, %v2763_v29 }
0x1246   :  { %8048 = vmatpush.xpose.msk.msrb.mxu3 %vm113_vm1, %v2897_v57 }
0x1249   :  { %v2869_v31 = vpop.permute.xlu0 %2868 }
0x124a   :  { %8046 = vmatpush.xpose.msk.msrb.mxu2 %vm113_vm1, %v2869_v31 }
0x124d   :  { %8047 = vmatmul.msk.f32.vlgmr.msrb.gmra.mxu2 %vm113_vm1, %v2867_v32 }
0x1251   :  { %v2895_v33 = vpop.permute.xlu0 %2894 }
0x1252   :  { %8049 = vmatmul.msk.f32.vlgmr.msrb.gmra.mxu3 %vm113_vm1, %v2895_v33 }
0x1259   :  { %v2417_v34 = vpop.permute.xlu0 %2416 }
0x125a   :  { %8018 = vmatpush.msk.msra.mxu0 %vm361_vm11, %v2417_v34 }
0x1298   :  { %v2391_v35 = vpop.f32.mrf.mxu3 }
0x1299   :  { %v2397_v14 = vsel %vm333_vm12, %v2391_v35, -inf }
0x129a   :  { %2398 = vmax.xlane.f32.xlu2 %v2397_v14 }
0x12a7   :  { %v2364_v36 = vpop.f32.mrf.mxu2 }
0x12a8   :  { %v2394_v21 = vsel %vm333_vm12, %v2364_v36, -inf }
0x12a9   :  { %2395 = vmax.xlane.f32.xlu1 %v2394_v21 }
0x12af   :  { %v2495_v39 = vpop.f32.mrf.mxu2 }
0x12b0   :  { %v2526_v40 = vsel %vm333_vm12, %v2495_v39, -inf }
0x12b1   :  { %2527 = vmax.xlane.f32.xlu0 %v2526_v40 }
0x12b2   :  { %2575 = vrot.lane.b32.xlu2 %v9539_v16, %s10885_s23 }
0x12b5   :  { %v2523_v41 = vpop.f32.mrf.mxu3 }
0x12b6   :  { %v2529_v61 = vsel %vm333_vm12, %v2523_v41, -inf }
0x12b7   :  { %2530 = vmax.xlane.f32.xlu1 %v2529_v61 }
0x12ba   :  { %2680 = vrot.lane.b32.xlu2 %v9531_v15, %s10886_s24 }
0x12bd   :  { %v2627_v37 = vpop.f32.mrf.mxu2  ;;  %v9608_v44 = vpop.f32.mrf.mxu3 }
0x12be   :  { %v2658_v46 = vsel %vm333_vm12, %v2627_v37, -inf  ;;  %v2661_v50 = vsel %vm333_vm12, %v9608_v44, -inf }
0x12c5   :  { %2548 = vrot.lane.b32.xlu0 %v9531_v15, %s10885_s23  ;;  %v9612_v45 = vpop.f32.mrf.mxu2 }
0x12c6   :  { %v2790_v52 = vsel %vm333_vm12, %v9612_v45, -inf }
0x12c8   :  { %v2787_v48 = vpop.f32.mrf.mxu3 }
0x12c9   :  { %v2793_v49 = vsel %vm333_vm12, %v2787_v48, -inf }
0x12d0   :  { %2443 = vrot.lane.b32.xlu1 %v9539_v16, %s10884_s2  ;;  %v9616_v9 = vpop.f32.mrf.mxu2 }
0x12d1   :  { %v2922_v51 = vsel %vm333_vm12, %v9616_v9, -inf }
0x12d5   :  { %v9622_v47 = vpop.f32.mrf.mxu3 }
0x12d6   :  { %v2925_v12 = vsel %vm333_vm12, %v9622_v47, -inf }
0x12e3   :  { %2659 = vmax.xlane.f32.xlu2 %v2658_v46 }
0x12eb   :  { %2794 = vmax.xlane.f32.xlu2 %v2793_v49 }
0x12ef   :  { %2662 = vmax.xlane.f32.xlu0 %v2661_v50 }
0x12f7   :  { %2923 = vmax.xlane.f32.xlu0 %v2922_v51 }
0x12fa   :  { %2791 = vmax.xlane.f32.xlu1 %v2790_v52 }
0x1302   :  { %2926 = vmax.xlane.f32.xlu1 %v2925_v12 }
0x130d   :  { %v2399_v54 = vpop.xlane.xlu2 %2398 }
0x130e   :  { %v2401_v56 = vsub.f32 %v2391_v35, %v2399_v54 }
0x1310   :  { %v2404_v58 = vmul.f32 1.442695, %v2401_v56 }
0x1312   :  { %8519 = vpow2.f32 %v2404_v58 }
0x1315   :  { %v2576_v22 = vpop.permute.xlu2 %2575 }
0x1318   :  { %v9626_v59 = vpop.eup %8519 }
0x1319   :  { %v2409_v43 = vsel %vm333_vm12, %v9626_v59, 0.0 }
0x131a   :  { %2410 = vadd.xlane.f32.xlu0 %v2409_v43 }
0x131c   :  { %v2396_v60 = vpop.xlane.xlu1 %2395 }
0x131d   :  { %v2400_v42 = vsub.f32 %v2364_v36, %v2396_v60  ;;  %v2681_v23 = vpop.permute.xlu2 %2680 }
0x131f   :  { %v2402_v63 = vmul.f32 1.442695, %v2400_v42 }
0x1321   :  { %8521 = vpow2.f32 %v2402_v63 }
0x1324   :  { %v2528_v0 = vpop.xlane.xlu0 %2527 }
0x1325   :  { %v2532_v1 = vsub.f32 %v2495_v39, %v2528_v0 }
0x1327   :  { %v9630_v2 = vpop.eup %8521  ;;  %v2534_v62 = vmul.f32 1.442695, %v2532_v1 }
0x1328   :  { %v2406_v3 = vsel %vm333_vm12, %v9630_v2, 0.0 }
0x1329   :  { %8523 = vpow2.f32 %v2534_v62  ;;  %2407 = vadd.xlane.f32.xlu2 %v2406_v3 }
0x132a   :  { %v2531_v4 = vpop.xlane.xlu1 %2530 }
0x132b   :  { %v2533_v5 = vsub.f32 %v2523_v41, %v2531_v4 }
0x132d   :  { %v2536_v6 = vmul.f32 1.442695, %v2533_v5 }
0x132f   :  { %v9634_v8 = vpop.eup %8523  ;;  %8525 = vpow2.f32 %v2536_v6 }
0x1330   :  { %v2538_v10 = vsel %vm333_vm12, %v9634_v8, 0.0 }
0x1331   :  { %2539 = vadd.xlane.f32.xlu1 %v2538_v10 }
0x1335   :  { %v9638_v11 = vpop.eup %8525 }
0x1336   :  { %v2541_v17 = vsel %vm333_vm12, %v9638_v11, 0.0 }
0x1337   :  { %2542 = vadd.xlane.f32.xlu2 %v2541_v17  ;;  %v2549_v18 = vpop.permute.xlu0 %2548 }
0x1338   :  { %8026 = vmatpush.msk.msrb.mxu0 %vm361_vm11, %v2549_v18 }
0x1342   :  { %v2444_v19 = vpop.permute.xlu1 %2443 }
0x1343   :  { %8020 = vmatpush.msk.msra.mxu1 %vm361_vm11, %v2444_v19 }
0x1345   :  { %8028 = vmatpush.msk.msrb.mxu1 %vm361_vm11, %v2576_v22 }
0x1356   :  { %v2660_v13 = vpop.xlane.xlu2 %2659 }
0x1357   :  { %v2664_v24 = vsub.f32 %v2627_v37, %v2660_v13 }
0x1359   :  { %v2666_v25 = vmul.f32 1.442695, %v2664_v24 }
0x135b   :  { %8527 = vpow2.f32 %v2666_v25 }
0x135e   :  { %v2795_v26 = vpop.xlane.xlu2 %2794 }
0x135f   :  { %v2797_v27 = vsub.f32 %v2787_v48, %v2795_v26 }
0x1361   :  { %v9645_v53 = vpop.eup %8527  ;;  %v2800_v28 = vmul.f32 1.442695, %v2797_v27 }
0x1362   :  { %v2663_v7 = vpop.xlane.xlu0 %2662  ;;  %v2670_v29 = vsel %vm333_vm12, %v9645_v53, 0.0 }
0x1363   :  { %8529 = vpow2.f32 %v2800_v28  ;;  %v2665_v57 = vsub.f32 %v9608_v44, %v2663_v7  ;;  %2671 = vadd.xlane.f32.xlu2 %v2670_v29 }
0x1365   :  { %v2668_v31 = vmul.f32 1.442695, %v2665_v57 }
0x1367   :  { %8531 = vpow2.f32 %v2668_v31 }
0x1369   :  { %v9650_v32 = vpop.eup %8529 }
0x136a   :  { %v2805_v33 = vsel %vm333_vm12, %v9650_v32, 0.0  ;;  %v2924_v41 = vpop.xlane.xlu0 %2923 }
0x136b   :  { %2806 = vadd.xlane.f32.xlu1 %v2805_v33  ;;  %v2928_v49 = vsub.f32 %v9616_v9, %v2924_v41 }
0x136d   :  { %v8532_v34 = vpop.eup %8531  ;;  %v2792_v35 = vpop.xlane.xlu1 %2791 }
0x136e   :  { %v2796_v14 = vsub.f32 %v9612_v45, %v2792_v35  ;;  %v2673_v36 = vsel %vm333_vm12, %v8532_v34, 0.0  ;;  %v2930_v45 = vmul.f32 1.442695, %v2928_v49 }
0x136f   :  { %2674 = vadd.xlane.f32.xlu2 %v2673_v36  ;;  %v8003_v36 = vld [vmem:[%s10813_s7 + $0x38] sm:$0xff] }
0x1370   :  { %v2798_v21 = vmul.f32 1.442695, %v2796_v14  ;;  %v8004_v14 = vld [vmem:[%s10813_s7 + $0x40] sm:$0xf] }
0x1371   :  { %8056 = vmatpush.msk.msra.mxu3 %vm361_vm11, %v8004_v14  ;;  %8054 = vmatpush.msk.msra.mxu2 %vm361_vm11, %v8004_v14 }
0x1372   :  { %8533 = vpow2.f32 %v2798_v21  ;;  %v8002_v21 = vld [vmem:[%s10813_s7 + $0x30] sm:$0xff] }
0x1373   :  { %3081 = vmatpush.msra.mxu3 %v8003_v36  ;;  %3058 = vmatpush.msra.mxu2 %v8003_v36 }
0x1375   :  { %v2927_v46 = vpop.xlane.xlu1 %2926  ;;  %3082 = vmatpush.msra.mxu3 %v8002_v21  ;;  %3059 = vmatpush.msra.mxu2 %v8002_v21  ;;  %v8009_v21 = vld [vmem:[%s10816_s10 + $0x58] sm:$0xff] }
0x1376   :  { %v2929_v52 = vsub.f32 %v9622_v47, %v2927_v46 }
0x1377   :  { %3245 = vmatpush.msrb.mxu3 %v8009_v21  ;;  %3222 = vmatpush.msrb.mxu2 %v8009_v21 }
0x1378   :  { %v8534_v39 = vpop.eup %8533  ;;  %v2932_v12 = vmul.f32 1.442695, %v2929_v52 }
0x1379   :  { %v2802_v40 = vsel %vm333_vm12, %v8534_v39, 0.0 }
0x137a   :  { %2803 = vadd.xlane.f32.xlu0 %v2802_v40 }
0x1384   :  { %2812 = vrot.lane.b32.xlu1 %v9531_v15, %s10887_s25 }
0x1387   :  { %2707 = vrot.lane.b32.xlu2 %v9539_v16, %s10886_s24 }
0x138c   :  { %2944 = vrot.lane.b32.xlu1 %v9531_v15, %s10888_s3 }
0x138d   :  { %v2411_v61 = vpop.xlane.xlu0 %2410 }
0x138e   :  { %8535 = vrcp.f32 %v2411_v61  ;;  %2839 = vrot.lane.b32.xlu0 %v9539_v16, %s10887_s25 }
0x1394   :  { %v8536_v37 = vpop.eup %8535 }
0x1395   :  { %v2415_v44 = vmul.f32 %v8536_v37, %v9626_v59 }
0x1397   :  { %8021 = vmatmul.msk.f32.vlgmr.msra.gmra.mxu1 %vm113_vm1, %v2415_v44 }
0x139c   :  { %v2408_v48 = vpop.xlane.xlu2 %2407 }
0x139d   :  { %8537 = vrcp.f32 %v2408_v48 }
0x13a3   :  { %v8538_v50 = vpop.eup %8537 }
0x13a4   :  { %v2414_v51 = vmul.f32 %v8538_v50, %v9630_v2  ;;  %v2540_v15 = vpop.xlane.xlu1 %2539 }
0x13a5   :  { %8539 = vrcp.f32 %v2540_v15 }
0x13a6   :  { %8541 = vpow2.f32 %v2930_v45  ;;  %8019 = vmatmul.msk.f32.vlgmr.msra.gmra.mxu0 %vm113_vm1, %v2414_v51 }
0x13a7   :  { %8034 = vmatpush.msk.msra.mxu0 %vm361_vm11, %v2681_v23 }
0x13aa   :  { %v2543_v54 = vpop.xlane.xlu2 %2542 }
0x13ab   :  { %v8540_v56 = vpop.eup %8539  ;;  %8543 = vrcp.f32 %v2543_v54 }
0x13ac   :  { %v8542_v58 = vpop.eup %8541  ;;  %v2546_v9 = vmul.f32 %v8540_v56, %v9634_v8  ;;  %8545 = vpow2.f32 %v2932_v12 }
0x13ad   :  { %v2934_v59 = vsel %vm333_vm12, %v8542_v58, 0.0 }
0x13ae   :  { %8027 = vmatmul.msk.f32.vlgmr.msrb.gmra.mxu0 %vm113_vm1, %v2546_v9 }
0x13b0   :  { %2935 = vadd.xlane.f32.xlu2 %v2934_v59 }
0x13b1   :  { %v8544_v43 = vpop.eup %8543 }
0x13b2   :  { %v2547_v47 = vmul.f32 %v8544_v43, %v9638_v11  ;;  %v8546_v60 = vpop.eup %8545 }
0x13b3   :  { %v2937_v42 = vsel %vm333_vm12, %v8546_v60, 0.0 }
0x13b4   :  { %8029 = vmatmul.msk.f32.vlgmr.msrb.gmra.mxu1 %vm113_vm1, %v2547_v47 }
0x13b8   :  { %2938 = vadd.xlane.f32.xlu0 %v2937_v42 }
0x13cc   :  { %2971 = vrot.lane.b32.xlu0 %v9539_v16, %s10888_s3 }
0x13d6   :  { %v2672_v63 = vpop.xlane.xlu2 %2671 }
0x13d7   :  { %8547 = vrcp.f32 %v2672_v63 }
0x13dd   :  { %v8548_v0 = vpop.eup %8547 }
0x13de   :  { %v2678_v1 = vmul.f32 %v8548_v0, %v9645_v53  ;;  %v2807_v6 = vpop.xlane.xlu1 %2806 }
0x13e0   :  { %8035 = vmatmul.msk.f32.vlgmr.msra.gmra.mxu0 %vm113_vm1, %v2678_v1 }
0x13e2   :  { %v2675_v2 = vpop.xlane.xlu2 %2674 }
0x13e3   :  { %8549 = vrcp.f32 %v2675_v2 }
0x13e9   :  { %v8550_v62 = vpop.eup %8549 }
0x13ea   :  { %v2679_v3 = vmul.f32 %v8550_v62, %v8532_v34  ;;  %v2708_v4 = vpop.permute.xlu2 %2707 }
0x13eb   :  { %8036 = vmatpush.msk.msra.mxu1 %vm361_vm11, %v2708_v4  ;;  %v8005_v4 = vld [vmem:[%s10814_s8 + $0x10] sm:$0xff]  ;;  %s10909_s8 = sld [smem:[#allocation14_spill]] }
0x13ec   :  { %8037 = vmatmul.msk.f32.vlgmr.msra.gmra.mxu1 %vm113_vm1, %v2679_v3 }
0x13ed   :  { %v2804_v5 = vpop.xlane.xlu0 %2803 }
0x13ee   :  { %8551 = vrcp.f32 %v2804_v5 }
0x13ef   :  { %8553 = vrcp.f32 %v2807_v6 }
0x13f4   :  { %v8552_v16 = vpop.eup %8551 }
0x13f5   :  { %v2810_v8 = vmul.f32 %v8552_v16, %v8534_v39  ;;  %v8554_v11 = vpop.eup %8553 }
0x13f6   :  { %v2813_v10 = vpop.permute.xlu1 %2812  ;;  %v2811_v18 = vmul.f32 %v8554_v11, %v9650_v32 }
0x13f7   :  { %8042 = vmatpush.msk.msrb.mxu0 %vm361_vm11, %v2813_v10 }
0x13f8   :  { %8043 = vmatmul.msk.f32.vlgmr.msrb.gmra.mxu0 %vm113_vm1, %v2810_v8 }
0x13fe   :  { %v2945_v17 = vpop.permute.xlu1 %2944 }
0x13ff   :  { %8050 = vmatpush.msk.msra.mxu0 %vm361_vm11, %v2945_v17 }
0x1400   :  { %v2840_v19 = vpop.permute.xlu0 %2839 }
0x1401   :  { %8044 = vmatpush.msk.msrb.mxu1 %vm361_vm11, %v2840_v19  ;;  %3160 = vmatpush.msrb.mxu0 %v8005_v4 }
0x1402   :  { %8045 = vmatmul.msk.f32.vlgmr.msrb.gmra.mxu1 %vm113_vm1, %v2811_v18 }
0x1414   :  { %v2467_v13 = vpop.f32.mrf.mxu1 }
0x1423   :  { %v2440_v22 = vpop.f32.mrf.mxu0  ;;  %v2936_v23 = vpop.xlane.xlu2 %2935 }
0x1424   :  { %8555 = vrcp.f32 %v2936_v23 }
0x142a   :  { %v8556_v24 = vpop.eup %8555 }
0x142b   :  { %v2942_v25 = vmul.f32 %v8556_v24, %v8542_v58  ;;  %v2572_v26 = vpop.f32.mrf.mxu0  ;;  %v2939_v53 = vpop.xlane.xlu0 %2938 }
0x142c   :  { %3000 = vrot.lane.b32.xlu2 %v2572_v26, %s10889_s27  ;;  %8557 = vrcp.f32 %v2939_v53 }
0x142d   :  { %8051 = vmatmul.msk.f32.vlgmr.msra.gmra.mxu0 %vm113_vm1, %v2942_v25 }
0x1431   :  { %v2599_v27 = vpop.f32.mrf.mxu1 }
0x1432   :  { %3002 = vrot.lane.b32.xlu1 %v2599_v27, %s10889_s27  ;;  %v8558_v28 = vpop.eup %8557  ;;  %v3133_v27 = vperm.slane %v9525_v55, 2 }
0x1433   :  { %v2943_v7 = vmul.f32 %v8558_v28, %v8546_v60 }
0x143e   :  { %v2972_v29 = vpop.permute.xlu0 %2971 }
0x143f   :  { %8052 = vmatpush.msk.msra.mxu1 %vm361_vm11, %v2972_v29 }
0x1440   :  { %8053 = vmatmul.msk.f32.vlgmr.msra.gmra.mxu1 %vm113_vm1, %v2943_v7 }
0x1441   :  { %3183 = vmatpush.msrb.mxu1 %v8005_v4 }
0x145d   :  { %v2704_v57 = vpop.f32.mrf.mxu0 }
0x145e   :  { %3008 = vrot.lane.b32.xlu0 %v2704_v57, %s10890_s4  ;;  %v3136_v57 = vperm.slane %v9525_v55, 3 }
0x1469   :  { %v2731_v31 = vpop.f32.mrf.mxu1 }
0x146a   :  { %3010 = vrot.lane.b32.xlu1 %v2731_v31, %s10890_s4 }
0x1475   :  { %v2836_v32 = vpop.f32.mrf.mxu0 }
0x1476   :  { %3016 = vrot.lane.b32.xlu0 %v2836_v32, %s10891_s26 }
0x147f   :  { %v2863_v33 = vpop.f32.mrf.mxu1 }
0x1480   :  { %3018 = vrot.lane.b32.xlu1 %v2863_v33, %s10891_s26 }
0x1486   :  { %v3001_v61 = vpop.permute.xlu2 %3000 }
0x1487   :  { %v3030_v51 = vsel %vm113_vm1, %v2440_v22, %v3001_v61  ;;  %v8403_v61 = vld [vmem:[%s10815_s9 + $0x2] ss:$0 sm:$0xff] }
0x14a4   :  { %v3003_v39 = vpop.permute.xlu1 %3002 }
0x14a5   :  { %v3031_v46 = vsel %vm113_vm1, %v2467_v13, %v3003_v39  ;;  %v8008_v39 = vld [vmem:[%s10816_s10 + $0x50] sm:$0xff] }
0x14a6   :  { %3246 = vmatpush.msrb.mxu3 %v8008_v39  ;;  %3223 = vmatpush.msrb.mxu2 %v8008_v39 }
0x14aa   :  { %v2968_v34 = vpop.f32.mrf.mxu0 }
0x14ab   :  { %3024 = vrot.lane.b32.xlu0 %v2968_v34, %s10892_s21 }
0x14bd   :  { %v2995_v35 = vpop.f32.mrf.mxu1 }
0x14be   :  { %3026 = vrot.lane.b32.xlu2 %v2995_v35, %s10892_s21 }
0x14d0   :  { %v3009_v40 = vpop.permute.xlu0 %3008 }
0x14d1   :  { %v3032_v15 = vsel %vm232_vm8, %v3030_v51, %v3009_v40  ;;  %v8007_v40 = vld [vmem:[%s10816_s10 + $0x48] sm:$0xff] }
0x14d2   :  { %3247 = vmatpush.msrb.mxu3 %v8007_v40  ;;  %3224 = vmatpush.msrb.mxu2 %v8007_v40 }
0x14dc   :  { %v3011_v41 = vpop.permute.xlu1 %3010 }
0x14dd   :  { %v3033_v48 = vsel %vm232_vm8, %v3031_v46, %v3011_v41  ;;  %v8006_v41 = vld [vmem:[%s10816_s10 + $0x40] sm:$0xff] }
0x14de   :  { %3248 = vmatpush.msrb.mxu3 %v8006_v41  ;;  %3225 = vmatpush.msrb.mxu2 %v8006_v41 }
0x14e8   :  { %v3017_v37 = vpop.permute.xlu0 %3016 }
0x14e9   :  { %v3034_v52 = vsel %vm975_vm13, %v3032_v15, %v3017_v37 }
0x14f2   :  { %v3019_v44 = vpop.permute.xlu1 %3018 }
0x14f3   :  { %v3035_v49 = vsel %vm975_vm13, %v3033_v48, %v3019_v44 }
0x1518   :  { %v3027_v45 = vpop.permute.xlu2 %3026 }
0x1519   :  { %v3037_v50 = vsel %vm64_vm0, %v3035_v49, %v3027_v45 }
0x151a   :  { %8057 = vmatmul.msk.f32.vlgmr.msra.gmra.mxu3 %vm980_vm14, %v3037_v50 }
0x151d   :  { %v3025_v12 = vpop.permute.xlu0 %3024 }
0x151e   :  { %v3036_v54 = vsel %vm64_vm0, %v3034_v52, %v3025_v12 }
0x151f   :  { %8055 = vmatmul.msk.f32.vlgmr.msra.gmra.mxu2 %vm980_vm14, %v3036_v54 }
0x159d   :  { %v3084_v56 = vpop.f32.mrf.mxu3 }
0x159e   :  { %v9723_v58 = vadd.f32 %v3084_v56, %v9507_v38 }
0x15a0   :  { %v3092_v9 = vsel %vm174_vm2, %v9723_v58, 0.0 }
0x15a1   :  { %3093 = vadd.xlane.f32.xlu0 %v3092_v9 }
0x15a2   :  { %v3061_v59 = vpop.f32.mrf.mxu2 }
0x15a3   :  { %v9728_v43 = vadd.f32 %v3061_v59, %v9502_v30 }
0x15a5   :  { %v3089_v47 = vsel %vm174_vm2, %v9728_v43, 0.0 }
0x15a6   :  { %3090 = vadd.xlane.f32.xlu1 %v3089_v47 }
0x1614   :  { %v3094_v60 = vpop.xlane.xlu0 %3093 }
0x1615   :  { %v3096_v42 = vmul.f32 %v3094_v60, %v8979_v20 }
0x1617   :  { %v3098_v63 = vsub.f32 %v9723_v58, %v3096_v42 }
0x1619   :  { %v3091_v0 = vpop.xlane.xlu1 %3090  ;;  %v3100_v38 = vmul.f32 %v3098_v63, %v3098_v63 }
0x161a   :  { %v3095_v1 = vmul.f32 %v3091_v0, %v8979_v20 }
0x161b   :  { %v3104_v2 = vsel %vm174_vm2, %v3100_v38, 0.0 }
0x161c   :  { %v3097_v62 = vsub.f32 %v9728_v43, %v3095_v1  ;;  %3105 = vadd.xlane.f32.xlu1 %v3104_v2  ;;  %v3206_v2 = vperm.slane %v9525_v55, 4 }
0x161e   :  { %v3099_v30 = vmul.f32 %v3097_v62, %v3097_v62 }
0x1620   :  { %v3101_v3 = vsel %vm174_vm2, %v3099_v30, 0.0 }
0x1621   :  { %3102 = vadd.xlane.f32.xlu2 %v3101_v3 }
0x168f   :  { %v3106_v5 = vpop.xlane.xlu1 %3105 }
0x1690   :  { %v3108_v6 = vmul.f32 %v3106_v5, %v8979_v20 }
0x1692   :  { %v3110_v16 = vadd.f32 1e-05, %v3108_v6 }
0x1694   :  { %8559 = vrsqrt.f32 %v3110_v16  ;;  %v3103_v8 = vpop.xlane.xlu2 %3102  ;;  %vm3127_vm6 = vweird.f32 %v3110_v16 }
0x1695   :  { %v3107_v10 = vmul.f32 %v3103_v8, %v8979_v20 }
0x1697   :  { %v3109_v11 = vadd.f32 1e-05, %v3107_v10 }
0x1699   :  { %8561 = vrsqrt.f32 %v3109_v11  ;;  %vm3117_vm15 = vweird.f32 %v3109_v11 }
0x169a   :  { %v8560_v17 = vpop.eup %8559 }
0x169b   :  { %v3122_v18 = vmul.f32 %v8560_v17, %v3110_v16  ;;  %vm3128_vm5 = vweird.f32 %v8560_v17 }
0x169c   :  { %vm3129_vm7 = vmor %vm3127_vm6, %vm3128_vm5 }
0x169d   :  { %v3123_v19 = vmul.f32 %v8560_v17, %v3122_v18 }
0x169f   :  { %v8562_v22 = vpop.eup %8561  ;;  %v3124_v23 = vmul.f32 0.5, %v3123_v19 }
0x16a0   :  { %v3112_v13 = vmul.f32 %v8562_v22, %v3109_v11  ;;  %vm3118_vm10 = vweird.f32 %v8562_v22 }
0x16a1   :  { %v3125_v24 = vsub.f32 1.5, %v3124_v23  ;;  %vm3119_vm3 = vmor %vm3117_vm15, %vm3118_vm10 }
0x16a2   :  { %v3113_v25 = vmul.f32 %v8562_v22, %v3112_v13  ;;  %v8062_v13 = vld [vmem:[%s10812_s6 + $0x18] sm:$0xff]  ;;  %s10904_s6 = sld [smem:[#allocation8_spill]] }
0x16a3   :  { %v3126_v26 = vmul.f32 %v8560_v17, %v3125_v24  ;;  %3363 = vmatpush.msra.mxu1 %v8062_v13  ;;  %3340 = vmatpush.msra.mxu0 %v8062_v13 }
0x16a4   :  { %v3114_v53 = vmul.f32 0.5, %v3113_v25 }
0x16a5   :  { %v3130_v28 = vsel %vm3129_vm7, %v8560_v17, %v3126_v26 }
0x16a6   :  { %v3132_v7 = vmul.f32 %v3130_v28, %v3098_v63  ;;  %v3115_v29 = vsub.f32 1.5, %v3114_v53 }
0x16a8   :  { %v3135_v31 = vmul.f32 %v3133_v27, %v3132_v7  ;;  %v3116_v32 = vmul.f32 %v8562_v22, %v3115_v29 }
0x16aa   :  { %v3120_v33 = vsel %vm3119_vm3, %v8562_v22, %v3116_v32  ;;  %v3138_v34 = vadd.f32 %v3136_v57, %v3135_v31 }
0x16ab   :  { %v3131_v35 = vmul.f32 %v3120_v33, %v3097_v62 }
0x16ac   :  { %8059 = vmatmul.msk.f32.vlgmr.msrb.gmra.mxu1 %vm232_vm8, %v3138_v34  ;;  %v9789_v34 = vld [vmem:[%s10817_s11 + $0x18] sm:$0x1f] }
0x16ad   :  { %v3134_v14 = vmul.f32 %v3133_v27, %v3131_v35  ;;  %v3316_v21 = vperm.slane %v9789_v34, 0 }
0x16af   :  { %v3137_v36 = vadd.f32 %v3136_v57, %v3134_v14 }
0x16b1   :  { %8058 = vmatmul.msk.f32.vlgmr.msrb.gmra.mxu0 %vm232_vm8, %v3137_v36 }
0x1729   :  { %v3185_v37 = vpop.f32.mrf.mxu1 }
0x172a   :  { %v3186_v44 = vadd.f32 %v8403_v61, %v3185_v37  ;;  %v3319_v37 = vperm.slane %v9789_v34, 1 }
0x172c   :  { %v3189_v46 = vmul.f32 %v3186_v44, %v3186_v44 }
0x172e   :  { %v3191_v48 = vmul.f32 %v3189_v46, %v3186_v44  ;;  %v3162_v49 = vpop.f32.mrf.mxu0 }
0x172f   :  { %v3163_v45 = vadd.f32 %v8403_v61, %v3162_v49 }
0x1730   :  { %v3193_v50 = vmul.f32 0.044715, %v3191_v48 }
0x1731   :  { %v3188_v51 = vmul.f32 %v3163_v45, %v3163_v45 }
0x1732   :  { %v3195_v15 = vadd.f32 %v3193_v50, %v3186_v44 }
0x1733   :  { %v3190_v52 = vmul.f32 %v3188_v51, %v3163_v45 }
0x1734   :  { %v3197_v12 = vmul.f32 0.7978846, %v3195_v15 }
0x1735   :  { %v3192_v54 = vmul.f32 0.044715, %v3190_v52 }
0x1736   :  { %8563 = vtanh.f32 %v3197_v12 }
0x1737   :  { %v3194_v56 = vadd.f32 %v3192_v54, %v3163_v45 }
0x1739   :  { %v3196_v9 = vmul.f32 0.7978846, %v3194_v56 }
0x173b   :  { %8565 = vtanh.f32 %v3196_v9 }
0x173c   :  { %v8564_v59 = vpop.eup %8563 }
0x173d   :  { %v3201_v47 = vadd.f32 1.0, %v8564_v59 }
0x173f   :  { %v3203_v60 = vmul.f32 0.5, %v3201_v47 }
0x1741   :  { %v8566_v42 = vpop.eup %8565  ;;  %v3205_v63 = vmul.f32 %v3203_v60, %v3186_v44 }
0x1742   :  { %v3200_v0 = vadd.f32 1.0, %v8566_v42 }
0x1743   :  { %8061 = vmatmul.msk.f32.vlgmr.msrb.gmra.mxu3 %vm1150_vm9, %v3205_v63 }
0x1744   :  { %v3202_v38 = vmul.f32 0.5, %v3200_v0 }
0x1746   :  { %v3204_v1 = vmul.f32 %v3202_v38, %v3163_v45 }
0x1748   :  { %8060 = vmatmul.msk.f32.vlgmr.msrb.gmra.mxu2 %vm1150_vm9, %v3204_v1 }
0x17c6   :  { %v3250_v62 = vpop.f32.mrf.mxu3 }
0x17c7   :  { %v3251_v30 = vadd.f32 %v3250_v62, %v3206_v2 }
0x17c9   :  { %v9766_v3 = vadd.f32 %v3251_v30, %v9723_v58 }
0x17cb   :  { %v3227_v4 = vpop.f32.mrf.mxu2  ;;  %v3275_v5 = vsel %vm174_vm2, %v9766_v3, 0.0 }
0x17cc   :  { %v3228_v6 = vadd.f32 %v3227_v4, %v3206_v2  ;;  %3276 = vadd.xlane.f32.xlu2 %v3275_v5 }
0x17ce   :  { %v9771_v16 = vadd.f32 %v3228_v6, %v9728_v43 }
0x17d0   :  { %v3272_v8 = vsel %vm174_vm2, %v9771_v16, 0.0 }
0x17d1   :  { %3273 = vadd.xlane.f32.xlu0 %v3272_v8 }
0x183f   :  { %v3277_v10 = vpop.xlane.xlu2 %3276 }
0x1840   :  { %v3279_v55 = vmul.f32 %v3277_v10, %v8979_v20 }
0x1842   :  { %v3281_v11 = vsub.f32 %v9766_v3, %v3279_v55 }
0x1844   :  { %v3274_v58 = vpop.xlane.xlu0 %3273  ;;  %v3283_v17 = vmul.f32 %v3281_v11, %v3281_v11 }
0x1845   :  { %v3278_v18 = vmul.f32 %v3274_v58, %v8979_v20 }
0x1846   :  { %v3287_v19 = vsel %vm174_vm2, %v3283_v17, 0.0 }
0x1847   :  { %v3280_v22 = vsub.f32 %v9771_v16, %v3278_v18  ;;  %3288 = vadd.xlane.f32.xlu0 %v3287_v19 }
0x1849   :  { %v3282_v43 = vmul.f32 %v3280_v22, %v3280_v22 }
0x184b   :  { %v3284_v23 = vsel %vm174_vm2, %v3282_v43, 0.0 }
0x184c   :  { %3285 = vadd.xlane.f32.xlu1 %v3284_v23 }
0x18ba   :  { %v3289_v24 = vpop.xlane.xlu0 %3288 }
0x18bb   :  { %v3291_v25 = vmul.f32 %v3289_v24, %v8979_v20 }
0x18bd   :  { %v3293_v26 = vadd.f32 1e-05, %v3291_v25 }
0x18bf   :  { %8567 = vrsqrt.f32 %v3293_v26  ;;  %v3286_v27 = vpop.xlane.xlu1 %3285  ;;  %vm3310_vm5 = vweird.f32 %v3293_v26 }
0x18c0   :  { %v3290_v53 = vmul.f32 %v3286_v27, %v8979_v20 }
0x18c2   :  { %v3292_v28 = vadd.f32 1e-05, %v3290_v53 }
0x18c4   :  { %8569 = vrsqrt.f32 %v3292_v28  ;;  %vm3300_vm10 = vweird.f32 %v3292_v28 }
0x18c5   :  { %v8568_v7 = vpop.eup %8567 }
0x18c6   :  { %v3305_v29 = vmul.f32 %v8568_v7, %v3293_v26  ;;  %vm3311_vm4 = vweird.f32 %v8568_v7 }
0x18c7   :  { %vm3312_vm6 = vmor %vm3310_vm5, %vm3311_vm4 }
0x18c8   :  { %v3306_v57 = vmul.f32 %v8568_v7, %v3305_v29 }
0x18ca   :  { %v8570_v31 = vpop.eup %8569  ;;  %v3307_v32 = vmul.f32 0.5, %v3306_v57 }
0x18cb   :  { %v3295_v33 = vmul.f32 %v8570_v31, %v3292_v28  ;;  %vm3301_vm7 = vweird.f32 %v8570_v31 }
0x18cc   :  { %v3308_v35 = vsub.f32 1.5, %v3307_v32  ;;  %vm3302_vm15 = vmor %vm3300_vm10, %vm3301_vm7 }
0x18cd   :  { %v3296_v14 = vmul.f32 %v8570_v31, %v3295_v33 }
0x18ce   :  { %v3309_v36 = vmul.f32 %v8568_v7, %v3308_v35 }
0x18cf   :  { %v3297_v39 = vmul.f32 0.5, %v3296_v14 }
0x18d0   :  { %v3313_v40 = vsel %vm3312_vm6, %v8568_v7, %v3309_v36 }
0x18d1   :  { %v3315_v41 = vmul.f32 %v3313_v40, %v3281_v11  ;;  %v3298_v61 = vsub.f32 1.5, %v3297_v39 }
0x18d3   :  { %v3318_v44 = vmul.f32 %v3316_v21, %v3315_v41  ;;  %v3299_v46 = vmul.f32 %v8570_v31, %v3298_v61 }
0x18d5   :  { %v3303_v48 = vsel %vm3302_vm15, %v8570_v31, %v3299_v46  ;;  %v3321_v49 = vadd.f32 %v3319_v37, %v3318_v44 }
0x18d6   :  { %v3314_v45 = vmul.f32 %v3303_v48, %v3280_v22 }
0x18d7   :  { %8074 = vmatmul.msk.f32.vlgmr.msra.gmra.mxu1 %vm232_vm8, %v3321_v49 }
0x18d8   :  { %v3317_v50 = vmul.f32 %v3316_v21, %v3314_v45 }
0x18da   :  { %v3320_v51 = vadd.f32 %v3319_v37, %v3317_v50 }
0x18dc   :  { %8073 = vmatmul.msk.f32.vlgmr.msra.gmra.mxu0 %vm232_vm8, %v3320_v51 }
0x1954   :  { %v9795_v15 = vpop.f32.mrf.mxu1 }
0x1955   :  { %3396 = vrot.lane.b32.xlu1 %v9795_v15, %s10893_s30 }
0x1959   :  { %v9799_v52 = vpop.f32.mrf.mxu0 }
0x195a   :  { %3500 = vrot.lane.b32.xlu0 %v9799_v52, %s10894_s0  ;;  %3369 = vrot.lane.b32.xlu2 %v9799_v52, %s10893_s30 }
0x195d   :  { %3526 = vrot.lane.b32.xlu1 %v9795_v15, %s10897_s28 }
0x1962   :  { %3498 = vrot.lane.b32.xlu0 %v9799_v52, %s10897_s28  ;;  %3528 = vrot.lane.b32.xlu2 %v9795_v15, %s10894_s0  ;;  %s8847_s0 = smov 110  }
0x1965   :  { %3630 = vrot.lane.b32.xlu1 %v9799_v52, %s10896_s1 }
0x196a   :  { %3660 = vrot.lane.b32.xlu0 %v9795_v15, %s10895_s19  ;;  %3632 = vrot.lane.b32.xlu2 %v9799_v52, %s10895_s19  ;;  %s8848_s19 = smov 106  }
0x196d   :  { %3792 = vrot.lane.b32.xlu1 %v9795_v15, %s10900_s22 }
0x1972   :  { %3764 = vrot.lane.b32.xlu0 %v9799_v52, %s10900_s22  ;;  %3658 = vrot.lane.b32.xlu2 %v9795_v15, %s10896_s1  ;;  %s8850_s22 = smov 6  }
0x1975   :  { %3896 = vrot.lane.b32.xlu1 %v9799_v52, %s10899_s20 }
0x197a   :  { %3790 = vrot.lane.b32.xlu0 %v9795_v15, %s10898_s29  ;;  %3762 = vrot.lane.b32.xlu2 %v9799_v52, %s10898_s29 }
0x197d   :  { %3922 = vrot.lane.b32.xlu1 %v9795_v15, %s10901_s18 }
0x1982   :  { %3894 = vrot.lane.b32.xlu0 %v9799_v52, %s10901_s18  ;;  %3924 = vrot.lane.b32.xlu2 %v9795_v15, %s10899_s20  ;;  %s8849_s20 = smov 2  }
0x1985   :  { %3444 = vrot.lane.b32.xlu1 %v9799_v52, %s10884_s2 }
0x198a   :  { %3576 = vrot.lane.b32.xlu0 %v9799_v52, %s10885_s23  ;;  %3471 = vrot.lane.b32.xlu2 %v9795_v15, %s10884_s2 }
0x198d   :  { %3603 = vrot.lane.b32.xlu1 %v9795_v15, %s10885_s23  ;;  %s10905_s23 = sld [smem:[#allocation10_spill]] }
0x1992   :  { %3708 = vrot.lane.b32.xlu0 %v9799_v52, %s10886_s24 }
0x199a   :  { %3735 = vrot.lane.b32.xlu0 %v9795_v15, %s10886_s24  ;;  %s10910_s24 = sld [smem:[#allocation13_spill]] }
0x19b4   :  { %v3370_v12 = vpop.permute.xlu2 %3369 }
0x19b5   :  { %8075 = vmatpush.xpose.msk.msra.mxu2 %vm113_vm1, %v3370_v12 }
0x19b8   :  { %8076 = vmatmul.msk.f32.vlgmr.msra.gmra.mxu2 %vm113_vm1, %v9799_v52 }
0x19bc   :  { %v3529_v54 = vpop.permute.xlu2 %3528 }
0x19c4   :  { %v3633_v56 = vpop.permute.xlu2 %3632 }
0x19c7   :  { %v3397_v9 = vpop.permute.xlu1 %3396 }
0x19c8   :  { %8077 = vmatpush.xpose.msk.msra.mxu3 %vm113_vm1, %v3397_v9 }
0x19cb   :  { %8078 = vmatmul.msk.f32.vlgmr.msra.gmra.mxu3 %vm113_vm1, %v9795_v15 }
0x19cc   :  { %8085 = vmatpush.xpose.msk.msrb.mxu3 %vm113_vm1, %v3529_v54  ;;  %v3659_v59 = vpop.permute.xlu2 %3658  ;;  %v3501_v47 = vpop.permute.xlu0 %3500 }
0x19cd   :  { %8083 = vmatpush.xpose.msk.msrb.mxu2 %vm113_vm1, %v3501_v47 }
0x19cf   :  { %v3527_v60 = vpop.permute.xlu1 %3526 }
0x19d1   :  { %8091 = vmatpush.xpose.msk.msra.mxu2 %vm113_vm1, %v3633_v56 }
0x19d3   :  { %8086 = vmatmul.msk.f32.vlgmr.msrb.gmra.mxu3 %vm113_vm1, %v3527_v60 }
0x19d4   :  { %v3763_v42 = vpop.permute.xlu2 %3762  ;;  %v3499_v63 = vpop.permute.xlu0 %3498 }
0x19d5   :  { %8084 = vmatmul.msk.f32.vlgmr.msrb.gmra.mxu2 %vm113_vm1, %v3499_v63 }
0x19d7   :  { %v3631_v0 = vpop.permute.xlu1 %3630 }
0x19dc   :  { %v3925_v38 = vpop.permute.xlu2 %3924  ;;  %v3661_v1 = vpop.permute.xlu0 %3660 }
0x19dd   :  { %8092 = vmatmul.msk.f32.vlgmr.msra.gmra.mxu2 %vm113_vm1, %v3631_v0  ;;  %8093 = vmatpush.xpose.msk.msra.mxu3 %vm113_vm1, %v3661_v1 }
0x19df   :  { %v3793_v2 = vpop.permute.xlu1 %3792 }
0x19e0   :  { %8094 = vmatmul.msk.f32.vlgmr.msra.gmra.mxu3 %vm113_vm1, %v3659_v59 }
0x19e1   :  { %8101 = vmatpush.xpose.msk.msrb.mxu3 %vm113_vm1, %v3793_v2 }
0x19e4   :  { %v3472_v62 = vpop.permute.xlu2 %3471  ;;  %v3765_v30 = vpop.permute.xlu0 %3764 }
0x19e5   :  { %8109 = vmatpush.xpose.msk.msra.mxu3 %vm113_vm1, %v3925_v38  ;;  %8081 = vmatpush.msk.msrb.mxu1 %vm361_vm11, %v3472_v62 }
0x19e6   :  { %8099 = vmatpush.xpose.msk.msrb.mxu2 %vm113_vm1, %v3765_v30 }
0x19e7   :  { %v3897_v4 = vpop.permute.xlu1 %3896 }
0x19e9   :  { %8100 = vmatmul.msk.f32.vlgmr.msrb.gmra.mxu2 %vm113_vm1, %v3763_v42 }
0x19ea   :  { %8107 = vmatpush.xpose.msk.msra.mxu2 %vm113_vm1, %v3897_v4 }
0x19ec   :  { %v3791_v5 = vpop.permute.xlu0 %3790 }
0x19ed   :  { %8102 = vmatmul.msk.f32.vlgmr.msrb.gmra.mxu3 %vm113_vm1, %v3791_v5 }
0x19ef   :  { %v3923_v6 = vpop.permute.xlu1 %3922 }
0x19f4   :  { %v3895_v8 = vpop.permute.xlu0 %3894 }
0x19f5   :  { %8108 = vmatmul.msk.f32.vlgmr.msra.gmra.mxu2 %vm113_vm1, %v3895_v8  ;;  %8110 = vmatmul.msk.f32.vlgmr.msra.gmra.mxu3 %vm113_vm1, %v3923_v6 }
0x19f7   :  { %v3445_v10 = vpop.permute.xlu1 %3444 }
0x19f8   :  { %8079 = vmatpush.msk.msrb.mxu0 %vm361_vm11, %v3445_v10 }
0x19fc   :  { %v3577_v55 = vpop.permute.xlu0 %3576 }
0x19fd   :  { %8087 = vmatpush.msk.msra.mxu0 %vm361_vm11, %v3577_v55 }
0x19ff   :  { %v3604_v11 = vpop.permute.xlu1 %3603 }
0x1a00   :  { %8089 = vmatpush.msk.msra.mxu1 %vm361_vm11, %v3604_v11 }
0x1a04   :  { %v9891_v14 = vpop.permute.xlu0 %3708 }
0x1a0c   :  { %v9895_v40 = vpop.permute.xlu0 %3735 }
0x1a3b   :  { %v3392_v58 = vpop.f32.mrf.mxu2 }
0x1a3c   :  { %v3422_v17 = vsel %vm333_vm12, %v3392_v58, -inf }
0x1a3d   :  { %3423 = vmax.xlane.f32.xlu2 %v3422_v17 }
0x1a4e   :  { %v3419_v18 = vpop.f32.mrf.mxu3 }
0x1a4f   :  { %v3425_v19 = vsel %vm333_vm12, %v3419_v18, -inf }
0x1a50   :  { %3426 = vmax.xlane.f32.xlu0 %v3425_v19 }
0x1a56   :  { %v3551_v22 = vpop.f32.mrf.mxu3 }
0x1a57   :  { %v3557_v43 = vsel %vm333_vm12, %v3551_v22, -inf }
0x1a58   :  { %3558 = vmax.xlane.f32.xlu2 %v3557_v43  ;;  %v3523_v23 = vpop.f32.mrf.mxu2 }
0x1a59   :  { %v3554_v13 = vsel %vm333_vm12, %v3523_v23, -inf }
0x1a5a   :  { %3555 = vmax.xlane.f32.xlu1 %v3554_v13 }
0x1a60   :  { %v3655_v24 = vpop.f32.mrf.mxu2 }
0x1a61   :  { %v3686_v25 = vsel %vm333_vm12, %v3655_v24, -inf }
0x1a62   :  { %3687 = vmax.xlane.f32.xlu0 %v3686_v25 }
0x1a63   :  { %v3683_v26 = vpop.f32.mrf.mxu3 }
0x1a64   :  { %v3689_v27 = vsel %vm333_vm12, %v3683_v26, -inf }
0x1a65   :  { %3690 = vmax.xlane.f32.xlu1 %v3689_v27 }
0x1a6c   :  { %v3787_v53 = vpop.f32.mrf.mxu2 }
0x1a6d   :  { %v3818_v28 = vsel %vm333_vm12, %v3787_v53, -inf }
0x1a6e   :  { %3819 = vmax.xlane.f32.xlu2 %v3818_v28 }
0x1a70   :  { %v3815_v7 = vpop.f32.mrf.mxu3 }
0x1a71   :  { %v3821_v29 = vsel %vm333_vm12, %v3815_v7, -inf }
0x1a72   :  { %3822 = vmax.xlane.f32.xlu0 %v3821_v29 }
0x1a78   :  { %v9881_v57 = vpop.f32.mrf.mxu2  ;;  %v9883_v31 = vpop.f32.mrf.mxu3 }
0x1a79   :  { %v3953_v32 = vsel %vm333_vm12, %v9883_v31, -inf  ;;  %v3950_v33 = vsel %vm333_vm12, %v9881_v57, -inf }
0x1a7a   :  { %3954 = vmax.xlane.f32.xlu2 %v3953_v32  ;;  %3951 = vmax.xlane.f32.xlu1 %v3950_v33 }
0x1a93   :  { %3840 = vrot.lane.b32.xlu1 %v9799_v52, %s10887_s25 }
0x1ab0   :  { %v3424_v35 = vpop.xlane.xlu2 %3423 }
0x1ab1   :  { %v3428_v36 = vsub.f32 %v3392_v58, %v3424_v35 }
0x1ab3   :  { %v3430_v21 = vmul.f32 1.442695, %v3428_v36 }
0x1ab5   :  { %8571 = vpow2.f32 %v3430_v21 }
0x1abb   :  { %v9893_v39 = vpop.eup %8571 }
0x1abc   :  { %v3434_v41 = vsel %vm333_vm12, %v9893_v39, 0.0 }
0x1abd   :  { %3435 = vadd.xlane.f32.xlu0 %v3434_v41 }
0x1ac3   :  { %v3427_v61 = vpop.xlane.xlu0 %3426 }
0x1ac4   :  { %v3429_v37 = vsub.f32 %v3419_v18, %v3427_v61 }
0x1ac6   :  { %v3432_v44 = vmul.f32 1.442695, %v3429_v37 }
0x1ac8   :  { %8573 = vpow2.f32 %v3432_v44 }
0x1acb   :  { %v3559_v46 = vpop.xlane.xlu2 %3558 }
0x1acc   :  { %v3561_v48 = vsub.f32 %v3551_v22, %v3559_v46 }
0x1acd   :  { %v3556_v49 = vpop.xlane.xlu1 %3555 }
0x1ace   :  { %v9899_v45 = vpop.eup %8573  ;;  %v3564_v50 = vmul.f32 1.442695, %v3561_v48  ;;  %v3560_v51 = vsub.f32 %v3523_v23, %v3556_v49 }
0x1acf   :  { %v3437_v12 = vsel %vm333_vm12, %v9899_v45, 0.0 }
0x1ad0   :  { %8575 = vpow2.f32 %v3564_v50  ;;  %v3562_v54 = vmul.f32 1.442695, %v3560_v51  ;;  %3438 = vadd.xlane.f32.xlu1 %v3437_v12 }
0x1ad2   :  { %8577 = vpow2.f32 %v3562_v54 }
0x1ad5   :  { %v3688_v56 = vpop.xlane.xlu0 %3687 }
0x1ad6   :  { %v9903_v9 = vpop.eup %8575  ;;  %v3692_v59 = vsub.f32 %v3655_v24, %v3688_v56 }
0x1ad7   :  { %v3569_v47 = vsel %vm333_vm12, %v9903_v9, 0.0 }
0x1ad8   :  { %v9907_v60 = vpop.eup %8577  ;;  %v3694_v42 = vmul.f32 1.442695, %v3692_v59  ;;  %v3691_v63 = vpop.xlane.xlu1 %3690  ;;  %3570 = vadd.xlane.f32.xlu0 %v3569_v47 }
0x1ad9   :  { %v3693_v0 = vsub.f32 %v3683_v26, %v3691_v63  ;;  %v3566_v38 = vsel %vm333_vm12, %v9907_v60, 0.0 }
0x1ada   :  { %8579 = vpow2.f32 %v3694_v42  ;;  %3567 = vadd.xlane.f32.xlu2 %v3566_v38 }
0x1adb   :  { %v3696_v1 = vmul.f32 1.442695, %v3693_v0 }
0x1add   :  { %8581 = vpow2.f32 %v3696_v1 }
0x1ae0   :  { %v9911_v2 = vpop.eup %8579 }
0x1ae1   :  { %v3820_v62 = vpop.xlane.xlu2 %3819  ;;  %v3698_v4 = vsel %vm333_vm12, %v9911_v2, 0.0 }
0x1ae2   :  { %v3824_v30 = vsub.f32 %v3787_v53, %v3820_v62  ;;  %3699 = vadd.xlane.f32.xlu0 %v3698_v4 }
0x1ae3   :  { %v9915_v8 = vpop.eup %8581 }
0x1ae4   :  { %v3826_v5 = vmul.f32 1.442695, %v3824_v30  ;;  %v3701_v11 = vsel %vm333_vm12, %v9915_v8, 0.0 }
0x1ae5   :  { %v3823_v6 = vpop.xlane.xlu0 %3822 }
0x1ae6   :  { %8583 = vpow2.f32 %v3826_v5  ;;  %v3825_v10 = vsub.f32 %v3815_v7, %v3823_v6 }
0x1ae8   :  { %v3828_v55 = vmul.f32 1.442695, %v3825_v10 }
0x1aea   :  { %8585 = vpow2.f32 %v3828_v55  ;;  %3702 = vadd.xlane.f32.xlu0 %v3701_v11  ;;  %v8065_v55 = vld [vmem:[%s10813_s7 + $0x58] sm:$0xf]  ;;  %v8064_v11 = vld [vmem:[%s10813_s7 + $0x50] sm:$0xff] }
0x1aeb   :  { %8117 = vmatpush.msk.msrb.mxu3 %vm361_vm11, %v8065_v55  ;;  %8115 = vmatpush.msk.msrb.mxu2 %vm361_vm11, %v8065_v55 }
0x1aec   :  { %v8584_v58 = vpop.eup %8583 }
0x1aed   :  { %v3830_v17 = vsel %vm333_vm12, %v8584_v58, 0.0  ;;  %v3955_v18 = vpop.xlane.xlu2 %3954  ;;  %v3952_v19 = vpop.xlane.xlu1 %3951  ;;  %4109 = vmatpush.msrb.mxu3 %v8064_v11  ;;  %4086 = vmatpush.msrb.mxu2 %v8064_v11 }
0x1aee   :  { %3831 = vadd.xlane.f32.xlu2 %v3830_v17  ;;  %v3957_v22 = vsub.f32 %v9883_v31, %v3955_v18  ;;  %v3956_v43 = vsub.f32 %v9881_v57, %v3952_v19 }
0x1af0   :  { %v8586_v23 = vpop.eup %8585  ;;  %v3960_v13 = vmul.f32 1.442695, %v3957_v22  ;;  %v3958_v24 = vmul.f32 1.442695, %v3956_v43 }
0x1af1   :  { %v3833_v25 = vsel %vm333_vm12, %v8586_v23, 0.0 }
0x1af2   :  { %8587 = vpow2.f32 %v3960_v13  ;;  %3834 = vadd.xlane.f32.xlu1 %v3833_v25 }
0x1af3   :  { %8589 = vpow2.f32 %v3958_v24 }
0x1af8   :  { %v8588_v26 = vpop.eup %8587 }
0x1af9   :  { %v9923_v27 = vpop.eup %8589  ;;  %v3965_v53 = vsel %vm333_vm12, %v8588_v26, 0.0 }
0x1afa   :  { %3966 = vadd.xlane.f32.xlu2 %v3965_v53  ;;  %v3962_v28 = vsel %vm333_vm12, %v9923_v27, 0.0 }
0x1afb   :  { %3963 = vadd.xlane.f32.xlu0 %v3962_v28 }
0x1b05   :  { %v3841_v31 = vpop.permute.xlu1 %3840 }
0x1b0b   :  { %3999 = vrot.lane.b32.xlu1 %v9795_v15, %s10888_s3 }
0x1b0f   :  { %3972 = vrot.lane.b32.xlu0 %v9799_v52, %s10888_s3  ;;  %s10906_s3 = sld [smem:[#allocation15_spill]] }
0x1b12   :  { %3867 = vrot.lane.b32.xlu2 %v9795_v15, %s10887_s25 }
0x1b30   :  { %v3436_v7 = vpop.xlane.xlu0 %3435 }
0x1b31   :  { %8591 = vrcp.f32 %v3436_v7 }
0x1b37   :  { %v8592_v29 = vpop.eup %8591 }
0x1b38   :  { %v3442_v57 = vmul.f32 %v8592_v29, %v9893_v39 }
0x1b3a   :  { %8080 = vmatmul.msk.f32.vlgmr.msrb.gmra.mxu0 %vm113_vm1, %v3442_v57 }
0x1b3b   :  { %8095 = vmatpush.msk.msrb.mxu0 %vm361_vm11, %v9891_v14 }
0x1b43   :  { %v3439_v32 = vpop.xlane.xlu1 %3438 }
0x1b44   :  { %8593 = vrcp.f32 %v3439_v32 }
0x1b4a   :  { %v8594_v33 = vpop.eup %8593 }
0x1b4b   :  { %v3443_v35 = vmul.f32 %v8594_v33, %v9899_v45  ;;  %v3571_v52 = vpop.xlane.xlu0 %3570 }
0x1b4c   :  { %8595 = vrcp.f32 %v3571_v52 }
0x1b4d   :  { %v3568_v36 = vpop.xlane.xlu2 %3567  ;;  %8082 = vmatmul.msk.f32.vlgmr.msrb.gmra.mxu1 %vm113_vm1, %v3443_v35 }
0x1b4e   :  { %8597 = vrcp.f32 %v3568_v36  ;;  %8097 = vmatpush.msk.msrb.mxu1 %vm361_vm11, %v9895_v40 }
0x1b52   :  { %v8596_v15 = vpop.eup %8595 }
0x1b53   :  { %v3575_v21 = vmul.f32 %v8596_v15, %v9903_v9 }
0x1b54   :  { %v8598_v39 = vpop.eup %8597 }
0x1b55   :  { %v3574_v14 = vmul.f32 %v8598_v39, %v9907_v60  ;;  %8090 = vmatmul.msk.f32.vlgmr.msra.gmra.mxu1 %vm113_vm1, %v3575_v21  ;;  %v3700_v41 = vpop.xlane.xlu0 %3699 }
0x1b56   :  { %8599 = vrcp.f32 %v3700_v41 }
0x1b57   :  { %8088 = vmatmul.msk.f32.vlgmr.msra.gmra.mxu0 %vm113_vm1, %v3574_v14 }
0x1b58   :  { %8103 = vmatpush.msk.msra.mxu0 %vm361_vm11, %v3841_v31 }
0x1b5c   :  { %v8600_v61 = vpop.eup %8599 }
0x1b5d   :  { %v3706_v37 = vmul.f32 %v8600_v61, %v9911_v2  ;;  %v3703_v44 = vpop.xlane.xlu0 %3702 }
0x1b5e   :  { %8601 = vrcp.f32 %v3703_v44 }
0x1b5f   :  { %8096 = vmatmul.msk.f32.vlgmr.msrb.gmra.mxu0 %vm113_vm1, %v3706_v37 }
0x1b61   :  { %v3832_v40 = vpop.xlane.xlu2 %3831 }
0x1b62   :  { %8603 = vrcp.f32 %v3832_v40 }
0x1b64   :  { %v8602_v46 = vpop.eup %8601 }
0x1b65   :  { %v3707_v48 = vmul.f32 %v8602_v46, %v9915_v8  ;;  %v3835_v50 = vpop.xlane.xlu1 %3834 }
0x1b66   :  { %8605 = vrcp.f32 %v3835_v50 }
0x1b67   :  { %8098 = vmatmul.msk.f32.vlgmr.msrb.gmra.mxu1 %vm113_vm1, %v3707_v48 }
0x1b68   :  { %v8604_v49 = vpop.eup %8603 }
0x1b69   :  { %v3838_v45 = vmul.f32 %v8604_v49, %v8584_v58  ;;  %v8063_v58 = vld [vmem:[%s10813_s7 + $0x48] sm:$0xff]  ;;  %s8843_s7 = smov 118  }
0x1b6a   :  { %4110 = vmatpush.msrb.mxu3 %v8063_v58  ;;  %4087 = vmatpush.msrb.mxu2 %v8063_v58  ;;  %v8070_v58 = vld [vmem:[%s10816_s10 + $0x78] sm:$0xff] }
0x1b6b   :  { %8104 = vmatmul.msk.f32.vlgmr.msra.gmra.mxu0 %vm113_vm1, %v3838_v45 }
0x1b6c   :  { %v8606_v12 = vpop.eup %8605  ;;  %4273 = vmatpush.msra.mxu3 %v8070_v58  ;;  %4250 = vmatpush.msra.mxu2 %v8070_v58 }
0x1b6d   :  { %v3967_v51 = vpop.xlane.xlu2 %3966  ;;  %v3839_v54 = vmul.f32 %v8606_v12, %v8586_v23 }
0x1b6e   :  { %8607 = vrcp.f32 %v3967_v51  ;;  %v3964_v56 = vpop.xlane.xlu0 %3963 }
0x1b6f   :  { %8609 = vrcp.f32 %v3964_v56 }
0x1b74   :  { %v8608_v59 = vpop.eup %8607 }
0x1b75   :  { %v3868_v9 = vpop.permute.xlu2 %3867  ;;  %v3971_v47 = vmul.f32 %v8608_v59, %v8588_v26  ;;  %v8610_v42 = vpop.eup %8609 }
0x1b76   :  { %8105 = vmatpush.msk.msra.mxu1 %vm361_vm11, %v3868_v9  ;;  %v3970_v63 = vmul.f32 %v8610_v42, %v9923_v27 }
0x1b77   :  { %8106 = vmatmul.msk.f32.vlgmr.msra.gmra.mxu1 %vm113_vm1, %v3839_v54 }
0x1b7d   :  { %v4000_v60 = vpop.permute.xlu1 %3999 }
0x1b7e   :  { %8113 = vmatpush.msk.msrb.mxu1 %vm361_vm11, %v4000_v60  ;;  %v4161_v60 = vperm.slane %v9789_v34, 2 }
0x1b7f   :  { %8114 = vmatmul.msk.f32.vlgmr.msrb.gmra.mxu1 %vm113_vm1, %v3971_v47 }
0x1b81   :  { %v3973_v0 = vpop.permute.xlu0 %3972 }
0x1b82   :  { %8111 = vmatpush.msk.msrb.mxu0 %vm361_vm11, %v3973_v0  ;;  %v4164_v0 = vperm.slane %v9789_v34, 3 }
0x1b83   :  { %8112 = vmatmul.msk.f32.vlgmr.msrb.gmra.mxu0 %vm113_vm1, %v3970_v63 }
0x1bb7   :  { %v3468_v1 = vpop.f32.mrf.mxu0 }
0x1bca   :  { %v3495_v38 = vpop.f32.mrf.mxu1 }
0x1bd2   :  { %v3627_v2 = vpop.f32.mrf.mxu1 }
0x1bd3   :  { %4030 = vrot.lane.b32.xlu1 %v3627_v2, %s10889_s27 }
0x1bd4   :  { %v3600_v62 = vpop.f32.mrf.mxu0 }
0x1bd5   :  { %4028 = vrot.lane.b32.xlu2 %v3600_v62, %s10889_s27 }
0x1bdc   :  { %v3732_v30 = vpop.f32.mrf.mxu0 }
0x1bdd   :  { %4036 = vrot.lane.b32.xlu2 %v3732_v30, %s10890_s4 }
0x1be4   :  { %v3759_v4 = vpop.f32.mrf.mxu1 }
0x1be5   :  { %4038 = vrot.lane.b32.xlu1 %v3759_v4, %s10890_s4  ;;  %s10902_s4 = sld [smem:[#allocation9_spill]] }
0x1be8   :  { %v3864_v5 = vpop.f32.mrf.mxu0 }
0x1be9   :  { %4044 = vrot.lane.b32.xlu2 %v3864_v5, %s10891_s26 }
0x1beb   :  { %v8066_v40 = vld [vmem:[%s10902_s4 + $0x18] sm:$0xff]  ;;  %s8845_s4 = smov 114  }
0x1bec   :  { %4211 = vmatpush.msra.mxu1 %v8066_v40  ;;  %4188 = vmatpush.msra.mxu0 %v8066_v40  ;;  %v4283_v40 = vld [vmem:[%s10903_s5] sm:$0xff] }
0x1bf4   :  { %v3891_v6 = vpop.f32.mrf.mxu1 }
0x1bf5   :  { %4046 = vrot.lane.b32.xlu0 %v3891_v6, %s10891_s26  ;;  %s8846_s26 = smov 122  }
0x1bfc   :  { %v4023_v8 = vpop.f32.mrf.mxu1 }
0x1bfd   :  { %4054 = vrot.lane.b32.xlu2 %v4023_v8, %s10892_s21 }
0x1c00   :  { %v3996_v10 = vpop.f32.mrf.mxu0 }
0x1c01   :  { %4052 = vrot.lane.b32.xlu1 %v3996_v10, %s10892_s21  ;;  %s8844_s21 = smov 126  }
0x1c2f   :  { %v4029_v17 = vpop.permute.xlu2 %4028 }
0x1c30   :  { %v4058_v53 = vsel %vm113_vm1, %v3468_v1, %v4029_v17  ;;  %v8069_v17 = vld [vmem:[%s10816_s10 + $0x70] sm:$0xff] }
0x1c31   :  { %4274 = vmatpush.msra.mxu3 %v8069_v17  ;;  %4251 = vmatpush.msra.mxu2 %v8069_v17 }
0x1c37   :  { %v4037_v18 = vpop.permute.xlu2 %4036 }
0x1c38   :  { %v4060_v28 = vsel %vm232_vm8, %v4058_v53, %v4037_v18  ;;  %v8068_v18 = vld [vmem:[%s10816_s10 + $0x68] sm:$0xff] }
0x1c39   :  { %4275 = vmatpush.msra.mxu3 %v8068_v18  ;;  %4252 = vmatpush.msra.mxu2 %v8068_v18 }
0x1c43   :  { %v4045_v22 = vpop.permute.xlu2 %4044 }
0x1c44   :  { %v4062_v7 = vsel %vm975_vm13, %v4060_v28, %v4045_v22  ;;  %v8404_v22 = vld [vmem:[%s10815_s9 + $0x3] ss:$0 sm:$0xff]  ;;  %s10908_s9 = sld [smem:[#allocation12_spill]] }
0x1c45   :  { %v4031_v19 = vpop.permute.xlu1 %4030 }
0x1c46   :  { %v4059_v23 = vsel %vm113_vm1, %v3495_v38, %v4031_v19  ;;  %v8067_v19 = vld [vmem:[%s10816_s10 + $0x60] sm:$0xff] }
0x1c47   :  { %4276 = vmatpush.msra.mxu3 %v8067_v19  ;;  %4253 = vmatpush.msra.mxu2 %v8067_v19 }
0x1c57   :  { %v4039_v43 = vpop.permute.xlu1 %4038  ;;  %v4055_v25 = vpop.permute.xlu2 %4054 }
0x1c58   :  { %v4061_v13 = vsel %vm232_vm8, %v4059_v23, %v4039_v43 }
0x1c67   :  { %v4047_v24 = vpop.permute.xlu0 %4046 }
0x1c68   :  { %v4063_v26 = vsel %vm975_vm13, %v4061_v13, %v4047_v24 }
0x1c69   :  { %v4065_v27 = vsel %vm64_vm0, %v4063_v26, %v4055_v25 }
0x1c6a   :  { %8118 = vmatmul.msk.f32.vlgmr.msrb.gmra.mxu3 %vm980_vm14, %v4065_v27 }
0x1c73   :  { %v4053_v29 = vpop.permute.xlu1 %4052 }
0x1c74   :  { %v4064_v57 = vsel %vm64_vm0, %v4062_v7, %v4053_v29 }
0x1c75   :  { %8116 = vmatmul.msk.f32.vlgmr.msrb.gmra.mxu2 %vm980_vm14, %v4064_v57 }
0x1ced   :  { %v4112_v31 = vpop.f32.mrf.mxu3 }
0x1cee   :  { %v9989_v32 = vadd.f32 %v4112_v31, %v9766_v3 }
0x1cf0   :  { %v4120_v33 = vsel %vm174_vm2, %v9989_v32, 0.0 }
0x1cf1   :  { %4121 = vadd.xlane.f32.xlu1 %v4120_v33 }
0x1cf8   :  { %v4089_v35 = vpop.f32.mrf.mxu2 }
0x1cf9   :  { %v9994_v52 = vadd.f32 %v4089_v35, %v9771_v16 }
0x1cfb   :  { %v4117_v36 = vsel %vm174_vm2, %v9994_v52, 0.0 }
0x1cfc   :  { %4118 = vadd.xlane.f32.xlu0 %v4117_v36 }
0x1d64   :  { %v4122_v15 = vpop.xlane.xlu1 %4121 }
0x1d65   :  { %v4124_v21 = vmul.f32 %v4122_v15, %v8979_v20 }
0x1d67   :  { %v4126_v39 = vsub.f32 %v9989_v32, %v4124_v21 }
0x1d69   :  { %v4128_v14 = vmul.f32 %v4126_v39, %v4126_v39 }
0x1d6b   :  { %v4132_v3 = vsel %vm174_vm2, %v4128_v14, 0.0 }
0x1d6c   :  { %4133 = vadd.xlane.f32.xlu0 %v4132_v3 }
0x1d6f   :  { %v4119_v41 = vpop.xlane.xlu0 %4118 }
0x1d70   :  { %v4123_v61 = vmul.f32 %v4119_v41, %v8979_v20 }
0x1d72   :  { %v4125_v37 = vsub.f32 %v9994_v52, %v4123_v61  ;;  %v4234_v61 = vperm.slane %v9789_v34, 4  ;;  %v4284_v34 = vld [vmem:[%s10904_s6] sm:$0xff] }
0x1d74   :  { %v4127_v16 = vmul.f32 %v4125_v37, %v4125_v37 }
0x1d76   :  { %v4129_v44 = vsel %vm174_vm2, %v4127_v16, 0.0 }
0x1d77   :  { %4130 = vadd.xlane.f32.xlu2 %v4129_v44 }
0x1ddf   :  { %v4134_v46 = vpop.xlane.xlu0 %4133 }
0x1de0   :  { %v4136_v48 = vmul.f32 %v4134_v46, %v8979_v20 }
0x1de2   :  { %v4138_v49 = vadd.f32 1e-05, %v4136_v48 }
0x1de4   :  { %8611 = vrsqrt.f32 %v4138_v49  ;;  %vm4155_vm12 = vweird.f32 %v4138_v49 }
0x1dea   :  { %v8612_v45 = vpop.eup %8611  ;;  %v4131_v50 = vpop.xlane.xlu2 %4130 }
0x1deb   :  { %v4150_v51 = vmul.f32 %v8612_v45, %v4138_v49  ;;  %v4135_v12 = vmul.f32 %v4131_v50, %v8979_v20  ;;  %vm4156_vm2 = vweird.f32 %v8612_v45 }
0x1dec   :  { %vm4157_vm13 = vmor %vm4155_vm12, %vm4156_vm2  ;;  %vm4450_vm12 = vcmask 15360  }
0x1ded   :  { %v4151_v54 = vmul.f32 %v8612_v45, %v4150_v51  ;;  %v4137_v56 = vadd.f32 1e-05, %v4135_v12 }
0x1def   :  { %v4152_v9 = vmul.f32 0.5, %v4151_v54  ;;  %8613 = vrsqrt.f32 %v4137_v56  ;;  %vm4145_vm3 = vweird.f32 %v4137_v56  ;;  %v8842_v54 = vmov 4.0  }
0x1df1   :  { %v4153_v59 = vsub.f32 1.5, %v4152_v9 }
0x1df3   :  { %v4154_v47 = vmul.f32 %v8612_v45, %v4153_v59 }
0x1df5   :  { %v8614_v42 = vpop.eup %8613  ;;  %v4158_v63 = vsel %vm4157_vm13, %v8612_v45, %v4154_v47  ;;  %vm4994_vm13 = vcmask 48128  }
0x1df6   :  { %v4160_v38 = vmul.f32 %v4158_v63, %v4126_v39  ;;  %v4140_v1 = vmul.f32 %v8614_v42, %v4137_v56  ;;  %vm4146_vm14 = vweird.f32 %v8614_v42 }
0x1df7   :  { %vm4147_vm4 = vmor %vm4145_vm3, %vm4146_vm14 }
0x1df8   :  { %v4163_v2 = vmul.f32 %v4161_v60, %v4160_v38  ;;  %v4141_v62 = vmul.f32 %v8614_v42, %v4140_v1 }
0x1dfa   :  { %v4166_v30 = vadd.f32 %v4164_v0, %v4163_v2  ;;  %v4142_v4 = vmul.f32 0.5, %v4141_v62 }
0x1dfc   :  { %v4143_v5 = vsub.f32 1.5, %v4142_v4  ;;  %8120 = vmatmul.msk.f32.vlgmr.msra.gmra.mxu1 %vm232_vm8, %v4166_v30 }
0x1dfe   :  { %v4144_v6 = vmul.f32 %v8614_v42, %v4143_v5 }
0x1e00   :  { %v4148_v8 = vsel %vm4147_vm4, %v8614_v42, %v4144_v6 }
0x1e01   :  { %v4159_v10 = vmul.f32 %v4148_v8, %v4125_v37  ;;  %v4334_v8 = vld [vmem:[%s10905_s23] sm:$0xf] }
0x1e02   :  { %8129 = vmatpush.msk.msrb.mxu3 %vm361_vm11, %v4334_v8  ;;  %8127 = vmatpush.msk.msrb.mxu2 %vm361_vm11, %v4334_v8 }
0x1e03   :  { %v4162_v55 = vmul.f32 %v4161_v60, %v4159_v10 }
0x1e05   :  { %v4165_v11 = vadd.f32 %v4164_v0, %v4162_v55 }
0x1e07   :  { %8119 = vmatmul.msk.f32.vlgmr.msra.gmra.mxu0 %vm232_vm8, %v4165_v11 }
0x1e79   :  { %v4213_v43 = vpop.f32.mrf.mxu1 }
0x1e7a   :  { %v4214_v23 = vadd.f32 %v8404_v22, %v4213_v43 }
0x1e7c   :  { %v4217_v13 = vmul.f32 %v4214_v23, %v4214_v23 }
0x1e7e   :  { %v4219_v24 = vmul.f32 %v4217_v13, %v4214_v23  ;;  %v10069_v13 = vld [vmem:[%s10906_s3] sm:$0x1f] }
0x1e80   :  { %v4221_v25 = vmul.f32 0.044715, %v4219_v24 }
0x1e82   :  { %v4223_v26 = vadd.f32 %v4221_v25, %v4214_v23 }
0x1e84   :  { %v4225_v27 = vmul.f32 0.7978846, %v4223_v26  ;;  %v4190_v53 = vpop.f32.mrf.mxu0  ;;  %v4392_v26 = vperm.slane %v10069_v13, 0 }
0x1e85   :  { %v4191_v28 = vadd.f32 %v8404_v22, %v4190_v53 }
0x1e86   :  { %8615 = vtanh.f32 %v4225_v27 }
0x1e87   :  { %v4216_v7 = vmul.f32 %v4191_v28, %v4191_v28 }
0x1e89   :  { %v4218_v29 = vmul.f32 %v4216_v7, %v4191_v28 }
0x1e8b   :  { %v4220_v57 = vmul.f32 0.044715, %v4218_v29 }
0x1e8c   :  { %v8616_v31 = vpop.eup %8615 }
0x1e8d   :  { %v4229_v33 = vadd.f32 1.0, %v8616_v31  ;;  %v4222_v35 = vadd.f32 %v4220_v57, %v4191_v28 }
0x1e8f   :  { %v4231_v36 = vmul.f32 0.5, %v4229_v33  ;;  %v4224_v15 = vmul.f32 0.7978846, %v4222_v35 }
0x1e91   :  { %v4233_v21 = vmul.f32 %v4231_v36, %v4214_v23  ;;  %8617 = vtanh.f32 %v4224_v15 }
0x1e92   :  { %8619 = vrcp.f32 %v8842_v54 }
0x1e93   :  { %8122 = vmatmul.msk.f32.vlgmr.msra.gmra.mxu3 %vm1150_vm9, %v4233_v21 }
0x1e97   :  { %v8618_v39 = vpop.eup %8617 }
0x1e98   :  { %v4228_v14 = vadd.f32 1.0, %v8618_v39  ;;  %v8620_v56 = vpop.eup %8619 }
0x1e99   :  { %v4348_v9 = vmul.f32 4.0, %v8620_v56 }
0x1e9a   :  { %v4230_v3 = vmul.f32 0.5, %v4228_v14 }
0x1e9b   :  { %v4349_v59 = vsub.f32 1.0, %v4348_v9 }
0x1e9c   :  { %v4232_v41 = vmul.f32 %v4230_v3, %v4191_v28  ;;  %v4395_v28 = vperm.slane %v10069_v13, 1 }
0x1e9d   :  { %v4350_v47 = vmul.f32 %v8620_v56, %v4349_v59 }
0x1e9e   :  { %8121 = vmatmul.msk.f32.vlgmr.msra.gmra.mxu2 %vm1150_vm9, %v4232_v41  ;;  %vm4352_vm9 = vweird.f32 %v8620_v56 }
0x1e9f   :  { %v4351_v60 = vadd.f32 %v8620_v56, %v4350_v47 }
0x1ea1   :  { %v10051_v42 = vsel %vm4352_vm9, %v8620_v56, %v4351_v60 }
0x1f16   :  { %v4278_v37 = vpop.f32.mrf.mxu3 }
0x1f17   :  { %v4279_v16 = vadd.f32 %v4278_v37, %v4234_v61 }
0x1f19   :  { %v4282_v44 = vadd.f32 %v4279_v16, %v9989_v32 }
0x1f1b   :  { %8125 = vmatpush.xpose.msk.msrb.mxu1 %vm232_vm8, %v4282_v44 }
0x1f1e   :  { %8126 = vmatmul.msk.f32.vlgmr.msrb.gmra.mxu1 %vm232_vm8, %v4283_v40 }
0x1f21   :  { %v4255_v46 = vpop.f32.mrf.mxu2 }
0x1f22   :  { %v4256_v48 = vadd.f32 %v4255_v46, %v4234_v61 }
0x1f24   :  { %v4281_v49 = vadd.f32 %v4256_v48, %v9994_v52 }
0x1f26   :  { %8123 = vmatpush.xpose.msk.msrb.mxu0 %vm232_vm8, %v4281_v49 }
0x1f29   :  { %8124 = vmatmul.msk.f32.vlgmr.msrb.gmra.mxu0 %vm232_vm8, %v4283_v40 }
0x1f9b   :  { %v4331_v32 = vpop.f32.mrf.mxu1 }
0x1f9c   :  { %v10043_v45 = vadd.f32 %v4331_v32, %v4284_v34 }
0x1f9e   :  { %v4344_v50 = vsel %vm113_vm1, %v10043_v45, 0.0 }
0x1f9f   :  { %4345 = vadd.xlane.f32.xlu2 %v4344_v50 }
0x1fa6   :  { %v4308_v51 = vpop.f32.mrf.mxu0 }
0x1fa7   :  { %v10047_v12 = vadd.f32 %v4308_v51, %v4284_v34 }
0x1fa9   :  { %v4341_v52 = vsel %vm113_vm1, %v10047_v12, 0.0 }
0x1faa   :  { %4342 = vadd.xlane.f32.xlu1 %v4341_v52 }
0x2012   :  { %v4346_v63 = vpop.xlane.xlu2 %4345 }
0x2013   :  { %v4355_v0 = vmul.f32 %v10051_v42, %v4346_v63 }
0x2015   :  { %v4357_v38 = vsub.f32 %v10043_v45, %v4355_v0 }
0x2017   :  { %v4359_v1 = vmul.f32 %v4357_v38, %v4357_v38 }
0x2019   :  { %v4363_v2 = vsel %vm113_vm1, %v4359_v1, 0.0 }
0x201a   :  { %4364 = vadd.xlane.f32.xlu1 %v4363_v2 }
0x201d   :  { %v4343_v62 = vpop.xlane.xlu1 %4342 }
0x201e   :  { %v4354_v30 = vmul.f32 %v10051_v42, %v4343_v62 }
0x2020   :  { %v4356_v4 = vsub.f32 %v10047_v12, %v4354_v30 }
0x2022   :  { %v4358_v5 = vmul.f32 %v4356_v4, %v4356_v4 }
0x2024   :  { %v4360_v6 = vsel %vm113_vm1, %v4358_v5, 0.0 }
0x2025   :  { %4361 = vadd.xlane.f32.xlu0 %v4360_v6 }
0x208d   :  { %v4365_v10 = vpop.xlane.xlu1 %4364 }
0x208e   :  { %v4367_v55 = vmul.f32 %v4365_v10, %v10051_v42 }
0x2090   :  { %v4369_v11 = vadd.f32 1e-05, %v4367_v55 }
0x2092   :  { %8621 = vrsqrt.f32 %v4369_v11  ;;  %vm4386_vm6 = vweird.f32 %v4369_v11 }
0x2098   :  { %v8622_v58 = vpop.eup %8621  ;;  %v4362_v17 = vpop.xlane.xlu0 %4361 }
0x2099   :  { %v4381_v18 = vmul.f32 %v8622_v58, %v4369_v11  ;;  %v4366_v19 = vmul.f32 %v4362_v17, %v10051_v42  ;;  %vm4387_vm5 = vweird.f32 %v8622_v58 }
0x209a   :  { %vm4388_vm7 = vmor %vm4386_vm6, %vm4387_vm5 }
0x209b   :  { %v4382_v22 = vmul.f32 %v8622_v58, %v4381_v18  ;;  %v4368_v43 = vadd.f32 1e-05, %v4366_v19 }
0x209d   :  { %v4383_v23 = vmul.f32 0.5, %v4382_v22  ;;  %8623 = vrsqrt.f32 %v4368_v43  ;;  %vm4376_vm15 = vweird.f32 %v4368_v43 }
0x209f   :  { %v4384_v24 = vsub.f32 1.5, %v4383_v23 }
0x20a1   :  { %v4385_v25 = vmul.f32 %v8622_v58, %v4384_v24 }
0x20a3   :  { %v8624_v27 = vpop.eup %8623  ;;  %v4389_v53 = vsel %vm4388_vm7, %v8622_v58, %v4385_v25 }
0x20a4   :  { %v4391_v7 = vmul.f32 %v4389_v53, %v4357_v38  ;;  %v4371_v29 = vmul.f32 %v8624_v27, %v4368_v43  ;;  %vm4377_vm10 = vweird.f32 %v8624_v27 }
0x20a5   :  { %vm4378_vm2 = vmor %vm4376_vm15, %vm4377_vm10 }
0x20a6   :  { %v4394_v57 = vmul.f32 %v4392_v26, %v4391_v7  ;;  %v4372_v31 = vmul.f32 %v8624_v27, %v4371_v29 }
0x20a8   :  { %v4397_v33 = vadd.f32 %v4395_v28, %v4394_v57  ;;  %v4373_v35 = vmul.f32 0.5, %v4372_v31 }
0x20aa   :  { %v4374_v36 = vsub.f32 1.5, %v4373_v35  ;;  %8130 = vmatmul.msk.f32.vlgmr.msrb.gmra.mxu3 %vm113_vm1, %v4397_v33 }
0x20ac   :  { %v4375_v15 = vmul.f32 %v8624_v27, %v4374_v36 }
0x20ae   :  { %v4379_v21 = vsel %vm4378_vm2, %v8624_v27, %v4375_v15 }
0x20af   :  { %v4390_v39 = vmul.f32 %v4379_v21, %v4356_v4 }
0x20b1   :  { %v4393_v14 = vmul.f32 %v4392_v26, %v4390_v39 }
0x20b3   :  { %v4396_v3 = vadd.f32 %v4395_v28, %v4393_v14 }
0x20b5   :  { %8128 = vmatmul.msk.f32.vlgmr.msrb.gmra.mxu2 %vm113_vm1, %v4396_v3 }
0x212d   :  { %v10075_v41 = vpop.f32.mrf.mxu3 }
0x212e   :  { %4476 = vrot.lane.b32.xlu0 %v10075_v41, %s10896_s1 }
0x2136   :  { %4606 = vrot.lane.b32.xlu0 %v10075_v41, %s8843_s7 }
0x2138   :  { %v10081_v61 = vpop.f32.mrf.mxu2 }
0x2139   :  { %4578 = vrot.lane.b32.xlu1 %v10081_v61, %s8843_s7  ;;  %4448 = vrot.lane.b32.xlu2 %v10081_v61, %s10896_s1  ;;  %v10135_v55 = vpack.i.bf16 %v10075_v41, %v10081_v61 }
0x213e   :  { %4604 = vrot.lane.b32.xlu0 %v10075_v41, %s8844_s21 }
0x2141   :  { %4736 = vrot.lane.b32.xlu1 %v10075_v41, %s10898_s29  ;;  %4576 = vrot.lane.b32.xlu2 %v10081_v61, %s8844_s21 }
0x2146   :  { %4706 = vrot.lane.b32.xlu0 %v10081_v61, %s10897_s28 }
0x2149   :  { %4838 = vrot.lane.b32.xlu1 %v10081_v61, %s8845_s4  ;;  %4708 = vrot.lane.b32.xlu2 %v10081_v61, %s10898_s29 }
0x214e   :  { %4866 = vrot.lane.b32.xlu0 %v10075_v41, %s8845_s4 }
0x2151   :  { %4864 = vrot.lane.b32.xlu1 %v10075_v41, %s8846_s26  ;;  %4734 = vrot.lane.b32.xlu2 %v10075_v41, %s10897_s28 }
0x2159   :  { %4836 = vrot.lane.b32.xlu2 %v10081_v61, %s8846_s26 }
0x2193   :  { %v4449_v37 = vpop.permute.xlu2 %4448 }
0x2194   :  { %8131 = vmatpush.xpose.msk.msra.mxu0 %vm4450_vm12, %v4449_v37 }
0x2197   :  { %8132 = vmatmul.msk.f32.vlgmr.msra.gmra.mxu0 %vm4450_vm12, %v10081_v61 }
0x219b   :  { %v4577_v44 = vpop.permute.xlu2 %4576 }
0x21a0   :  { %v4477_v16 = vpop.permute.xlu0 %4476 }
0x21a1   :  { %8133 = vmatpush.xpose.msk.msra.mxu1 %vm4450_vm12, %v4477_v16 }
0x21a3   :  { %v4709_v48 = vpop.permute.xlu2 %4708 }
0x21a4   :  { %8134 = vmatmul.msk.f32.vlgmr.msra.gmra.mxu1 %vm4450_vm12, %v10075_v41 }
0x21a8   :  { %v4607_v40 = vpop.permute.xlu0 %4606 }
0x21a9   :  { %8139 = vmatpush.xpose.msk.msrb.mxu1 %vm4450_vm12, %v4607_v40 }
0x21ab   :  { %v4579_v46 = vpop.permute.xlu1 %4578  ;;  %v4735_v32 = vpop.permute.xlu2 %4734 }
0x21ac   :  { %8137 = vmatpush.xpose.msk.msrb.mxu0 %vm4450_vm12, %v4579_v46 }
0x21af   :  { %8138 = vmatmul.msk.f32.vlgmr.msrb.gmra.mxu0 %vm4450_vm12, %v4577_v44 }
0x21b0   :  { %8143 = vmatpush.xpose.msk.msra.mxu0 %vm4450_vm12, %v4709_v48  ;;  %v4605_v49 = vpop.permute.xlu0 %4604 }
0x21b1   :  { %8140 = vmatmul.msk.f32.vlgmr.msrb.gmra.mxu1 %vm4450_vm12, %v4605_v49 }
0x21b3   :  { %v4737_v34 = vpop.permute.xlu1 %4736  ;;  %v4837_v52 = vpop.permute.xlu2 %4836 }
0x21b4   :  { %8145 = vmatpush.xpose.msk.msra.mxu1 %vm4450_vm12, %v4737_v34 }
0x21b8   :  { %v4707_v50 = vpop.permute.xlu0 %4706 }
0x21b9   :  { %8144 = vmatmul.msk.f32.vlgmr.msra.gmra.mxu0 %vm4450_vm12, %v4707_v50  ;;  %8146 = vmatmul.msk.f32.vlgmr.msra.gmra.mxu1 %vm4450_vm12, %v4735_v32 }
0x21bb   :  { %v4839_v51 = vpop.permute.xlu1 %4838 }
0x21bc   :  { %8149 = vmatpush.xpose.msk.msrb.mxu0 %vm4450_vm12, %v4839_v51 }
0x21c0   :  { %v4867_v54 = vpop.permute.xlu0 %4866 }
0x21c1   :  { %8150 = vmatmul.msk.f32.vlgmr.msrb.gmra.mxu0 %vm4450_vm12, %v4837_v52  ;;  %8151 = vmatpush.xpose.msk.msrb.mxu1 %vm4450_vm12, %v4867_v54 }
0x21c3   :  { %v4865_v56 = vpop.permute.xlu1 %4864 }
0x21c4   :  { %8152 = vmatmul.msk.f32.vlgmr.msrb.gmra.mxu1 %vm4450_vm12, %v4865_v56 }
0x2214   :  { %v4472_v9 = vpop.f32.mrf.mxu0 }
0x2215   :  { %v4502_v59 = vsel %vm232_vm8, %v4472_v9, -inf }
0x2216   :  { %4503 = vmax.xlane.f32.xlu0 %v4502_v59 }
0x2221   :  { %v4499_v47 = vpop.f32.mrf.mxu1 }
0x2222   :  { %v4505_v60 = vsel %vm232_vm8, %v4499_v47, -inf }
0x2223   :  { %4506 = vmax.xlane.f32.xlu2 %v4505_v60 }
0x222c   :  { %v4601_v63 = vpop.f32.mrf.mxu0 }
0x222d   :  { %v4632_v0 = vsel %vm232_vm8, %v4601_v63, -inf }
0x222e   :  { %4633 = vmax.xlane.f32.xlu1 %v4632_v0  ;;  %v4629_v38 = vpop.f32.mrf.mxu1 }
0x222f   :  { %v4635_v1 = vsel %vm232_vm8, %v4629_v38, -inf }
0x2230   :  { %4636 = vmax.xlane.f32.xlu2 %v4635_v1 }
0x2236   :  { %v4731_v2 = vpop.f32.mrf.mxu0  ;;  %v4759_v62 = vpop.f32.mrf.mxu1 }
0x2237   :  { %v4765_v30 = vsel %vm232_vm8, %v4759_v62, -inf  ;;  %v4762_v4 = vsel %vm232_vm8, %v4731_v2, -inf }
0x2238   :  { %4766 = vmax.xlane.f32.xlu1 %v4765_v30  ;;  %4763 = vmax.xlane.f32.xlu0 %v4762_v4 }
0x223e   :  { %v4861_v5 = vpop.f32.mrf.mxu0 }
0x223f   :  { %v4892_v6 = vsel %vm232_vm8, %v4861_v5, -inf }
0x2240   :  { %4893 = vmax.xlane.f32.xlu2 %v4892_v6 }
0x2241   :  { %v4889_v8 = vpop.f32.mrf.mxu1 }
0x2242   :  { %v4895_v10 = vsel %vm232_vm8, %v4889_v8, -inf }
0x2243   :  { %4896 = vmax.xlane.f32.xlu0 %v4895_v10 }
0x2258   :  { %8322 = vrot.lane.b32.xlu2 %v10135_v55, %s10901_s18 }
0x2289   :  { %v4504_v11 = vpop.xlane.xlu0 %4503 }
0x228a   :  { %v4508_v58 = vsub.f32 %v4472_v9, %v4504_v11 }
0x228c   :  { %v4510_v17 = vmul.f32 1.442695, %v4508_v58 }
0x228e   :  { %8625 = vpow2.f32 %v4510_v17 }
0x2294   :  { %v10139_v18 = vpop.eup %8625 }
0x2295   :  { %v4514_v19 = vsel %vm232_vm8, %v10139_v18, 0.0 }
0x2296   :  { %4515 = vadd.xlane.f32.xlu1 %v4514_v19  ;;  %v4507_v22 = vpop.xlane.xlu2 %4506 }
0x2297   :  { %v4509_v43 = vsub.f32 %v4499_v47, %v4507_v22 }
0x2299   :  { %v4512_v23 = vmul.f32 1.442695, %v4509_v43 }
0x229b   :  { %8627 = vpow2.f32 %v4512_v23 }
0x22a1   :  { %v10143_v24 = vpop.eup %8627  ;;  %v4634_v25 = vpop.xlane.xlu1 %4633 }
0x22a2   :  { %v4638_v26 = vsub.f32 %v4601_v63, %v4634_v25  ;;  %v4517_v27 = vsel %vm232_vm8, %v10143_v24, 0.0 }
0x22a3   :  { %v4637_v53 = vpop.xlane.xlu2 %4636  ;;  %4518 = vadd.xlane.f32.xlu2 %v4517_v27 }
0x22a4   :  { %v4640_v28 = vmul.f32 1.442695, %v4638_v26  ;;  %v4639_v7 = vsub.f32 %v4629_v38, %v4637_v53 }
0x22a6   :  { %8629 = vpow2.f32 %v4640_v28  ;;  %v4642_v29 = vmul.f32 1.442695, %v4639_v7 }
0x22a8   :  { %8631 = vpow2.f32 %v4642_v29 }
0x22ab   :  { %v4767_v57 = vpop.xlane.xlu1 %4766  ;;  %v4764_v31 = vpop.xlane.xlu0 %4763 }
0x22ac   :  { %v10147_v33 = vpop.eup %8629  ;;  %v4769_v35 = vsub.f32 %v4759_v62, %v4767_v57  ;;  %v4768_v36 = vsub.f32 %v4731_v2, %v4764_v31 }
0x22ad   :  { %v4644_v15 = vsel %vm232_vm8, %v10147_v33, 0.0 }
0x22ae   :  { %v10151_v21 = vpop.eup %8631  ;;  %v4772_v39 = vmul.f32 1.442695, %v4769_v35  ;;  %v4770_v14 = vmul.f32 1.442695, %v4768_v36  ;;  %4645 = vadd.xlane.f32.xlu0 %v4644_v15 }
0x22af   :  { %v4647_v3 = vsel %vm232_vm8, %v10151_v21, 0.0 }
0x22b0   :  { %8633 = vpow2.f32 %v4772_v39  ;;  %4648 = vadd.xlane.f32.xlu1 %v4647_v3  ;;  %v4335_v3 = vld [vmem:[%s10907_s13] sm:$0xff] }
0x22b1   :  { %8635 = vpow2.f32 %v4770_v14  ;;  %5038 = vmatpush.msra.mxu1 %v4335_v3  ;;  %5015 = vmatpush.msra.mxu0 %v4335_v3 }
0x22b3   :  { %v4894_v41 = vpop.xlane.xlu2 %4893 }
0x22b4   :  { %v4898_v61 = vsub.f32 %v4861_v5, %v4894_v41 }
0x22b6   :  { %v10155_v37 = vpop.eup %8633  ;;  %v4900_v16 = vmul.f32 1.442695, %v4898_v61  ;;  %v4897_v44 = vpop.xlane.xlu0 %4896 }
0x22b7   :  { %v10157_v40 = vpop.eup %8635  ;;  %v4899_v46 = vsub.f32 %v4889_v8, %v4897_v44  ;;  %v4777_v48 = vsel %vm232_vm8, %v10155_v37, 0.0 }
0x22b8   :  { %8637 = vpow2.f32 %v4900_v16  ;;  %4778 = vadd.xlane.f32.xlu1 %v4777_v48  ;;  %v4774_v49 = vsel %vm232_vm8, %v10157_v40, 0.0 }
0x22b9   :  { %4775 = vadd.xlane.f32.xlu0 %v4774_v49  ;;  %v4902_v34 = vmul.f32 1.442695, %v4899_v46 }
0x22bb   :  { %8332 = vrot.lane.b32.xlu2 %v10135_v55, %s10893_s30  ;;  %v8323_v32 = vpop.permute.xlu2 %8322  ;;  %8639 = vpow2.f32 %v4902_v34 }
0x22bc   :  { %v8325_v50 = vunpack.i.h.bf16 %v8323_v32  ;;  %v8324_v51 = vunpack.i.l.bf16 %v8323_v32 }
0x22be   :  { %v8638_v52 = vpop.eup %8637  ;;  %4545 = vmatpush.msra.mxu2 %v8324_v51  ;;  %4571 = vmatpush.msra.mxu3 %v8325_v50 }
0x22bf   :  { %v4904_v54 = vsel %vm232_vm8, %v8638_v52, 0.0 }
0x22c0   :  { %4905 = vadd.xlane.f32.xlu1 %v4904_v54 }
0x22c1   :  { %v8640_v56 = vpop.eup %8639 }
0x22c2   :  { %v4907_v9 = vsel %vm232_vm8, %v8640_v56, 0.0 }
0x22c8   :  { %4908 = vadd.xlane.f32.xlu1 %v4907_v9 }
0x22cd   :  { %8327 = vrot.lane.b32.xlu0 %v10135_v55, %s8847_s0 }
0x22e1   :  { %8337 = vrot.lane.b32.xlu1 %v10135_v55, %s8848_s19 }
0x2309   :  { %v4516_v59 = vpop.xlane.xlu1 %4515 }
0x230a   :  { %8641 = vrcp.f32 %v4516_v59 }
0x2310   :  { %v8642_v47 = vpop.eup %8641 }
0x2311   :  { %v4522_v60 = vmul.f32 %v8642_v47, %v10139_v18 }
0x2313   :  { %8135 = vmatmul.msk.f32.vlgmr.msra.gmra.mxu2 %vm232_vm8, %v4522_v60 }
0x2316   :  { %v4519_v63 = vpop.xlane.xlu2 %4518 }
0x2317   :  { %8643 = vrcp.f32 %v4519_v63 }
0x231d   :  { %v8644_v0 = vpop.eup %8643 }
0x231e   :  { %v4523_v38 = vmul.f32 %v8644_v0, %v10143_v24  ;;  %v8333_v6 = vpop.permute.xlu2 %8332 }
0x231f   :  { %v8335_v18 = vunpack.i.h.bf16 %v8333_v6  ;;  %v8334_v19 = vunpack.i.l.bf16 %v8333_v6 }
0x2320   :  { %8136 = vmatmul.msk.f32.vlgmr.msra.gmra.mxu3 %vm232_vm8, %v4523_v38 }
0x2321   :  { %v4646_v2 = vpop.xlane.xlu0 %4645 }
0x2322   :  { %8645 = vrcp.f32 %v4646_v2 }
0x2323   :  { %v4649_v1 = vpop.xlane.xlu1 %4648 }
0x2324   :  { %8647 = vrcp.f32 %v4649_v1 }
0x2328   :  { %v8646_v4 = vpop.eup %8645 }
0x2329   :  { %v4652_v58 = vmul.f32 %v8646_v4, %v10147_v33 }
0x232a   :  { %v8648_v5 = vpop.eup %8647 }
0x232b   :  { %v4779_v62 = vpop.xlane.xlu1 %4778  ;;  %v4653_v17 = vmul.f32 %v8648_v5, %v10151_v21 }
0x232c   :  { %v4776_v30 = vpop.xlane.xlu0 %4775  ;;  %8649 = vrcp.f32 %v4779_v62 }
0x232d   :  { %8651 = vrcp.f32 %v4776_v30  ;;  %v4336_v30 = vld [vmem:[%s10908_s9] sm:$0xf] }
0x2332   :  { %v8650_v22 = vpop.eup %8649 }
0x2333   :  { %v4906_v8 = vpop.xlane.xlu1 %4905  ;;  %v8652_v43 = vpop.eup %8651  ;;  %v4783_v23 = vmul.f32 %v8650_v22, %v10155_v37  ;;  %v5092_v22 = vperm.slane %v10069_v13, 3 }
0x2334   :  { %v4782_v24 = vmul.f32 %v8652_v43, %v10157_v40  ;;  %8653 = vrcp.f32 %v4906_v8 }
0x233a   :  { %v8654_v26 = vpop.eup %8653 }
0x233b   :  { %v4909_v25 = vpop.xlane.xlu1 %4908  ;;  %v4912_v29 = vmul.f32 %v8654_v26, %v8638_v52 }
0x233c   :  { %8655 = vrcp.f32 %v4909_v25 }
0x233f   :  { %v8328_v10 = vpop.permute.xlu0 %8327 }
0x2340   :  { %v8330_v55 = vunpack.i.h.bf16 %v8328_v10  ;;  %v8329_v11 = vunpack.i.l.bf16 %v8328_v10 }
0x2342   :  { %4675 = vmatpush.msrb.mxu2 %v8329_v11  ;;  %4701 = vmatpush.msrb.mxu3 %v8330_v55  ;;  %v8656_v27 = vpop.eup %8655 }
0x2343   :  { %8141 = vmatmul.msk.f32.vlgmr.msrb.gmra.mxu2 %vm232_vm8, %v4652_v58  ;;  %8142 = vmatmul.msk.f32.vlgmr.msrb.gmra.mxu3 %vm232_vm8, %v4653_v17  ;;  %v4913_v57 = vmul.f32 %v8656_v27, %v8640_v56 }
0x2344   :  { %4805 = vmatpush.msra.mxu2 %v8334_v19  ;;  %4831 = vmatpush.msra.mxu3 %v8335_v18  ;;  %v5089_v18 = vperm.slane %v10069_v13, 2 }
0x234b   :  { %8147 = vmatmul.msk.f32.vlgmr.msra.gmra.mxu2 %vm232_vm8, %v4782_v24  ;;  %8148 = vmatmul.msk.f32.vlgmr.msra.gmra.mxu3 %vm232_vm8, %v4783_v23 }
0x2353   :  { %v8338_v53 = vpop.permute.xlu1 %8337 }
0x2354   :  { %v8340_v28 = vunpack.i.h.bf16 %v8338_v53  ;;  %v8339_v7 = vunpack.i.l.bf16 %v8338_v53 }
0x2356   :  { %4935 = vmatpush.msrb.mxu2 %v8339_v7  ;;  %4961 = vmatpush.msrb.mxu3 %v8340_v28 }
0x2357   :  { %8153 = vmatmul.msk.f32.vlgmr.msrb.gmra.mxu2 %vm232_vm8, %v4912_v29  ;;  %8154 = vmatmul.msk.f32.vlgmr.msrb.gmra.mxu3 %vm232_vm8, %v4913_v57 }
0x2358   :  { %8159 = vmatpush.msk.msra.mxu3 %vm361_vm11, %v4336_v30  ;;  %8157 = vmatpush.msk.msra.mxu2 %vm361_vm11, %v4336_v30 }
0x2396   :  { %v4547_v31 = vpop.f32.mrf.mxu2 }
0x23a3   :  { %v4573_v33 = vpop.f32.mrf.mxu3 }
0x23c6   :  { %v4677_v35 = vpop.f32.mrf.mxu2  ;;  %v4703_v36 = vpop.f32.mrf.mxu3 }
0x23c7   :  { %4970 = vrot.lane.b32.xlu2 %v4703_v36, %s8849_s20  ;;  %4968 = vrot.lane.b32.xlu0 %v4677_v35, %s8849_s20 }
0x23ce   :  { %v4807_v15 = vpop.f32.mrf.mxu2  ;;  %v4833_v21 = vpop.f32.mrf.mxu3 }
0x23cf   :  { %4978 = vrot.lane.b32.xlu2 %v4833_v21, %s10889_s27  ;;  %4976 = vrot.lane.b32.xlu0 %v4807_v15, %s10889_s27  ;;  %v4338_v21 = vld [vmem:[%s10909_s8 + $0x8] sm:$0xff] }
0x23d0   :  { %5206 = vmatpush.msrb.mxu1 %v4338_v21  ;;  %5183 = vmatpush.msrb.mxu0 %v4338_v21 }
0x23da   :  { %v4937_v39 = vpop.f32.mrf.mxu2  ;;  %v4963_v14 = vpop.f32.mrf.mxu3 }
0x23db   :  { %4986 = vrot.lane.b32.xlu2 %v4963_v14, %s8850_s22  ;;  %4984 = vrot.lane.b32.xlu0 %v4937_v39, %s8850_s22  ;;  %v4337_v39 = vld [vmem:[%s10909_s8] sm:$0xff] }
0x23dc   :  { %5207 = vmatpush.msrb.mxu1 %v4337_v39  ;;  %5184 = vmatpush.msrb.mxu0 %v4337_v39  ;;  %v8405_v14 = vld [vmem:[%s10910_s24] ss:$0 sm:$0xff] }
0x2421   :  { %v4971_v41 = vpop.permute.xlu2 %4970 }
0x2422   :  { %v4991_v37 = vsel %vm4450_vm12, %v4573_v33, %v4971_v41 }
0x2429   :  { %v4979_v61 = vpop.permute.xlu2 %4978 }
0x242a   :  { %v4993_v16 = vsel %vm113_vm1, %v4991_v37, %v4979_v61 }
0x2435   :  { %v4987_v44 = vpop.permute.xlu2 %4986 }
0x2436   :  { %v4996_v40 = vsel %vm4994_vm13, %v4993_v16, %v4987_v44 }
0x2437   :  { %8156 = vmatmul.msk.f32.vlgmr.msra.gmra.mxu1 %vm232_vm8, %v4996_v40 }
0x2439   :  { %v4969_v46 = vpop.permute.xlu0 %4968 }
0x243a   :  { %v4990_v49 = vsel %vm4450_vm12, %v4547_v31, %v4969_v46 }
0x2441   :  { %v4977_v48 = vpop.permute.xlu0 %4976 }
0x2442   :  { %v4992_v34 = vsel %vm113_vm1, %v4990_v49, %v4977_v48 }
0x244d   :  { %v4985_v32 = vpop.permute.xlu0 %4984 }
0x244e   :  { %v4995_v50 = vsel %vm4994_vm13, %v4992_v34, %v4985_v32 }
0x244f   :  { %8155 = vmatmul.msk.f32.vlgmr.msra.gmra.mxu0 %vm232_vm8, %v4995_v50 }
0x24b4   :  { %v5040_v51 = vpop.f32.mrf.mxu1 }
0x24b5   :  { %v10203_v52 = vadd.f32 %v5040_v51, %v10043_v45 }
0x24b7   :  { %v5048_v54 = vsel %vm113_vm1, %v10203_v52, 0.0 }
0x24b8   :  { %5049 = vadd.xlane.f32.xlu0 %v5048_v54 }
0x24cc   :  { %v5017_v56 = vpop.f32.mrf.mxu0 }
0x24cd   :  { %v10208_v9 = vadd.f32 %v5017_v56, %v10047_v12 }
0x24cf   :  { %v5045_v59 = vsel %vm113_vm1, %v10208_v9, 0.0 }
0x24d0   :  { %5046 = vadd.xlane.f32.xlu1 %v5045_v59 }
0x252b   :  { %v5050_v47 = vpop.xlane.xlu0 %5049 }
0x252c   :  { %v5052_v60 = vmul.f32 %v5050_v47, %v10051_v42 }
0x252e   :  { %v5054_v63 = vsub.f32 %v10203_v52, %v5052_v60 }
0x2530   :  { %v5056_v0 = vmul.f32 %v5054_v63, %v5054_v63 }
0x2532   :  { %v5060_v45 = vsel %vm113_vm1, %v5056_v0, 0.0 }
0x2533   :  { %5061 = vadd.xlane.f32.xlu1 %v5060_v45 }
0x2543   :  { %v5047_v38 = vpop.xlane.xlu1 %5046 }
0x2544   :  { %v5051_v1 = vmul.f32 %v5047_v38, %v10051_v42  ;;  %v5165_v38 = vperm.slane %v10069_v13, 4 }
0x2546   :  { %v5053_v2 = vsub.f32 %v10208_v9, %v5051_v1 }
0x2548   :  { %v5055_v12 = vmul.f32 %v5053_v2, %v5053_v2 }
0x254a   :  { %v5057_v62 = vsel %vm113_vm1, %v5055_v12, 0.0 }
0x254b   :  { %5058 = vadd.xlane.f32.xlu2 %v5057_v62 }
0x25a6   :  { %v5062_v4 = vpop.xlane.xlu1 %5061 }
0x25a7   :  { %v5064_v5 = vmul.f32 %v5062_v4, %v10051_v42 }
0x25a9   :  { %v5066_v6 = vadd.f32 1e-05, %v5064_v5 }
0x25ab   :  { %8657 = vrsqrt.f32 %v5066_v6  ;;  %vm5083_vm3 = vweird.f32 %v5066_v6 }
0x25b1   :  { %v8658_v8 = vpop.eup %8657 }
0x25b2   :  { %v5078_v10 = vmul.f32 %v8658_v8, %v5066_v6  ;;  %vm5084_vm14 = vweird.f32 %v8658_v8 }
0x25b3   :  { %vm5085_vm4 = vmor %vm5083_vm3, %vm5084_vm14 }
0x25b4   :  { %v5079_v55 = vmul.f32 %v8658_v8, %v5078_v10 }
0x25b6   :  { %v5080_v11 = vmul.f32 0.5, %v5079_v55 }
0x25b8   :  { %v5081_v58 = vsub.f32 1.5, %v5080_v11 }
0x25ba   :  { %v5082_v17 = vmul.f32 %v8658_v8, %v5081_v58 }
0x25bc   :  { %v5086_v19 = vsel %vm5085_vm4, %v8658_v8, %v5082_v17 }
0x25bd   :  { %v5088_v43 = vmul.f32 %v5086_v19, %v5054_v63  ;;  %v8163_v19 = vld [vmem:[%s10905_s23 + $0x4] sm:$0xf] }
0x25be   :  { %v5059_v23 = vpop.xlane.xlu2 %5058  ;;  %8172 = vmatpush.msk.msrb.mxu3 %vm361_vm11, %v8163_v19  ;;  %8170 = vmatpush.msk.msrb.mxu2 %vm361_vm11, %v8163_v19 }
0x25bf   :  { %v5091_v24 = vmul.f32 %v5089_v18, %v5088_v43  ;;  %v5063_v25 = vmul.f32 %v5059_v23, %v10051_v42 }
0x25c1   :  { %v5094_v26 = vadd.f32 %v5092_v22, %v5091_v24  ;;  %v5065_v27 = vadd.f32 1e-05, %v5063_v25 }
0x25c3   :  { %8659 = vrsqrt.f32 %v5065_v27  ;;  %8160 = vmatmul.msk.f32.vlgmr.msra.gmra.mxu3 %vm113_vm1, %v5094_v26  ;;  %vm5073_vm5 = vweird.f32 %v5065_v27 }
0x25c9   :  { %v8660_v53 = vpop.eup %8659 }
0x25ca   :  { %v5068_v28 = vmul.f32 %v8660_v53, %v5065_v27  ;;  %vm5074_vm9 = vweird.f32 %v8660_v53 }
0x25cb   :  { %vm5075_vm6 = vmor %vm5073_vm5, %vm5074_vm9 }
0x25cc   :  { %v5069_v7 = vmul.f32 %v8660_v53, %v5068_v28 }
0x25ce   :  { %v5070_v29 = vmul.f32 0.5, %v5069_v7 }
0x25d0   :  { %v5071_v57 = vsub.f32 1.5, %v5070_v29 }
0x25d2   :  { %v5072_v31 = vmul.f32 %v8660_v53, %v5071_v57 }
0x25d4   :  { %v5076_v33 = vsel %vm5075_vm6, %v8660_v53, %v5072_v31  ;;  %v10266_v53 = vld [vmem:[%s10906_s3 + $0x8] sm:$0x1f] }
0x25d5   :  { %v5087_v35 = vmul.f32 %v5076_v33, %v5053_v2  ;;  %v5271_v29 = vperm.slane %v10266_v53, 0  ;;  %v5274_v31 = vperm.slane %v10266_v53, 1 }
0x25d7   :  { %v5090_v36 = vmul.f32 %v5089_v18, %v5087_v35 }
0x25d9   :  { %v5093_v15 = vadd.f32 %v5092_v22, %v5090_v36 }
0x25db   :  { %8158 = vmatmul.msk.f32.vlgmr.msra.gmra.mxu2 %vm113_vm1, %v5093_v15 }
0x2646   :  { %v5144_v3 = vpop.f32.mrf.mxu3 }
0x2647   :  { %v5145_v41 = vadd.f32 %v8405_v14, %v5144_v3 }
0x2649   :  { %v5148_v61 = vmul.f32 %v5145_v41, %v5145_v41 }
0x264b   :  { %v5150_v37 = vmul.f32 %v5148_v61, %v5145_v41 }
0x264d   :  { %v5152_v16 = vmul.f32 0.044715, %v5150_v37 }
0x264f   :  { %v5154_v44 = vadd.f32 %v5152_v16, %v5145_v41 }
0x2651   :  { %v5156_v40 = vmul.f32 0.7978846, %v5154_v44 }
0x2653   :  { %8661 = vtanh.f32 %v5156_v40 }
0x2659   :  { %v8662_v46 = vpop.eup %8661 }
0x265a   :  { %v5160_v48 = vadd.f32 1.0, %v8662_v46 }
0x265c   :  { %v5162_v49 = vmul.f32 0.5, %v5160_v48 }
0x265e   :  { %v5164_v34 = vmul.f32 %v5162_v49, %v5145_v41  ;;  %v5121_v32 = vpop.f32.mrf.mxu2 }
0x265f   :  { %v5122_v50 = vadd.f32 %v8405_v14, %v5121_v32 }
0x2660   :  { %8162 = vmatmul.msk.f32.vlgmr.msrb.gmra.mxu1 %vm64_vm0, %v5164_v34 }
0x2661   :  { %v5147_v51 = vmul.f32 %v5122_v50, %v5122_v50 }
0x2663   :  { %v5149_v54 = vmul.f32 %v5147_v51, %v5122_v50 }
0x2665   :  { %v5151_v56 = vmul.f32 0.044715, %v5149_v54 }
0x2667   :  { %v5153_v59 = vadd.f32 %v5151_v56, %v5122_v50 }
0x2669   :  { %v5155_v47 = vmul.f32 0.7978846, %v5153_v59 }
0x266b   :  { %8663 = vtanh.f32 %v5155_v47 }
0x2671   :  { %v8664_v60 = vpop.eup %8663 }
0x2672   :  { %v5159_v63 = vadd.f32 1.0, %v8664_v60 }
0x2674   :  { %v5161_v0 = vmul.f32 0.5, %v5159_v63 }
0x2676   :  { %v5163_v45 = vmul.f32 %v5161_v0, %v5122_v50 }
0x2678   :  { %8161 = vmatmul.msk.f32.vlgmr.msrb.gmra.mxu0 %vm64_vm0, %v5163_v45 }
0x26dd   :  { %v5209_v1 = vpop.f32.mrf.mxu1 }
0x26de   :  { %v5210_v2 = vadd.f32 %v5209_v1, %v5165_v38 }
0x26e0   :  { %v10242_v12 = vadd.f32 %v5210_v2, %v10203_v52 }
0x26e2   :  { %v5230_v62 = vsel %vm113_vm1, %v10242_v12, 0.0 }
0x26e3   :  { %5231 = vadd.xlane.f32.xlu2 %v5230_v62 }
0x26f5   :  { %v5186_v30 = vpop.f32.mrf.mxu0 }
0x26f6   :  { %v5187_v4 = vadd.f32 %v5186_v30, %v5165_v38 }
0x26f8   :  { %v10247_v5 = vadd.f32 %v5187_v4, %v10208_v9 }
0x26fa   :  { %v5227_v6 = vsel %vm113_vm1, %v10247_v5, 0.0 }
0x26fb   :  { %5228 = vadd.xlane.f32.xlu0 %v5227_v6 }
0x2756   :  { %v5232_v8 = vpop.xlane.xlu2 %5231 }
0x2757   :  { %v5234_v13 = vmul.f32 %v5232_v8, %v10051_v42 }
0x2759   :  { %v5236_v10 = vsub.f32 %v10242_v12, %v5234_v13 }
0x275b   :  { %v5238_v52 = vmul.f32 %v5236_v10, %v5236_v10 }
0x275d   :  { %v5242_v55 = vsel %vm113_vm1, %v5238_v52, 0.0 }
0x275e   :  { %5243 = vadd.xlane.f32.xlu0 %v5242_v55 }
0x276e   :  { %v5229_v11 = vpop.xlane.xlu0 %5228 }
0x276f   :  { %v5233_v58 = vmul.f32 %v5229_v11, %v10051_v42 }
0x2771   :  { %v5235_v17 = vsub.f32 %v10247_v5, %v5233_v58 }
0x2773   :  { %v5237_v9 = vmul.f32 %v5235_v17, %v5235_v17 }
0x2775   :  { %v5239_v18 = vsel %vm113_vm1, %v5237_v9, 0.0 }
0x2776   :  { %5240 = vadd.xlane.f32.xlu1 %v5239_v18 }
0x27d1   :  { %v5244_v22 = vpop.xlane.xlu0 %5243 }
0x27d2   :  { %v5246_v43 = vmul.f32 %v5244_v22, %v10051_v42 }
0x27d4   :  { %v5248_v23 = vadd.f32 1e-05, %v5246_v43 }
0x27d6   :  { %8665 = vrsqrt.f32 %v5248_v23  ;;  %vm5265_vm10 = vweird.f32 %v5248_v23 }
0x27dc   :  { %v8666_v24 = vpop.eup %8665 }
0x27dd   :  { %v5260_v25 = vmul.f32 %v8666_v24, %v5248_v23  ;;  %vm5266_vm7 = vweird.f32 %v8666_v24 }
0x27de   :  { %vm5267_vm15 = vmor %vm5265_vm10, %vm5266_vm7 }
0x27df   :  { %v5261_v26 = vmul.f32 %v8666_v24, %v5260_v25 }
0x27e1   :  { %v5262_v27 = vmul.f32 0.5, %v5261_v26 }
0x27e3   :  { %v5263_v28 = vsub.f32 1.5, %v5262_v27 }
0x27e5   :  { %v5264_v7 = vmul.f32 %v8666_v24, %v5263_v28 }
0x27e7   :  { %v5268_v57 = vsel %vm5267_vm15, %v8666_v24, %v5264_v7 }
0x27e8   :  { %v5270_v33 = vmul.f32 %v5268_v57, %v5236_v10 }
0x27e9   :  { %v5241_v35 = vpop.xlane.xlu1 %5240 }
0x27ea   :  { %v5273_v36 = vmul.f32 %v5271_v29, %v5270_v33  ;;  %v5245_v15 = vmul.f32 %v5241_v35, %v10051_v42 }
0x27ec   :  { %v5276_v21 = vadd.f32 %v5274_v31, %v5273_v36  ;;  %v5247_v39 = vadd.f32 1e-05, %v5245_v15 }
0x27ee   :  { %8667 = vrsqrt.f32 %v5247_v39  ;;  %8173 = vmatmul.msk.f32.vlgmr.msrb.gmra.mxu3 %vm113_vm1, %v5276_v21  ;;  %vm5255_vm14 = vweird.f32 %v5247_v39 }
0x27f4   :  { %v8668_v14 = vpop.eup %8667 }
0x27f5   :  { %v5250_v3 = vmul.f32 %v8668_v14, %v5247_v39  ;;  %vm5256_vm2 = vweird.f32 %v8668_v14 }
0x27f6   :  { %vm5257_vm3 = vmor %vm5255_vm14, %vm5256_vm2 }
0x27f7   :  { %v5251_v41 = vmul.f32 %v8668_v14, %v5250_v3 }
0x27f9   :  { %v5252_v61 = vmul.f32 0.5, %v5251_v41 }
0x27fb   :  { %v5253_v37 = vsub.f32 1.5, %v5252_v61 }
0x27fd   :  { %v5254_v16 = vmul.f32 %v8668_v14, %v5253_v37 }
0x27ff   :  { %v5258_v44 = vsel %vm5257_vm3, %v8668_v14, %v5254_v16 }
0x2800   :  { %v5269_v40 = vmul.f32 %v5258_v44, %v5235_v17 }
0x2802   :  { %v5272_v46 = vmul.f32 %v5271_v29, %v5269_v40 }
0x2804   :  { %v5275_v48 = vadd.f32 %v5274_v31, %v5272_v46 }
0x2806   :  { %8171 = vmatmul.msk.f32.vlgmr.msrb.gmra.mxu2 %vm113_vm1, %v5275_v48 }
0x2871   :  { %v10273_v49 = vpop.f32.mrf.mxu3 }
0x2872   :  { %5354 = vrot.lane.b32.xlu1 %v10273_v49, %s10896_s1 }
0x287a   :  { %5482 = vrot.lane.b32.xlu1 %v10273_v49, %s8844_s21 }
0x2889   :  { %v10279_v34 = vpop.f32.mrf.mxu2 }
0x288a   :  { %5456 = vrot.lane.b32.xlu0 %v10279_v34, %s8843_s7  ;;  %5327 = vrot.lane.b32.xlu2 %v10279_v34, %s10896_s1  ;;  %v10333_v43 = vpack.i.bf16 %v10273_v49, %v10279_v34 }
0x288b   :  { %5584 = vrot.lane.b32.xlu1 %v10279_v34, %s10897_s28 }
0x2892   :  { %5454 = vrot.lane.b32.xlu0 %v10279_v34, %s8844_s21  ;;  %5484 = vrot.lane.b32.xlu2 %v10273_v49, %s8843_s7 }
0x2893   :  { %5744 = vrot.lane.b32.xlu1 %v10273_v49, %s8845_s4 }
0x289a   :  { %5614 = vrot.lane.b32.xlu0 %v10273_v49, %s10898_s29  ;;  %5586 = vrot.lane.b32.xlu2 %v10279_v34, %s10898_s29 }
0x28a2   :  { %5716 = vrot.lane.b32.xlu0 %v10279_v34, %s8845_s4  ;;  %5612 = vrot.lane.b32.xlu2 %v10273_v49, %s10897_s28 }
0x28aa   :  { %5742 = vrot.lane.b32.xlu0 %v10273_v49, %s8846_s26  ;;  %5714 = vrot.lane.b32.xlu2 %v10279_v34, %s8846_s26 }
0x28e4   :  { %v5328_v32 = vpop.permute.xlu2 %5327  ;;  %v5355_v50 = vpop.permute.xlu1 %5354 }
0x28e5   :  { %8174 = vmatpush.xpose.msk.msra.mxu0 %vm4450_vm12, %v5328_v32  ;;  %8176 = vmatpush.xpose.msk.msra.mxu1 %vm4450_vm12, %v5355_v50 }
0x28e8   :  { %8175 = vmatmul.msk.f32.vlgmr.msra.gmra.mxu0 %vm4450_vm12, %v10279_v34  ;;  %8177 = vmatmul.msk.f32.vlgmr.msra.gmra.mxu1 %vm4450_vm12, %v10273_v49 }
0x28ec   :  { %v5485_v51 = vpop.permute.xlu2 %5484  ;;  %v5483_v54 = vpop.permute.xlu1 %5482 }
0x28ed   :  { %8182 = vmatpush.xpose.msk.msrb.mxu1 %vm4450_vm12, %v5485_v51 }
0x28f0   :  { %8183 = vmatmul.msk.f32.vlgmr.msrb.gmra.mxu1 %vm4450_vm12, %v5483_v54 }
0x28f4   :  { %v5587_v59 = vpop.permute.xlu2 %5586 }
0x28fc   :  { %v5457_v56 = vpop.permute.xlu0 %5456  ;;  %v5613_v0 = vpop.permute.xlu2 %5612 }
0x28fd   :  { %8180 = vmatpush.xpose.msk.msrb.mxu0 %vm4450_vm12, %v5457_v56  ;;  %v5585_v47 = vpop.permute.xlu1 %5584 }
0x2901   :  { %8186 = vmatpush.xpose.msk.msra.mxu0 %vm4450_vm12, %v5587_v59 }
0x2904   :  { %v5455_v60 = vpop.permute.xlu0 %5454  ;;  %v5715_v1 = vpop.permute.xlu2 %5714 }
0x2905   :  { %8181 = vmatmul.msk.f32.vlgmr.msrb.gmra.mxu0 %vm4450_vm12, %v5455_v60  ;;  %v5745_v45 = vpop.permute.xlu1 %5744 }
0x290c   :  { %v5615_v63 = vpop.permute.xlu0 %5614 }
0x290d   :  { %8187 = vmatmul.msk.f32.vlgmr.msra.gmra.mxu0 %vm4450_vm12, %v5585_v47  ;;  %8188 = vmatpush.xpose.msk.msra.mxu1 %vm4450_vm12, %v5615_v63 }
0x2910   :  { %8189 = vmatmul.msk.f32.vlgmr.msra.gmra.mxu1 %vm4450_vm12, %v5613_v0 }
0x2911   :  { %8194 = vmatpush.xpose.msk.msrb.mxu1 %vm4450_vm12, %v5745_v45 }
0x2914   :  { %v5717_v38 = vpop.permute.xlu0 %5716 }
0x2915   :  { %8192 = vmatpush.xpose.msk.msrb.mxu0 %vm4450_vm12, %v5717_v38 }
0x2918   :  { %8193 = vmatmul.msk.f32.vlgmr.msrb.gmra.mxu0 %vm4450_vm12, %v5715_v1 }
0x291c   :  { %v5743_v2 = vpop.permute.xlu0 %5742 }
0x291d   :  { %8195 = vmatmul.msk.f32.vlgmr.msrb.gmra.mxu1 %vm4450_vm12, %v5743_v2 }
0x2965   :  { %v5350_v62 = vpop.f32.mrf.mxu0  ;;  %v5377_v30 = vpop.f32.mrf.mxu1 }
0x2966   :  { %v5380_v4 = vsel %vm232_vm8, %v5350_v62, -inf  ;;  %v5383_v6 = vsel %vm232_vm8, %v5377_v30, -inf }
0x2967   :  { %5381 = vmax.xlane.f32.xlu1 %v5380_v4  ;;  %5384 = vmax.xlane.f32.xlu2 %v5383_v6 }
0x296d   :  { %v5507_v8 = vpop.f32.mrf.mxu1 }
0x296e   :  { %v5513_v13 = vsel %vm232_vm8, %v5507_v8, -inf }
0x296f   :  { %5514 = vmax.xlane.f32.xlu1 %v5513_v13 }
0x2982   :  { %v5479_v10 = vpop.f32.mrf.mxu0 }
0x2983   :  { %v5510_v52 = vsel %vm232_vm8, %v5479_v10, -inf }
0x2984   :  { %5511 = vmax.xlane.f32.xlu0 %v5510_v52 }
0x298a   :  { %v5609_v55 = vpop.f32.mrf.mxu0 }
0x298b   :  { %v5640_v11 = vsel %vm232_vm8, %v5609_v55, -inf }
0x298c   :  { %5641 = vmax.xlane.f32.xlu2 %v5640_v11 }
0x298d   :  { %v5637_v58 = vpop.f32.mrf.mxu1 }
0x298e   :  { %v5643_v17 = vsel %vm232_vm8, %v5637_v58, -inf }
0x298f   :  { %5644 = vmax.xlane.f32.xlu0 %v5643_v17 }
0x2995   :  { %v5739_v9 = vpop.f32.mrf.mxu0 }
0x2996   :  { %v5770_v18 = vsel %vm232_vm8, %v5739_v9, -inf }
0x2997   :  { %5771 = vmax.xlane.f32.xlu1 %v5770_v18 }
0x299a   :  { %v5767_v19 = vpop.f32.mrf.mxu1 }
0x299b   :  { %v5773_v22 = vsel %vm232_vm8, %v5767_v19, -inf }
0x299c   :  { %5774 = vmax.xlane.f32.xlu2 %v5773_v22 }
0x29b0   :  { %8342 = vrot.lane.b32.xlu1 %v10333_v43, %s10901_s18 }
0x29da   :  { %v5385_v23 = vpop.xlane.xlu2 %5384  ;;  %v5382_v24 = vpop.xlane.xlu1 %5381 }
0x29db   :  { %v5387_v25 = vsub.f32 %v5377_v30, %v5385_v23  ;;  %v5386_v26 = vsub.f32 %v5350_v62, %v5382_v24 }
0x29dd   :  { %v5390_v27 = vmul.f32 1.442695, %v5387_v25  ;;  %v5388_v28 = vmul.f32 1.442695, %v5386_v26 }
0x29df   :  { %8669 = vpow2.f32 %v5390_v27 }
0x29e0   :  { %8671 = vpow2.f32 %v5388_v28 }
0x29e2   :  { %v5515_v7 = vpop.xlane.xlu1 %5514 }
0x29e3   :  { %v5517_v29 = vsub.f32 %v5507_v8, %v5515_v7 }
0x29e5   :  { %v8670_v57 = vpop.eup %8669  ;;  %v5520_v31 = vmul.f32 1.442695, %v5517_v29 }
0x29e6   :  { %v8672_v33 = vpop.eup %8671  ;;  %v5395_v35 = vsel %vm232_vm8, %v8670_v57, 0.0 }
0x29e7   :  { %8673 = vpow2.f32 %v5520_v31  ;;  %v5392_v36 = vsel %vm232_vm8, %v8672_v33, 0.0  ;;  %5396 = vadd.xlane.f32.xlu1 %v5395_v35 }
0x29e8   :  { %5393 = vadd.xlane.f32.xlu0 %v5392_v36 }
0x29ed   :  { %v10339_v15 = vpop.eup %8673 }
0x29ee   :  { %v5525_v21 = vsel %vm232_vm8, %v10339_v15, 0.0 }
0x29f0   :  { %5526 = vadd.xlane.f32.xlu0 %v5525_v21 }
0x29f7   :  { %v5512_v39 = vpop.xlane.xlu0 %5511 }
0x29f8   :  { %v5516_v14 = vsub.f32 %v5479_v10, %v5512_v39 }
0x29fa   :  { %v5518_v3 = vmul.f32 1.442695, %v5516_v14 }
0x29fc   :  { %8675 = vpow2.f32 %v5518_v3 }
0x29ff   :  { %v5642_v41 = vpop.xlane.xlu2 %5641 }
0x2a00   :  { %v5646_v61 = vsub.f32 %v5609_v55, %v5642_v41  ;;  %8352 = vrot.lane.b32.xlu1 %v10333_v43, %s10893_s30 }
0x2a02   :  { %v8676_v37 = vpop.eup %8675  ;;  %v5648_v16 = vmul.f32 1.442695, %v5646_v61  ;;  %v5645_v44 = vpop.xlane.xlu0 %5644 }
0x2a03   :  { %v5647_v40 = vsub.f32 %v5637_v58, %v5645_v44  ;;  %v5522_v46 = vsel %vm232_vm8, %v8676_v37, 0.0 }
0x2a04   :  { %8677 = vpow2.f32 %v5648_v16  ;;  %5523 = vadd.xlane.f32.xlu2 %v5522_v46 }
0x2a05   :  { %v5650_v48 = vmul.f32 1.442695, %v5647_v40 }
0x2a07   :  { %8679 = vpow2.f32 %v5650_v48  ;;  %v8164_v48 = vld [vmem:[%s10907_s13 + $0x8] sm:$0xff] }
0x2a08   :  { %5892 = vmatpush.msra.mxu0 %v8164_v48  ;;  %5915 = vmatpush.msra.mxu1 %v8164_v48 }
0x2a0a   :  { %v10346_v49 = vpop.eup %8677  ;;  %v5772_v34 = vpop.xlane.xlu1 %5771 }
0x2a0b   :  { %v5776_v32 = vsub.f32 %v5739_v9, %v5772_v34  ;;  %v5652_v50 = vsel %vm232_vm8, %v10346_v49, 0.0 }
0x2a0c   :  { %5653 = vadd.xlane.f32.xlu2 %v5652_v50 }
0x2a0d   :  { %v8680_v51 = vpop.eup %8679  ;;  %v5778_v54 = vmul.f32 1.442695, %v5776_v32 }
0x2a0e   :  { %v5655_v56 = vsel %vm232_vm8, %v8680_v51, 0.0 }
0x2a0f   :  { %8681 = vpow2.f32 %v5778_v54  ;;  %v5775_v59 = vpop.xlane.xlu2 %5774  ;;  %5656 = vadd.xlane.f32.xlu0 %v5655_v56 }
0x2a10   :  { %v5777_v47 = vsub.f32 %v5767_v19, %v5775_v59 }
0x2a12   :  { %v5780_v60 = vmul.f32 1.442695, %v5777_v47 }
0x2a14   :  { %8683 = vpow2.f32 %v5780_v60 }
0x2a15   :  { %v10351_v63 = vpop.eup %8681 }
0x2a16   :  { %v5782_v0 = vsel %vm232_vm8, %v10351_v63, 0.0 }
0x2a17   :  { %5783 = vadd.xlane.f32.xlu0 %v5782_v0 }
0x2a1a   :  { %v8684_v45 = vpop.eup %8683 }
0x2a1b   :  { %v5785_v38 = vsel %vm232_vm8, %v8684_v45, 0.0 }
0x2a1f   :  { %5786 = vadd.xlane.f32.xlu0 %v5785_v38 }
0x2a22   :  { %v8343_v1 = vpop.permute.xlu1 %8342 }
0x2a23   :  { %v8345_v2 = vunpack.i.h.bf16 %v8343_v1  ;;  %v8344_v62 = vunpack.i.l.bf16 %v8343_v1 }
0x2a24   :  { %8347 = vrot.lane.b32.xlu2 %v10333_v43, %s8847_s0 }
0x2a25   :  { %5423 = vmatpush.msra.mxu2 %v8344_v62  ;;  %5449 = vmatpush.msra.mxu3 %v8345_v2 }
0x2a33   :  { %8357 = vrot.lane.b32.xlu0 %v10333_v43, %s8848_s19 }
0x2a5a   :  { %v5397_v30 = vpop.xlane.xlu1 %5396 }
0x2a5b   :  { %8685 = vrcp.f32 %v5397_v30  ;;  %v5394_v4 = vpop.xlane.xlu0 %5393 }
0x2a5c   :  { %8687 = vrcp.f32 %v5394_v4 }
0x2a61   :  { %v8686_v6 = vpop.eup %8685 }
0x2a62   :  { %v8688_v8 = vpop.eup %8687  ;;  %v5401_v13 = vmul.f32 %v8686_v6, %v8670_v57 }
0x2a63   :  { %v5400_v10 = vmul.f32 %v8688_v8, %v8672_v33  ;;  %v5527_v55 = vpop.xlane.xlu0 %5526 }
0x2a64   :  { %8179 = vmatmul.msk.f32.vlgmr.msra.gmra.mxu3 %vm232_vm8, %v5401_v13  ;;  %8689 = vrcp.f32 %v5527_v55 }
0x2a65   :  { %8178 = vmatmul.msk.f32.vlgmr.msra.gmra.mxu2 %vm232_vm8, %v5400_v10 }
0x2a6a   :  { %v8690_v58 = vpop.eup %8689 }
0x2a6b   :  { %v5531_v23 = vmul.f32 %v8690_v58, %v10339_v15  ;;  %v8165_v58 = vld [vmem:[%s10908_s9 + $0x4] sm:$0xf] }
0x2a72   :  { %v8353_v18 = vpop.permute.xlu1 %8352 }
0x2a73   :  { %v8355_v25 = vunpack.i.h.bf16 %v8353_v18  ;;  %v8354_v26 = vunpack.i.l.bf16 %v8353_v18 }
0x2a77   :  { %v5524_v52 = vpop.xlane.xlu2 %5523 }
0x2a78   :  { %8691 = vrcp.f32 %v5524_v52 }
0x2a7e   :  { %v8692_v9 = vpop.eup %8691 }
0x2a7f   :  { %v5654_v11 = vpop.xlane.xlu2 %5653  ;;  %v5530_v24 = vmul.f32 %v8692_v9, %v8676_v37 }
0x2a80   :  { %8693 = vrcp.f32 %v5654_v11 }
0x2a82   :  { %v5657_v17 = vpop.xlane.xlu0 %5656 }
0x2a83   :  { %8695 = vrcp.f32 %v5657_v17 }
0x2a86   :  { %v8694_v27 = vpop.eup %8693 }
0x2a87   :  { %v8348_v19 = vpop.permute.xlu2 %8347  ;;  %v5660_v7 = vmul.f32 %v8694_v27, %v10346_v49 }
0x2a88   :  { %v8350_v22 = vunpack.i.h.bf16 %v8348_v19  ;;  %v8349_v43 = vunpack.i.l.bf16 %v8348_v19 }
0x2a89   :  { %v8696_v28 = vpop.eup %8695 }
0x2a8a   :  { %5553 = vmatpush.msrb.mxu2 %v8349_v43  ;;  %5579 = vmatpush.msrb.mxu3 %v8350_v22  ;;  %v5661_v29 = vmul.f32 %v8696_v28, %v8680_v51  ;;  %v5784_v57 = vpop.xlane.xlu0 %5783 }
0x2a8b   :  { %8184 = vmatmul.msk.f32.vlgmr.msrb.gmra.mxu2 %vm232_vm8, %v5530_v24  ;;  %8185 = vmatmul.msk.f32.vlgmr.msrb.gmra.mxu3 %vm232_vm8, %v5531_v23  ;;  %8697 = vrcp.f32 %v5784_v57 }
0x2a8c   :  { %5683 = vmatpush.msra.mxu2 %v8354_v26  ;;  %5709 = vmatpush.msra.mxu3 %v8355_v25 }
0x2a91   :  { %v8698_v33 = vpop.eup %8697 }
0x2a92   :  { %v5787_v31 = vpop.xlane.xlu0 %5786  ;;  %v5790_v39 = vmul.f32 %v8698_v33, %v10351_v63 }
0x2a93   :  { %8190 = vmatmul.msk.f32.vlgmr.msra.gmra.mxu2 %vm232_vm8, %v5660_v7  ;;  %8191 = vmatmul.msk.f32.vlgmr.msra.gmra.mxu3 %vm232_vm8, %v5661_v29  ;;  %8699 = vrcp.f32 %v5787_v31 }
0x2a99   :  { %v8700_v35 = vpop.eup %8699 }
0x2a9a   :  { %v5791_v14 = vmul.f32 %v8700_v35, %v8684_v45  ;;  %v5966_v35 = vperm.slane %v10266_v53, 2 }
0x2aa5   :  { %v8358_v36 = vpop.permute.xlu0 %8357 }
0x2aa6   :  { %v8360_v15 = vunpack.i.h.bf16 %v8358_v36  ;;  %v8359_v21 = vunpack.i.l.bf16 %v8358_v36 }
0x2aa8   :  { %5813 = vmatpush.msrb.mxu2 %v8359_v21  ;;  %5839 = vmatpush.msrb.mxu3 %v8360_v15  ;;  %v5969_v21 = vperm.slane %v10266_v53, 3 }
0x2aa9   :  { %8196 = vmatmul.msk.f32.vlgmr.msrb.gmra.mxu2 %vm232_vm8, %v5790_v39  ;;  %8197 = vmatmul.msk.f32.vlgmr.msrb.gmra.mxu3 %vm232_vm8, %v5791_v14 }
0x2aaa   :  { %8200 = vmatpush.msk.msra.mxu2 %vm361_vm11, %v8165_v58  ;;  %8202 = vmatpush.msk.msra.mxu3 %vm361_vm11, %v8165_v58 }
0x2ae7   :  { %v5451_v41 = vpop.f32.mrf.mxu3 }
0x2ae8   :  { %v5425_v3 = vpop.f32.mrf.mxu2 }
0x2b0e   :  { %v5555_v61 = vpop.f32.mrf.mxu2  ;;  %v5581_v37 = vpop.f32.mrf.mxu3 }
0x2b0f   :  { %5846 = vrot.lane.b32.xlu1 %v5555_v61, %s8849_s20  ;;  %5848 = vrot.lane.b32.xlu2 %v5581_v37, %s8849_s20 }
0x2b16   :  { %v5685_v16 = vpop.f32.mrf.mxu2  ;;  %v5711_v44 = vpop.f32.mrf.mxu3 }
0x2b17   :  { %5854 = vrot.lane.b32.xlu1 %v5685_v16, %s10889_s27  ;;  %5856 = vrot.lane.b32.xlu2 %v5711_v44, %s10889_s27  ;;  %v8167_v44 = vld [vmem:[%s10909_s8 + $0x18] sm:$0xff] }
0x2b18   :  { %6060 = vmatpush.msrb.mxu0 %v8167_v44  ;;  %6083 = vmatpush.msrb.mxu1 %v8167_v44 }
0x2b2c   :  { %v5815_v40 = vpop.f32.mrf.mxu2  ;;  %v5841_v46 = vpop.f32.mrf.mxu3 }
0x2b2d   :  { %5864 = vrot.lane.b32.xlu1 %v5841_v46, %s8850_s22  ;;  %5862 = vrot.lane.b32.xlu0 %v5815_v40, %s8850_s22  ;;  %v8166_v40 = vld [vmem:[%s10909_s8 + $0x10] sm:$0xff]  ;;  %v8406_v46 = vld [vmem:[%s10910_s24 + $0x1] ss:$0 sm:$0xff] }
0x2b2e   :  { %6061 = vmatpush.msrb.mxu0 %v8166_v40  ;;  %6084 = vmatpush.msrb.mxu1 %v8166_v40 }
0x2b69   :  { %v5849_v34 = vpop.permute.xlu2 %5848 }
0x2b6a   :  { %v5869_v51 = vsel %vm4450_vm12, %v5451_v41, %v5849_v34 }
0x2b71   :  { %v5857_v50 = vpop.permute.xlu2 %5856 }
0x2b72   :  { %v5871_v56 = vsel %vm113_vm1, %v5869_v51, %v5857_v50 }
0x2b81   :  { %v5847_v49 = vpop.permute.xlu1 %5846 }
0x2b82   :  { %v5868_v54 = vsel %vm4450_vm12, %v5425_v3, %v5847_v49 }
0x2b89   :  { %v5855_v32 = vpop.permute.xlu1 %5854 }
0x2b8a   :  { %v5870_v59 = vsel %vm113_vm1, %v5868_v54, %v5855_v32 }
0x2b9f   :  { %v5865_v47 = vpop.permute.xlu1 %5864  ;;  %v5863_v60 = vpop.permute.xlu0 %5862 }
0x2ba0   :  { %v5873_v63 = vsel %vm4994_vm13, %v5871_v56, %v5865_v47  ;;  %v5872_v0 = vsel %vm4994_vm13, %v5870_v59, %v5863_v60 }
0x2ba1   :  { %8198 = vmatmul.msk.f32.vlgmr.msra.gmra.mxu0 %vm232_vm8, %v5872_v0  ;;  %8199 = vmatmul.msk.f32.vlgmr.msra.gmra.mxu1 %vm232_vm8, %v5873_v63 }
0x2c1e   :  { %v5894_v45 = vpop.f32.mrf.mxu0  ;;  %v5917_v38 = vpop.f32.mrf.mxu1 }
0x2c1f   :  { %v10389_v1 = vadd.f32 %v5894_v45, %v10247_v5  ;;  %v10392_v2 = vadd.f32 %v5917_v38, %v10242_v12 }
0x2c21   :  { %v5925_v62 = vsel %vm113_vm1, %v10392_v2, 0.0  ;;  %v5922_v30 = vsel %vm113_vm1, %v10389_v1, 0.0 }
0x2c22   :  { %5926 = vadd.xlane.f32.xlu0 %v5925_v62  ;;  %5923 = vadd.xlane.f32.xlu2 %v5922_v30 }
0x2c95   :  { %v5924_v4 = vpop.xlane.xlu2 %5923  ;;  %v5927_v6 = vpop.xlane.xlu0 %5926 }
0x2c96   :  { %v5928_v8 = vmul.f32 %v5924_v4, %v10051_v42  ;;  %v5929_v13 = vmul.f32 %v5927_v6, %v10051_v42 }
0x2c98   :  { %v5930_v5 = vsub.f32 %v10389_v1, %v5928_v8  ;;  %v5931_v10 = vsub.f32 %v10392_v2, %v5929_v13 }
0x2c9a   :  { %v5932_v12 = vmul.f32 %v5930_v5, %v5930_v5  ;;  %v5933_v52 = vmul.f32 %v5931_v10, %v5931_v10 }
0x2c9c   :  { %v5934_v55 = vsel %vm113_vm1, %v5932_v12, 0.0  ;;  %v5937_v11 = vsel %vm113_vm1, %v5933_v52, 0.0 }
0x2c9d   :  { %5935 = vadd.xlane.f32.xlu1 %v5934_v55  ;;  %5938 = vadd.xlane.f32.xlu2 %v5937_v11 }
0x2d10   :  { %v5936_v17 = vpop.xlane.xlu1 %5935  ;;  %v5939_v9 = vpop.xlane.xlu2 %5938 }
0x2d11   :  { %v5940_v18 = vmul.f32 %v5936_v17, %v10051_v42  ;;  %v5941_v19 = vmul.f32 %v5939_v9, %v10051_v42 }
0x2d13   :  { %v5942_v22 = vadd.f32 1e-05, %v5940_v18  ;;  %v5943_v43 = vadd.f32 1e-05, %v5941_v19 }
0x2d15   :  { %8701 = vrsqrt.f32 %v5942_v22  ;;  %vm5950_vm5 = vweird.f32 %v5942_v22  ;;  %vm5960_vm7 = vweird.f32 %v5943_v43 }
0x2d16   :  { %8703 = vrsqrt.f32 %v5943_v43 }
0x2d1b   :  { %v8702_v23 = vpop.eup %8701 }
0x2d1c   :  { %v8704_v24 = vpop.eup %8703  ;;  %v5945_v25 = vmul.f32 %v8702_v23, %v5942_v22  ;;  %vm5951_vm4 = vweird.f32 %v8702_v23 }
0x2d1d   :  { %v5955_v26 = vmul.f32 %v8704_v24, %v5943_v43  ;;  %vm5961_vm9 = vweird.f32 %v8704_v24  ;;  %vm5952_vm6 = vmor %vm5950_vm5, %vm5951_vm4 }
0x2d1e   :  { %v5946_v27 = vmul.f32 %v8702_v23, %v5945_v25  ;;  %vm5962_vm10 = vmor %vm5960_vm7, %vm5961_vm9 }
0x2d1f   :  { %v5956_v28 = vmul.f32 %v8704_v24, %v5955_v26 }
0x2d20   :  { %v5947_v7 = vmul.f32 0.5, %v5946_v27  ;;  %v8206_v27 = vld [vmem:[%s10905_s23 + $0x8] sm:$0xf] }
0x2d21   :  { %v5957_v29 = vmul.f32 0.5, %v5956_v28  ;;  %8213 = vmatpush.msk.msrb.mxu2 %vm361_vm11, %v8206_v27  ;;  %8215 = vmatpush.msk.msrb.mxu3 %vm361_vm11, %v8206_v27 }
0x2d22   :  { %v5948_v57 = vsub.f32 1.5, %v5947_v7 }
0x2d23   :  { %v5958_v31 = vsub.f32 1.5, %v5957_v29 }
0x2d24   :  { %v5949_v33 = vmul.f32 %v8702_v23, %v5948_v57 }
0x2d25   :  { %v5959_v36 = vmul.f32 %v8704_v24, %v5958_v31 }
0x2d26   :  { %v5953_v15 = vsel %vm5952_vm6, %v8702_v23, %v5949_v33 }
0x2d27   :  { %v5964_v39 = vmul.f32 %v5953_v15, %v5930_v5  ;;  %v5963_v14 = vsel %vm5962_vm10, %v8704_v24, %v5959_v36 }
0x2d28   :  { %v5965_v3 = vmul.f32 %v5963_v14, %v5931_v10  ;;  %v6042_v10 = vperm.slane %v10266_v53, 4 }
0x2d29   :  { %v5967_v41 = vmul.f32 %v5966_v35, %v5964_v39 }
0x2d2a   :  { %v5968_v61 = vmul.f32 %v5966_v35, %v5965_v3 }
0x2d2b   :  { %v5970_v37 = vadd.f32 %v5969_v21, %v5967_v41 }
0x2d2c   :  { %v5971_v16 = vadd.f32 %v5969_v21, %v5968_v61  ;;  %v10453_v61 = vld [vmem:[%s10906_s3 + $0x10] sm:$0x1f] }
0x2d2d   :  { %8201 = vmatmul.msk.f32.vlgmr.msra.gmra.mxu2 %vm113_vm1, %v5970_v37  ;;  %v6148_v40 = vperm.slane %v10453_v61, 0 }
0x2d2e   :  { %8203 = vmatmul.msk.f32.vlgmr.msra.gmra.mxu3 %vm113_vm1, %v5971_v16 }
0x2db0   :  { %v5998_v48 = vpop.f32.mrf.mxu2 }
0x2db1   :  { %v5999_v49 = vadd.f32 %v8406_v46, %v5998_v48  ;;  %v6021_v34 = vpop.f32.mrf.mxu3 }
0x2db2   :  { %v6022_v32 = vadd.f32 %v8406_v46, %v6021_v34 }
0x2db3   :  { %v6024_v50 = vmul.f32 %v5999_v49, %v5999_v49 }
0x2db4   :  { %v6025_v51 = vmul.f32 %v6022_v32, %v6022_v32 }
0x2db5   :  { %v6026_v54 = vmul.f32 %v6024_v50, %v5999_v49 }
0x2db6   :  { %v6027_v56 = vmul.f32 %v6025_v51, %v6022_v32 }
0x2db7   :  { %v6028_v59 = vmul.f32 0.044715, %v6026_v54 }
0x2db8   :  { %v6029_v47 = vmul.f32 0.044715, %v6027_v56 }
0x2db9   :  { %v6030_v60 = vadd.f32 %v6028_v59, %v5999_v49 }
0x2dba   :  { %v6031_v63 = vadd.f32 %v6029_v47, %v6022_v32 }
0x2dbb   :  { %v6032_v0 = vmul.f32 0.7978846, %v6030_v60 }
0x2dbc   :  { %v6033_v45 = vmul.f32 0.7978846, %v6031_v63 }
0x2dbd   :  { %8705 = vtanh.f32 %v6032_v0 }
0x2dbe   :  { %8707 = vtanh.f32 %v6033_v45 }
0x2dc3   :  { %v8706_v38 = vpop.eup %8705 }
0x2dc4   :  { %v8708_v62 = vpop.eup %8707  ;;  %v6036_v30 = vadd.f32 1.0, %v8706_v38 }
0x2dc5   :  { %v6037_v4 = vadd.f32 1.0, %v8708_v62 }
0x2dc6   :  { %v6038_v6 = vmul.f32 0.5, %v6036_v30 }
0x2dc7   :  { %v6039_v8 = vmul.f32 0.5, %v6037_v4 }
0x2dc8   :  { %v6040_v13 = vmul.f32 %v6038_v6, %v5999_v49  ;;  %v6151_v49 = vperm.slane %v10453_v61, 1 }
0x2dc9   :  { %v6041_v5 = vmul.f32 %v6039_v8, %v6022_v32 }
0x2dca   :  { %8204 = vmatmul.msk.f32.vlgmr.msrb.gmra.mxu0 %vm64_vm0, %v6040_v13 }
0x2dcb   :  { %8205 = vmatmul.msk.f32.vlgmr.msrb.gmra.mxu1 %vm64_vm0, %v6041_v5 }
0x2e47   :  { %v6063_v12 = vpop.f32.mrf.mxu0 }
0x2e48   :  { %v6064_v52 = vadd.f32 %v6063_v12, %v6042_v10  ;;  %v6086_v55 = vpop.f32.mrf.mxu1 }
0x2e49   :  { %v6087_v11 = vadd.f32 %v6086_v55, %v6042_v10 }
0x2e4a   :  { %v10428_v58 = vadd.f32 %v6064_v52, %v10389_v1 }
0x2e4b   :  { %v10431_v17 = vadd.f32 %v6087_v11, %v10392_v2 }
0x2e4c   :  { %v6104_v9 = vsel %vm113_vm1, %v10428_v58, 0.0 }
0x2e4d   :  { %6105 = vadd.xlane.f32.xlu0 %v6104_v9  ;;  %v6107_v18 = vsel %vm113_vm1, %v10431_v17, 0.0 }
0x2e4e   :  { %6108 = vadd.xlane.f32.xlu1 %v6107_v18 }
0x2ec0   :  { %v6106_v19 = vpop.xlane.xlu0 %6105 }
0x2ec1   :  { %v6109_v53 = vpop.xlane.xlu1 %6108  ;;  %v6110_v22 = vmul.f32 %v6106_v19, %v10051_v42 }
0x2ec2   :  { %v6111_v43 = vmul.f32 %v6109_v53, %v10051_v42 }
0x2ec3   :  { %v6112_v1 = vsub.f32 %v10428_v58, %v6110_v22 }
0x2ec4   :  { %v6113_v23 = vsub.f32 %v10431_v17, %v6111_v43 }
0x2ec5   :  { %v6114_v2 = vmul.f32 %v6112_v1, %v6112_v1 }
0x2ec6   :  { %v6115_v24 = vmul.f32 %v6113_v23, %v6113_v23 }
0x2ec7   :  { %v6116_v25 = vsel %vm113_vm1, %v6114_v2, 0.0 }
0x2ec8   :  { %v6119_v26 = vsel %vm113_vm1, %v6115_v24, 0.0  ;;  %6117 = vadd.xlane.f32.xlu2 %v6116_v25 }
0x2ec9   :  { %6120 = vadd.xlane.f32.xlu0 %v6119_v26 }
0x2f3b   :  { %v6118_v28 = vpop.xlane.xlu2 %6117 }
0x2f3c   :  { %v6122_v7 = vmul.f32 %v6118_v28, %v10051_v42  ;;  %v6121_v29 = vpop.xlane.xlu0 %6120 }
0x2f3d   :  { %v6123_v57 = vmul.f32 %v6121_v29, %v10051_v42 }
0x2f3e   :  { %v6124_v31 = vadd.f32 1e-05, %v6122_v7 }
0x2f3f   :  { %v6125_v33 = vadd.f32 1e-05, %v6123_v57 }
0x2f40   :  { %8709 = vrsqrt.f32 %v6124_v31  ;;  %vm6132_vm14 = vweird.f32 %v6124_v31 }
0x2f41   :  { %8711 = vrsqrt.f32 %v6125_v33  ;;  %vm6142_vm4 = vweird.f32 %v6125_v33 }
0x2f46   :  { %v8710_v35 = vpop.eup %8709 }
0x2f47   :  { %v8712_v36 = vpop.eup %8711  ;;  %v6127_v15 = vmul.f32 %v8710_v35, %v6124_v31  ;;  %vm6133_vm15 = vweird.f32 %v8710_v35 }
0x2f48   :  { %v6137_v21 = vmul.f32 %v8712_v36, %v6125_v33  ;;  %vm6143_vm2 = vweird.f32 %v8712_v36  ;;  %vm6134_vm3 = vmor %vm6132_vm14, %vm6133_vm15 }
0x2f49   :  { %v6128_v39 = vmul.f32 %v8710_v35, %v6127_v15  ;;  %vm6144_vm9 = vmor %vm6142_vm4, %vm6143_vm2 }
0x2f4a   :  { %v6138_v14 = vmul.f32 %v8712_v36, %v6137_v21 }
0x2f4b   :  { %v6129_v3 = vmul.f32 0.5, %v6128_v39 }
0x2f4c   :  { %v6139_v41 = vmul.f32 0.5, %v6138_v14 }
0x2f4d   :  { %v6130_v37 = vsub.f32 1.5, %v6129_v3 }
0x2f4e   :  { %v6140_v16 = vsub.f32 1.5, %v6139_v41 }
0x2f4f   :  { %v6131_v44 = vmul.f32 %v8710_v35, %v6130_v37 }
0x2f50   :  { %v6141_v46 = vmul.f32 %v8712_v36, %v6140_v16 }
0x2f51   :  { %v6135_v48 = vsel %vm6134_vm3, %v8710_v35, %v6131_v44 }
0x2f52   :  { %v6146_v34 = vmul.f32 %v6135_v48, %v6112_v1  ;;  %v6145_v32 = vsel %vm6144_vm9, %v8712_v36, %v6141_v46 }
0x2f53   :  { %v6147_v50 = vmul.f32 %v6145_v32, %v6113_v23 }
0x2f54   :  { %v6149_v51 = vmul.f32 %v6148_v40, %v6146_v34 }
0x2f55   :  { %v6150_v54 = vmul.f32 %v6148_v40, %v6147_v50 }
0x2f56   :  { %v6152_v56 = vadd.f32 %v6151_v49, %v6149_v51 }
0x2f57   :  { %v6153_v59 = vadd.f32 %v6151_v49, %v6150_v54 }
0x2f58   :  { %8214 = vmatmul.msk.f32.vlgmr.msrb.gmra.mxu2 %vm113_vm1, %v6152_v56 }
0x2f59   :  { %8216 = vmatmul.msk.f32.vlgmr.msrb.gmra.mxu3 %vm113_vm1, %v6153_v59 }
0x2fdb   :  { %v10459_v47 = vpop.f32.mrf.mxu2 }
0x2fdc   :  { %v10461_v60 = vpop.f32.mrf.mxu3  ;;  %6333 = vrot.lane.b32.xlu0 %v10459_v47, %s8843_s7  ;;  %6204 = vrot.lane.b32.xlu1 %v10459_v47, %s10896_s1 }
0x2fdd   :  { %6231 = vrot.lane.b32.xlu2 %v10461_v60, %s10896_s1  ;;  %v8366_v7 = vpack.i.bf16 %v10461_v60, %v10459_v47 }
0x2fe4   :  { %6331 = vrot.lane.b32.xlu1 %v10459_v47, %s8844_s21  ;;  %6359 = vrot.lane.b32.xlu0 %v10461_v60, %s8844_s21 }
0x2fe5   :  { %6361 = vrot.lane.b32.xlu2 %v10461_v60, %s8843_s7 }
0x2fec   :  { %6491 = vrot.lane.b32.xlu1 %v10461_v60, %s10898_s29  ;;  %6461 = vrot.lane.b32.xlu0 %v10459_v47, %s10897_s28 }
0x2fed   :  { %6463 = vrot.lane.b32.xlu2 %v10459_v47, %s10898_s29 }
0x2ff4   :  { %6593 = vrot.lane.b32.xlu1 %v10459_v47, %s8845_s4  ;;  %6621 = vrot.lane.b32.xlu0 %v10461_v60, %s8845_s4 }
0x2ff5   :  { %6489 = vrot.lane.b32.xlu2 %v10461_v60, %s10897_s28 }
0x2ffc   :  { %6619 = vrot.lane.b32.xlu1 %v10461_v60, %s8846_s26 }
0x2ffd   :  { %6591 = vrot.lane.b32.xlu2 %v10459_v47, %s8846_s26 }
0x3037   :  { %v6232_v63 = vpop.permute.xlu2 %6231 }
0x3038   :  { %8219 = vmatpush.xpose.msk.msra.mxu1 %vm4450_vm12, %v6232_v63 }
0x303b   :  { %8220 = vmatmul.msk.f32.vlgmr.msra.gmra.mxu1 %vm4450_vm12, %v10461_v60 }
0x303f   :  { %v6362_v0 = vpop.permute.xlu2 %6361 }
0x3040   :  { %8225 = vmatpush.xpose.msk.msrb.mxu1 %vm4450_vm12, %v6362_v0 }
0x3047   :  { %v6464_v62 = vpop.permute.xlu2 %6463 }
0x304e   :  { %v6205_v45 = vpop.permute.xlu1 %6204  ;;  %v6334_v38 = vpop.permute.xlu0 %6333 }
0x304f   :  { %8217 = vmatpush.xpose.msk.msra.mxu0 %vm4450_vm12, %v6205_v45  ;;  %v6490_v13 = vpop.permute.xlu2 %6489 }
0x3052   :  { %8218 = vmatmul.msk.f32.vlgmr.msra.gmra.mxu0 %vm4450_vm12, %v10459_v47 }
0x3053   :  { %8223 = vmatpush.xpose.msk.msrb.mxu0 %vm4450_vm12, %v6334_v38 }
0x3056   :  { %v6332_v30 = vpop.permute.xlu1 %6331  ;;  %v6360_v4 = vpop.permute.xlu0 %6359 }
0x3057   :  { %8229 = vmatpush.xpose.msk.msra.mxu0 %vm4450_vm12, %v6464_v62  ;;  %8226 = vmatmul.msk.f32.vlgmr.msrb.gmra.mxu1 %vm4450_vm12, %v6360_v4  ;;  %v6592_v12 = vpop.permute.xlu2 %6591 }
0x305a   :  { %8224 = vmatmul.msk.f32.vlgmr.msrb.gmra.mxu0 %vm4450_vm12, %v6332_v30 }
0x305e   :  { %v6492_v6 = vpop.permute.xlu1 %6491  ;;  %v6462_v8 = vpop.permute.xlu0 %6461 }
0x305f   :  { %8231 = vmatpush.xpose.msk.msra.mxu1 %vm4450_vm12, %v6492_v6 }
0x3062   :  { %8230 = vmatmul.msk.f32.vlgmr.msra.gmra.mxu0 %vm4450_vm12, %v6462_v8  ;;  %8232 = vmatmul.msk.f32.vlgmr.msra.gmra.mxu1 %vm4450_vm12, %v6490_v13 }
0x3066   :  { %v6594_v5 = vpop.permute.xlu1 %6593  ;;  %v6622_v10 = vpop.permute.xlu0 %6621 }
0x3067   :  { %8235 = vmatpush.xpose.msk.msrb.mxu0 %vm4450_vm12, %v6594_v5  ;;  %8237 = vmatpush.xpose.msk.msrb.mxu1 %vm4450_vm12, %v6622_v10 }
0x306a   :  { %8236 = vmatmul.msk.f32.vlgmr.msrb.gmra.mxu0 %vm4450_vm12, %v6592_v12 }
0x306e   :  { %v6620_v52 = vpop.permute.xlu1 %6619 }
0x306f   :  { %8238 = vmatmul.msk.f32.vlgmr.msrb.gmra.mxu1 %vm4450_vm12, %v6620_v52 }
0x30b8   :  { %v6254_v55 = vpop.f32.mrf.mxu1 }
0x30b9   :  { %v6260_v11 = vsel %vm232_vm8, %v6254_v55, -inf }
0x30ba   :  { %6261 = vmax.xlane.f32.xlu2 %v6260_v11 }
0x30cf   :  { %v6227_v9 = vpop.f32.mrf.mxu0 }
0x30d0   :  { %v6257_v18 = vsel %vm232_vm8, %v6227_v9, -inf }
0x30d1   :  { %6258 = vmax.xlane.f32.xlu0 %v6257_v18 }
0x30d4   :  { %v6384_v19 = vpop.f32.mrf.mxu1 }
0x30d5   :  { %v6390_v43 = vsel %vm232_vm8, %v6384_v19, -inf }
0x30d7   :  { %v6356_v53 = vpop.f32.mrf.mxu0 }
0x30d8   :  { %v6387_v22 = vsel %vm232_vm8, %v6356_v53, -inf }
0x30d9   :  { %6388 = vmax.xlane.f32.xlu1 %v6387_v22  ;;  %6391 = vmax.xlane.f32.xlu0 %v6390_v43 }
0x30df   :  { %v6486_v1 = vpop.f32.mrf.mxu0  ;;  %v6514_v23 = vpop.f32.mrf.mxu1 }
0x30e0   :  { %v6520_v2 = vsel %vm232_vm8, %v6514_v23, -inf  ;;  %v6517_v24 = vsel %vm232_vm8, %v6486_v1, -inf }
0x30e1   :  { %6521 = vmax.xlane.f32.xlu1 %v6520_v2  ;;  %6518 = vmax.xlane.f32.xlu2 %v6517_v24 }
0x30e7   :  { %v6616_v25 = vpop.f32.mrf.mxu0 }
0x30e8   :  { %v6647_v26 = vsel %vm232_vm8, %v6616_v25, -inf }
0x30e9   :  { %6648 = vmax.xlane.f32.xlu0 %v6647_v26 }
0x30ec   :  { %v6644_v27 = vpop.f32.mrf.mxu1 }
0x30ed   :  { %v6650_v28 = vsel %vm232_vm8, %v6644_v27, -inf }
0x30ee   :  { %6651 = vmax.xlane.f32.xlu2 %v6650_v28 }
0x3106   :  { %8367 = vrot.lane.b32.xlu2 %v8366_v7, %s8847_s0 }
0x312d   :  { %v6262_v29 = vpop.xlane.xlu2 %6261 }
0x312e   :  { %v6264_v57 = vsub.f32 %v6254_v55, %v6262_v29 }
0x3130   :  { %v6267_v31 = vmul.f32 1.442695, %v6264_v57 }
0x3132   :  { %8713 = vpow2.f32 %v6267_v31 }
0x3138   :  { %v10520_v33 = vpop.eup %8713 }
0x3139   :  { %v6272_v35 = vsel %vm232_vm8, %v10520_v33, 0.0 }
0x313a   :  { %6273 = vadd.xlane.f32.xlu0 %v6272_v35 }
0x3144   :  { %v6259_v36 = vpop.xlane.xlu0 %6258 }
0x3145   :  { %v6263_v15 = vsub.f32 %v6227_v9, %v6259_v36 }
0x3147   :  { %v6265_v21 = vmul.f32 1.442695, %v6263_v15 }
0x3149   :  { %8715 = vpow2.f32 %v6265_v21 }
0x314c   :  { %v6389_v39 = vpop.xlane.xlu1 %6388  ;;  %v6392_v14 = vpop.xlane.xlu0 %6391 }
0x314d   :  { %v6393_v3 = vsub.f32 %v6356_v53, %v6389_v39  ;;  %v6394_v41 = vsub.f32 %v6384_v19, %v6392_v14 }
0x314e   :  { %8362 = vrot.lane.b32.xlu0 %v8366_v7, %s10901_s18 }
0x314f   :  { %v8716_v37 = vpop.eup %8715  ;;  %v6395_v16 = vmul.f32 1.442695, %v6393_v3  ;;  %v6397_v44 = vmul.f32 1.442695, %v6394_v41 }
0x3150   :  { %v6269_v40 = vsel %vm232_vm8, %v8716_v37, 0.0 }
0x3151   :  { %8717 = vpow2.f32 %v6395_v16  ;;  %6270 = vadd.xlane.f32.xlu1 %v6269_v40 }
0x3152   :  { %8719 = vpow2.f32 %v6397_v44 }
0x3154   :  { %v6522_v46 = vpop.xlane.xlu1 %6521  ;;  %v6519_v48 = vpop.xlane.xlu2 %6518 }
0x3155   :  { %v6524_v49 = vsub.f32 %v6514_v23, %v6522_v46  ;;  %v6523_v34 = vsub.f32 %v6486_v1, %v6519_v48 }
0x3157   :  { %v8718_v32 = vpop.eup %8717  ;;  %v6527_v50 = vmul.f32 1.442695, %v6524_v49  ;;  %v6525_v51 = vmul.f32 1.442695, %v6523_v34 }
0x3158   :  { %v8720_v54 = vpop.eup %8719  ;;  %v6399_v56 = vsel %vm232_vm8, %v8718_v32, 0.0 }
0x3159   :  { %8721 = vpow2.f32 %v6527_v50  ;;  %6400 = vadd.xlane.f32.xlu2 %v6399_v56  ;;  %v6402_v59 = vsel %vm232_vm8, %v8720_v54, 0.0 }
0x315a   :  { %8723 = vpow2.f32 %v6525_v51  ;;  %6403 = vadd.xlane.f32.xlu1 %v6402_v59  ;;  %v8207_v59 = vld [vmem:[%s10907_s13 + $0x10] sm:$0xff] }
0x315b   :  { %6769 = vmatpush.msra.mxu0 %v8207_v59  ;;  %6792 = vmatpush.msra.mxu1 %v8207_v59 }
0x315c   :  { %v6649_v47 = vpop.xlane.xlu0 %6648 }
0x315d   :  { %v6653_v60 = vsub.f32 %v6616_v25, %v6649_v47 }
0x315f   :  { %v10528_v63 = vpop.eup %8721  ;;  %v6655_v0 = vmul.f32 1.442695, %v6653_v60 }
0x3160   :  { %v8724_v45 = vpop.eup %8723  ;;  %v6532_v38 = vsel %vm232_vm8, %v10528_v63, 0.0 }
0x3161   :  { %8725 = vpow2.f32 %v6655_v0  ;;  %v6529_v62 = vsel %vm232_vm8, %v8724_v45, 0.0  ;;  %v6652_v30 = vpop.xlane.xlu2 %6651 }
0x3162   :  { %6530 = vadd.xlane.f32.xlu2 %v6529_v62  ;;  %6533 = vadd.xlane.f32.xlu1 %v6532_v38  ;;  %v6654_v4 = vsub.f32 %v6644_v27, %v6652_v30 }
0x3164   :  { %v6657_v13 = vmul.f32 1.442695, %v6654_v4 }
0x3166   :  { %8727 = vpow2.f32 %v6657_v13 }
0x3167   :  { %v10533_v6 = vpop.eup %8725 }
0x3168   :  { %v6659_v8 = vsel %vm232_vm8, %v10533_v6, 0.0 }
0x3169   :  { %v8368_v55 = vpop.permute.xlu2 %8367 }
0x316a   :  { %6660 = vadd.xlane.f32.xlu1 %v6659_v8  ;;  %v8369_v19 = vunpack.i.l.bf16 %v8368_v55  ;;  %v8370_v22 = vunpack.i.h.bf16 %v8368_v55 }
0x316c   :  { %v8728_v5 = vpop.eup %8727 }
0x316d   :  { %v6662_v10 = vsel %vm232_vm8, %v8728_v5, 0.0 }
0x3178   :  { %6663 = vadd.xlane.f32.xlu0 %v6662_v10 }
0x317a   :  { %8377 = vrot.lane.b32.xlu2 %v8366_v7, %s8848_s19 }
0x3183   :  { %8372 = vrot.lane.b32.xlu1 %v8366_v7, %s10893_s30 }
0x31ad   :  { %v6274_v12 = vpop.xlane.xlu0 %6273 }
0x31ae   :  { %8729 = vrcp.f32 %v6274_v12 }
0x31b4   :  { %v8730_v52 = vpop.eup %8729 }
0x31b5   :  { %v6278_v53 = vmul.f32 %v8730_v52, %v10520_v33 }
0x31c0   :  { %v8363_v11 = vpop.permute.xlu0 %8362 }
0x31c1   :  { %v8365_v9 = vunpack.i.h.bf16 %v8363_v11  ;;  %v8364_v18 = vunpack.i.l.bf16 %v8363_v11 }
0x31c3   :  { %6300 = vmatpush.msra.mxu2 %v8364_v18  ;;  %6326 = vmatpush.msra.mxu3 %v8365_v9 }
0x31c4   :  { %8222 = vmatmul.msk.f32.vlgmr.msra.gmra.mxu3 %vm232_vm8, %v6278_v53  ;;  %v6271_v43 = vpop.xlane.xlu1 %6270 }
0x31c5   :  { %6430 = vmatpush.msrb.mxu2 %v8369_v19  ;;  %6456 = vmatpush.msrb.mxu3 %v8370_v22  ;;  %8731 = vrcp.f32 %v6271_v43 }
0x31cb   :  { %v8732_v1 = vpop.eup %8731 }
0x31cc   :  { %v6277_v23 = vmul.f32 %v8732_v1, %v8716_v37  ;;  %v6401_v2 = vpop.xlane.xlu2 %6400 }
0x31cd   :  { %8733 = vrcp.f32 %v6401_v2  ;;  %v6404_v24 = vpop.xlane.xlu1 %6403  ;;  %v8208_v2 = vld [vmem:[%s10908_s9 + $0x8] sm:$0xf] }
0x31ce   :  { %8735 = vrcp.f32 %v6404_v24  ;;  %8221 = vmatmul.msk.f32.vlgmr.msra.gmra.mxu2 %vm232_vm8, %v6277_v23 }
0x31d3   :  { %v8734_v25 = vpop.eup %8733 }
0x31d4   :  { %v8736_v26 = vpop.eup %8735  ;;  %v6407_v27 = vmul.f32 %v8734_v25, %v8718_v32 }
0x31d5   :  { %v6408_v28 = vmul.f32 %v8736_v26, %v8720_v54  ;;  %v6534_v7 = vpop.xlane.xlu1 %6533  ;;  %v6531_v29 = vpop.xlane.xlu2 %6530 }
0x31d6   :  { %8227 = vmatmul.msk.f32.vlgmr.msrb.gmra.mxu2 %vm232_vm8, %v6407_v27  ;;  %8737 = vrcp.f32 %v6531_v29 }
0x31d7   :  { %8228 = vmatmul.msk.f32.vlgmr.msrb.gmra.mxu3 %vm232_vm8, %v6408_v28  ;;  %8739 = vrcp.f32 %v6534_v7 }
0x31dc   :  { %v8738_v31 = vpop.eup %8737 }
0x31dd   :  { %v6661_v57 = vpop.xlane.xlu1 %6660  ;;  %v8740_v35 = vpop.eup %8739  ;;  %v6537_v14 = vmul.f32 %v8738_v31, %v8724_v45 }
0x31de   :  { %v8378_v36 = vpop.permute.xlu2 %8377  ;;  %8741 = vrcp.f32 %v6661_v57  ;;  %v6538_v3 = vmul.f32 %v8740_v35, %v10528_v63 }
0x31df   :  { %v8380_v41 = vunpack.i.h.bf16 %v8378_v36  ;;  %v8379_v37 = vunpack.i.l.bf16 %v8378_v36  ;;  %v6846_v36 = vperm.slane %v10453_v61, 3 }
0x31e4   :  { %v8742_v16 = vpop.eup %8741 }
0x31e5   :  { %v6667_v40 = vmul.f32 %v8742_v16, %v10533_v6 }
0x31eb   :  { %v6664_v33 = vpop.xlane.xlu0 %6663 }
0x31ec   :  { %8743 = vrcp.f32 %v6664_v33  ;;  %v6843_v33 = vperm.slane %v10453_v61, 2 }
0x31f2   :  { %v8744_v44 = vpop.eup %8743 }
0x31f3   :  { %v6668_v46 = vmul.f32 %v8744_v44, %v8728_v5 }
0x31f5   :  { %v8373_v15 = vpop.permute.xlu1 %8372 }
0x31f6   :  { %v8375_v21 = vunpack.i.h.bf16 %v8373_v15  ;;  %v8374_v39 = vunpack.i.l.bf16 %v8373_v15 }
0x31f8   :  { %6560 = vmatpush.msra.mxu2 %v8374_v39  ;;  %6586 = vmatpush.msra.mxu3 %v8375_v21 }
0x31f9   :  { %8233 = vmatmul.msk.f32.vlgmr.msra.gmra.mxu2 %vm232_vm8, %v6537_v14  ;;  %8234 = vmatmul.msk.f32.vlgmr.msra.gmra.mxu3 %vm232_vm8, %v6538_v3 }
0x31fa   :  { %6690 = vmatpush.msrb.mxu2 %v8379_v37  ;;  %6716 = vmatpush.msrb.mxu3 %v8380_v41 }
0x31fc   :  { %8243 = vmatpush.msk.msra.mxu2 %vm361_vm11, %v8208_v2  ;;  %8245 = vmatpush.msk.msra.mxu3 %vm361_vm11, %v8208_v2 }
0x3201   :  { %8239 = vmatmul.msk.f32.vlgmr.msrb.gmra.mxu2 %vm232_vm8, %v6667_v40  ;;  %8240 = vmatmul.msk.f32.vlgmr.msrb.gmra.mxu3 %vm232_vm8, %v6668_v46 }
0x3247   :  { %v6328_v49 = vpop.f32.mrf.mxu3 }
0x3251   :  { %v6302_v48 = vpop.f32.mrf.mxu2 }
0x3259   :  { %v6432_v34 = vpop.f32.mrf.mxu2 }
0x325a   :  { %v6458_v32 = vpop.f32.mrf.mxu3  ;;  %6723 = vrot.lane.b32.xlu2 %v6432_v34, %s8849_s20 }
0x325b   :  { %6725 = vrot.lane.b32.xlu1 %v6458_v32, %s8849_s20 }
0x327c   :  { %v6562_v50 = vpop.f32.mrf.mxu2  ;;  %v6588_v51 = vpop.f32.mrf.mxu3 }
0x327d   :  { %6733 = vrot.lane.b32.xlu1 %v6588_v51, %s10889_s27  ;;  %6731 = vrot.lane.b32.xlu2 %v6562_v50, %s10889_s27  ;;  %v8210_v51 = vld [vmem:[%s10909_s8 + $0x28] sm:$0xff] }
0x327e   :  { %6937 = vmatpush.msrb.mxu0 %v8210_v51  ;;  %6960 = vmatpush.msrb.mxu1 %v8210_v51 }
0x3284   :  { %v6692_v54 = vpop.f32.mrf.mxu2  ;;  %v6718_v56 = vpop.f32.mrf.mxu3 }
0x3285   :  { %6741 = vrot.lane.b32.xlu0 %v6718_v56, %s8850_s22  ;;  %6739 = vrot.lane.b32.xlu2 %v6692_v54, %s8850_s22  ;;  %v8209_v54 = vld [vmem:[%s10909_s8 + $0x20] sm:$0xff] }
0x3286   :  { %6938 = vmatpush.msrb.mxu0 %v8209_v54  ;;  %6961 = vmatpush.msrb.mxu1 %v8209_v54  ;;  %v8407_v56 = vld [vmem:[%s10910_s24 + $0x2] ss:$0 sm:$0xff] }
0x32b4   :  { %v6724_v47 = vpop.permute.xlu2 %6723 }
0x32b5   :  { %v6745_v63 = vsel %vm4450_vm12, %v6302_v48, %v6724_v47 }
0x32cd   :  { %v6726_v62 = vpop.permute.xlu1 %6725 }
0x32ce   :  { %v6746_v4 = vsel %vm4450_vm12, %v6328_v49, %v6726_v62 }
0x32d7   :  { %v6732_v60 = vpop.permute.xlu2 %6731 }
0x32d8   :  { %v6747_v0 = vsel %vm113_vm1, %v6745_v63, %v6732_v60 }
0x32df   :  { %v6740_v45 = vpop.permute.xlu2 %6739 }
0x32e0   :  { %v6749_v38 = vsel %vm4994_vm13, %v6747_v0, %v6740_v45 }
0x32e1   :  { %8241 = vmatmul.msk.f32.vlgmr.msra.gmra.mxu0 %vm232_vm8, %v6749_v38 }
0x32ef   :  { %v6734_v30 = vpop.permute.xlu1 %6733 }
0x32f0   :  { %v6748_v6 = vsel %vm113_vm1, %v6746_v4, %v6734_v30 }
0x32f7   :  { %v6742_v8 = vpop.permute.xlu0 %6741 }
0x32f8   :  { %v6750_v13 = vsel %vm4994_vm13, %v6748_v6, %v6742_v8 }
0x32f9   :  { %8242 = vmatmul.msk.f32.vlgmr.msra.gmra.mxu1 %vm232_vm8, %v6750_v13 }
0x335e   :  { %v6771_v5 = vpop.f32.mrf.mxu0 }
0x335f   :  { %v10569_v10 = vadd.f32 %v6771_v5, %v10428_v58 }
0x3361   :  { %v6799_v12 = vsel %vm113_vm1, %v10569_v10, 0.0 }
0x3362   :  { %6800 = vadd.xlane.f32.xlu1 %v6799_v12 }
0x3376   :  { %v6794_v52 = vpop.f32.mrf.mxu1 }
0x3377   :  { %v10574_v55 = vadd.f32 %v6794_v52, %v10431_v17 }
0x3379   :  { %v6802_v11 = vsel %vm113_vm1, %v10574_v55, 0.0 }
0x337a   :  { %6803 = vadd.xlane.f32.xlu2 %v6802_v11 }
0x33d5   :  { %v6801_v9 = vpop.xlane.xlu1 %6800 }
0x33d6   :  { %v6805_v18 = vmul.f32 %v6801_v9, %v10051_v42 }
0x33d8   :  { %v6807_v19 = vsub.f32 %v10569_v10, %v6805_v18 }
0x33da   :  { %v6809_v53 = vmul.f32 %v6807_v19, %v6807_v19 }
0x33dc   :  { %v6811_v58 = vsel %vm113_vm1, %v6809_v53, 0.0 }
0x33dd   :  { %6812 = vadd.xlane.f32.xlu0 %v6811_v58 }
0x33ed   :  { %v6804_v22 = vpop.xlane.xlu2 %6803 }
0x33ee   :  { %v6806_v43 = vmul.f32 %v6804_v22, %v10051_v42  ;;  %v6919_v22 = vperm.slane %v10453_v61, 4 }
0x33f0   :  { %v6808_v1 = vsub.f32 %v10574_v55, %v6806_v43 }
0x33f2   :  { %v6810_v17 = vmul.f32 %v6808_v1, %v6808_v1 }
0x33f4   :  { %v6814_v23 = vsel %vm113_vm1, %v6810_v17, 0.0 }
0x33f5   :  { %6815 = vadd.xlane.f32.xlu1 %v6814_v23 }
0x3450   :  { %v6813_v24 = vpop.xlane.xlu0 %6812 }
0x3451   :  { %v6817_v25 = vmul.f32 %v6813_v24, %v10051_v42 }
0x3453   :  { %v6819_v26 = vadd.f32 1e-05, %v6817_v25 }
0x3455   :  { %8745 = vrsqrt.f32 %v6819_v26  ;;  %vm6827_vm6 = vweird.f32 %v6819_v26 }
0x345b   :  { %v8746_v27 = vpop.eup %8745 }
0x345c   :  { %v6822_v28 = vmul.f32 %v8746_v27, %v6819_v26  ;;  %vm6828_vm5 = vweird.f32 %v8746_v27 }
0x345d   :  { %vm6829_vm7 = vmor %vm6827_vm6, %vm6828_vm5 }
0x345e   :  { %v6823_v7 = vmul.f32 %v8746_v27, %v6822_v28 }
0x3460   :  { %v6824_v29 = vmul.f32 0.5, %v6823_v7 }
0x3462   :  { %v6825_v57 = vsub.f32 1.5, %v6824_v29 }
0x3464   :  { %v6826_v31 = vmul.f32 %v8746_v27, %v6825_v57 }
0x3466   :  { %v6830_v35 = vsel %vm6829_vm7, %v8746_v27, %v6826_v31 }
0x3467   :  { %v6841_v15 = vmul.f32 %v6830_v35, %v6807_v19  ;;  %v8249_v35 = vld [vmem:[%s10905_s23 + $0xc] sm:$0xf] }
0x3468   :  { %v6816_v21 = vpop.xlane.xlu1 %6815  ;;  %8256 = vmatpush.msk.msrb.mxu2 %vm361_vm11, %v8249_v35  ;;  %8258 = vmatpush.msk.msrb.mxu3 %vm361_vm11, %v8249_v35 }
0x3469   :  { %v6844_v39 = vmul.f32 %v6843_v33, %v6841_v15  ;;  %v6818_v14 = vmul.f32 %v6816_v21, %v10051_v42 }
0x346b   :  { %v6847_v3 = vadd.f32 %v6846_v36, %v6844_v39  ;;  %v6820_v41 = vadd.f32 1e-05, %v6818_v14 }
0x346d   :  { %8747 = vrsqrt.f32 %v6820_v41  ;;  %8244 = vmatmul.msk.f32.vlgmr.msra.gmra.mxu2 %vm113_vm1, %v6847_v3  ;;  %vm6837_vm15 = vweird.f32 %v6820_v41 }
0x3473   :  { %v8748_v37 = vpop.eup %8747 }
0x3474   :  { %v6832_v16 = vmul.f32 %v8748_v37, %v6820_v41  ;;  %vm6838_vm10 = vweird.f32 %v8748_v37 }
0x3475   :  { %vm6839_vm2 = vmor %vm6837_vm15, %vm6838_vm10 }
0x3476   :  { %v6833_v44 = vmul.f32 %v8748_v37, %v6832_v16 }
0x3478   :  { %v6834_v40 = vmul.f32 0.5, %v6833_v44 }
0x347a   :  { %v6835_v46 = vsub.f32 1.5, %v6834_v40 }
0x347c   :  { %v6836_v48 = vmul.f32 %v8748_v37, %v6835_v46 }
0x347e   :  { %v6840_v49 = vsel %vm6839_vm2, %v8748_v37, %v6836_v48  ;;  %v10632_v37 = vld [vmem:[%s10906_s3 + $0x18] sm:$0x1f] }
0x347f   :  { %v6842_v34 = vmul.f32 %v6840_v49, %v6808_v1  ;;  %v7025_v40 = vperm.slane %v10632_v37, 0  ;;  %v7028_v48 = vperm.slane %v10632_v37, 1 }
0x3481   :  { %v6845_v32 = vmul.f32 %v6843_v33, %v6842_v34 }
0x3483   :  { %v6848_v50 = vadd.f32 %v6846_v36, %v6845_v32 }
0x3485   :  { %8246 = vmatmul.msk.f32.vlgmr.msra.gmra.mxu3 %vm113_vm1, %v6848_v50 }
0x34f0   :  { %v6875_v59 = vpop.f32.mrf.mxu2 }
0x34f1   :  { %v6876_v47 = vadd.f32 %v8407_v56, %v6875_v59 }
0x34f3   :  { %v6901_v60 = vmul.f32 %v6876_v47, %v6876_v47 }
0x34f5   :  { %v6903_v63 = vmul.f32 %v6901_v60, %v6876_v47 }
0x34f7   :  { %v6905_v0 = vmul.f32 0.044715, %v6903_v63 }
0x34f9   :  { %v6907_v45 = vadd.f32 %v6905_v0, %v6876_v47 }
0x34fb   :  { %v6909_v38 = vmul.f32 0.7978846, %v6907_v45 }
0x34fd   :  { %8749 = vtanh.f32 %v6909_v38 }
0x3503   :  { %v8750_v62 = vpop.eup %8749 }
0x3504   :  { %v6913_v30 = vadd.f32 1.0, %v8750_v62 }
0x3506   :  { %v6915_v4 = vmul.f32 0.5, %v6913_v30 }
0x3508   :  { %v6917_v6 = vmul.f32 %v6915_v4, %v6876_v47  ;;  %v6898_v8 = vpop.f32.mrf.mxu3 }
0x3509   :  { %v6899_v13 = vadd.f32 %v8407_v56, %v6898_v8 }
0x350a   :  { %8247 = vmatmul.msk.f32.vlgmr.msrb.gmra.mxu0 %vm64_vm0, %v6917_v6 }
0x350b   :  { %v6902_v5 = vmul.f32 %v6899_v13, %v6899_v13 }
0x350d   :  { %v6904_v12 = vmul.f32 %v6902_v5, %v6899_v13 }
0x350f   :  { %v6906_v52 = vmul.f32 0.044715, %v6904_v12 }
0x3511   :  { %v6908_v11 = vadd.f32 %v6906_v52, %v6899_v13 }
0x3513   :  { %v6910_v9 = vmul.f32 0.7978846, %v6908_v11 }
0x3515   :  { %8751 = vtanh.f32 %v6910_v9 }
0x351b   :  { %v8752_v18 = vpop.eup %8751 }
0x351c   :  { %v6914_v19 = vadd.f32 1.0, %v8752_v18 }
0x351e   :  { %v6916_v53 = vmul.f32 0.5, %v6914_v19 }
0x3520   :  { %v6918_v58 = vmul.f32 %v6916_v53, %v6899_v13 }
0x3522   :  { %8248 = vmatmul.msk.f32.vlgmr.msrb.gmra.mxu1 %vm64_vm0, %v6918_v58 }
0x3587   :  { %v6940_v43 = vpop.f32.mrf.mxu0 }
0x3588   :  { %v6941_v1 = vadd.f32 %v6940_v43, %v6919_v22 }
0x358a   :  { %v10608_v17 = vadd.f32 %v6941_v1, %v10569_v10 }
0x358c   :  { %v6981_v23 = vsel %vm113_vm1, %v10608_v17, 0.0 }
0x358d   :  { %6982 = vadd.xlane.f32.xlu2 %v6981_v23 }
0x359f   :  { %v6963_v2 = vpop.f32.mrf.mxu1 }
0x35a0   :  { %v6964_v24 = vadd.f32 %v6963_v2, %v6919_v22 }
0x35a2   :  { %v10613_v25 = vadd.f32 %v6964_v24, %v10574_v55 }
0x35a4   :  { %v6984_v26 = vsel %vm113_vm1, %v10613_v25, 0.0 }
0x35a5   :  { %6985 = vadd.xlane.f32.xlu1 %v6984_v26 }
0x3600   :  { %v6983_v27 = vpop.xlane.xlu2 %6982 }
0x3601   :  { %v6987_v61 = vmul.f32 %v6983_v27, %v10051_v42 }
0x3603   :  { %v6989_v28 = vsub.f32 %v10608_v17, %v6987_v61 }
0x3605   :  { %v6991_v10 = vmul.f32 %v6989_v28, %v6989_v28 }
0x3607   :  { %v6993_v7 = vsel %vm113_vm1, %v6991_v10, 0.0 }
0x3608   :  { %6994 = vadd.xlane.f32.xlu2 %v6993_v7 }
0x3618   :  { %v6986_v29 = vpop.xlane.xlu1 %6985 }
0x3619   :  { %v6988_v57 = vmul.f32 %v6986_v29, %v10051_v42 }
0x361b   :  { %v6990_v31 = vsub.f32 %v10613_v25, %v6988_v57 }
0x361d   :  { %v6992_v55 = vmul.f32 %v6990_v31, %v6990_v31 }
0x361f   :  { %v6996_v33 = vsel %vm113_vm1, %v6992_v55, 0.0 }
0x3620   :  { %6997 = vadd.xlane.f32.xlu1 %v6996_v33 }
0x367b   :  { %v6995_v36 = vpop.xlane.xlu2 %6994 }
0x367c   :  { %v6999_v15 = vmul.f32 %v6995_v36, %v10051_v42 }
0x367e   :  { %v7001_v21 = vadd.f32 1e-05, %v6999_v15 }
0x3680   :  { %8753 = vrsqrt.f32 %v7001_v21  ;;  %vm7009_vm3 = vweird.f32 %v7001_v21 }
0x3686   :  { %v8754_v39 = vpop.eup %8753 }
0x3687   :  { %v7004_v14 = vmul.f32 %v8754_v39, %v7001_v21  ;;  %vm7010_vm14 = vweird.f32 %v8754_v39 }
0x3688   :  { %vm7011_vm4 = vmor %vm7009_vm3, %vm7010_vm14 }
0x3689   :  { %v7005_v3 = vmul.f32 %v8754_v39, %v7004_v14 }
0x368b   :  { %v7006_v41 = vmul.f32 0.5, %v7005_v3 }
0x368d   :  { %v7007_v16 = vsub.f32 1.5, %v7006_v41 }
0x368f   :  { %v7008_v44 = vmul.f32 %v8754_v39, %v7007_v16 }
0x3691   :  { %v7012_v46 = vsel %vm7011_vm4, %v8754_v39, %v7008_v44 }
0x3692   :  { %v7023_v49 = vmul.f32 %v7012_v46, %v6989_v28 }
0x3693   :  { %v6998_v34 = vpop.xlane.xlu1 %6997 }
0x3694   :  { %v7026_v32 = vmul.f32 %v7025_v40, %v7023_v49  ;;  %v7000_v50 = vmul.f32 %v6998_v34, %v10051_v42 }
0x3696   :  { %v7029_v51 = vadd.f32 %v7028_v48, %v7026_v32  ;;  %v7002_v54 = vadd.f32 1e-05, %v7000_v50 }
0x3698   :  { %8755 = vrsqrt.f32 %v7002_v54  ;;  %8257 = vmatmul.msk.f32.vlgmr.msrb.gmra.mxu2 %vm113_vm1, %v7029_v51  ;;  %vm7019_vm5 = vweird.f32 %v7002_v54 }
0x369e   :  { %v8756_v56 = vpop.eup %8755 }
0x369f   :  { %v7014_v59 = vmul.f32 %v8756_v56, %v7002_v54  ;;  %vm7020_vm9 = vweird.f32 %v8756_v56 }
0x36a0   :  { %vm7021_vm6 = vmor %vm7019_vm5, %vm7020_vm9 }
0x36a1   :  { %v7015_v47 = vmul.f32 %v8756_v56, %v7014_v59 }
0x36a3   :  { %v7016_v60 = vmul.f32 0.5, %v7015_v47 }
0x36a5   :  { %v7017_v63 = vsub.f32 1.5, %v7016_v60 }
0x36a7   :  { %v7018_v0 = vmul.f32 %v8756_v56, %v7017_v63 }
0x36a9   :  { %v7022_v45 = vsel %vm7021_vm6, %v8756_v56, %v7018_v0 }
0x36aa   :  { %v7024_v38 = vmul.f32 %v7022_v45, %v6990_v31 }
0x36ac   :  { %v7027_v62 = vmul.f32 %v7025_v40, %v7024_v38 }
0x36ae   :  { %v7030_v30 = vadd.f32 %v7028_v48, %v7027_v62 }
0x36b0   :  { %8259 = vmatmul.msk.f32.vlgmr.msrb.gmra.mxu3 %vm113_vm1, %v7030_v30 }
0x371b   :  { %v10639_v4 = vpop.f32.mrf.mxu2 }
0x371c   :  { %7210 = vrot.lane.b32.xlu1 %v10639_v4, %s8843_s7  ;;  %7081 = vrot.lane.b32.xlu0 %v10639_v4, %s10896_s1 }
0x3724   :  { %7340 = vrot.lane.b32.xlu1 %v10639_v4, %s10898_s29 }
0x3733   :  { %v10647_v6 = vpop.f32.mrf.mxu3 }
0x3734   :  { %7108 = vrot.lane.b32.xlu2 %v10647_v6, %s10896_s1  ;;  %7366 = vrot.lane.b32.xlu1 %v10647_v6, %s10897_s28  ;;  %v10699_v15 = vpack.i.bf16 %v10647_v6, %v10639_v4 }
0x3735   :  { %7238 = vrot.lane.b32.xlu0 %v10647_v6, %s8843_s7 }
0x373c   :  { %7208 = vrot.lane.b32.xlu2 %v10639_v4, %s8844_s21  ;;  %7468 = vrot.lane.b32.xlu1 %v10639_v4, %s8846_s26 }
0x373d   :  { %7236 = vrot.lane.b32.xlu0 %v10647_v6, %s8844_s21 }
0x3744   :  { %7368 = vrot.lane.b32.xlu2 %v10647_v6, %s10898_s29 }
0x3745   :  { %7338 = vrot.lane.b32.xlu0 %v10639_v4, %s10897_s28 }
0x374c   :  { %7470 = vrot.lane.b32.xlu2 %v10639_v4, %s8845_s4 }
0x374d   :  { %7498 = vrot.lane.b32.xlu0 %v10647_v6, %s8845_s4  ;;  %s8851_s4 = smov [#allocation2]  }
0x3754   :  { %7496 = vrot.lane.b32.xlu2 %v10647_v6, %s8846_s26  ;;  %s7873_s26 = sshll.u32 %s8851_s4, 4  ;;  %s7874_s26 = int_to_ptr.vmem [resolvable:$true] %s7873_s26 }
0x378e   :  { %v7211_v8 = vpop.permute.xlu1 %7210  ;;  %v7082_v13 = vpop.permute.xlu0 %7081 }
0x378f   :  { %v7109_v5 = vpop.permute.xlu2 %7108  ;;  %8260 = vmatpush.xpose.msk.msra.mxu0 %vm4450_vm12, %v7082_v13 }
0x3790   :  { %8262 = vmatpush.xpose.msk.msra.mxu1 %vm4450_vm12, %v7109_v5 }
0x3792   :  { %8261 = vmatmul.msk.f32.vlgmr.msra.gmra.mxu0 %vm4450_vm12, %v10639_v4 }
0x3793   :  { %8266 = vmatpush.xpose.msk.msrb.mxu0 %vm4450_vm12, %v7211_v8  ;;  %8263 = vmatmul.msk.f32.vlgmr.msra.gmra.mxu1 %vm4450_vm12, %v10647_v6 }
0x3796   :  { %v7341_v12 = vpop.permute.xlu1 %7340 }
0x3797   :  { %v7209_v52 = vpop.permute.xlu2 %7208  ;;  %8272 = vmatpush.xpose.msk.msra.mxu0 %vm4450_vm12, %v7341_v12 }
0x379a   :  { %8267 = vmatmul.msk.f32.vlgmr.msrb.gmra.mxu0 %vm4450_vm12, %v7209_v52 }
0x379f   :  { %v7369_v11 = vpop.permute.xlu2 %7368 }
0x37a6   :  { %v7367_v53 = vpop.permute.xlu1 %7366 }
0x37a7   :  { %v7239_v9 = vpop.permute.xlu0 %7238  ;;  %v7471_v18 = vpop.permute.xlu2 %7470 }
0x37a8   :  { %8268 = vmatpush.xpose.msk.msrb.mxu1 %vm4450_vm12, %v7239_v9  ;;  %8278 = vmatpush.xpose.msk.msrb.mxu0 %vm4450_vm12, %v7471_v18 }
0x37ac   :  { %8274 = vmatpush.xpose.msk.msra.mxu1 %vm4450_vm12, %v7369_v11 }
0x37ae   :  { %v7469_v22 = vpop.permute.xlu1 %7468 }
0x37af   :  { %v7237_v19 = vpop.permute.xlu0 %7236  ;;  %v7497_v1 = vpop.permute.xlu2 %7496 }
0x37b0   :  { %8269 = vmatmul.msk.f32.vlgmr.msrb.gmra.mxu1 %vm4450_vm12, %v7237_v19 }
0x37b7   :  { %v7339_v58 = vpop.permute.xlu0 %7338 }
0x37b8   :  { %8273 = vmatmul.msk.f32.vlgmr.msra.gmra.mxu0 %vm4450_vm12, %v7339_v58  ;;  %8275 = vmatmul.msk.f32.vlgmr.msra.gmra.mxu1 %vm4450_vm12, %v7367_v53 }
0x37bf   :  { %v7499_v43 = vpop.permute.xlu0 %7498 }
0x37c0   :  { %8279 = vmatmul.msk.f32.vlgmr.msrb.gmra.mxu0 %vm4450_vm12, %v7469_v22  ;;  %8280 = vmatpush.xpose.msk.msrb.mxu1 %vm4450_vm12, %v7499_v43 }
0x37c3   :  { %8281 = vmatmul.msk.f32.vlgmr.msrb.gmra.mxu1 %vm4450_vm12, %v7497_v1 }
0x380f   :  { %v7104_v23 = vpop.f32.mrf.mxu0 }
0x3810   :  { %v7131_v2 = vpop.f32.mrf.mxu1  ;;  %v7134_v24 = vsel %vm232_vm8, %v7104_v23, -inf }
0x3811   :  { %7135 = vmax.xlane.f32.xlu0 %v7134_v24  ;;  %v7137_v26 = vsel %vm232_vm8, %v7131_v2, -inf }
0x3812   :  { %7138 = vmax.xlane.f32.xlu1 %v7137_v26 }
0x3817   :  { %v7233_v27 = vpop.f32.mrf.mxu0 }
0x3818   :  { %v7264_v61 = vsel %vm232_vm8, %v7233_v27, -inf }
0x3819   :  { %7265 = vmax.xlane.f32.xlu2 %v7264_v61 }
0x382d   :  { %v7261_v28 = vpop.f32.mrf.mxu1 }
0x382e   :  { %v7267_v10 = vsel %vm232_vm8, %v7261_v28, -inf }
0x382f   :  { %7268 = vmax.xlane.f32.xlu0 %v7267_v10 }
0x3835   :  { %v7363_v7 = vpop.f32.mrf.mxu0  ;;  %v7391_v29 = vpop.f32.mrf.mxu1 }
0x3836   :  { %v7394_v57 = vsel %vm232_vm8, %v7363_v7, -inf  ;;  %v7397_v31 = vsel %vm232_vm8, %v7391_v29, -inf }
0x3837   :  { %7395 = vmax.xlane.f32.xlu1 %v7394_v57  ;;  %7398 = vmax.xlane.f32.xlu2 %v7397_v31 }
0x383d   :  { %v7493_v55 = vpop.f32.mrf.mxu0 }
0x383e   :  { %v7524_v33 = vsel %vm232_vm8, %v7493_v55, -inf }
0x383f   :  { %7525 = vmax.xlane.f32.xlu0 %v7524_v33 }
0x3840   :  { %v7521_v35 = vpop.f32.mrf.mxu1 }
0x3841   :  { %v7527_v36 = vsel %vm232_vm8, %v7521_v35, -inf }
0x3842   :  { %7528 = vmax.xlane.f32.xlu1 %v7527_v36 }
0x3853   :  { %8382 = vrot.lane.b32.xlu0 %v10699_v15, %s10901_s18 }
0x3884   :  { %v7136_v21 = vpop.xlane.xlu0 %7135 }
0x3885   :  { %v7140_v39 = vsub.f32 %v7104_v23, %v7136_v21  ;;  %v7139_v14 = vpop.xlane.xlu1 %7138 }
0x3886   :  { %v7141_v3 = vsub.f32 %v7131_v2, %v7139_v14 }
0x3887   :  { %v7142_v41 = vmul.f32 1.442695, %v7140_v39 }
0x3888   :  { %v7144_v16 = vmul.f32 1.442695, %v7141_v3 }
0x3889   :  { %8757 = vpow2.f32 %v7142_v41 }
0x388a   :  { %8759 = vpow2.f32 %v7144_v16 }
0x388c   :  { %v7266_v44 = vpop.xlane.xlu2 %7265 }
0x388d   :  { %v7270_v40 = vsub.f32 %v7233_v27, %v7266_v44 }
0x388f   :  { %v8758_v46 = vpop.eup %8757  ;;  %v7272_v48 = vmul.f32 1.442695, %v7270_v40 }
0x3890   :  { %v8760_v49 = vpop.eup %8759  ;;  %v7146_v34 = vsel %vm232_vm8, %v8758_v46, 0.0 }
0x3891   :  { %8761 = vpow2.f32 %v7272_v48  ;;  %7147 = vadd.xlane.f32.xlu2 %v7146_v34  ;;  %v7149_v32 = vsel %vm232_vm8, %v8760_v49, 0.0 }
0x3892   :  { %7150 = vadd.xlane.f32.xlu0 %v7149_v32 }
0x3897   :  { %v10705_v50 = vpop.eup %8761 }
0x3898   :  { %v7276_v51 = vsel %vm232_vm8, %v10705_v50, 0.0 }
0x3899   :  { %7277 = vadd.xlane.f32.xlu1 %v7276_v51 }
0x38a2   :  { %v7269_v54 = vpop.xlane.xlu0 %7268 }
0x38a3   :  { %v7271_v56 = vsub.f32 %v7261_v28, %v7269_v54 }
0x38a5   :  { %v7274_v59 = vmul.f32 1.442695, %v7271_v56 }
0x38a6   :  { %8392 = vrot.lane.b32.xlu0 %v10699_v15, %s10893_s30 }
0x38a7   :  { %8763 = vpow2.f32 %v7274_v59 }
0x38aa   :  { %v7396_v47 = vpop.xlane.xlu1 %7395  ;;  %v7399_v60 = vpop.xlane.xlu2 %7398 }
0x38ab   :  { %v7400_v63 = vsub.f32 %v7363_v7, %v7396_v47  ;;  %v7401_v0 = vsub.f32 %v7391_v29, %v7399_v60 }
0x38ad   :  { %v8764_v45 = vpop.eup %8763  ;;  %v7402_v38 = vmul.f32 1.442695, %v7400_v63  ;;  %v7404_v62 = vmul.f32 1.442695, %v7401_v0 }
0x38ae   :  { %v7279_v30 = vsel %vm232_vm8, %v8764_v45, 0.0 }
0x38af   :  { %8765 = vpow2.f32 %v7402_v38  ;;  %7280 = vadd.xlane.f32.xlu2 %v7279_v30  ;;  %v8250_v30 = vld [vmem:[%s10907_s13 + $0x18] sm:$0xff] }
0x38b0   :  { %8767 = vpow2.f32 %v7404_v62  ;;  %7646 = vmatpush.msra.mxu0 %v8250_v30  ;;  %7669 = vmatpush.msra.mxu1 %v8250_v30 }
0x38b2   :  { %v7526_v4 = vpop.xlane.xlu0 %7525 }
0x38b3   :  { %v7530_v6 = vsub.f32 %v7493_v55, %v7526_v4 }
0x38b5   :  { %v10712_v8 = vpop.eup %8765  ;;  %v7532_v13 = vmul.f32 1.442695, %v7530_v6  ;;  %v7529_v5 = vpop.xlane.xlu1 %7528 }
0x38b6   :  { %v10714_v12 = vpop.eup %8767  ;;  %v7531_v52 = vsub.f32 %v7521_v35, %v7529_v5  ;;  %v7406_v11 = vsel %vm232_vm8, %v10712_v8, 0.0 }
0x38b7   :  { %8769 = vpow2.f32 %v7532_v13  ;;  %7407 = vadd.xlane.f32.xlu1 %v7406_v11  ;;  %v7409_v9 = vsel %vm232_vm8, %v10714_v12, 0.0 }
0x38b8   :  { %7410 = vadd.xlane.f32.xlu2 %v7409_v9  ;;  %v7534_v18 = vmul.f32 1.442695, %v7531_v52 }
0x38ba   :  { %8771 = vpow2.f32 %v7534_v18 }
0x38bd   :  { %v10720_v19 = vpop.eup %8769 }
0x38be   :  { %v7536_v53 = vsel %vm232_vm8, %v10720_v19, 0.0 }
0x38c0   :  { %7537 = vadd.xlane.f32.xlu2 %v7536_v53  ;;  %v8772_v58 = vpop.eup %8771 }
0x38c1   :  { %v7539_v23 = vsel %vm232_vm8, %v8772_v58, 0.0 }
0x38c5   :  { %v8383_v22 = vpop.permute.xlu0 %8382 }
0x38c6   :  { %v8385_v43 = vunpack.i.h.bf16 %v8383_v22  ;;  %v8384_v1 = vunpack.i.l.bf16 %v8383_v22 }
0x38c8   :  { %7540 = vadd.xlane.f32.xlu2 %v7539_v23  ;;  %7177 = vmatpush.msra.mxu2 %v8384_v1 }
0x38c9   :  { %7203 = vmatpush.msra.mxu3 %v8385_v43 }
0x38d0   :  { %8387 = vrot.lane.b32.xlu1 %v10699_v15, %s8847_s0 }
0x38e0   :  { %8397 = vrot.lane.b32.xlu2 %v10699_v15, %s8848_s19 }
0x3904   :  { %v7148_v2 = vpop.xlane.xlu2 %7147 }
0x3905   :  { %v7151_v24 = vpop.xlane.xlu0 %7150  ;;  %8773 = vrcp.f32 %v7148_v2 }
0x3906   :  { %8775 = vrcp.f32 %v7151_v24 }
0x390b   :  { %v8774_v26 = vpop.eup %8773 }
0x390c   :  { %v8776_v27 = vpop.eup %8775  ;;  %v7154_v61 = vmul.f32 %v8774_v26, %v8758_v46  ;;  %v7278_v29 = vpop.xlane.xlu1 %7277 }
0x390d   :  { %v7155_v28 = vmul.f32 %v8776_v27, %v8760_v49  ;;  %8777 = vrcp.f32 %v7278_v29 }
0x390e   :  { %8264 = vmatmul.msk.f32.vlgmr.msra.gmra.mxu2 %vm232_vm8, %v7154_v61 }
0x390f   :  { %8265 = vmatmul.msk.f32.vlgmr.msra.gmra.mxu3 %vm232_vm8, %v7155_v28 }
0x3913   :  { %v8778_v33 = vpop.eup %8777 }
0x3914   :  { %v7284_v3 = vmul.f32 %v8778_v33, %v10705_v50 }
0x3918   :  { %v8393_v36 = vpop.permute.xlu0 %8392 }
0x3919   :  { %v8395_v16 = vunpack.i.h.bf16 %v8393_v36  ;;  %v8394_v44 = vunpack.i.l.bf16 %v8393_v36 }
0x3922   :  { %v7281_v10 = vpop.xlane.xlu2 %7280 }
0x3923   :  { %8779 = vrcp.f32 %v7281_v10 }
0x3929   :  { %v8780_v35 = vpop.eup %8779 }
0x392a   :  { %v7408_v31 = vpop.xlane.xlu1 %7407  ;;  %v7285_v41 = vmul.f32 %v8780_v35, %v8764_v45 }
0x392b   :  { %v7411_v7 = vpop.xlane.xlu2 %7410  ;;  %8781 = vrcp.f32 %v7408_v31 }
0x392c   :  { %8783 = vrcp.f32 %v7411_v7 }
0x3931   :  { %v8782_v48 = vpop.eup %8781 }
0x3932   :  { %v8784_v49 = vpop.eup %8783  ;;  %v7414_v34 = vmul.f32 %v8782_v48, %v10712_v8 }
0x3933   :  { %v7538_v57 = vpop.xlane.xlu2 %7537  ;;  %v7415_v32 = vmul.f32 %v8784_v49, %v10714_v12 }
0x3934   :  { %8785 = vrcp.f32 %v7538_v57  ;;  %v8251_v57 = vld [vmem:[%s10908_s9 + $0xc] sm:$0xf] }
0x393a   :  { %v8786_v50 = vpop.eup %8785 }
0x393b   :  { %v7541_v55 = vpop.xlane.xlu2 %7540  ;;  %v7544_v54 = vmul.f32 %v8786_v50, %v10720_v19  ;;  %v7723_v50 = vperm.slane %v10632_v37, 3 }
0x393c   :  { %8787 = vrcp.f32 %v7541_v55 }
0x3942   :  { %v8388_v15 = vpop.permute.xlu1 %8387  ;;  %v8788_v51 = vpop.eup %8787 }
0x3943   :  { %v8390_v21 = vunpack.i.h.bf16 %v8388_v15  ;;  %v8389_v39 = vunpack.i.l.bf16 %v8388_v15  ;;  %v8398_v14 = vpop.permute.xlu2 %8397  ;;  %v7545_v56 = vmul.f32 %v8788_v51, %v8772_v58 }
0x3944   :  { %v8400_v40 = vunpack.i.h.bf16 %v8398_v14  ;;  %v8399_v46 = vunpack.i.l.bf16 %v8398_v14 }
0x3945   :  { %7307 = vmatpush.msrb.mxu2 %v8389_v39  ;;  %7333 = vmatpush.msrb.mxu3 %v8390_v21 }
0x3946   :  { %8270 = vmatmul.msk.f32.vlgmr.msrb.gmra.mxu2 %vm232_vm8, %v7284_v3  ;;  %8271 = vmatmul.msk.f32.vlgmr.msrb.gmra.mxu3 %vm232_vm8, %v7285_v41 }
0x3947   :  { %7437 = vmatpush.msra.mxu2 %v8394_v44  ;;  %7463 = vmatpush.msra.mxu3 %v8395_v16 }
0x3949   :  { %7567 = vmatpush.msrb.mxu2 %v8399_v46  ;;  %7593 = vmatpush.msrb.mxu3 %v8400_v40 }
0x394e   :  { %8276 = vmatmul.msk.f32.vlgmr.msra.gmra.mxu2 %vm232_vm8, %v7414_v34  ;;  %8277 = vmatmul.msk.f32.vlgmr.msra.gmra.mxu3 %vm232_vm8, %v7415_v32 }
0x394f   :  { %8286 = vmatpush.msk.msra.mxu2 %vm361_vm11, %v8251_v57  ;;  %8288 = vmatpush.msk.msra.mxu3 %vm361_vm11, %v8251_v57 }
0x3956   :  { %8282 = vmatmul.msk.f32.vlgmr.msrb.gmra.mxu2 %vm232_vm8, %v7544_v54  ;;  %8283 = vmatmul.msk.f32.vlgmr.msrb.gmra.mxu3 %vm232_vm8, %v7545_v56 }
0x3991   :  { %v7179_v59 = vpop.f32.mrf.mxu2 }
0x3992   :  { %v7205_v47 = vpop.f32.mrf.mxu3 }
0x39c9   :  { %v7309_v60 = vpop.f32.mrf.mxu2  ;;  %v7335_v63 = vpop.f32.mrf.mxu3 }
0x39ca   :  { %7600 = vrot.lane.b32.xlu0 %v7309_v60, %s8849_s20  ;;  %7602 = vrot.lane.b32.xlu1 %v7335_v63, %s8849_s20  ;;  %s10911_s20 = sld [smem:[#allocation16_spill]] }
0x39d1   :  { %v7439_v0 = vpop.f32.mrf.mxu2  ;;  %v7465_v45 = vpop.f32.mrf.mxu3 }
0x39d2   :  { %7608 = vrot.lane.b32.xlu0 %v7439_v0, %s10889_s27  ;;  %7610 = vrot.lane.b32.xlu1 %v7465_v45, %s10889_s27  ;;  %v8253_v0 = vld [vmem:[%s10909_s8 + $0x38] sm:$0xff]  ;;  %v8252_v45 = vld [vmem:[%s10909_s8 + $0x30] sm:$0xff] }
0x39d3   :  { %7814 = vmatpush.msrb.mxu0 %v8253_v0  ;;  %7837 = vmatpush.msrb.mxu1 %v8253_v0 }
0x39d5   :  { %7815 = vmatpush.msrb.mxu0 %v8252_v45  ;;  %7838 = vmatpush.msrb.mxu1 %v8252_v45 }
0x39d9   :  { %v7569_v38 = vpop.f32.mrf.mxu2  ;;  %v7595_v62 = vpop.f32.mrf.mxu3 }
0x39da   :  { %7618 = vrot.lane.b32.xlu1 %v7595_v62, %s8850_s22  ;;  %7616 = vrot.lane.b32.xlu0 %v7569_v38, %s8850_s22  ;;  %v8408_v38 = vld [vmem:[%s10910_s24 + $0x3] ss:$0 sm:$0xff]  ;;  %s7875_s22 = sshll.u32 %s10911_s20, 4  ;;  %s7876_s22 = int_to_ptr.hbm [resolvable:$true] %s7875_s22 }
0x3a3c   :  { %v7601_v4 = vpop.permute.xlu0 %7600  ;;  %v7603_v6 = vpop.permute.xlu1 %7602 }
0x3a3d   :  { %v7622_v5 = vsel %vm4450_vm12, %v7179_v59, %v7601_v4  ;;  %v7623_v12 = vsel %vm4450_vm12, %v7205_v47, %v7603_v6 }
0x3a44   :  { %v7609_v8 = vpop.permute.xlu0 %7608  ;;  %v7611_v13 = vpop.permute.xlu1 %7610 }
0x3a45   :  { %v7624_v52 = vsel %vm113_vm1, %v7622_v5, %v7609_v8  ;;  %v7625_v11 = vsel %vm113_vm1, %v7623_v12, %v7611_v13 }
0x3a4c   :  { %v7619_v9 = vpop.permute.xlu1 %7618  ;;  %v7617_v18 = vpop.permute.xlu0 %7616 }
0x3a4d   :  { %v7627_v19 = vsel %vm4994_vm13, %v7625_v11, %v7619_v9  ;;  %v7626_v53 = vsel %vm4994_vm13, %v7624_v52, %v7617_v18 }
0x3a4e   :  { %8284 = vmatmul.msk.f32.vlgmr.msra.gmra.mxu0 %vm232_vm8, %v7626_v53  ;;  %8285 = vmatmul.msk.f32.vlgmr.msra.gmra.mxu1 %vm232_vm8, %v7627_v19 }
0x3acb   :  { %v7648_v58 = vpop.f32.mrf.mxu0  ;;  %v7671_v22 = vpop.f32.mrf.mxu1 }
0x3acc   :  { %v10759_v43 = vadd.f32 %v7648_v58, %v10608_v17  ;;  %v10762_v1 = vadd.f32 %v7671_v22, %v10613_v25 }
0x3ace   :  { %v7679_v23 = vsel %vm113_vm1, %v10762_v1, 0.0  ;;  %v7676_v2 = vsel %vm113_vm1, %v10759_v43, 0.0 }
0x3acf   :  { %7680 = vadd.xlane.f32.xlu0 %v7679_v23  ;;  %7677 = vadd.xlane.f32.xlu2 %v7676_v2 }
0x3b42   :  { %v7678_v24 = vpop.xlane.xlu2 %7677  ;;  %v7681_v26 = vpop.xlane.xlu0 %7680 }
0x3b43   :  { %v7682_v27 = vmul.f32 %v7678_v24, %v10051_v42  ;;  %v7683_v61 = vmul.f32 %v7681_v26, %v10051_v42 }
0x3b45   :  { %v7684_v17 = vsub.f32 %v10759_v43, %v7682_v27  ;;  %v7685_v28 = vsub.f32 %v10762_v1, %v7683_v61 }
0x3b47   :  { %v7686_v25 = vmul.f32 %v7684_v17, %v7684_v17  ;;  %v7687_v10 = vmul.f32 %v7685_v28, %v7685_v28 }
0x3b49   :  { %v7688_v7 = vsel %vm113_vm1, %v7686_v25, 0.0  ;;  %v7691_v29 = vsel %vm113_vm1, %v7687_v10, 0.0 }
0x3b4a   :  { %7689 = vadd.xlane.f32.xlu1 %v7688_v7  ;;  %7692 = vadd.xlane.f32.xlu2 %v7691_v29 }
0x3bbd   :  { %v7690_v31 = vpop.xlane.xlu1 %7689  ;;  %v7693_v55 = vpop.xlane.xlu2 %7692 }
0x3bbe   :  { %v7694_v33 = vmul.f32 %v7690_v31, %v10051_v42  ;;  %v7695_v35 = vmul.f32 %v7693_v55, %v10051_v42  ;;  %v7720_v42 = vperm.slane %v10632_v37, 2 }
0x3bc0   :  { %v7696_v36 = vadd.f32 1e-05, %v7694_v33  ;;  %v7697_v15 = vadd.f32 1e-05, %v7695_v35 }
0x3bc2   :  { %8789 = vrsqrt.f32 %v7696_v36  ;;  %vm7704_vm12 = vweird.f32 %v7696_v36  ;;  %vm7714_vm7 = vweird.f32 %v7697_v15 }
0x3bc3   :  { %8791 = vrsqrt.f32 %v7697_v15 }
0x3bc8   :  { %v8790_v21 = vpop.eup %8789 }
0x3bc9   :  { %v8792_v39 = vpop.eup %8791  ;;  %v7699_v14 = vmul.f32 %v8790_v21, %v7696_v36  ;;  %vm7705_vm8 = vweird.f32 %v8790_v21 }
0x3bca   :  { %v7709_v3 = vmul.f32 %v8792_v39, %v7697_v15  ;;  %vm7715_vm11 = vweird.f32 %v8792_v39  ;;  %vm7706_vm13 = vmor %vm7704_vm12, %vm7705_vm8 }
0x3bcb   :  { %v7700_v41 = vmul.f32 %v8790_v21, %v7699_v14  ;;  %vm7716_vm10 = vmor %vm7714_vm7, %vm7715_vm11 }
0x3bcc   :  { %v7710_v16 = vmul.f32 %v8792_v39, %v7709_v3 }
0x3bcd   :  { %v7701_v44 = vmul.f32 0.5, %v7700_v41 }
0x3bce   :  { %v7711_v40 = vmul.f32 0.5, %v7710_v16 }
0x3bcf   :  { %v7702_v46 = vsub.f32 1.5, %v7701_v44 }
0x3bd0   :  { %v7712_v48 = vsub.f32 1.5, %v7711_v40 }
0x3bd1   :  { %v7703_v49 = vmul.f32 %v8790_v21, %v7702_v46 }
0x3bd2   :  { %v7713_v34 = vmul.f32 %v8792_v39, %v7712_v48 }
0x3bd3   :  { %v7707_v32 = vsel %vm7706_vm13, %v8790_v21, %v7703_v49 }
0x3bd4   :  { %v7718_v51 = vmul.f32 %v7707_v32, %v7684_v17  ;;  %v7717_v54 = vsel %vm7716_vm10, %v8792_v39, %v7713_v34  ;;  %v7796_v17 = vperm.slane %v10632_v37, 4 }
0x3bd5   :  { %v7719_v56 = vmul.f32 %v7717_v54, %v7685_v28 }
0x3bd6   :  { %v7721_v59 = vmul.f32 %v7720_v42, %v7718_v51 }
0x3bd7   :  { %v7722_v47 = vmul.f32 %v7720_v42, %v7719_v56 }
0x3bd8   :  { %v7724_v60 = vadd.f32 %v7723_v50, %v7721_v59 }
0x3bd9   :  { %v7725_v63 = vadd.f32 %v7723_v50, %v7722_v47 }
0x3bda   :  { %8287 = vmatmul.msk.f32.vlgmr.msra.gmra.mxu2 %vm113_vm1, %v7724_v60 }
0x3bdb   :  { %8289 = vmatmul.msk.f32.vlgmr.msra.gmra.mxu3 %vm113_vm1, %v7725_v63 }
0x3c5d   :  { %v7752_v62 = vpop.f32.mrf.mxu2 }
0x3c5e   :  { %v7753_v30 = vadd.f32 %v8408_v38, %v7752_v62  ;;  %v7775_v4 = vpop.f32.mrf.mxu3 }
0x3c5f   :  { %v7776_v6 = vadd.f32 %v8408_v38, %v7775_v4 }
0x3c60   :  { %v7778_v8 = vmul.f32 %v7753_v30, %v7753_v30 }
0x3c61   :  { %v7779_v13 = vmul.f32 %v7776_v6, %v7776_v6 }
0x3c62   :  { %v7780_v5 = vmul.f32 %v7778_v8, %v7753_v30 }
0x3c63   :  { %v7781_v12 = vmul.f32 %v7779_v13, %v7776_v6 }
0x3c64   :  { %v7782_v52 = vmul.f32 0.044715, %v7780_v5 }
0x3c65   :  { %v7783_v11 = vmul.f32 0.044715, %v7781_v12 }
0x3c66   :  { %v7784_v9 = vadd.f32 %v7782_v52, %v7753_v30 }
0x3c67   :  { %v7785_v18 = vadd.f32 %v7783_v11, %v7776_v6 }
0x3c68   :  { %v7786_v19 = vmul.f32 0.7978846, %v7784_v9 }
0x3c69   :  { %v7787_v53 = vmul.f32 0.7978846, %v7785_v18 }
0x3c6a   :  { %8793 = vtanh.f32 %v7786_v19 }
0x3c6b   :  { %8795 = vtanh.f32 %v7787_v53 }
0x3c70   :  { %v8794_v58 = vpop.eup %8793 }
0x3c71   :  { %v8796_v22 = vpop.eup %8795  ;;  %v7790_v23 = vadd.f32 1.0, %v8794_v58 }
0x3c72   :  { %v7791_v2 = vadd.f32 1.0, %v8796_v22 }
0x3c73   :  { %v7792_v24 = vmul.f32 0.5, %v7790_v23 }
0x3c74   :  { %v7793_v26 = vmul.f32 0.5, %v7791_v2 }
0x3c75   :  { %v7794_v27 = vmul.f32 %v7792_v24, %v7753_v30 }
0x3c76   :  { %v7795_v61 = vmul.f32 %v7793_v26, %v7776_v6 }
0x3c77   :  { %8290 = vmatmul.msk.f32.vlgmr.msrb.gmra.mxu0 %vm64_vm0, %v7794_v27 }
0x3c78   :  { %8291 = vmatmul.msk.f32.vlgmr.msrb.gmra.mxu1 %vm64_vm0, %v7795_v61  ;;  %vm7863_vm0 = vcmask 1041409  }
0x3cf4   :  { %v7817_v28 = vpop.f32.mrf.mxu0 }
0x3cf5   :  { %v7818_v25 = vadd.f32 %v7817_v28, %v7796_v17  ;;  %v7840_v10 = vpop.f32.mrf.mxu1 }
0x3cf6   :  { %v7841_v7 = vadd.f32 %v7840_v10, %v7796_v17 }
0x3cf7   :  { %v7843_v29 = vadd.f32 %v7818_v25, %v10759_v43 }
0x3cf8   :  { %v7844_v57 = vadd.f32 %v7841_v7, %v10762_v1 }
0x3cf9   :  { %v7845_v31 = vsel %vm113_vm1, %v7843_v29, 0.0 }
0x3cfa   :  { %v7846_v55 = vrot.slane %v7845_v31, 4  ;;  %v7852_v33 = vsel %vm113_vm1, %v7844_v57, 0.0  ;;  %vm7866_vm1 = vcmask 25600  }
0x3cfb   :  { %v7853_v35 = vrot.slane %v7852_v33, 4 }
0x3cfc   :  { %v7847_v36 = vadd.f32 %v7846_v55, %v7845_v31 }
0x3cfd   :  { %v7854_v15 = vadd.f32 %v7853_v35, %v7852_v33 }
0x3cfe   :  { %v7848_v21 = vrot.slane %v7847_v36, 2 }
0x3cff   :  { %v7855_v39 = vrot.slane %v7854_v15, 2 }
0x3d00   :  { %v7849_v14 = vadd.f32 %v7848_v21, %v7847_v36 }
0x3d01   :  { %v7856_v37 = vadd.f32 %v7855_v39, %v7854_v15 }
0x3d02   :  { %v7850_v3 = vrot.slane %v7849_v14, 1 }
0x3d03   :  { %v7857_v41 = vrot.slane %v7856_v37, 1 }
0x3d04   :  { %v7851_v16 = vadd.f32 %v7850_v3, %v7849_v14 }
0x3d05   :  { %v7858_v44 = vadd.f32 %v7857_v41, %v7856_v37 }
0x3d06   :  { %v7859_v43 = vmul.f32 %v7851_v16, %v8979_v20 }
0x3d07   :  { %v7860_v1 = vmul.f32 %v7858_v44, %v8979_v20 }
0x3d09   :  { %v7864_v40 = vsel %vm7863_vm0, %v7860_v1, %v7859_v43 }
0x3d0a   :  { %7867 = vst.msk [vmem:[#allocation2] sm:$0x3] %vm7866_vm1, %v7864_v40 }
0x3d0b   :  { %7878 = dma.vmem_to_hbm [thread:$0]  %s7874_s26, 32, %s7876_s22, [#allocation3]  }
0x3d0c   :  { %8821 = dma.done.wait [#allocation3], 32  }
0x3d0d   :  { %8822 = vsyncadd [#allocation3], 4294967264 }
0x3d0e   :  { %7883 = vsyncpa [#allocation3], 1 }

</bundles_post_ra>
